<compile_context>
chip_gen: v5e
topology: v5e:2x2
jax: 0.10.0
libtpu: 0.0.40
codegen_flags: <defaults>
</compile_context>

<pallas_src>
import functools

import jax
import jax.numpy as jnp
from jax import lax
from jax.experimental import pallas as pl
from jax.experimental.pallas import tpu as pltpu


# ----------------------------------------------------------------------------
# Pallas kernels
# ----------------------------------------------------------------------------

def _interp_planes(x_ref, awt_ref, ah_ref, *, C, H):
    """Bilinear x2 upsample of one batch element, channels unrolled.

    x_ref:   [1, C*H, W]  activations (compute dtype), W on the lane axis
    awt_ref: [W,  Wo]     column-interp matrix (transposed), Wo = 2W (+2)
    ah_ref:  [Ho, H]      row-interp matrix, Ho = 2H (+2)
    Returns a list of C planes [Ho, Wo] in f32.
    """
    cdt = x_ref.dtype
    # Column interp: a single lane-dense 2D MXU matmul over all C*H rows.
    u1 = jnp.dot(x_ref[0], awt_ref[...], preferred_element_type=jnp.float32)
    u1 = u1.astype(cdt)                                    # [C*H, Wo]
    ah = ah_ref[...]
    planes = []
    for c in range(C):
        rows = u1[c * H:(c + 1) * H, :]                    # sublane-aligned slice
        planes.append(jnp.dot(ah, rows, preferred_element_type=jnp.float32))
    return planes


def upsample_kernel(x_ref, awt_ref, ah_ref, o_ref, *, C, H):
    """Bilinear x2 upsample only (use_conv=False). o_ref: [1, C, 2H, 2W] f32."""
    planes = _interp_planes(x_ref, awt_ref, ah_ref, C=C, H=H)
    for c in range(C):
        o_ref[0, c] = planes[c]


def upsample_conv_kernel(x_ref, awt_ref, ah_ref, w_ref, b_ref, o_ref, *, C, H):
    """Fused bilinear x2 upsample + 3x3 'same' conv (small-C VPU conv path).

    The interp matrices are pre-padded with a zero row/col on each side, so
    the planes come out already zero-padded to [2H+2, 2W+2]; the conv is then
    9*C*C scalar-broadcast FMAs on shifted views of those planes.

    w_ref: SMEM [C*C*9] f32, index (co*C + ci)*9 + ky*3 + kx (torch OIHW order)
    b_ref: SMEM [C] f32
    o_ref: [1, C, 2H, 2W] f32
    """
    H2 = 2 * H
    planes = _interp_planes(x_ref, awt_ref, ah_ref, C=C, H=H)  # [H2+2, W2+2] each
    W2 = planes[0].shape[1] - 2

    accs = [jnp.zeros((H2, W2), jnp.float32) for _ in range(C)]
    for ci in range(C):
        for k in range(9):
            ky, kx = divmod(k, 3)
            tap = planes[ci][ky:ky + H2, kx:kx + W2]       # shifted view (VPU/XLU)
            for co in range(C):
                accs[co] = accs[co] + w_ref[(co * C + ci) * 9 + k] * tap
    for co in range(C):
        o_ref[0, co] = accs[co] + b_ref[co]


# ----------------------------------------------------------------------------
# Wrapper (all heavy compute and padding live inside the single kernel)
# ----------------------------------------------------------------------------

def _bilinear_matrix(n_in, n_out):
    """Interpolation matrix A (n_out x n_in) for align_corners=True resize."""
    if n_out == 1:
        return jnp.zeros((1, n_in), jnp.float32).at[0, 0].set(1.0)
    src = jnp.arange(n_out, dtype=jnp.float32) * ((n_in - 1) / (n_out - 1))
    i0 = jnp.clip(jnp.floor(src).astype(jnp.int32), 0, n_in - 1)
    i1 = jnp.clip(i0 + 1, 0, n_in - 1)
    w = src - i0.astype(jnp.float32)
    cols = jnp.arange(n_in)[None, :]
    return (jnp.where(cols == i0[:, None], 1.0 - w[:, None], 0.0)
            + jnp.where(cols == i1[:, None], w[:, None], 0.0)).astype(jnp.float32)


def upsample_forward(x_nchw, conv_w=None, conv_b=None, *, use_conv=True,
                     compute_dtype=jnp.bfloat16):
    """Pallas forward of the PyTorch Upsample module. NCHW in, NCHW out (f32)."""
    B, C, H, W = x_nchw.shape
    H2, W2 = 2 * H, 2 * W
    cdt = compute_dtype

    # Free reshape (NCHW is contiguous); bf16 cast halves input DMA bytes.
    x2d = x_nchw.reshape(B, C * H, W).astype(cdt)

    a_h = _bilinear_matrix(H, H2)                          # [H2, H]
    a_wT = _bilinear_matrix(W, W2).T                       # [W, W2]
    if use_conv:
        # Fold the conv's 'same' zero padding into the interp matrices: the
        # two matmuls then directly emit the zero-padded (H2+2, W2+2) planes.
        a_h = jnp.pad(a_h, ((1, 1), (0, 0)))
        a_wT = jnp.pad(a_wT, ((0, 0), (1, 1)))
    a_h = a_h.astype(cdt)
    a_wT = a_wT.astype(cdt)
    ho, wo = a_h.shape[0], a_wT.shape[1]

    in_specs = [
        pl.BlockSpec((1, C * H, W), lambda b: (b, 0, 0)),
        pl.BlockSpec((W, wo), lambda b: (0, 0)),
        pl.BlockSpec((ho, H), lambda b: (0, 0)),
    ]
    out_spec = pl.BlockSpec((1, C, H2, W2), lambda b: (b, 0, 0, 0))
    out_shape = jax.ShapeDtypeStruct((B, C, H2, W2), jnp.float32)
    cp = pltpu.CompilerParams(dimension_semantics=("parallel",))

    if not use_conv:
        kern = functools.partial(upsample_kernel, C=C, H=H)
        return pl.pallas_call(
            kern, out_shape=out_shape, grid=(B,),
            in_specs=in_specs, out_specs=out_spec, compiler_params=cp,
        )(x2d, a_wT, a_h)

    w_flat = conv_w.astype(jnp.float32).reshape(-1)        # OIHW flat order
    b_vec = conv_b.astype(jnp.float32).reshape(-1)
    kern = functools.partial(upsample_conv_kernel, C=C, H=H)
    return pl.pallas_call(
        kern, out_shape=out_shape, grid=(B,),
        in_specs=in_specs + [
            pl.BlockSpec(memory_space=pltpu.MemorySpace.SMEM),
            pl.BlockSpec(memory_space=pltpu.MemorySpace.SMEM),
        ],
        out_specs=out_spec, compiler_params=cp,
    )(x2d, a_wT, a_h, w_flat, b_vec)


# ----------------------------------------------------------------------------
# Pure-JAX reference (independent code path, exact f32, for correctness check)
# ----------------------------------------------------------------------------

def _reference_upsample(x_nchw):
    B, C, H, W = x_nchw.shape
    H2, W2 = 2 * H, 2 * W

    def coords(n_in, n_out):
        src = jnp.arange(n_out, dtype=jnp.float32) * ((n_in - 1) / (n_out - 1))
        i0 = jnp.clip(jnp.floor(src).astype(jnp.int32), 0, n_in - 1)
        i1 = jnp.clip(i0 + 1, 0, n_in - 1)
        w = src - i0.astype(jnp.float32)
        return i0, i1, w

    h0, h1, wh = coords(H, H2)
    w0, w1, ww = coords(W, W2)
    t = (x_nchw[:, :, h0, :] * (1.0 - wh)[None, None, :, None]
         + x_nchw[:, :, h1, :] * wh[None, None, :, None])
    return (t[:, :, :, w0] * (1.0 - ww)[None, None, None, :]
            + t[:, :, :, w1] * ww[None, None, None, :])


def _reference_conv3x3(u_nchw, conv_w, conv_b):
    y = lax.conv_general_dilated(
        u_nchw, conv_w, (1, 1), ((1, 1), (1, 1)),
        dimension_numbers=("NCHW", "OIHW", "NCHW"),
        precision=lax.Precision.HIGHEST)
    return y + conv_b.reshape(1, -1, 1, 1)


def reference_forward(x_nchw, conv_w, conv_b):
    return _reference_conv3x3(_reference_upsample(x_nchw), conv_w, conv_b)


# ----------------------------------------------------------------------------
# main
# ----------------------------------------------------------------------------

if __name__ == "__main__":
    B, C, H, W = 2, 4, 16, 16

    key = jax.random.PRNGKey(0)
    k1, k2, k3 = jax.random.split(key, 3)
    x = jax.random.normal(k1, (B, C, H, W), jnp.float32)
    conv_w = 0.1 * jax.random.normal(k2, (C, C, 3, 3), jnp.float32)
    conv_b = 0.05 * jax.random.normal(k3, (C,), jnp.float32)

    # Pallas forward (bf16 MXU operands, f32 accumulation).
    out = jax.block_until_ready(upsample_forward(x, conv_w, conv_b, use_conv=True))
    up = jax.block_until_ready(upsample_forward(x, use_conv=False))
    assert out.shape == (B, C, 2 * H, 2 * W), out.shape
    assert up.shape == (B, C, 2 * H, 2 * W), up.shape

    # Independent exact-f32 references.
    ref_out = jax.block_until_ready(reference_forward(x, conv_w, conv_b))
    ref_up = jax.block_until_ready(_reference_upsample(x))

    def maxerr(a, b):
        return float(jnp.max(jnp.abs(a - b)))

    def meanerr(a, b):
        return float(jnp.mean(jnp.abs(a - b)))

    # bf16 operand rounding (<= 2^-9 relative per rounding, ~4 roundings)
    # bounds the max-abs error vs the exact-f32 reference at a few 1e-2 for
    # N(0,1) data; mean-abs error stays a few 1e-3.
    e_up, m_up = maxerr(up, ref_up), meanerr(up, ref_up)
    assert e_up < 5e-2 and m_up < 1e-2, f"upsample path mismatch: {e_up}, {m_up}"
    e_out, m_out = maxerr(out, ref_out), meanerr(out, ref_out)
    assert e_out < 5e-2 and m_out < 1e-2, f"conv path mismatch: {e_out}, {m_out}"

    # Tight structural check of the in-kernel conv (f32 VPU FMAs, f32 SMEM
    # weights): the f32 reference conv applied to the Pallas upsample output
    # must match the fused kernel almost exactly (the bf16 interp rounding is
    # common to both sides and cancels).
    conv_iso = jax.block_until_ready(_reference_conv3x3(up, conv_w, conv_b))
    e_iso = maxerr(out, conv_iso)
    assert e_iso < 1e-3, f"fused conv stage mismatch: {e_iso}"

    print("KERNEL_OK")
</pallas_src>

<mosaic_0001>
module attributes {stable_mosaic.version = 11 : i64} {
  func.func @upsample_conv_kernel(%arg0: i32, %arg1: memref<1x64x16xbf16, #tpu.memory_space<vmem>>, %arg2: memref<16x34xbf16, #tpu.memory_space<vmem>>, %arg3: memref<34x16xbf16, #tpu.memory_space<vmem>>, %arg4: memref<144xf32, #tpu.memory_space<smem>>, %arg5: memref<4xf32, #tpu.memory_space<smem>>, %arg6: memref<1x4x32x32xf32, #tpu.memory_space<vmem>>) attributes {dimension_semantics = [#tpu.dimension_semantics<parallel>], iteration_bounds = array<i64: 2>, scalar_prefetch = 0 : i64, scratch_operands = 0 : i64, tpu.core_type = #tpu.core_type<tc>, window_params = [{transform_indices = @transform_0, window_bounds = array<i64: 1, 64, 16>}, {pipeline_mode = #tpu.pipeline_mode<synchronous>, transform_indices = @transform_1, window_bounds = array<i64: 16, 34>}, {pipeline_mode = #tpu.pipeline_mode<synchronous>, transform_indices = @transform_2, window_bounds = array<i64: 34, 16>}, {transform_indices = @transform_3, window_bounds = array<i64: 144>}, {transform_indices = @transform_4, window_bounds = array<i64: 4>}, {transform_indices = @transform_5, window_bounds = array<i64: 1, 4, 32, 32>}]} {
    %c0 = arith.constant 0 : index
    %c0_0 = arith.constant 0 : index
    %c0_1 = arith.constant 0 : index
    %0 = vector.load %arg1[%c0, %c0_0, %c0_1] : memref<1x64x16xbf16, #tpu.memory_space<vmem>>, vector<1x64x16xbf16>
    %1 = vector.shape_cast %0 : vector<1x64x16xbf16> to vector<64x16xbf16>
    %c0_2 = arith.constant 0 : index
    %c0_3 = arith.constant 0 : index
    %2 = vector.load %arg2[%c0_2, %c0_3] : memref<16x34xbf16, #tpu.memory_space<vmem>>, vector<16x34xbf16>
    %cst = arith.constant dense<0.000000e+00> : vector<64x34xf32>
    %3 = tpu.matmul %1, %2, %cst {dimension_numbers = #tpu.dot_dimension_numbers<[1], [0], [0], [1], [0, 0, 1, 1], [], []>} : vector<64x16xbf16>, vector<16x34xbf16>, vector<64x34xf32> -> vector<64x34xf32>
    %4 = arith.truncf %3 : vector<64x34xf32> to vector<64x34xbf16>
    %c0_4 = arith.constant 0 : index
    %c0_5 = arith.constant 0 : index
    %5 = vector.load %arg3[%c0_4, %c0_5] : memref<34x16xbf16, #tpu.memory_space<vmem>>, vector<34x16xbf16>
    %6 = vector.extract_strided_slice %4 {offsets = [0, 0], sizes = [16, 34], strides = [1, 1]} : vector<64x34xbf16> to vector<16x34xbf16>
    %cst_6 = arith.constant dense<0.000000e+00> : vector<34x34xf32>
    %7 = tpu.matmul %5, %6, %cst_6 {dimension_numbers = #tpu.dot_dimension_numbers<[1], [0], [0], [1], [0, 0, 1, 1], [], []>} : vector<34x16xbf16>, vector<16x34xbf16>, vector<34x34xf32> -> vector<34x34xf32>
    %8 = vector.extract_strided_slice %4 {offsets = [16, 0], sizes = [16, 34], strides = [1, 1]} : vector<64x34xbf16> to vector<16x34xbf16>
    %cst_7 = arith.constant dense<0.000000e+00> : vector<34x34xf32>
    %9 = tpu.matmul %5, %8, %cst_7 {dimension_numbers = #tpu.dot_dimension_numbers<[1], [0], [0], [1], [0, 0, 1, 1], [], []>} : vector<34x16xbf16>, vector<16x34xbf16>, vector<34x34xf32> -> vector<34x34xf32>
    %10 = vector.extract_strided_slice %4 {offsets = [32, 0], sizes = [16, 34], strides = [1, 1]} : vector<64x34xbf16> to vector<16x34xbf16>
    %cst_8 = arith.constant dense<0.000000e+00> : vector<34x34xf32>
    %11 = tpu.matmul %5, %10, %cst_8 {dimension_numbers = #tpu.dot_dimension_numbers<[1], [0], [0], [1], [0, 0, 1, 1], [], []>} : vector<34x16xbf16>, vector<16x34xbf16>, vector<34x34xf32> -> vector<34x34xf32>
    %12 = vector.extract_strided_slice %4 {offsets = [48, 0], sizes = [16, 34], strides = [1, 1]} : vector<64x34xbf16> to vector<16x34xbf16>
    %cst_9 = arith.constant dense<0.000000e+00> : vector<34x34xf32>
    %13 = tpu.matmul %5, %12, %cst_9 {dimension_numbers = #tpu.dot_dimension_numbers<[1], [0], [0], [1], [0, 0, 1, 1], [], []>} : vector<34x16xbf16>, vector<16x34xbf16>, vector<34x34xf32> -> vector<34x34xf32>
    %cst_10 = arith.constant 0.000000e+00 : f32
    %14 = vector.broadcast %cst_10 : f32 to vector<32x32xf32>
    %cst_11 = arith.constant 0.000000e+00 : f32
    %15 = vector.broadcast %cst_11 : f32 to vector<32x32xf32>
    %cst_12 = arith.constant 0.000000e+00 : f32
    %16 = vector.broadcast %cst_12 : f32 to vector<32x32xf32>
    %cst_13 = arith.constant 0.000000e+00 : f32
    %17 = vector.broadcast %cst_13 : f32 to vector<32x32xf32>
    %18 = vector.extract_strided_slice %7 {offsets = [0, 0], sizes = [32, 32], strides = [1, 1]} : vector<34x34xf32> to vector<32x32xf32>
    %c0_14 = arith.constant 0 : index
    %19 = memref.load %arg4[%c0_14] : memref<144xf32, #tpu.memory_space<smem>>
    %20 = vector.broadcast %19 : f32 to vector<32x32xf32>
    %21 = arith.mulf %20, %18 : vector<32x32xf32>
    %22 = arith.addf %14, %21 : vector<32x32xf32>
    %c36 = arith.constant 36 : index
    %23 = memref.load %arg4[%c36] : memref<144xf32, #tpu.memory_space<smem>>
    %24 = vector.broadcast %23 : f32 to vector<32x32xf32>
    %25 = arith.mulf %24, %18 : vector<32x32xf32>
    %26 = arith.addf %15, %25 : vector<32x32xf32>
    %c72 = arith.constant 72 : index
    %27 = memref.load %arg4[%c72] : memref<144xf32, #tpu.memory_space<smem>>
    %28 = vector.broadcast %27 : f32 to vector<32x32xf32>
    %29 = arith.mulf %28, %18 : vector<32x32xf32>
    %30 = arith.addf %16, %29 : vector<32x32xf32>
    %c108 = arith.constant 108 : index
    %31 = memref.load %arg4[%c108] : memref<144xf32, #tpu.memory_space<smem>>
    %32 = vector.broadcast %31 : f32 to vector<32x32xf32>
    %33 = arith.mulf %32, %18 : vector<32x32xf32>
    %34 = arith.addf %17, %33 : vector<32x32xf32>
    %35 = vector.extract_strided_slice %7 {offsets = [0, 1], sizes = [32, 32], strides = [1, 1]} : vector<34x34xf32> to vector<32x32xf32>
    %c1 = arith.constant 1 : index
    %36 = memref.load %arg4[%c1] : memref<144xf32, #tpu.memory_space<smem>>
    %37 = vector.broadcast %36 : f32 to vector<32x32xf32>
    %38 = arith.mulf %37, %35 : vector<32x32xf32>
    %39 = arith.addf %22, %38 : vector<32x32xf32>
    %c37 = arith.constant 37 : index
    %40 = memref.load %arg4[%c37] : memref<144xf32, #tpu.memory_space<smem>>
    %41 = vector.broadcast %40 : f32 to vector<32x32xf32>
    %42 = arith.mulf %41, %35 : vector<32x32xf32>
    %43 = arith.addf %26, %42 : vector<32x32xf32>
    %c73 = arith.constant 73 : index
    %44 = memref.load %arg4[%c73] : memref<144xf32, #tpu.memory_space<smem>>
    %45 = vector.broadcast %44 : f32 to vector<32x32xf32>
    %46 = arith.mulf %45, %35 : vector<32x32xf32>
    %47 = arith.addf %30, %46 : vector<32x32xf32>
    %c109 = arith.constant 109 : index
    %48 = memref.load %arg4[%c109] : memref<144xf32, #tpu.memory_space<smem>>
    %49 = vector.broadcast %48 : f32 to vector<32x32xf32>
    %50 = arith.mulf %49, %35 : vector<32x32xf32>
    %51 = arith.addf %34, %50 : vector<32x32xf32>
    %52 = vector.extract_strided_slice %7 {offsets = [0, 2], sizes = [32, 32], strides = [1, 1]} : vector<34x34xf32> to vector<32x32xf32>
    %c2 = arith.constant 2 : index
    %53 = memref.load %arg4[%c2] : memref<144xf32, #tpu.memory_space<smem>>
    %54 = vector.broadcast %53 : f32 to vector<32x32xf32>
    %55 = arith.mulf %54, %52 : vector<32x32xf32>
    %56 = arith.addf %39, %55 : vector<32x32xf32>
    %c38 = arith.constant 38 : index
    %57 = memref.load %arg4[%c38] : memref<144xf32, #tpu.memory_space<smem>>
    %58 = vector.broadcast %57 : f32 to vector<32x32xf32>
    %59 = arith.mulf %58, %52 : vector<32x32xf32>
    %60 = arith.addf %43, %59 : vector<32x32xf32>
    %c74 = arith.constant 74 : index
    %61 = memref.load %arg4[%c74] : memref<144xf32, #tpu.memory_space<smem>>
    %62 = vector.broadcast %61 : f32 to vector<32x32xf32>
    %63 = arith.mulf %62, %52 : vector<32x32xf32>
    %64 = arith.addf %47, %63 : vector<32x32xf32>
    %c110 = arith.constant 110 : index
    %65 = memref.load %arg4[%c110] : memref<144xf32, #tpu.memory_space<smem>>
    %66 = vector.broadcast %65 : f32 to vector<32x32xf32>
    %67 = arith.mulf %66, %52 : vector<32x32xf32>
    %68 = arith.addf %51, %67 : vector<32x32xf32>
    %69 = vector.extract_strided_slice %7 {offsets = [1, 0], sizes = [32, 32], strides = [1, 1]} : vector<34x34xf32> to vector<32x32xf32>
    %c3 = arith.constant 3 : index
    %70 = memref.load %arg4[%c3] : memref<144xf32, #tpu.memory_space<smem>>
    %71 = vector.broadcast %70 : f32 to vector<32x32xf32>
    %72 = arith.mulf %71, %69 : vector<32x32xf32>
    %73 = arith.addf %56, %72 : vector<32x32xf32>
    %c39 = arith.constant 39 : index
    %74 = memref.load %arg4[%c39] : memref<144xf32, #tpu.memory_space<smem>>
    %75 = vector.broadcast %74 : f32 to vector<32x32xf32>
    %76 = arith.mulf %75, %69 : vector<32x32xf32>
    %77 = arith.addf %60, %76 : vector<32x32xf32>
    %c75 = arith.constant 75 : index
    %78 = memref.load %arg4[%c75] : memref<144xf32, #tpu.memory_space<smem>>
    %79 = vector.broadcast %78 : f32 to vector<32x32xf32>
    %80 = arith.mulf %79, %69 : vector<32x32xf32>
    %81 = arith.addf %64, %80 : vector<32x32xf32>
    %c111 = arith.constant 111 : index
    %82 = memref.load %arg4[%c111] : memref<144xf32, #tpu.memory_space<smem>>
    %83 = vector.broadcast %82 : f32 to vector<32x32xf32>
    %84 = arith.mulf %83, %69 : vector<32x32xf32>
    %85 = arith.addf %68, %84 : vector<32x32xf32>
    %86 = vector.extract_strided_slice %7 {offsets = [1, 1], sizes = [32, 32], strides = [1, 1]} : vector<34x34xf32> to vector<32x32xf32>
    %c4 = arith.constant 4 : index
    %87 = memref.load %arg4[%c4] : memref<144xf32, #tpu.memory_space<smem>>
    %88 = vector.broadcast %87 : f32 to vector<32x32xf32>
    %89 = arith.mulf %88, %86 : vector<32x32xf32>
    %90 = arith.addf %73, %89 : vector<32x32xf32>
    %c40 = arith.constant 40 : index
    %91 = memref.load %arg4[%c40] : memref<144xf32, #tpu.memory_space<smem>>
    %92 = vector.broadcast %91 : f32 to vector<32x32xf32>
    %93 = arith.mulf %92, %86 : vector<32x32xf32>
    %94 = arith.addf %77, %93 : vector<32x32xf32>
    %c76 = arith.constant 76 : index
    %95 = memref.load %arg4[%c76] : memref<144xf32, #tpu.memory_space<smem>>
    %96 = vector.broadcast %95 : f32 to vector<32x32xf32>
    %97 = arith.mulf %96, %86 : vector<32x32xf32>
    %98 = arith.addf %81, %97 : vector<32x32xf32>
    %c112 = arith.constant 112 : index
    %99 = memref.load %arg4[%c112] : memref<144xf32, #tpu.memory_space<smem>>
    %100 = vector.broadcast %99 : f32 to vector<32x32xf32>
    %101 = arith.mulf %100, %86 : vector<32x32xf32>
    %102 = arith.addf %85, %101 : vector<32x32xf32>
    %103 = vector.extract_strided_slice %7 {offsets = [1, 2], sizes = [32, 32], strides = [1, 1]} : vector<34x34xf32> to vector<32x32xf32>
    %c5 = arith.constant 5 : index
    %104 = memref.load %arg4[%c5] : memref<144xf32, #tpu.memory_space<smem>>
    %105 = vector.broadcast %104 : f32 to vector<32x32xf32>
    %106 = arith.mulf %105, %103 : vector<32x32xf32>
    %107 = arith.addf %90, %106 : vector<32x32xf32>
    %c41 = arith.constant 41 : index
    %108 = memref.load %arg4[%c41] : memref<144xf32, #tpu.memory_space<smem>>
    %109 = vector.broadcast %108 : f32 to vector<32x32xf32>
    %110 = arith.mulf %109, %103 : vector<32x32xf32>
    %111 = arith.addf %94, %110 : vector<32x32xf32>
    %c77 = arith.constant 77 : index
    %112 = memref.load %arg4[%c77] : memref<144xf32, #tpu.memory_space<smem>>
    %113 = vector.broadcast %112 : f32 to vector<32x32xf32>
    %114 = arith.mulf %113, %103 : vector<32x32xf32>
    %115 = arith.addf %98, %114 : vector<32x32xf32>
    %c113 = arith.constant 113 : index
    %116 = memref.load %arg4[%c113] : memref<144xf32, #tpu.memory_space<smem>>
    %117 = vector.broadcast %116 : f32 to vector<32x32xf32>
    %118 = arith.mulf %117, %103 : vector<32x32xf32>
    %119 = arith.addf %102, %118 : vector<32x32xf32>
    %120 = vector.extract_strided_slice %7 {offsets = [2, 0], sizes = [32, 32], strides = [1, 1]} : vector<34x34xf32> to vector<32x32xf32>
    %c6 = arith.constant 6 : index
    %121 = memref.load %arg4[%c6] : memref<144xf32, #tpu.memory_space<smem>>
    %122 = vector.broadcast %121 : f32 to vector<32x32xf32>
    %123 = arith.mulf %122, %120 : vector<32x32xf32>
    %124 = arith.addf %107, %123 : vector<32x32xf32>
    %c42 = arith.constant 42 : index
    %125 = memref.load %arg4[%c42] : memref<144xf32, #tpu.memory_space<smem>>
    %126 = vector.broadcast %125 : f32 to vector<32x32xf32>
    %127 = arith.mulf %126, %120 : vector<32x32xf32>
    %128 = arith.addf %111, %127 : vector<32x32xf32>
    %c78 = arith.constant 78 : index
    %129 = memref.load %arg4[%c78] : memref<144xf32, #tpu.memory_space<smem>>
    %130 = vector.broadcast %129 : f32 to vector<32x32xf32>
    %131 = arith.mulf %130, %120 : vector<32x32xf32>
    %132 = arith.addf %115, %131 : vector<32x32xf32>
    %c114 = arith.constant 114 : index
    %133 = memref.load %arg4[%c114] : memref<144xf32, #tpu.memory_space<smem>>
    %134 = vector.broadcast %133 : f32 to vector<32x32xf32>
    %135 = arith.mulf %134, %120 : vector<32x32xf32>
    %136 = arith.addf %119, %135 : vector<32x32xf32>
    %137 = vector.extract_strided_slice %7 {offsets = [2, 1], sizes = [32, 32], strides = [1, 1]} : vector<34x34xf32> to vector<32x32xf32>
    %c7 = arith.constant 7 : index
    %138 = memref.load %arg4[%c7] : memref<144xf32, #tpu.memory_space<smem>>
    %139 = vector.broadcast %138 : f32 to vector<32x32xf32>
    %140 = arith.mulf %139, %137 : vector<32x32xf32>
    %141 = arith.addf %124, %140 : vector<32x32xf32>
    %c43 = arith.constant 43 : index
    %142 = memref.load %arg4[%c43] : memref<144xf32, #tpu.memory_space<smem>>
    %143 = vector.broadcast %142 : f32 to vector<32x32xf32>
    %144 = arith.mulf %143, %137 : vector<32x32xf32>
    %145 = arith.addf %128, %144 : vector<32x32xf32>
    %c79 = arith.constant 79 : index
    %146 = memref.load %arg4[%c79] : memref<144xf32, #tpu.memory_space<smem>>
    %147 = vector.broadcast %146 : f32 to vector<32x32xf32>
    %148 = arith.mulf %147, %137 : vector<32x32xf32>
    %149 = arith.addf %132, %148 : vector<32x32xf32>
    %c115 = arith.constant 115 : index
    %150 = memref.load %arg4[%c115] : memref<144xf32, #tpu.memory_space<smem>>
    %151 = vector.broadcast %150 : f32 to vector<32x32xf32>
    %152 = arith.mulf %151, %137 : vector<32x32xf32>
    %153 = arith.addf %136, %152 : vector<32x32xf32>
    %154 = vector.extract_strided_slice %7 {offsets = [2, 2], sizes = [32, 32], strides = [1, 1]} : vector<34x34xf32> to vector<32x32xf32>
    %c8 = arith.constant 8 : index
    %155 = memref.load %arg4[%c8] : memref<144xf32, #tpu.memory_space<smem>>
    %156 = vector.broadcast %155 : f32 to vector<32x32xf32>
    %157 = arith.mulf %156, %154 : vector<32x32xf32>
    %158 = arith.addf %141, %157 : vector<32x32xf32>
    %c44 = arith.constant 44 : index
    %159 = memref.load %arg4[%c44] : memref<144xf32, #tpu.memory_space<smem>>
    %160 = vector.broadcast %159 : f32 to vector<32x32xf32>
    %161 = arith.mulf %160, %154 : vector<32x32xf32>
    %162 = arith.addf %145, %161 : vector<32x32xf32>
    %c80 = arith.constant 80 : index
    %163 = memref.load %arg4[%c80] : memref<144xf32, #tpu.memory_space<smem>>
    %164 = vector.broadcast %163 : f32 to vector<32x32xf32>
    %165 = arith.mulf %164, %154 : vector<32x32xf32>
    %166 = arith.addf %149, %165 : vector<32x32xf32>
    %c116 = arith.constant 116 : index
    %167 = memref.load %arg4[%c116] : memref<144xf32, #tpu.memory_space<smem>>
    %168 = vector.broadcast %167 : f32 to vector<32x32xf32>
    %169 = arith.mulf %168, %154 : vector<32x32xf32>
    %170 = arith.addf %153, %169 : vector<32x32xf32>
    %171 = vector.extract_strided_slice %9 {offsets = [0, 0], sizes = [32, 32], strides = [1, 1]} : vector<34x34xf32> to vector<32x32xf32>
    %c9 = arith.constant 9 : index
    %172 = memref.load %arg4[%c9] : memref<144xf32, #tpu.memory_space<smem>>
    %173 = vector.broadcast %172 : f32 to vector<32x32xf32>
    %174 = arith.mulf %173, %171 : vector<32x32xf32>
    %175 = arith.addf %158, %174 : vector<32x32xf32>
    %c45 = arith.constant 45 : index
    %176 = memref.load %arg4[%c45] : memref<144xf32, #tpu.memory_space<smem>>
    %177 = vector.broadcast %176 : f32 to vector<32x32xf32>
    %178 = arith.mulf %177, %171 : vector<32x32xf32>
    %179 = arith.addf %162, %178 : vector<32x32xf32>
    %c81 = arith.constant 81 : index
    %180 = memref.load %arg4[%c81] : memref<144xf32, #tpu.memory_space<smem>>
    %181 = vector.broadcast %180 : f32 to vector<32x32xf32>
    %182 = arith.mulf %181, %171 : vector<32x32xf32>
    %183 = arith.addf %166, %182 : vector<32x32xf32>
    %c117 = arith.constant 117 : index
    %184 = memref.load %arg4[%c117] : memref<144xf32, #tpu.memory_space<smem>>
    %185 = vector.broadcast %184 : f32 to vector<32x32xf32>
    %186 = arith.mulf %185, %171 : vector<32x32xf32>
    %187 = arith.addf %170, %186 : vector<32x32xf32>
    %188 = vector.extract_strided_slice %9 {offsets = [0, 1], sizes = [32, 32], strides = [1, 1]} : vector<34x34xf32> to vector<32x32xf32>
    %c10 = arith.constant 10 : index
    %189 = memref.load %arg4[%c10] : memref<144xf32, #tpu.memory_space<smem>>
    %190 = vector.broadcast %189 : f32 to vector<32x32xf32>
    %191 = arith.mulf %190, %188 : vector<32x32xf32>
    %192 = arith.addf %175, %191 : vector<32x32xf32>
    %c46 = arith.constant 46 : index
    %193 = memref.load %arg4[%c46] : memref<144xf32, #tpu.memory_space<smem>>
    %194 = vector.broadcast %193 : f32 to vector<32x32xf32>
    %195 = arith.mulf %194, %188 : vector<32x32xf32>
    %196 = arith.addf %179, %195 : vector<32x32xf32>
    %c82 = arith.constant 82 : index
    %197 = memref.load %arg4[%c82] : memref<144xf32, #tpu.memory_space<smem>>
    %198 = vector.broadcast %197 : f32 to vector<32x32xf32>
    %199 = arith.mulf %198, %188 : vector<32x32xf32>
    %200 = arith.addf %183, %199 : vector<32x32xf32>
    %c118 = arith.constant 118 : index
    %201 = memref.load %arg4[%c118] : memref<144xf32, #tpu.memory_space<smem>>
    %202 = vector.broadcast %201 : f32 to vector<32x32xf32>
    %203 = arith.mulf %202, %188 : vector<32x32xf32>
    %204 = arith.addf %187, %203 : vector<32x32xf32>
    %205 = vector.extract_strided_slice %9 {offsets = [0, 2], sizes = [32, 32], strides = [1, 1]} : vector<34x34xf32> to vector<32x32xf32>
    %c11 = arith.constant 11 : index
    %206 = memref.load %arg4[%c11] : memref<144xf32, #tpu.memory_space<smem>>
    %207 = vector.broadcast %206 : f32 to vector<32x32xf32>
    %208 = arith.mulf %207, %205 : vector<32x32xf32>
    %209 = arith.addf %192, %208 : vector<32x32xf32>
    %c47 = arith.constant 47 : index
    %210 = memref.load %arg4[%c47] : memref<144xf32, #tpu.memory_space<smem>>
    %211 = vector.broadcast %210 : f32 to vector<32x32xf32>
    %212 = arith.mulf %211, %205 : vector<32x32xf32>
    %213 = arith.addf %196, %212 : vector<32x32xf32>
    %c83 = arith.constant 83 : index
    %214 = memref.load %arg4[%c83] : memref<144xf32, #tpu.memory_space<smem>>
    %215 = vector.broadcast %214 : f32 to vector<32x32xf32>
    %216 = arith.mulf %215, %205 : vector<32x32xf32>
    %217 = arith.addf %200, %216 : vector<32x32xf32>
    %c119 = arith.constant 119 : index
    %218 = memref.load %arg4[%c119] : memref<144xf32, #tpu.memory_space<smem>>
    %219 = vector.broadcast %218 : f32 to vector<32x32xf32>
    %220 = arith.mulf %219, %205 : vector<32x32xf32>
    %221 = arith.addf %204, %220 : vector<32x32xf32>
    %222 = vector.extract_strided_slice %9 {offsets = [1, 0], sizes = [32, 32], strides = [1, 1]} : vector<34x34xf32> to vector<32x32xf32>
    %c12 = arith.constant 12 : index
    %223 = memref.load %arg4[%c12] : memref<144xf32, #tpu.memory_space<smem>>
    %224 = vector.broadcast %223 : f32 to vector<32x32xf32>
    %225 = arith.mulf %224, %222 : vector<32x32xf32>
    %226 = arith.addf %209, %225 : vector<32x32xf32>
    %c48 = arith.constant 48 : index
    %227 = memref.load %arg4[%c48] : memref<144xf32, #tpu.memory_space<smem>>
    %228 = vector.broadcast %227 : f32 to vector<32x32xf32>
    %229 = arith.mulf %228, %222 : vector<32x32xf32>
    %230 = arith.addf %213, %229 : vector<32x32xf32>
    %c84 = arith.constant 84 : index
    %231 = memref.load %arg4[%c84] : memref<144xf32, #tpu.memory_space<smem>>
    %232 = vector.broadcast %231 : f32 to vector<32x32xf32>
    %233 = arith.mulf %232, %222 : vector<32x32xf32>
    %234 = arith.addf %217, %233 : vector<32x32xf32>
    %c120 = arith.constant 120 : index
    %235 = memref.load %arg4[%c120] : memref<144xf32, #tpu.memory_space<smem>>
    %236 = vector.broadcast %235 : f32 to vector<32x32xf32>
    %237 = arith.mulf %236, %222 : vector<32x32xf32>
    %238 = arith.addf %221, %237 : vector<32x32xf32>
    %239 = vector.extract_strided_slice %9 {offsets = [1, 1], sizes = [32, 32], strides = [1, 1]} : vector<34x34xf32> to vector<32x32xf32>
    %c13 = arith.constant 13 : index
    %240 = memref.load %arg4[%c13] : memref<144xf32, #tpu.memory_space<smem>>
    %241 = vector.broadcast %240 : f32 to vector<32x32xf32>
    %242 = arith.mulf %241, %239 : vector<32x32xf32>
    %243 = arith.addf %226, %242 : vector<32x32xf32>
    %c49 = arith.constant 49 : index
    %244 = memref.load %arg4[%c49] : memref<144xf32, #tpu.memory_space<smem>>
    %245 = vector.broadcast %244 : f32 to vector<32x32xf32>
    %246 = arith.mulf %245, %239 : vector<32x32xf32>
    %247 = arith.addf %230, %246 : vector<32x32xf32>
    %c85 = arith.constant 85 : index
    %248 = memref.load %arg4[%c85] : memref<144xf32, #tpu.memory_space<smem>>
    %249 = vector.broadcast %248 : f32 to vector<32x32xf32>
    %250 = arith.mulf %249, %239 : vector<32x32xf32>
    %251 = arith.addf %234, %250 : vector<32x32xf32>
    %c121 = arith.constant 121 : index
    %252 = memref.load %arg4[%c121] : memref<144xf32, #tpu.memory_space<smem>>
    %253 = vector.broadcast %252 : f32 to vector<32x32xf32>
    %254 = arith.mulf %253, %239 : vector<32x32xf32>
    %255 = arith.addf %238, %254 : vector<32x32xf32>
    %256 = vector.extract_strided_slice %9 {offsets = [1, 2], sizes = [32, 32], strides = [1, 1]} : vector<34x34xf32> to vector<32x32xf32>
    %c14 = arith.constant 14 : index
    %257 = memref.load %arg4[%c14] : memref<144xf32, #tpu.memory_space<smem>>
    %258 = vector.broadcast %257 : f32 to vector<32x32xf32>
    %259 = arith.mulf %258, %256 : vector<32x32xf32>
    %260 = arith.addf %243, %259 : vector<32x32xf32>
    %c50 = arith.constant 50 : index
    %261 = memref.load %arg4[%c50] : memref<144xf32, #tpu.memory_space<smem>>
    %262 = vector.broadcast %261 : f32 to vector<32x32xf32>
    %263 = arith.mulf %262, %256 : vector<32x32xf32>
    %264 = arith.addf %247, %263 : vector<32x32xf32>
    %c86 = arith.constant 86 : index
    %265 = memref.load %arg4[%c86] : memref<144xf32, #tpu.memory_space<smem>>
    %266 = vector.broadcast %265 : f32 to vector<32x32xf32>
    %267 = arith.mulf %266, %256 : vector<32x32xf32>
    %268 = arith.addf %251, %267 : vector<32x32xf32>
    %c122 = arith.constant 122 : index
    %269 = memref.load %arg4[%c122] : memref<144xf32, #tpu.memory_space<smem>>
    %270 = vector.broadcast %269 : f32 to vector<32x32xf32>
    %271 = arith.mulf %270, %256 : vector<32x32xf32>
    %272 = arith.addf %255, %271 : vector<32x32xf32>
    %273 = vector.extract_strided_slice %9 {offsets = [2, 0], sizes = [32, 32], strides = [1, 1]} : vector<34x34xf32> to vector<32x32xf32>
    %c15 = arith.constant 15 : index
    %274 = memref.load %arg4[%c15] : memref<144xf32, #tpu.memory_space<smem>>
    %275 = vector.broadcast %274 : f32 to vector<32x32xf32>
    %276 = arith.mulf %275, %273 : vector<32x32xf32>
    %277 = arith.addf %260, %276 : vector<32x32xf32>
    %c51 = arith.constant 51 : index
    %278 = memref.load %arg4[%c51] : memref<144xf32, #tpu.memory_space<smem>>
    %279 = vector.broadcast %278 : f32 to vector<32x32xf32>
    %280 = arith.mulf %279, %273 : vector<32x32xf32>
    %281 = arith.addf %264, %280 : vector<32x32xf32>
    %c87 = arith.constant 87 : index
    %282 = memref.load %arg4[%c87] : memref<144xf32, #tpu.memory_space<smem>>
    %283 = vector.broadcast %282 : f32 to vector<32x32xf32>
    %284 = arith.mulf %283, %273 : vector<32x32xf32>
    %285 = arith.addf %268, %284 : vector<32x32xf32>
    %c123 = arith.constant 123 : index
    %286 = memref.load %arg4[%c123] : memref<144xf32, #tpu.memory_space<smem>>
    %287 = vector.broadcast %286 : f32 to vector<32x32xf32>
    %288 = arith.mulf %287, %273 : vector<32x32xf32>
    %289 = arith.addf %272, %288 : vector<32x32xf32>
    %290 = vector.extract_strided_slice %9 {offsets = [2, 1], sizes = [32, 32], strides = [1, 1]} : vector<34x34xf32> to vector<32x32xf32>
    %c16 = arith.constant 16 : index
    %291 = memref.load %arg4[%c16] : memref<144xf32, #tpu.memory_space<smem>>
    %292 = vector.broadcast %291 : f32 to vector<32x32xf32>
    %293 = arith.mulf %292, %290 : vector<32x32xf32>
    %294 = arith.addf %277, %293 : vector<32x32xf32>
    %c52 = arith.constant 52 : index
    %295 = memref.load %arg4[%c52] : memref<144xf32, #tpu.memory_space<smem>>
    %296 = vector.broadcast %295 : f32 to vector<32x32xf32>
    %297 = arith.mulf %296, %290 : vector<32x32xf32>
    %298 = arith.addf %281, %297 : vector<32x32xf32>
    %c88 = arith.constant 88 : index
    %299 = memref.load %arg4[%c88] : memref<144xf32, #tpu.memory_space<smem>>
    %300 = vector.broadcast %299 : f32 to vector<32x32xf32>
    %301 = arith.mulf %300, %290 : vector<32x32xf32>
    %302 = arith.addf %285, %301 : vector<32x32xf32>
    %c124 = arith.constant 124 : index
    %303 = memref.load %arg4[%c124] : memref<144xf32, #tpu.memory_space<smem>>
    %304 = vector.broadcast %303 : f32 to vector<32x32xf32>
    %305 = arith.mulf %304, %290 : vector<32x32xf32>
    %306 = arith.addf %289, %305 : vector<32x32xf32>
    %307 = vector.extract_strided_slice %9 {offsets = [2, 2], sizes = [32, 32], strides = [1, 1]} : vector<34x34xf32> to vector<32x32xf32>
    %c17 = arith.constant 17 : index
    %308 = memref.load %arg4[%c17] : memref<144xf32, #tpu.memory_space<smem>>
    %309 = vector.broadcast %308 : f32 to vector<32x32xf32>
    %310 = arith.mulf %309, %307 : vector<32x32xf32>
    %311 = arith.addf %294, %310 : vector<32x32xf32>
    %c53 = arith.constant 53 : index
    %312 = memref.load %arg4[%c53] : memref<144xf32, #tpu.memory_space<smem>>
    %313 = vector.broadcast %312 : f32 to vector<32x32xf32>
    %314 = arith.mulf %313, %307 : vector<32x32xf32>
    %315 = arith.addf %298, %314 : vector<32x32xf32>
    %c89 = arith.constant 89 : index
    %316 = memref.load %arg4[%c89] : memref<144xf32, #tpu.memory_space<smem>>
    %317 = vector.broadcast %316 : f32 to vector<32x32xf32>
    %318 = arith.mulf %317, %307 : vector<32x32xf32>
    %319 = arith.addf %302, %318 : vector<32x32xf32>
    %c125 = arith.constant 125 : index
    %320 = memref.load %arg4[%c125] : memref<144xf32, #tpu.memory_space<smem>>
    %321 = vector.broadcast %320 : f32 to vector<32x32xf32>
    %322 = arith.mulf %321, %307 : vector<32x32xf32>
    %323 = arith.addf %306, %322 : vector<32x32xf32>
    %324 = vector.extract_strided_slice %11 {offsets = [0, 0], sizes = [32, 32], strides = [1, 1]} : vector<34x34xf32> to vector<32x32xf32>
    %c18 = arith.constant 18 : index
    %325 = memref.load %arg4[%c18] : memref<144xf32, #tpu.memory_space<smem>>
    %326 = vector.broadcast %325 : f32 to vector<32x32xf32>
    %327 = arith.mulf %326, %324 : vector<32x32xf32>
    %328 = arith.addf %311, %327 : vector<32x32xf32>
    %c54 = arith.constant 54 : index
    %329 = memref.load %arg4[%c54] : memref<144xf32, #tpu.memory_space<smem>>
    %330 = vector.broadcast %329 : f32 to vector<32x32xf32>
    %331 = arith.mulf %330, %324 : vector<32x32xf32>
    %332 = arith.addf %315, %331 : vector<32x32xf32>
    %c90 = arith.constant 90 : index
    %333 = memref.load %arg4[%c90] : memref<144xf32, #tpu.memory_space<smem>>
    %334 = vector.broadcast %333 : f32 to vector<32x32xf32>
    %335 = arith.mulf %334, %324 : vector<32x32xf32>
    %336 = arith.addf %319, %335 : vector<32x32xf32>
    %c126 = arith.constant 126 : index
    %337 = memref.load %arg4[%c126] : memref<144xf32, #tpu.memory_space<smem>>
    %338 = vector.broadcast %337 : f32 to vector<32x32xf32>
    %339 = arith.mulf %338, %324 : vector<32x32xf32>
    %340 = arith.addf %323, %339 : vector<32x32xf32>
    %341 = vector.extract_strided_slice %11 {offsets = [0, 1], sizes = [32, 32], strides = [1, 1]} : vector<34x34xf32> to vector<32x32xf32>
    %c19 = arith.constant 19 : index
    %342 = memref.load %arg4[%c19] : memref<144xf32, #tpu.memory_space<smem>>
    %343 = vector.broadcast %342 : f32 to vector<32x32xf32>
    %344 = arith.mulf %343, %341 : vector<32x32xf32>
    %345 = arith.addf %328, %344 : vector<32x32xf32>
    %c55 = arith.constant 55 : index
    %346 = memref.load %arg4[%c55] : memref<144xf32, #tpu.memory_space<smem>>
    %347 = vector.broadcast %346 : f32 to vector<32x32xf32>
    %348 = arith.mulf %347, %341 : vector<32x32xf32>
    %349 = arith.addf %332, %348 : vector<32x32xf32>
    %c91 = arith.constant 91 : index
    %350 = memref.load %arg4[%c91] : memref<144xf32, #tpu.memory_space<smem>>
    %351 = vector.broadcast %350 : f32 to vector<32x32xf32>
    %352 = arith.mulf %351, %341 : vector<32x32xf32>
    %353 = arith.addf %336, %352 : vector<32x32xf32>
    %c127 = arith.constant 127 : index
    %354 = memref.load %arg4[%c127] : memref<144xf32, #tpu.memory_space<smem>>
    %355 = vector.broadcast %354 : f32 to vector<32x32xf32>
    %356 = arith.mulf %355, %341 : vector<32x32xf32>
    %357 = arith.addf %340, %356 : vector<32x32xf32>
    %358 = vector.extract_strided_slice %11 {offsets = [0, 2], sizes = [32, 32], strides = [1, 1]} : vector<34x34xf32> to vector<32x32xf32>
    %c20 = arith.constant 20 : index
    %359 = memref.load %arg4[%c20] : memref<144xf32, #tpu.memory_space<smem>>
    %360 = vector.broadcast %359 : f32 to vector<32x32xf32>
    %361 = arith.mulf %360, %358 : vector<32x32xf32>
    %362 = arith.addf %345, %361 : vector<32x32xf32>
    %c56 = arith.constant 56 : index
    %363 = memref.load %arg4[%c56] : memref<144xf32, #tpu.memory_space<smem>>
    %364 = vector.broadcast %363 : f32 to vector<32x32xf32>
    %365 = arith.mulf %364, %358 : vector<32x32xf32>
    %366 = arith.addf %349, %365 : vector<32x32xf32>
    %c92 = arith.constant 92 : index
    %367 = memref.load %arg4[%c92] : memref<144xf32, #tpu.memory_space<smem>>
    %368 = vector.broadcast %367 : f32 to vector<32x32xf32>
    %369 = arith.mulf %368, %358 : vector<32x32xf32>
    %370 = arith.addf %353, %369 : vector<32x32xf32>
    %c128 = arith.constant 128 : index
    %371 = memref.load %arg4[%c128] : memref<144xf32, #tpu.memory_space<smem>>
    %372 = vector.broadcast %371 : f32 to vector<32x32xf32>
    %373 = arith.mulf %372, %358 : vector<32x32xf32>
    %374 = arith.addf %357, %373 : vector<32x32xf32>
    %375 = vector.extract_strided_slice %11 {offsets = [1, 0], sizes = [32, 32], strides = [1, 1]} : vector<34x34xf32> to vector<32x32xf32>
    %c21 = arith.constant 21 : index
    %376 = memref.load %arg4[%c21] : memref<144xf32, #tpu.memory_space<smem>>
    %377 = vector.broadcast %376 : f32 to vector<32x32xf32>
    %378 = arith.mulf %377, %375 : vector<32x32xf32>
    %379 = arith.addf %362, %378 : vector<32x32xf32>
    %c57 = arith.constant 57 : index
    %380 = memref.load %arg4[%c57] : memref<144xf32, #tpu.memory_space<smem>>
    %381 = vector.broadcast %380 : f32 to vector<32x32xf32>
    %382 = arith.mulf %381, %375 : vector<32x32xf32>
    %383 = arith.addf %366, %382 : vector<32x32xf32>
    %c93 = arith.constant 93 : index
    %384 = memref.load %arg4[%c93] : memref<144xf32, #tpu.memory_space<smem>>
    %385 = vector.broadcast %384 : f32 to vector<32x32xf32>
    %386 = arith.mulf %385, %375 : vector<32x32xf32>
    %387 = arith.addf %370, %386 : vector<32x32xf32>
    %c129 = arith.constant 129 : index
    %388 = memref.load %arg4[%c129] : memref<144xf32, #tpu.memory_space<smem>>
    %389 = vector.broadcast %388 : f32 to vector<32x32xf32>
    %390 = arith.mulf %389, %375 : vector<32x32xf32>
    %391 = arith.addf %374, %390 : vector<32x32xf32>
    %392 = vector.extract_strided_slice %11 {offsets = [1, 1], sizes = [32, 32], strides = [1, 1]} : vector<34x34xf32> to vector<32x32xf32>
    %c22 = arith.constant 22 : index
    %393 = memref.load %arg4[%c22] : memref<144xf32, #tpu.memory_space<smem>>
    %394 = vector.broadcast %393 : f32 to vector<32x32xf32>
    %395 = arith.mulf %394, %392 : vector<32x32xf32>
    %396 = arith.addf %379, %395 : vector<32x32xf32>
    %c58 = arith.constant 58 : index
    %397 = memref.load %arg4[%c58] : memref<144xf32, #tpu.memory_space<smem>>
    %398 = vector.broadcast %397 : f32 to vector<32x32xf32>
    %399 = arith.mulf %398, %392 : vector<32x32xf32>
    %400 = arith.addf %383, %399 : vector<32x32xf32>
    %c94 = arith.constant 94 : index
    %401 = memref.load %arg4[%c94] : memref<144xf32, #tpu.memory_space<smem>>
    %402 = vector.broadcast %401 : f32 to vector<32x32xf32>
    %403 = arith.mulf %402, %392 : vector<32x32xf32>
    %404 = arith.addf %387, %403 : vector<32x32xf32>
    %c130 = arith.constant 130 : index
    %405 = memref.load %arg4[%c130] : memref<144xf32, #tpu.memory_space<smem>>
    %406 = vector.broadcast %405 : f32 to vector<32x32xf32>
    %407 = arith.mulf %406, %392 : vector<32x32xf32>
    %408 = arith.addf %391, %407 : vector<32x32xf32>
    %409 = vector.extract_strided_slice %11 {offsets = [1, 2], sizes = [32, 32], strides = [1, 1]} : vector<34x34xf32> to vector<32x32xf32>
    %c23 = arith.constant 23 : index
    %410 = memref.load %arg4[%c23] : memref<144xf32, #tpu.memory_space<smem>>
    %411 = vector.broadcast %410 : f32 to vector<32x32xf32>
    %412 = arith.mulf %411, %409 : vector<32x32xf32>
    %413 = arith.addf %396, %412 : vector<32x32xf32>
    %c59 = arith.constant 59 : index
    %414 = memref.load %arg4[%c59] : memref<144xf32, #tpu.memory_space<smem>>
    %415 = vector.broadcast %414 : f32 to vector<32x32xf32>
    %416 = arith.mulf %415, %409 : vector<32x32xf32>
    %417 = arith.addf %400, %416 : vector<32x32xf32>
    %c95 = arith.constant 95 : index
    %418 = memref.load %arg4[%c95] : memref<144xf32, #tpu.memory_space<smem>>
    %419 = vector.broadcast %418 : f32 to vector<32x32xf32>
    %420 = arith.mulf %419, %409 : vector<32x32xf32>
    %421 = arith.addf %404, %420 : vector<32x32xf32>
    %c131 = arith.constant 131 : index
    %422 = memref.load %arg4[%c131] : memref<144xf32, #tpu.memory_space<smem>>
    %423 = vector.broadcast %422 : f32 to vector<32x32xf32>
    %424 = arith.mulf %423, %409 : vector<32x32xf32>
    %425 = arith.addf %408, %424 : vector<32x32xf32>
    %426 = vector.extract_strided_slice %11 {offsets = [2, 0], sizes = [32, 32], strides = [1, 1]} : vector<34x34xf32> to vector<32x32xf32>
    %c24 = arith.constant 24 : index
    %427 = memref.load %arg4[%c24] : memref<144xf32, #tpu.memory_space<smem>>
    %428 = vector.broadcast %427 : f32 to vector<32x32xf32>
    %429 = arith.mulf %428, %426 : vector<32x32xf32>
    %430 = arith.addf %413, %429 : vector<32x32xf32>
    %c60 = arith.constant 60 : index
    %431 = memref.load %arg4[%c60] : memref<144xf32, #tpu.memory_space<smem>>
    %432 = vector.broadcast %431 : f32 to vector<32x32xf32>
    %433 = arith.mulf %432, %426 : vector<32x32xf32>
    %434 = arith.addf %417, %433 : vector<32x32xf32>
    %c96 = arith.constant 96 : index
    %435 = memref.load %arg4[%c96] : memref<144xf32, #tpu.memory_space<smem>>
    %436 = vector.broadcast %435 : f32 to vector<32x32xf32>
    %437 = arith.mulf %436, %426 : vector<32x32xf32>
    %438 = arith.addf %421, %437 : vector<32x32xf32>
    %c132 = arith.constant 132 : index
    %439 = memref.load %arg4[%c132] : memref<144xf32, #tpu.memory_space<smem>>
    %440 = vector.broadcast %439 : f32 to vector<32x32xf32>
    %441 = arith.mulf %440, %426 : vector<32x32xf32>
    %442 = arith.addf %425, %441 : vector<32x32xf32>
    %443 = vector.extract_strided_slice %11 {offsets = [2, 1], sizes = [32, 32], strides = [1, 1]} : vector<34x34xf32> to vector<32x32xf32>
    %c25 = arith.constant 25 : index
    %444 = memref.load %arg4[%c25] : memref<144xf32, #tpu.memory_space<smem>>
    %445 = vector.broadcast %444 : f32 to vector<32x32xf32>
    %446 = arith.mulf %445, %443 : vector<32x32xf32>
    %447 = arith.addf %430, %446 : vector<32x32xf32>
    %c61 = arith.constant 61 : index
    %448 = memref.load %arg4[%c61] : memref<144xf32, #tpu.memory_space<smem>>
    %449 = vector.broadcast %448 : f32 to vector<32x32xf32>
    %450 = arith.mulf %449, %443 : vector<32x32xf32>
    %451 = arith.addf %434, %450 : vector<32x32xf32>
    %c97 = arith.constant 97 : index
    %452 = memref.load %arg4[%c97] : memref<144xf32, #tpu.memory_space<smem>>
    %453 = vector.broadcast %452 : f32 to vector<32x32xf32>
    %454 = arith.mulf %453, %443 : vector<32x32xf32>
    %455 = arith.addf %438, %454 : vector<32x32xf32>
    %c133 = arith.constant 133 : index
    %456 = memref.load %arg4[%c133] : memref<144xf32, #tpu.memory_space<smem>>
    %457 = vector.broadcast %456 : f32 to vector<32x32xf32>
    %458 = arith.mulf %457, %443 : vector<32x32xf32>
    %459 = arith.addf %442, %458 : vector<32x32xf32>
    %460 = vector.extract_strided_slice %11 {offsets = [2, 2], sizes = [32, 32], strides = [1, 1]} : vector<34x34xf32> to vector<32x32xf32>
    %c26 = arith.constant 26 : index
    %461 = memref.load %arg4[%c26] : memref<144xf32, #tpu.memory_space<smem>>
    %462 = vector.broadcast %461 : f32 to vector<32x32xf32>
    %463 = arith.mulf %462, %460 : vector<32x32xf32>
    %464 = arith.addf %447, %463 : vector<32x32xf32>
    %c62 = arith.constant 62 : index
    %465 = memref.load %arg4[%c62] : memref<144xf32, #tpu.memory_space<smem>>
    %466 = vector.broadcast %465 : f32 to vector<32x32xf32>
    %467 = arith.mulf %466, %460 : vector<32x32xf32>
    %468 = arith.addf %451, %467 : vector<32x32xf32>
    %c98 = arith.constant 98 : index
    %469 = memref.load %arg4[%c98] : memref<144xf32, #tpu.memory_space<smem>>
    %470 = vector.broadcast %469 : f32 to vector<32x32xf32>
    %471 = arith.mulf %470, %460 : vector<32x32xf32>
    %472 = arith.addf %455, %471 : vector<32x32xf32>
    %c134 = arith.constant 134 : index
    %473 = memref.load %arg4[%c134] : memref<144xf32, #tpu.memory_space<smem>>
    %474 = vector.broadcast %473 : f32 to vector<32x32xf32>
    %475 = arith.mulf %474, %460 : vector<32x32xf32>
    %476 = arith.addf %459, %475 : vector<32x32xf32>
    %477 = vector.extract_strided_slice %13 {offsets = [0, 0], sizes = [32, 32], strides = [1, 1]} : vector<34x34xf32> to vector<32x32xf32>
    %c27 = arith.constant 27 : index
    %478 = memref.load %arg4[%c27] : memref<144xf32, #tpu.memory_space<smem>>
    %479 = vector.broadcast %478 : f32 to vector<32x32xf32>
    %480 = arith.mulf %479, %477 : vector<32x32xf32>
    %481 = arith.addf %464, %480 : vector<32x32xf32>
    %c63 = arith.constant 63 : index
    %482 = memref.load %arg4[%c63] : memref<144xf32, #tpu.memory_space<smem>>
    %483 = vector.broadcast %482 : f32 to vector<32x32xf32>
    %484 = arith.mulf %483, %477 : vector<32x32xf32>
    %485 = arith.addf %468, %484 : vector<32x32xf32>
    %c99 = arith.constant 99 : index
    %486 = memref.load %arg4[%c99] : memref<144xf32, #tpu.memory_space<smem>>
    %487 = vector.broadcast %486 : f32 to vector<32x32xf32>
    %488 = arith.mulf %487, %477 : vector<32x32xf32>
    %489 = arith.addf %472, %488 : vector<32x32xf32>
    %c135 = arith.constant 135 : index
    %490 = memref.load %arg4[%c135] : memref<144xf32, #tpu.memory_space<smem>>
    %491 = vector.broadcast %490 : f32 to vector<32x32xf32>
    %492 = arith.mulf %491, %477 : vector<32x32xf32>
    %493 = arith.addf %476, %492 : vector<32x32xf32>
    %494 = vector.extract_strided_slice %13 {offsets = [0, 1], sizes = [32, 32], strides = [1, 1]} : vector<34x34xf32> to vector<32x32xf32>
    %c28 = arith.constant 28 : index
    %495 = memref.load %arg4[%c28] : memref<144xf32, #tpu.memory_space<smem>>
    %496 = vector.broadcast %495 : f32 to vector<32x32xf32>
    %497 = arith.mulf %496, %494 : vector<32x32xf32>
    %498 = arith.addf %481, %497 : vector<32x32xf32>
    %c64 = arith.constant 64 : index
    %499 = memref.load %arg4[%c64] : memref<144xf32, #tpu.memory_space<smem>>
    %500 = vector.broadcast %499 : f32 to vector<32x32xf32>
    %501 = arith.mulf %500, %494 : vector<32x32xf32>
    %502 = arith.addf %485, %501 : vector<32x32xf32>
    %c100 = arith.constant 100 : index
    %503 = memref.load %arg4[%c100] : memref<144xf32, #tpu.memory_space<smem>>
    %504 = vector.broadcast %503 : f32 to vector<32x32xf32>
    %505 = arith.mulf %504, %494 : vector<32x32xf32>
    %506 = arith.addf %489, %505 : vector<32x32xf32>
    %c136 = arith.constant 136 : index
    %507 = memref.load %arg4[%c136] : memref<144xf32, #tpu.memory_space<smem>>
    %508 = vector.broadcast %507 : f32 to vector<32x32xf32>
    %509 = arith.mulf %508, %494 : vector<32x32xf32>
    %510 = arith.addf %493, %509 : vector<32x32xf32>
    %511 = vector.extract_strided_slice %13 {offsets = [0, 2], sizes = [32, 32], strides = [1, 1]} : vector<34x34xf32> to vector<32x32xf32>
    %c29 = arith.constant 29 : index
    %512 = memref.load %arg4[%c29] : memref<144xf32, #tpu.memory_space<smem>>
    %513 = vector.broadcast %512 : f32 to vector<32x32xf32>
    %514 = arith.mulf %513, %511 : vector<32x32xf32>
    %515 = arith.addf %498, %514 : vector<32x32xf32>
    %c65 = arith.constant 65 : index
    %516 = memref.load %arg4[%c65] : memref<144xf32, #tpu.memory_space<smem>>
    %517 = vector.broadcast %516 : f32 to vector<32x32xf32>
    %518 = arith.mulf %517, %511 : vector<32x32xf32>
    %519 = arith.addf %502, %518 : vector<32x32xf32>
    %c101 = arith.constant 101 : index
    %520 = memref.load %arg4[%c101] : memref<144xf32, #tpu.memory_space<smem>>
    %521 = vector.broadcast %520 : f32 to vector<32x32xf32>
    %522 = arith.mulf %521, %511 : vector<32x32xf32>
    %523 = arith.addf %506, %522 : vector<32x32xf32>
    %c137 = arith.constant 137 : index
    %524 = memref.load %arg4[%c137] : memref<144xf32, #tpu.memory_space<smem>>
    %525 = vector.broadcast %524 : f32 to vector<32x32xf32>
    %526 = arith.mulf %525, %511 : vector<32x32xf32>
    %527 = arith.addf %510, %526 : vector<32x32xf32>
    %528 = vector.extract_strided_slice %13 {offsets = [1, 0], sizes = [32, 32], strides = [1, 1]} : vector<34x34xf32> to vector<32x32xf32>
    %c30 = arith.constant 30 : index
    %529 = memref.load %arg4[%c30] : memref<144xf32, #tpu.memory_space<smem>>
    %530 = vector.broadcast %529 : f32 to vector<32x32xf32>
    %531 = arith.mulf %530, %528 : vector<32x32xf32>
    %532 = arith.addf %515, %531 : vector<32x32xf32>
    %c66 = arith.constant 66 : index
    %533 = memref.load %arg4[%c66] : memref<144xf32, #tpu.memory_space<smem>>
    %534 = vector.broadcast %533 : f32 to vector<32x32xf32>
    %535 = arith.mulf %534, %528 : vector<32x32xf32>
    %536 = arith.addf %519, %535 : vector<32x32xf32>
    %c102 = arith.constant 102 : index
    %537 = memref.load %arg4[%c102] : memref<144xf32, #tpu.memory_space<smem>>
    %538 = vector.broadcast %537 : f32 to vector<32x32xf32>
    %539 = arith.mulf %538, %528 : vector<32x32xf32>
    %540 = arith.addf %523, %539 : vector<32x32xf32>
    %c138 = arith.constant 138 : index
    %541 = memref.load %arg4[%c138] : memref<144xf32, #tpu.memory_space<smem>>
    %542 = vector.broadcast %541 : f32 to vector<32x32xf32>
    %543 = arith.mulf %542, %528 : vector<32x32xf32>
    %544 = arith.addf %527, %543 : vector<32x32xf32>
    %545 = vector.extract_strided_slice %13 {offsets = [1, 1], sizes = [32, 32], strides = [1, 1]} : vector<34x34xf32> to vector<32x32xf32>
    %c31 = arith.constant 31 : index
    %546 = memref.load %arg4[%c31] : memref<144xf32, #tpu.memory_space<smem>>
    %547 = vector.broadcast %546 : f32 to vector<32x32xf32>
    %548 = arith.mulf %547, %545 : vector<32x32xf32>
    %549 = arith.addf %532, %548 : vector<32x32xf32>
    %c67 = arith.constant 67 : index
    %550 = memref.load %arg4[%c67] : memref<144xf32, #tpu.memory_space<smem>>
    %551 = vector.broadcast %550 : f32 to vector<32x32xf32>
    %552 = arith.mulf %551, %545 : vector<32x32xf32>
    %553 = arith.addf %536, %552 : vector<32x32xf32>
    %c103 = arith.constant 103 : index
    %554 = memref.load %arg4[%c103] : memref<144xf32, #tpu.memory_space<smem>>
    %555 = vector.broadcast %554 : f32 to vector<32x32xf32>
    %556 = arith.mulf %555, %545 : vector<32x32xf32>
    %557 = arith.addf %540, %556 : vector<32x32xf32>
    %c139 = arith.constant 139 : index
    %558 = memref.load %arg4[%c139] : memref<144xf32, #tpu.memory_space<smem>>
    %559 = vector.broadcast %558 : f32 to vector<32x32xf32>
    %560 = arith.mulf %559, %545 : vector<32x32xf32>
    %561 = arith.addf %544, %560 : vector<32x32xf32>
    %562 = vector.extract_strided_slice %13 {offsets = [1, 2], sizes = [32, 32], strides = [1, 1]} : vector<34x34xf32> to vector<32x32xf32>
    %c32 = arith.constant 32 : index
    %563 = memref.load %arg4[%c32] : memref<144xf32, #tpu.memory_space<smem>>
    %564 = vector.broadcast %563 : f32 to vector<32x32xf32>
    %565 = arith.mulf %564, %562 : vector<32x32xf32>
    %566 = arith.addf %549, %565 : vector<32x32xf32>
    %c68 = arith.constant 68 : index
    %567 = memref.load %arg4[%c68] : memref<144xf32, #tpu.memory_space<smem>>
    %568 = vector.broadcast %567 : f32 to vector<32x32xf32>
    %569 = arith.mulf %568, %562 : vector<32x32xf32>
    %570 = arith.addf %553, %569 : vector<32x32xf32>
    %c104 = arith.constant 104 : index
    %571 = memref.load %arg4[%c104] : memref<144xf32, #tpu.memory_space<smem>>
    %572 = vector.broadcast %571 : f32 to vector<32x32xf32>
    %573 = arith.mulf %572, %562 : vector<32x32xf32>
    %574 = arith.addf %557, %573 : vector<32x32xf32>
    %c140 = arith.constant 140 : index
    %575 = memref.load %arg4[%c140] : memref<144xf32, #tpu.memory_space<smem>>
    %576 = vector.broadcast %575 : f32 to vector<32x32xf32>
    %577 = arith.mulf %576, %562 : vector<32x32xf32>
    %578 = arith.addf %561, %577 : vector<32x32xf32>
    %579 = vector.extract_strided_slice %13 {offsets = [2, 0], sizes = [32, 32], strides = [1, 1]} : vector<34x34xf32> to vector<32x32xf32>
    %c33 = arith.constant 33 : index
    %580 = memref.load %arg4[%c33] : memref<144xf32, #tpu.memory_space<smem>>
    %581 = vector.broadcast %580 : f32 to vector<32x32xf32>
    %582 = arith.mulf %581, %579 : vector<32x32xf32>
    %583 = arith.addf %566, %582 : vector<32x32xf32>
    %c69 = arith.constant 69 : index
    %584 = memref.load %arg4[%c69] : memref<144xf32, #tpu.memory_space<smem>>
    %585 = vector.broadcast %584 : f32 to vector<32x32xf32>
    %586 = arith.mulf %585, %579 : vector<32x32xf32>
    %587 = arith.addf %570, %586 : vector<32x32xf32>
    %c105 = arith.constant 105 : index
    %588 = memref.load %arg4[%c105] : memref<144xf32, #tpu.memory_space<smem>>
    %589 = vector.broadcast %588 : f32 to vector<32x32xf32>
    %590 = arith.mulf %589, %579 : vector<32x32xf32>
    %591 = arith.addf %574, %590 : vector<32x32xf32>
    %c141 = arith.constant 141 : index
    %592 = memref.load %arg4[%c141] : memref<144xf32, #tpu.memory_space<smem>>
    %593 = vector.broadcast %592 : f32 to vector<32x32xf32>
    %594 = arith.mulf %593, %579 : vector<32x32xf32>
    %595 = arith.addf %578, %594 : vector<32x32xf32>
    %596 = vector.extract_strided_slice %13 {offsets = [2, 1], sizes = [32, 32], strides = [1, 1]} : vector<34x34xf32> to vector<32x32xf32>
    %c34 = arith.constant 34 : index
    %597 = memref.load %arg4[%c34] : memref<144xf32, #tpu.memory_space<smem>>
    %598 = vector.broadcast %597 : f32 to vector<32x32xf32>
    %599 = arith.mulf %598, %596 : vector<32x32xf32>
    %600 = arith.addf %583, %599 : vector<32x32xf32>
    %c70 = arith.constant 70 : index
    %601 = memref.load %arg4[%c70] : memref<144xf32, #tpu.memory_space<smem>>
    %602 = vector.broadcast %601 : f32 to vector<32x32xf32>
    %603 = arith.mulf %602, %596 : vector<32x32xf32>
    %604 = arith.addf %587, %603 : vector<32x32xf32>
    %c106 = arith.constant 106 : index
    %605 = memref.load %arg4[%c106] : memref<144xf32, #tpu.memory_space<smem>>
    %606 = vector.broadcast %605 : f32 to vector<32x32xf32>
    %607 = arith.mulf %606, %596 : vector<32x32xf32>
    %608 = arith.addf %591, %607 : vector<32x32xf32>
    %c142 = arith.constant 142 : index
    %609 = memref.load %arg4[%c142] : memref<144xf32, #tpu.memory_space<smem>>
    %610 = vector.broadcast %609 : f32 to vector<32x32xf32>
    %611 = arith.mulf %610, %596 : vector<32x32xf32>
    %612 = arith.addf %595, %611 : vector<32x32xf32>
    %613 = vector.extract_strided_slice %13 {offsets = [2, 2], sizes = [32, 32], strides = [1, 1]} : vector<34x34xf32> to vector<32x32xf32>
    %c35 = arith.constant 35 : index
    %614 = memref.load %arg4[%c35] : memref<144xf32, #tpu.memory_space<smem>>
    %615 = vector.broadcast %614 : f32 to vector<32x32xf32>
    %616 = arith.mulf %615, %613 : vector<32x32xf32>
    %617 = arith.addf %600, %616 : vector<32x32xf32>
    %c71 = arith.constant 71 : index
    %618 = memref.load %arg4[%c71] : memref<144xf32, #tpu.memory_space<smem>>
    %619 = vector.broadcast %618 : f32 to vector<32x32xf32>
    %620 = arith.mulf %619, %613 : vector<32x32xf32>
    %621 = arith.addf %604, %620 : vector<32x32xf32>
    %c107 = arith.constant 107 : index
    %622 = memref.load %arg4[%c107] : memref<144xf32, #tpu.memory_space<smem>>
    %623 = vector.broadcast %622 : f32 to vector<32x32xf32>
    %624 = arith.mulf %623, %613 : vector<32x32xf32>
    %625 = arith.addf %608, %624 : vector<32x32xf32>
    %c143 = arith.constant 143 : index
    %626 = memref.load %arg4[%c143] : memref<144xf32, #tpu.memory_space<smem>>
    %627 = vector.broadcast %626 : f32 to vector<32x32xf32>
    %628 = arith.mulf %627, %613 : vector<32x32xf32>
    %629 = arith.addf %612, %628 : vector<32x32xf32>
    %c0_15 = arith.constant 0 : index
    %630 = memref.load %arg5[%c0_15] : memref<4xf32, #tpu.memory_space<smem>>
    %631 = vector.broadcast %630 : f32 to vector<32x32xf32>
    %632 = arith.addf %617, %631 : vector<32x32xf32>
    %c0_16 = arith.constant 0 : index
    %c0_17 = arith.constant 0 : index
    %c0_18 = arith.constant 0 : index
    %c0_19 = arith.constant 0 : index
    %633 = vector.load %arg6[%c0_16, %c0_17, %c0_18, %c0_19] : memref<1x4x32x32xf32, #tpu.memory_space<vmem>>, vector<1x1x32x32xf32>
    %634 = vector.shape_cast %633 : vector<1x1x32x32xf32> to vector<32x32xf32>
    %635 = vector.shape_cast %632 : vector<32x32xf32> to vector<1x1x32x32xf32>
    tpu.vector_store %arg6[%c0_16, %c0_17, %c0_18, %c0_19], %635 {strides = array<i32>} : memref<1x4x32x32xf32, #tpu.memory_space<vmem>>, vector<1x1x32x32xf32>,
    %c1_20 = arith.constant 1 : index
    %636 = memref.load %arg5[%c1_20] : memref<4xf32, #tpu.memory_space<smem>>
    %637 = vector.broadcast %636 : f32 to vector<32x32xf32>
    %638 = arith.addf %621, %637 : vector<32x32xf32>
    %c0_21 = arith.constant 0 : index
    %c1_22 = arith.constant 1 : index
    %c0_23 = arith.constant 0 : index
    %c0_24 = arith.constant 0 : index
    %639 = vector.load %arg6[%c0_21, %c1_22, %c0_23, %c0_24] : memref<1x4x32x32xf32, #tpu.memory_space<vmem>>, vector<1x1x32x32xf32>
    %640 = vector.shape_cast %639 : vector<1x1x32x32xf32> to vector<32x32xf32>
    %641 = vector.shape_cast %638 : vector<32x32xf32> to vector<1x1x32x32xf32>
    tpu.vector_store %arg6[%c0_21, %c1_22, %c0_23, %c0_24], %641 {strides = array<i32>} : memref<1x4x32x32xf32, #tpu.memory_space<vmem>>, vector<1x1x32x32xf32>,
    %c2_25 = arith.constant 2 : index
    %642 = memref.load %arg5[%c2_25] : memref<4xf32, #tpu.memory_space<smem>>
    %643 = vector.broadcast %642 : f32 to vector<32x32xf32>
    %644 = arith.addf %625, %643 : vector<32x32xf32>
    %c0_26 = arith.constant 0 : index
    %c2_27 = arith.constant 2 : index
    %c0_28 = arith.constant 0 : index
    %c0_29 = arith.constant 0 : index
    %645 = vector.load %arg6[%c0_26, %c2_27, %c0_28, %c0_29] : memref<1x4x32x32xf32, #tpu.memory_space<vmem>>, vector<1x1x32x32xf32>
    %646 = vector.shape_cast %645 : vector<1x1x32x32xf32> to vector<32x32xf32>
    %647 = vector.shape_cast %644 : vector<32x32xf32> to vector<1x1x32x32xf32>
    tpu.vector_store %arg6[%c0_26, %c2_27, %c0_28, %c0_29], %647 {strides = array<i32>} : memref<1x4x32x32xf32, #tpu.memory_space<vmem>>, vector<1x1x32x32xf32>,
    %c3_30 = arith.constant 3 : index
    %648 = memref.load %arg5[%c3_30] : memref<4xf32, #tpu.memory_space<smem>>
    %649 = vector.broadcast %648 : f32 to vector<32x32xf32>
    %650 = arith.addf %629, %649 : vector<32x32xf32>
    %c0_31 = arith.constant 0 : index
    %c3_32 = arith.constant 3 : index
    %c0_33 = arith.constant 0 : index
    %c0_34 = arith.constant 0 : index
    %651 = vector.load %arg6[%c0_31, %c3_32, %c0_33, %c0_34] : memref<1x4x32x32xf32, #tpu.memory_space<vmem>>, vector<1x1x32x32xf32>
    %652 = vector.shape_cast %651 : vector<1x1x32x32xf32> to vector<32x32xf32>
    %653 = vector.shape_cast %650 : vector<32x32xf32> to vector<1x1x32x32xf32>
    tpu.vector_store %arg6[%c0_31, %c3_32, %c0_33, %c0_34], %653 {strides = array<i32>} : memref<1x4x32x32xf32, #tpu.memory_space<vmem>>, vector<1x1x32x32xf32>,
    return
  }
  func.func @transform_0(%arg0: i32) -> (i32, i32, i32) {
    %c0_i32 = arith.constant 0 : i32
    %c0_i32_0 = arith.constant 0 : i32
    %c0_i32_1 = arith.constant 0 : i32
    return %arg0, %c0_i32, %c0_i32_0 : i32, i32, i32
  }
  func.func @transform_1(%arg0: i32) -> (i32, i32) {
    %c0_i32 = arith.constant 0 : i32
    %c0_i32_0 = arith.constant 0 : i32
    %c0_i32_1 = arith.constant 0 : i32
    return %c0_i32, %c0_i32_0 : i32, i32
  }
  func.func @transform_2(%arg0: i32) -> (i32, i32) {
    %c0_i32 = arith.constant 0 : i32
    %c0_i32_0 = arith.constant 0 : i32
    %c0_i32_1 = arith.constant 0 : i32
    return %c0_i32, %c0_i32_0 : i32, i32
  }
  func.func @transform_3(%arg0: i32) -> i32 {
    %c0_i32 = arith.constant 0 : i32
    %c0_i32_0 = arith.constant 0 : i32
    return %c0_i32 : i32
  }
  func.func @transform_4(%arg0: i32) -> i32 {
    %c0_i32 = arith.constant 0 : i32
    %c0_i32_0 = arith.constant 0 : i32
    return %c0_i32 : i32
  }
  func.func @transform_5(%arg0: i32) -> (i32, i32, i32, i32) {
    %c0_i32 = arith.constant 0 : i32
    %c0_i32_0 = arith.constant 0 : i32
    %c0_i32_1 = arith.constant 0 : i32
    %c0_i32_2 = arith.constant 0 : i32
    return %arg0, %c0_i32, %c0_i32_0, %c0_i32_1 : i32, i32, i32, i32
  }
}

</mosaic_0001>

<bundles_post_ra>
// kernel: tpu_custom_call.1
= control target key start
LH: loop header
LB: loop body
LE: loop exit
PB: predicated region body
PF: predicated region fallthrough
CT: control target
= control target key end

     0   :  { %10 = vsyncpa [#allocation4], 0  ;;  %s10013_s0 = inlined_call_operand.vmem [shape: bf16[2,64,16], index: 0, kind: input, shape index: {}]   ;;  %s10014_s1 = inlined_call_operand.vmem [shape: bf16[16,34], index: 1, kind: input, shape index: {}]   ;;  %s10015_s2 = inlined_call_operand.vmem [shape: bf16[34,16], index: 2, kind: input, shape index: {}]   ;;  %s10016_s3 = inlined_call_operand.vmem [shape: f32[144], index: 3, kind: input, shape index: {}]   ;;  %s10017_s4 = inlined_call_operand.vmem [shape: f32[4], index: 4, kind: input, shape index: {}]   ;;  %s10018_s5 = inlined_call_operand.hbm [shape: f32[2,4,32,32], index: 5, kind: output, shape index: {}]  }
   0x1   :  { %11 = vsyncpa [#allocation6], 0 }
   0x2   :  { %12 = vsyncpa [#allocation3], 0 }
   0x3   :  { %14 = vsyncpa [#allocation3 + $0x1], 0  ;;  %s5349_s18 = smov 0   ;;  %s5351_s19 = smov 0  }
   0x4   :  { %s5353_s20 = smov 0   ;;  %s5355_s21 = smov 0  }
   0x5 LB: > { %s5370_s22 = sadd.s32 4294967295, %s5311_s21   ;;  %s4914_s23 = sadd.s32 4294967294, %s5311_s21   ;;  %s5311_s21 = sphi %s5355_s21, %s10803_s21   ;;  %s5307_s20 = sphi %s5353_s20, %s10802_s20   ;;  %s5303_s19 = sphi %s5351_s19, %s10801_s19   ;;  %s5299_s18 = sphi %s5349_s18, %s10800_s18  }
   0x6   : > { %s5374_s24 = sadd.s32 1, %s5311_s21   ;;  %s137_s25 = sadd.s32 1, %s5307_s20 }
   0x7   : > { %s134_s26 = ssub.s32 %s5311_s21, %s5374_s24  ;;  %p147_p0 = scmp.ne.s32.totalorder %s5307_s20, %s5303_s19 }
   0x8   : > { %p135_p1 = scmp.eq.s32.totalorder %s134_s26, 0  ;;  %p148_p2 = scmp.eq.s32.totalorder %s5370_s22, 1 }
   0x9   : > { %p153_p3 = scmp.ne.s32.totalorder %s5303_s19, %s5299_s18  ;;  %p154_p4 = scmp.eq.s32.totalorder %s4914_s23, 1 }
   0xa   : > { %s5385_s27 = scalar_select %p135_p1, %s5307_s20, %s137_s25  }
   0xb   : > { %p5387_p5 = por %p148_p2, %p147_p0  ;;  %p5391_p6 = por %p154_p4, %p153_p3 }
   0xc   : > { %p4915_p7 = scmp.ge.s32.totalorder %s5311_s21, 1  ;;  %p161_p8 = scmp.lt.s32.totalorder %s5311_s21, 3 }
   0xd   : > { %p5164_p9 = scmp.eq.s32.totalorder %s5370_s22, 0  ;;  %s179_s7 = sshll.u32 %s10016_s3, 4  ;;  %s180_s7 = int_to_ptr.vmem [resolvable:$true] %s179_s7 }
   0xe   : > { %p162_p10 = pnand %p4915_p7, %p161_p8  ;;  %s189_s10 = sshll.u32 %s10017_s4, 4  ;;  %s190_s10 = int_to_ptr.vmem [resolvable:$true] %s189_s10 }
   0xf   : > { %s5313_s11 = smov [#allocation2]   ;;  %s5314_s12 = smov [#allocation5]  }
  0x10   : > { %p5153_p11 = pneg %p162_p10 }
  0x11   : > { %210 = sbr.rel (%p162_p10) target bundleno = 1448 (0x5a8), region = 40 }
  0x12   : > { %p5154_p12 = pnand %p5164_p9, %p5153_p11 }
  0x14   : > { %5156 = dma.vmem_to_smem (!%p5154_p12), %s180_s7, 32, %s5313_s11, [#allocation4]  }
  0x15   : > { %5159 = dma.vmem_to_smem (!%p5154_p12), %s190_s10, 16, %s5314_s12, [#allocation6]  }
  0x16   : > { %5286 = dma.done.wait (%p5164_p9), [#allocation4], 32  }
  0x17   : > { %5288 = vsyncadd (%p5164_p9), [#allocation4], 4294967264 }
  0x18   : > { %5290 = dma.done.wait (%p5164_p9), [#allocation6], 16  }
  0x19   : > { %5292 = vsyncadd (%p5164_p9), [#allocation6], 4294967280 }
  0x1a   : > { %222 = sfence }
  0x1b   : > { %v5137_v0 = vld [vmem:[%s10014_s1] sm:$0xff]  ;;  %p245_p13 = scmp.lt.s32.totalorder %s5370_s22, 1  ;;  %vm287_vm0 = vcmask 130048   ;;  %v341_v6 = vld [vmem:[%s10015_s2 + $0x10] sm:$0x1]  ;;  %v5439_v13 = vld [vmem:[%s10015_s2 + $0x8] sm:$0xff] }
  0x1c   : > { %307 = vmatpush.bf16.msra.mxu0 %v5137_v0  ;;  %v351_v10 = vunpack.c.l.b16 %v341_v6  ;;  %v5434_v12 = vld [vmem:[%s10015_s2] sm:$0xff]  ;;  %s4976_s10 = sld [smem:[#allocation2 + $0x2]]  ;;  %s5316_s17 = smov 127   ;;  %vm740_vm1 = vcmask 1046528   ;;  %vm1153_vm2 = vcmask 1045504   ;;  %vm4776_vm3 = vcmask 261120  }
  0x1d   : > { %s246_s15 = scalar_select %p245_p13, %s5370_s22, 1 }
  0x1e   : > { %v5441_v14 = vpack.c.b16 %v351_v10, %v351_v10  ;;  %s4973_s11 = sld [smem:[#allocation2 + $0x25]] }
  0x1f   : > { %s5132_s16 = sshll.u32 %s246_s15, 5  ;;  %s4972_s12 = sld [smem:[#allocation2 + $0x1]] }
  0x20   : > { %s5422_s25 = scalar_lea.vmem %s10013_s0, %s5132_s16  ;;  %10092 = vst [vmem:[#allocation11_spill] sm:$0xff] %v5441_v14  ;;  %s4979_s13 = sld [smem:[#allocation2 + $0x6e]] }
  0x21   : > { %v5133_v1 = vld [vmem:[%s5422_s25] sm:$0xff]  ;;  %v5134_v2 = vld [vmem:[%s5422_s25 + $0x8] sm:$0xff]  ;;  %s4974_s14 = sld [smem:[#allocation2 + $0x49]]  ;;  %s5315_s16 = smov 126  }
  0x22   : > { %4945 = vmatmul.msk.bf16.vlgmr.msra.gmra.mxu0 %vm287_vm0, %v5133_v1  ;;  %v5449_v15 = vstv %s4976_s10  ;;  %s4975_s15 = sld [smem:[#allocation2 + $0x6d]] }
  0x23   : > { %s4977_s23 = sld [smem:[#allocation2 + $0x26]] }
  0x24   : > { %v5451_v16 = vstv %s4973_s11  ;;  %s4978_s26 = sld [smem:[#allocation2 + $0x4a]] }
  0x25   : > { %v5453_v17 = vstv %s4972_s12  ;;  %s4984_s30 = sld [smem:[#allocation2 + $0x4]] }
  0x26   : > { %v5466_v22 = vstv %s4979_s13  ;;  %s4985_s6 = sld [smem:[#allocation2 + $0x28]] }
  0x27   : > { %v5468_v23 = vstv %s4974_s14  ;;  %s4986_s7 = sld [smem:[#allocation2 + $0x4c]] }
  0x28   : > { %v5470_v24 = vstv %s4975_s15  ;;  %s4987_s8 = sld [smem:[#allocation2 + $0x70]] }
  0x29   : > { %v5485_v30 = vstv %s4977_s23  ;;  %s5539_s9 = sld [smem:[#allocation2 + $0x5]] }
  0x2a   : > { %v5489_v32 = vstv %s4978_s26  ;;  %s5544_s10 = sld [smem:[#allocation2 + $0x29]] }
  0x2b   : > { %v5524_v47 = vstv %s4984_s30  ;;  %s4990_s11 = sld [smem:[#allocation2 + $0x4d]] }
  0x2c   : > { %v5541_v54 = vstv %s4985_s6  ;;  %s5596_s12 = sld [smem:[#allocation2 + $0x71]] }
  0x2d   : > { %v5549_v58 = vstv %s4986_s7  ;;  %s5614_s13 = sld [smem:[#allocation2 + $0x7]] }
  0x2e   : > { %s5670_s14 = sld [smem:[#allocation2 + $0x2b]] }
  0x2f   : > { %s5691_s15 = sld [smem:[#allocation2 + $0x4f]] }
  0x30   : > { %s5701_s23 = sld [smem:[#allocation2 + $0x73]] }
  0x31   : > { %s5001_s26 = sld [smem:[#allocation2 + $0x2c]] }
  0x32   : > { %4946 = vmatmul.msk.bf16.gmra.mxu0 %vm287_vm0, %v5134_v2  ;;  %s5737_s30 = sld [smem:[#allocation2 + $0x50]] }
  0x33   : > { %s5748_s6 = sld [smem:[#allocation2 + $0x8]] }
  0x34   : > { %s5756_s7 = sld [smem:[#allocation2 + $0x74]] }
  0x9f   : > { %v309_v3 = vpop.f32.mrf.mxu0 }
  0xa0   : > { %v329_v4 = vpack.c.bf16 %v309_v3, %v309_v3 }
  0xa2   : > { %v357_v8 = vunpack.c.l.b16 %v329_v4 }
  0xa7   : > { %v311_v5 = vpop.f32.mrf.mxu0 }
  0xa8   : > { %v330_v7 = vpack.c.bf16 %v311_v5, %v311_v5  ;;  %v5582_v5 = vstv %s4987_s8  ;;  %s5010_s8 = sld [smem:[#allocation2 + $0x52]] }
  0xaa   : > { %v358_v9 = vunpack.c.l.b16 %v330_v7 }
  0xac   : > { %v359_v11 = vpack.c.b16 %v358_v9, %v357_v8 }
  0xae   : > { %377 = vmatpush.bf16.msra.mxu1 %v359_v11  ;;  %5141 = vmatpush.bf16.msra.mxu2 %v359_v11 }
  0xaf   : > { %5142 = vmatpush.bf16.msra.mxu3 %v359_v11  ;;  %v314_v42 = vpop.f32.mrf.mxu0 }
  0xb0   : > { %v331_v50 = vpack.c.bf16 %v314_v42, %v314_v42 }
  0xb1   : > { %4957 = vmatmul.msk.bf16.vlgmr.msra.gmra.mxu1 %vm287_vm0, %v5434_v12  ;;  %4958 = vmatmul.msk.bf16.vlgmr.msra.gmra.mxu2 %vm287_vm0, %v5439_v13 }
  0xb2   : > { %4959 = vmatmul.msk.bf16.vlgmr.msra.gmra.mxu3 %vm287_vm0, %v5441_v14  ;;  %v395_v59 = vunpack.c.l.b16 %v331_v50 }
  0xb7   : > { %v316_v51 = vpop.f32.mrf.mxu0 }
  0xb8   : > { %v332_v53 = vpack.c.bf16 %v316_v51, %v316_v51 }
  0xba   : > { %v396_v60 = vunpack.c.l.b16 %v332_v53 }
  0xbc   : > { %v397_v8 = vpack.c.b16 %v396_v60, %v395_v59 }
  0xbe   : > { %406 = vmatpush.bf16.msrb.mxu2 %v397_v8 }
  0xc1   : > { %4960 = vmatmul.msk.bf16.vlgmr.msrb.gmra.mxu2 %vm287_vm0, %v5434_v12 }
  0xd1   : > { %4961 = vmatmul.msk.bf16.gmra.mxu2 %vm287_vm0, %v5439_v13 }
  0xe1   : > { %4962 = vmatmul.msk.bf16.gmra.mxu2 %vm287_vm0, %v5441_v14 }
 0x12e   : > { %v5455_v18 = vpop.f32.mrf.mxu1 }
 0x12f   : > { %v626_v19 = vmul.f32 %v5449_v15, %v5455_v18  ;;  %v548_v20 = vmul.f32 %v5451_v16, %v5455_v18  ;;  %v522_v21 = vmul.f32 %v5453_v17, %v5455_v18  ;;  %v704_v26 = vmul.f32 %v5466_v22, %v5455_v18 }
 0x130   : > { %v574_v27 = vmul.f32 %v5468_v23, %v5455_v18  ;;  %v600_v28 = vmul.f32 %v5470_v24, %v5455_v18  ;;  %v652_v34 = vmul.f32 %v5485_v30, %v5455_v18  ;;  %v678_v35 = vmul.f32 %v5489_v32, %v5455_v18 }
 0x131   : > { %634 = vrot.lane.b32.xlu1 %v626_v19, %s5315_s16  ;;  %556 = vrot.lane.b32.xlu2 %v548_v20, %s5316_s17  ;;  %v5594_v20 = vstv %s5539_s9  ;;  %v921_v53 = vmul.f32 %v5549_v58, %v5455_v18  ;;  %s5009_s9 = sld [smem:[#allocation2 + $0x2e]] }
 0x132   : > { %530 = vrot.lane.b32.xlu0 %v522_v21, %s5316_s17 }
 0x134   : > { %v5483_v29 = vpop.f32.mrf.mxu2 }
 0x135   : > { %v5472_v25 = vpop.f32.mrf.mxu3  ;;  %10093 = vst [vmem:[#allocation12_spill] sm:$0xff] %v5483_v29  ;;  %v524_v31 = vmul.f32 %v5453_v17, %v5483_v29  ;;  %v576_v36 = vmul.f32 %v5468_v23, %v5483_v29  ;;  %v602_v37 = vmul.f32 %v5470_v24, %v5483_v29  ;;  %v550_v38 = vmul.f32 %v5451_v16, %v5483_v29 }
 0x136   : > { %v654_v39 = vmul.f32 %v5485_v30, %v5483_v29  ;;  %v680_v40 = vmul.f32 %v5489_v32, %v5483_v29  ;;  %v628_v41 = vmul.f32 %v5449_v15, %v5483_v29  ;;  %v5516_v43 = vpop.f32.mrf.mxu1  ;;  %v706_v48 = vmul.f32 %v5466_v22, %v5483_v29 }
 0x137   : > { %v601_v45 = vmul.f32 %v5470_v24, %v5516_v43  ;;  %v549_v46 = vmul.f32 %v5451_v16, %v5516_v43  ;;  %v5530_v49 = vmul.f32 %v5524_v47, %v5483_v29  ;;  %v886_v57 = vmul.f32 %v5541_v54, %v5483_v29 }
 0x138   : > { %v679_v63 = vmul.f32 %v5489_v32, %v5516_v43  ;;  %v627_v0 = vmul.f32 %v5449_v15, %v5516_v43  ;;  %v5568_v1 = vmul.f32 %v5549_v58, %v5483_v29  ;;  %v523_v2 = vmul.f32 %v5453_v17, %v5516_v43 }
 0x139   : > { %712 = vrot.lane.b32.xlu1 %v704_v26, %s5315_s16  ;;  %582 = vrot.lane.b32.xlu2 %v574_v27, %s5316_s17  ;;  %v10030_v55 = vrot.slane %v5530_v49, 1  ;;  %v5574_v3 = vmul.f32 %v5541_v54, %v5516_v43  ;;  %v897_v7 = vrot.slane %v886_v57, 1  ;;  %v5588_v9 = vmul.f32 %v5582_v5, %v5483_v29 }
 0x13a   : > { %608 = vrot.lane.b32.xlu0 %v600_v28, %s5316_s17  ;;  %v10031_v11 = vrot.slane %v5568_v1, 1  ;;  %v5609_v27 = vmul.f32 %v5594_v20, %v5483_v29  ;;  %v5612_v28 = vstv %s5544_s10  ;;  %v847_v57 = vmul.f32 %v5524_v47, %v5455_v18  ;;  %s5008_s10 = sld [smem:[#allocation2 + $0xa]] }
 0x13b   : > { %v10029_v19 = vrot.slane %v5574_v3, 1  ;;  %10094 = vst [vmem:[#allocation13_spill] sm:$0xff] %v5612_v28  ;;  %v10114_v13 = vrot.slane %v5530_v49, 1  ;;  %v5844_v49 = vstv %s5756_s7  ;;  %s5038_s7 = sld [smem:[#allocation2 + $0x59]] }
 0x13c   : > { %v5518_v44 = vpop.f32.mrf.mxu2 }
 0x13d   : > { %v391_v33 = vpop.f32.mrf.mxu3  ;;  %v5537_v52 = vmul.f32 %v5524_v47, %v5518_v44  ;;  %v5560_v62 = vmul.f32 %v5549_v58, %v5518_v44  ;;  %v5578_v4 = vmul.f32 %v5541_v54, %v5518_v44  ;;  %v5605_v26 = vmul.f32 %v5582_v5, %v5518_v44 }
 0x13e   : > { %v898_v42 = vsel %vm740_vm1, %v10029_v19, %v897_v7  ;;  %v5774_v19 = vstv %s5691_s15  ;;  %s5032_s15 = sld [smem:[#allocation2 + $0x10]] }
 0x13f   : > { %v10025_v56 = vrot.slane %v5537_v52, 1  ;;  %v10023_v6 = vrot.slane %v5560_v62, 1  ;;  %v10022_v10 = vrot.slane %v5578_v4, 1 }
 0x141   : > { %534 = vrot.lane.b32.xlu1 %v524_v31, %s5316_s17  ;;  %660 = vrot.lane.b32.xlu2 %v652_v34, %s5315_s16  ;;  %v5556_v61 = vsel %vm740_vm1, %v10030_v55, %v10025_v56  ;;  %v5601_v21 = vsel %vm740_vm1, %v897_v7, %v10022_v10  ;;  %v5616_v31 = vstv %s4990_s11  ;;  %v5623_v33 = vsel %vm740_vm1, %v10031_v11, %v10023_v6  ;;  %s5013_s11 = sld [smem:[#allocation2 + $0x2f]] }
 0x142   : > { %686 = vrot.lane.b32.xlu0 %v678_v35, %s5315_s16  ;;  %10095 = vst [vmem:[#allocation14_spill] sm:$0xff] %v5623_v33  ;;  %v705_v34 = vmul.f32 %v5466_v22, %v5516_v43  ;;  %v10027_v35 = vrot.slane %v5588_v9, 1  ;;  %v5681_v59 = vmul.f32 %v5616_v31, %v5518_v44  ;;  %v5746_v56 = vstv %s5670_s14  ;;  %s5014_s14 = sld [smem:[#allocation2 + $0x53]] }
 0x143   : > { %v5777_v55 = vstv %s5701_s23  ;;  %v5779_v11 = vstv %s5001_s26  ;;  %s5015_s26 = sld [smem:[#allocation2 + $0x77]] }
 0x144   : > { %10099 = vst [vmem:[#allocation18_spill] sm:$0xff] %v5681_v59  ;;  %v10024_v8 = vrot.slane %v5681_v59, 1  ;;  %s5033_s23 = sld [smem:[#allocation2 + $0x34]] }
 0x149   : > { %586 = vrot.lane.b32.xlu1 %v576_v36, %s5316_s17  ;;  %612 = vrot.lane.b32.xlu2 %v602_v37, %s5316_s17  ;;  %v10020_v36 = vrot.slane %v5605_v26, 1  ;;  %v5631_v37 = vmul.f32 %v5612_v28, %v5518_v44 }
 0x14a   : > { %560 = vrot.lane.b32.xlu0 %v550_v38, %s5316_s17  ;;  %v575_v38 = vmul.f32 %v5468_v23, %v5516_v43 }
 0x14b   : > { %10096 = vst [vmem:[#allocation15_spill] sm:$0xff] %v5631_v37  ;;  %v5665_v12 = vsel %vm740_vm1, %v10027_v35, %v10020_v36  ;;  %v10021_v50 = vrot.slane %v5631_v37, 1  ;;  %v653_v36 = vmul.f32 %v5485_v30, %v5516_v43  ;;  %v5800_v35 = vmul.f32 %v5777_v55, %v5483_v29 }
 0x14c   : > { %10098 = vst [vmem:[#allocation17_spill] sm:$0xff] %v5665_v12 }
 0x151   : > { %664 = vrot.lane.b32.xlu1 %v654_v39, %s5315_s16  ;;  %690 = vrot.lane.b32.xlu2 %v680_v40, %s5315_s16  ;;  %v5637_v39 = vmul.f32 %v5549_v58, %v5516_v43  ;;  %v5643_v40 = vmul.f32 %v5612_v28, %v5483_v29 }
 0x152   : > { %638 = vrot.lane.b32.xlu0 %v628_v41, %s5315_s16  ;;  %v5647_v41 = vmul.f32 %v5594_v20, %v5518_v44 }
 0x153   : > { %v10028_v60 = vrot.slane %v5643_v40, 1 }
 0x154   : > { %10097 = vst [vmem:[#allocation16_spill] sm:$0xff] %v5647_v41  ;;  %v10019_v51 = vrot.slane %v5647_v41, 1 }
 0x159   : > { %610 = vrot.lane.b32.xlu1 %v601_v45, %s5316_s17  ;;  %558 = vrot.lane.b32.xlu2 %v549_v46, %s5316_s17  ;;  %v5654_v45 = vmul.f32 %v5524_v47, %v5516_v43  ;;  %v5658_v46 = vmul.f32 %v5616_v31, %v5483_v29 }
 0x15a   : > { %716 = vrot.lane.b32.xlu0 %v706_v48, %s5315_s16  ;;  %v1008_v48 = vrot.slane %v5609_v27, 1  ;;  %v5696_v27 = vstv %s5596_s12  ;;  %s5012_s12 = sld [smem:[#allocation2 + $0xb]] }
 0x15b   : > { %v10026_v7 = vrot.slane %v5658_v46, 1 }
 0x161   : > { %688 = vrot.lane.b32.xlu1 %v679_v63, %s5315_s16  ;;  %636 = vrot.lane.b32.xlu2 %v627_v0, %s5315_s16  ;;  %v5687_v63 = vsel %vm740_vm1, %v1008_v48, %v10019_v51  ;;  %v932_v0 = vrot.slane %v5637_v39, 1  ;;  %v931_v39 = vrot.slane %v921_v53, 1  ;;  %v5719_v51 = vsel %vm740_vm1, %v10026_v7, %v10024_v8 }
 0x162   : > { %532 = vrot.lane.b32.xlu0 %v523_v2, %s5316_s17  ;;  %10100 = vst [vmem:[#allocation19_spill] sm:$0xff] %v5687_v63  ;;  %v858_v2 = vrot.slane %v5654_v45, 1  ;;  %v5712_v45 = vmul.f32 %v5696_v27, %v5483_v29  ;;  %v5741_v8 = vmul.f32 %v5696_v27, %v5518_v44 }
 0x163   : > { %10102 = vst [vmem:[#allocation21_spill] sm:$0xff] %v5719_v51 }
 0x164   : > { %10104 = vst [vmem:[#allocation23_spill] sm:$0xff] %v5741_v8 }
 0x169   : > { %905 = vrot.lane.b32.xlu1 %v898_v42, %s5316_s17  ;;  %714 = vrot.lane.b32.xlu2 %v705_v34, %s5315_s16  ;;  %v5699_v34 = vstv %s5614_s13  ;;  %v857_v42 = vrot.slane %v847_v57, 1  ;;  %v933_v57 = vsel %vm740_vm1, %v931_v39, %v932_v0  ;;  %v10033_v39 = vrot.slane %v5712_v45, 1  ;;  %s5011_s13 = sld [smem:[#allocation2 + $0x76]] }
 0x16a   : > { %584 = vrot.lane.b32.xlu0 %v575_v38, %s5316_s17  ;;  %v5708_v38 = vsel %vm740_vm1, %v10028_v60, %v10021_v50  ;;  %v5725_v50 = vmul.f32 %v5594_v20, %v5516_v43  ;;  %v5729_v53 = vmul.f32 %v5699_v34, %v5518_v44  ;;  %v5735_v6 = vmul.f32 %v5699_v34, %v5483_v29 }
 0x16b   : > { %10101 = vst [vmem:[#allocation20_spill] sm:$0xff] %v5708_v38  ;;  %v859_v10 = vsel %vm740_vm1, %v857_v42, %v858_v2  ;;  %v5754_v42 = vmul.f32 %v5746_v56, %v5483_v29  ;;  %v5771_v60 = vmul.f32 %v5746_v56, %v5518_v44  ;;  %v5812_v38 = vmul.f32 %v5774_v19, %v5483_v29 }
 0x16c   : > { %10103 = vst [vmem:[#allocation22_spill] sm:$0xff] %v5729_v53  ;;  %v10035_v7 = vrot.slane %v5729_v53, 2 }
 0x16d   : > { %10106 = vst [vmem:[#allocation25_spill] sm:$0xff] %v5771_v60  ;;  %v10111_v51 = vrot.slane %v5771_v60, 2  ;;  %v10112_v59 = vrot.slane %v5754_v42, 2 }
 0x16f   : > { %v5819_v41 = vsel %vm1153_vm2, %v10112_v59, %v10111_v51  ;;  %v5837_v51 = vstv %s5737_s30  ;;  %s5020_s30 = sld [smem:[#allocation2 + $0xd]] }
 0x170   : > { %10113 = vst [vmem:[#allocation27_spill] sm:$0xff] %v5819_v41  ;;  %v1347_v41 = vrot.slane %v5812_v38, 2  ;;  %v5874_v38 = vmul.f32 %v5779_v11, %v5483_v29 }
 0x171   : > { %940 = vrot.lane.b32.xlu1 %v933_v57, %s5316_s17  ;;  %866 = vrot.lane.b32.xlu2 %v859_v10, %s5316_s17  ;;  %v10032_v57 = vrot.slane %v5741_v8, 1  ;;  %v1032_v8 = vmul.f32 %v5612_v28, %v5455_v18  ;;  %v5796_v10 = vmul.f32 %v5582_v5, %v5516_v43 }
 0x172   : > { %662 = vrot.lane.b32.xlu0 %v653_v36, %s5315_s16 }
 0x173   : > { %v5767_v36 = vsel %vm740_vm1, %v10033_v39, %v10032_v57  ;;  %v10107_v57 = vrot.slane %v5735_v6, 2  ;;  %v1042_v37 = vrot.slane %v1032_v8, 1 }
 0x174   : > { %10105 = vst [vmem:[#allocation24_spill] sm:$0xff] %v5767_v36  ;;  %v1033_v36 = vmul.f32 %v5612_v28, %v5516_v43 }
 0x175   : > { %v5788_v39 = vsel %vm1153_vm2, %v10107_v57, %v10035_v7  ;;  %v10109_v57 = vrot.slane %v5725_v50, 1 }
 0x176   : > { %10108 = vst [vmem:[#allocation26_spill] sm:$0xff] %v5788_v39  ;;  %v10110_v39 = vrot.slane %v5568_v1, 1  ;;  %v861_v1 = vsel %vm740_vm1, %v858_v2, %v10114_v13  ;;  %v5848_v2 = vmul.f32 %v5774_v19, %v5518_v44 }
 0x177   : > { %v1009_v7 = vsel %vm740_vm1, %v10109_v57, %v1008_v48  ;;  %v958_v48 = vmul.f32 %v5582_v5, %v5455_v18  ;;  %v10044_v57 = vrot.slane %v5800_v35, 2 }
 0x178   : > { %v935_v53 = vsel %vm740_vm1, %v932_v0, %v10110_v39  ;;  %v5829_v0 = vstv %s5748_s6  ;;  %v5833_v39 = vmul.f32 %v5777_v55, %v5518_v44  ;;  %10116 = vst [vmem:[#allocation29_spill] sm:$0xff] %v5848_v2  ;;  %v10119_v8 = vrot.slane %v5848_v2, 2  ;;  %s5037_s6 = sld [smem:[#allocation2 + $0x35]] }
 0x179   : > { %1016 = vrot.lane.b32.xlu1 %v1009_v7, %s5315_s16  ;;  %942 = vrot.lane.b32.xlu2 %v935_v53, %s5316_s17  ;;  %v5841_v59 = vmul.f32 %v5829_v0, %v5483_v29  ;;  %v1043_v7 = vrot.slane %v1033_v36, 1  ;;  %v884_v53 = vmul.f32 %v5541_v54, %v5455_v18  ;;  %v5859_v63 = vmul.f32 %v5829_v0, %v5518_v44 }
 0x17a   : > { %10115 = vst [vmem:[#allocation28_spill] sm:$0xff] %v5833_v39  ;;  %868 = vrot.lane.b32.xlu0 %v861_v1, %s5316_s17  ;;  %v10043_v13 = vrot.slane %v5833_v39, 2  ;;  %v969_v1 = vrot.slane %v5796_v10, 1  ;;  %v968_v33 = vrot.slane %v958_v48, 1  ;;  %v5863_v36 = vmul.f32 %v5837_v51, %v5483_v29 }
 0x17b   : > { %10117 = vst [vmem:[#allocation30_spill] sm:$0xff] %v5859_v63  ;;  %v5880_v48 = vsel %vm1153_vm2, %v1347_v41, %v10119_v8  ;;  %v10049_v12 = vrot.slane %v5859_v63, 2  ;;  %v1044_v39 = vsel %vm740_vm1, %v1042_v37, %v1043_v7  ;;  %v894_v28 = vrot.slane %v884_v53, 1 }
 0x17c   : > { %v5870_v10 = vsel %vm1153_vm2, %v10044_v57, %v10043_v13  ;;  %v5886_v13 = vmul.f32 %v5696_v27, %v5516_v43  ;;  %v5890_v57 = vmul.f32 %v5837_v51, %v5518_v44  ;;  %v970_v60 = vsel %vm740_vm1, %v968_v33, %v969_v1 }
 0x17d   : > { %10118 = vst [vmem:[#allocation31_spill] sm:$0xff] %v5870_v10  ;;  %v5895_v10 = vmul.f32 %v5844_v49, %v5483_v29  ;;  %v10120_v8 = vrot.slane %v5841_v59, 2  ;;  %v5906_v53 = vmul.f32 %v5779_v11, %v5518_v44  ;;  %v10122_v33 = vrot.slane %v5574_v3, 1 }
 0x17e   : > { %v10051_v2 = vrot.slane %v5863_v36, 2  ;;  %v10050_v63 = vrot.slane %v5890_v57, 2 }
 0x17f   : > { %v5902_v37 = vsel %vm1153_vm2, %v10120_v8, %v10049_v12  ;;  %v896_v29 = vsel %vm740_vm1, %v894_v28, %v10122_v33  ;;  %v10053_v8 = vrot.slane %v5874_v38, 2  ;;  %v10052_v12 = vrot.slane %v5906_v53, 2 }
 0x180   : > { %10121 = vst [vmem:[#allocation32_spill] sm:$0xff] %v5902_v37  ;;  %v5920_v37 = vmul.f32 %v5844_v49, %v5518_v44  ;;  %v5927_v3 = vsel %vm1153_vm2, %v10051_v2, %v10050_v63  ;;  %v1117_v28 = vrot.slane %v5886_v13, 1  ;;  %v10125_v13 = vrot.slane %v5712_v45, 1 }
 0x181   : > { %1051 = vrot.lane.b32.xlu1 %v1044_v39, %s5315_s16  ;;  %977 = vrot.lane.b32.xlu2 %v970_v60, %s5316_s17  ;;  %10123 = vst [vmem:[#allocation33_spill] sm:$0xff] %v5927_v3  ;;  %v10055_v60 = vrot.slane %v5895_v10, 2  ;;  %v10126_v2 = vrot.slane %v5643_v40, 1  ;;  %v1070_v3 = vmul.f32 %v5616_v31, %v5516_v43  ;;  %v1260_v40 = vmul.f32 %v5699_v34, %v5455_v18 }
 0x182   : > { %903 = vrot.lane.b32.xlu0 %v896_v29, %s5316_s17  ;;  %v5936_v29 = vsel %vm1153_vm2, %v10053_v8, %v10052_v12  ;;  %v10054_v39 = vrot.slane %v5920_v37, 2  ;;  %v1120_v63 = vsel %vm740_vm1, %v1117_v28, %v10125_v13  ;;  %v1261_v8 = vmul.f32 %v5699_v34, %v5516_v43 }
 0x183   : > { %v1046_v12 = vsel %vm740_vm1, %v1043_v7, %v10126_v2  ;;  %v1069_v2 = vmul.f32 %v5616_v31, %v5455_v18  ;;  %v995_v13 = vmul.f32 %v5594_v20, %v5455_v18 }
 0x184   : > { %v5944_v33 = vsel %vm1153_vm2, %v10055_v60, %v10054_v39  ;;  %v10127_v39 = vrot.slane %v5588_v9, 1  ;;  %v1080_v60 = vrot.slane %v1070_v3, 1 }
 0x185   : > { %10124 = vst [vmem:[#allocation34_spill] sm:$0xff] %v5944_v33  ;;  %v1079_v14 = vrot.slane %v1069_v2, 1  ;;  %v1005_v9 = vrot.slane %v995_v13, 1  ;;  %v1372_v13 = vmul.f32 %v5777_v55, %v5516_v43 }
 0x186   : > { %v972_v45 = vsel %vm740_vm1, %v969_v1, %v10127_v39 }
 0x187   : > { %v1081_v39 = vsel %vm740_vm1, %v1079_v14, %v1080_v60  ;;  %v10131_v14 = vrot.slane %v5735_v6, 2  ;;  %v1371_v6 = vmul.f32 %v5777_v55, %v5455_v18 }
 0x189   : > { %1127 = vrot.lane.b32.xlu1 %v1120_v63, %s5315_s16  ;;  %1053 = vrot.lane.b32.xlu2 %v1046_v12, %s5315_s16  ;;  %v1271_v63 = vrot.slane %v1261_v8, 2  ;;  %v1270_v12 = vrot.slane %v1260_v40, 2 }
 0x18a   : > { %979 = vrot.lane.b32.xlu0 %v972_v45, %s5316_s17  ;;  %v1335_v45 = vmul.f32 %v5774_v19, %v5516_v43 }
 0x18b   : > { %v5968_v7 = vpop.permute.xlu2 %556  ;;  %v1272_v1 = vsel %vm1153_vm2, %v1270_v12, %v1271_v63  ;;  %v1274_v2 = vsel %vm1153_vm2, %v1271_v63, %v10131_v14  ;;  %v1298_v12 = vmul.f32 %v5746_v56, %v5516_v43  ;;  %v1106_v63 = vmul.f32 %v5696_v27, %v5455_v18 }
 0x18c   : > { %10128 = vst [vmem:[#allocation35_spill] sm:$0xff] %v5968_v7  ;;  %v10129_v7 = vrot.slane %v5725_v50, 1  ;;  %v1345_v3 = vrot.slane %v1335_v45, 2  ;;  %v10132_v50 = vrot.slane %v5658_v46, 1  ;;  %v1446_v14 = vmul.f32 %v5779_v11, %v5516_v43 }
 0x18d   : > { %v1116_v46 = vrot.slane %v1106_v63, 1  ;;  %v10135_v63 = vrot.slane %v5800_v35, 2  ;;  %v1482_v35 = vmul.f32 %v5837_v51, %v5455_v18 }
 0x18e   : > { %v1007_v33 = vsel %vm740_vm1, %v1005_v9, %v10129_v7  ;;  %v1348_v40 = vsel %vm1153_vm2, %v1345_v3, %v1347_v41  ;;  %v1297_v41 = vmul.f32 %v5746_v56, %v5455_v18  ;;  %v1382_v9 = vrot.slane %v1372_v13, 2 }
 0x190   : > { %v1307_v45 = vrot.slane %v1297_v41, 2 }
 0x191   : > { %1279 = vrot.lane.b32.xlu1 %v1272_v1, %s5316_s17  ;;  %1088 = vrot.lane.b32.xlu2 %v1081_v39, %s5315_s16  ;;  %v1308_v1 = vrot.slane %v1298_v12, 2  ;;  %v1381_v39 = vrot.slane %v1371_v6, 2  ;;  %v10134_v6 = vrot.slane %v5874_v38, 2 }
 0x192   : > { %1014 = vrot.lane.b32.xlu0 %v1007_v33, %s5315_s16  ;;  %v1083_v33 = vsel %vm740_vm1, %v1080_v60, %v10132_v50 }
 0x193   : > { %v5982_v8 = vpop.permute.xlu2 %582  ;;  %v1383_v60 = vsel %vm1153_vm2, %v1381_v39, %v1382_v9  ;;  %v1385_v39 = vsel %vm1153_vm2, %v1382_v9, %v10135_v63  ;;  %v1408_v9 = vmul.f32 %v5829_v0, %v5455_v18 }
 0x194   : > { %10130 = vst [vmem:[#allocation36_spill] sm:$0xff] %v5982_v8 }
 0x199   : > { %1355 = vrot.lane.b32.xlu1 %v1348_v40, %s5316_s17  ;;  %1281 = vrot.lane.b32.xlu2 %v1274_v2, %s5316_s17  ;;  %v1309_v40 = vsel %vm1153_vm2, %v1307_v45, %v1308_v1  ;;  %v1118_v2 = vsel %vm740_vm1, %v1116_v46, %v1117_v28  ;;  %v1483_v28 = vmul.f32 %v5837_v51, %v5516_v43  ;;  %v10136_v46 = vrot.slane %v5754_v42, 2 }
 0x19a   : > { %1090 = vrot.lane.b32.xlu0 %v1083_v33, %s5315_s16  ;;  %v1456_v33 = vrot.slane %v1446_v14, 2  ;;  %v1409_v45 = vmul.f32 %v5829_v0, %v5516_v43  ;;  %v1334_v14 = vmul.f32 %v5774_v19, %v5455_v18 }
 0x19b   : > { %v6002_v7 = vpop.permute.xlu2 %660  ;;  %v1311_v38 = vsel %vm1153_vm2, %v1308_v1, %v10136_v46  ;;  %v1493_v42 = vrot.slane %v1483_v28, 2  ;;  %v1492_v1 = vrot.slane %v1482_v35, 2  ;;  %v10142_v35 = vrot.slane %v5863_v36, 2 }
 0x19c   : > { %v1459_v41 = vsel %vm1153_vm2, %v1456_v33, %v10134_v6  ;;  %v1419_v6 = vrot.slane %v1409_v45, 2  ;;  %v1344_v63 = vrot.slane %v1334_v14, 2  ;;  %v525_v45 = vmul.f32 %v5453_v17, %v5518_v44 }
 0x19d   : > { %v1520_v14 = vmul.f32 %v5844_v49, %v5516_v43  ;;  %v1519_v17 = vmul.f32 %v5844_v49, %v5455_v18 }
 0x1a1   : > { %1390 = vrot.lane.b32.xlu1 %v1383_v60, %s5316_s17  ;;  %1316 = vrot.lane.b32.xlu2 %v1309_v40, %s5316_s17 }
 0x1a2   : > { %1125 = vrot.lane.b32.xlu0 %v1118_v2, %s5315_s16 }
 0x1a3   : > { %v6014_v13 = vpop.permute.xlu1 %634  ;;  %v6016_v12 = vpop.permute.xlu2 %612 }
 0x1a4   : > { %10133 = vst [vmem:[#allocation37_spill] sm:$0xff] %v6016_v12  ;;  %v6018_v50 = vpop.permute.xlu0 %530 }
 0x1a9   : > { %1466 = vrot.lane.b32.xlu1 %v1459_v41, %s5315_s16  ;;  %1392 = vrot.lane.b32.xlu2 %v1385_v39, %s5316_s17  ;;  %v1418_v41 = vrot.slane %v1408_v9, 2  ;;  %v1494_v39 = vsel %vm1153_vm2, %v1492_v1, %v1493_v42  ;;  %v1496_v9 = vsel %vm1153_vm2, %v1493_v42, %v10142_v35  ;;  %v1445_v42 = vmul.f32 %v5779_v11, %v5455_v18 }
 0x1aa   : > { %1318 = vrot.lane.b32.xlu0 %v1311_v38, %s5316_s17  ;;  %v1346_v38 = vsel %vm1153_vm2, %v1344_v63, %v1345_v3  ;;  %v10143_v3 = vrot.slane %v5841_v59, 2  ;;  %v551_v59 = vmul.f32 %v5451_v16, %v5518_v44  ;;  %v629_v16 = vmul.f32 %v5449_v15, %v5518_v44 }
 0x1ab   : > { %v6040_v60 = vpop.permute.xlu1 %712  ;;  %v6042_v40 = vpop.permute.xlu2 %690  ;;  %v1420_v46 = vsel %vm1153_vm2, %v1418_v41, %v1419_v6  ;;  %v707_v15 = vmul.f32 %v5466_v22, %v5518_v44 }
 0x1ac   : > { %10137 = vst [vmem:[#allocation38_spill] sm:$0xff] %v6040_v60  ;;  %v6046_v2 = vpop.permute.xlu0 %608  ;;  %v1422_v1 = vsel %vm1153_vm2, %v1419_v6, %v10143_v3  ;;  %v1455_v6 = vrot.slane %v1445_v42, 2  ;;  %v577_v3 = vmul.f32 %v5468_v23, %v5518_v44  ;;  %v655_v23 = vmul.f32 %v5485_v30, %v5518_v44  ;;  %v5135_v30 = vld [vmem:[%s5422_s25 + $0x10] sm:$0xff] }
 0x1ad   : > { %10138 = vst [vmem:[#allocation39_spill] sm:$0xff] %v6042_v40  ;;  %4947 = vmatmul.msk.bf16.gmra.mxu0 %vm287_vm0, %v5135_v30 }
 0x1b1   : > { %1501 = vrot.lane.b32.xlu1 %v1494_v39, %s5315_s16  ;;  %1427 = vrot.lane.b32.xlu2 %v1420_v46, %s5315_s16  ;;  %v1530_v39 = vrot.slane %v1520_v14, 2  ;;  %v1529_v46 = vrot.slane %v1519_v17, 2 }
 0x1b2   : > { %1353 = vrot.lane.b32.xlu0 %v1346_v38, %s5316_s17 }
 0x1b3   : > { %v6054_v40 = vpop.permute.xlu1 %534  ;;  %v6056_v12 = vpop.permute.xlu2 %558  ;;  %v1531_v38 = vsel %vm1153_vm2, %v1529_v46, %v1530_v39 }
 0x1b4   : > { %10139 = vst [vmem:[#allocation40_spill] sm:$0xff] %v6054_v40  ;;  %v6058_v28 = vpop.permute.xlu0 %686 }
 0x1b5   : > { %10140 = vst [vmem:[#allocation41_spill] sm:$0xff] %v6056_v12 }
 0x1b6   : > { %10141 = vst [vmem:[#allocation42_spill] sm:$0xff] %v6058_v28 }
 0x1b9   : > { %536 = vrot.lane.b32.xlu1 %v525_v45, %s5316_s17  ;;  %1503 = vrot.lane.b32.xlu2 %v1496_v9, %s5315_s16  ;;  %v1457_v45 = vsel %vm1153_vm2, %v1455_v6, %v1456_v33  ;;  %v10150_v33 = vrot.slane %v5895_v10, 2  ;;  %v603_v10 = vmul.f32 %v5470_v24, %v5518_v44 }
 0x1ba   : > { %1429 = vrot.lane.b32.xlu0 %v1422_v1, %s5315_s16 }
 0x1bb   : > { %v6075_v41 = vpop.permute.xlu1 %586  ;;  %v6077_v36 = vpop.permute.xlu2 %636  ;;  %v1533_v1 = vsel %vm1153_vm2, %v1530_v39, %v10150_v33  ;;  %v851_v39 = vmul.f32 %v5524_v47, %v5472_v25  ;;  %v681_v47 = vmul.f32 %v5489_v32, %v5518_v44 }
 0x1bc   : > { %10144 = vst [vmem:[#allocation43_spill] sm:$0xff] %v6075_v41  ;;  %v6081_v63 = vpop.permute.xlu0 %560 }
 0x1bd   : > { %10145 = vst [vmem:[#allocation44_spill] sm:$0xff] %v6077_v36 }
 0x1be   : > { %10146 = vst [vmem:[#allocation45_spill] sm:$0xff] %v6081_v63 }
 0x1c1   : > { %562 = vrot.lane.b32.xlu1 %v551_v59, %s5316_s17  ;;  %1538 = vrot.lane.b32.xlu2 %v1531_v38, %s5315_s16  ;;  %v864_v38 = vrot.slane %v851_v39, 1 }
 0x1c2   : > { %1464 = vrot.lane.b32.xlu0 %v1457_v45, %s5315_s16  ;;  %v10156_v45 = vrot.slane %v5537_v52, 1 }
 0x1c3   : > { %v6090_v35 = vpop.permute.xlu1 %664  ;;  %v6092_v9 = vpop.permute.xlu2 %714 }
 0x1c4   : > { %10147 = vst [vmem:[#allocation46_spill] sm:$0xff] %v6090_v35  ;;  %v6094_v14 = vpop.permute.xlu0 %638  ;;  %v865_v24 = vsel %vm740_vm1, %v10156_v45, %v864_v38 }
 0x1c5   : > { %10148 = vst [vmem:[#allocation47_spill] sm:$0xff] %v6092_v9 }
 0x1c6   : > { %10149 = vst [vmem:[#allocation48_spill] sm:$0xff] %v6094_v14 }
 0x1c9   : > { %640 = vrot.lane.b32.xlu1 %v629_v16, %s5315_s16  ;;  %588 = vrot.lane.b32.xlu2 %v577_v3, %s5316_s17  ;;  %v925_v16 = vmul.f32 %v5549_v58, %v5472_v25  ;;  %v888_v3 = vmul.f32 %v5541_v54, %v5472_v25  ;;  %v10160_v54 = vrot.slane %v5578_v4, 1  ;;  %v10166_v4 = vld [vmem:[#allocation17_spill] sm:$0xff] }
 0x1ca   : > { %1540 = vrot.lane.b32.xlu0 %v1533_v1, %s5315_s16 }
 0x1cb   : > { %v6106_v17 = vpop.permute.xlu1 %610  ;;  %v6108_v42 = vpop.permute.xlu2 %866  ;;  %v938_v1 = vrot.slane %v925_v16, 1  ;;  %v901_v58 = vrot.slane %v888_v3, 1  ;;  %v10167_v16 = vld [vmem:[#allocation14_spill] sm:$0xff] }
 0x1cc   : > { %10151 = vst [vmem:[#allocation49_spill] sm:$0xff] %v6106_v17  ;;  %v6110_v46 = vpop.permute.xlu0 %716 }
 0x1cd   : > { %10152 = vst [vmem:[#allocation50_spill] sm:$0xff] %v6108_v42 }
 0x1ce   : > { %10153 = vst [vmem:[#allocation51_spill] sm:$0xff] %v6110_v46 }
 0x1d1   : > { %718 = vrot.lane.b32.xlu1 %v707_v15, %s5315_s16  ;;  %666 = vrot.lane.b32.xlu2 %v655_v23, %s5315_s16  ;;  %v10159_v15 = vrot.slane %v5560_v62, 1  ;;  %v962_v23 = vmul.f32 %v5582_v5, %v5472_v25  ;;  %v10164_v5 = vrot.slane %v5605_v26, 1 }
 0x1d2   : > { %614 = vrot.lane.b32.xlu0 %v603_v10, %s5316_s17  ;;  %v902_v10 = vsel %vm740_vm1, %v10160_v54, %v901_v58 }
 0x1d3   : > { %v6123_v59 = vpop.permute.xlu1 %688  ;;  %v6125_v6 = vpop.permute.xlu2 %942  ;;  %v975_v30 = vrot.slane %v962_v23, 1 }
 0x1d4   : > { %10154 = vst [vmem:[#allocation52_spill] sm:$0xff] %v6123_v59  ;;  %v6127_v22 = vpop.permute.xlu0 %532 }
 0x1d5   : > { %10155 = vst [vmem:[#allocation53_spill] sm:$0xff] %v6125_v6  ;;  %v976_v45 = vsel %vm740_vm1, %v10164_v5, %v975_v30  ;;  %v10174_v30 = vld [vmem:[#allocation16_spill] sm:$0xff] }
 0x1d6   : > { %v10175_v5 = vrot.slane %v10174_v30, 1 }
 0x1d9   : > { %870 = vrot.lane.b32.xlu1 %v5556_v61, %s5316_s17  ;;  %872 = vrot.lane.b32.xlu2 %v865_v24, %s5316_s17  ;;  %v939_v61 = vsel %vm740_vm1, %v10159_v15, %v938_v1  ;;  %v10165_v24 = vld [vmem:[#allocation13_spill] sm:$0xff] }
 0x1da   : > { %692 = vrot.lane.b32.xlu0 %v681_v47, %s5315_s16  ;;  %v999_v47 = vmul.f32 %v5594_v20, %v5472_v25  ;;  %v10173_v20 = vld [vmem:[#allocation19_spill] sm:$0xff] }
 0x1db   : > { %v6144_v52 = vpop.permute.xlu1 %905  ;;  %v6146_v33 = vpop.permute.xlu2 %977 }
 0x1dc   : > { %10157 = vst [vmem:[#allocation54_spill] sm:$0xff] %v6144_v52  ;;  %v6148_v32 = vpop.permute.xlu0 %584  ;;  %v1012_v15 = vrot.slane %v999_v47, 1 }
 0x1dd   : > { %10158 = vst [vmem:[#allocation55_spill] sm:$0xff] %v6146_v33 }
 0x1e1   : > { %946 = vrot.lane.b32.xlu1 %v939_v61, %s5316_s17  ;;  %907 = vrot.lane.b32.xlu2 %v5601_v21, %s5316_s17  ;;  %v1036_v21 = vmul.f32 %v10165_v24, %v5472_v25  ;;  %v10171_v61 = vld [vmem:[#allocation15_spill] sm:$0xff] }
 0x1e2   : > { %909 = vrot.lane.b32.xlu0 %v902_v10, %s5316_s17  ;;  %v10172_v23 = vrot.slane %v10171_v61, 1  ;;  %v1073_v10 = vmul.f32 %v5616_v31, %v5472_v25  ;;  %v1264_v61 = vmul.f32 %v5699_v34, %v5472_v25  ;;  %v10186_v34 = vld [vmem:[#allocation22_spill] sm:$0xff] }
 0x1e3   : > { %v6162_v39 = vpop.permute.xlu1 %940  ;;  %v6164_v38 = vpop.permute.xlu2 %1053  ;;  %v1049_v58 = vrot.slane %v1036_v21, 1 }
 0x1e4   : > { %10161 = vst [vmem:[#allocation56_spill] sm:$0xff] %v6162_v39  ;;  %v6166_v62 = vpop.permute.xlu0 %662  ;;  %v1086_v47 = vrot.slane %v1073_v10, 1 }
 0x1e5   : > { %10162 = vst [vmem:[#allocation57_spill] sm:$0xff] %v6164_v38  ;;  %v1050_v54 = vsel %vm740_vm1, %v10172_v23, %v1049_v58  ;;  %v10181_v23 = vld [vmem:[#allocation21_spill] sm:$0xff] }
 0x1e6   : > { %10163 = vst [vmem:[#allocation58_spill] sm:$0xff] %v6166_v62 }
 0x1e9   : > { %981 = vrot.lane.b32.xlu1 %v10166_v4, %s5316_s17  ;;  %983 = vrot.lane.b32.xlu2 %v976_v45, %s5316_s17  ;;  %v1013_v45 = vsel %vm740_vm1, %v10175_v5, %v1012_v15  ;;  %v1110_v15 = vmul.f32 %v5696_v27, %v5472_v25  ;;  %v1277_v5 = vrot.slane %v1264_v61, 2  ;;  %v10188_v27 = vld [vmem:[#allocation24_spill] sm:$0xff] }
 0x1ea   : > { %944 = vrot.lane.b32.xlu0 %v10167_v16, %s5316_s17  ;;  %v10179_v16 = vld [vmem:[#allocation18_spill] sm:$0xff] }
 0x1eb   : > { %v6180_v3 = vpop.permute.xlu1 %1016  ;;  %v6182_v1 = vpop.permute.xlu2 %1088  ;;  %v10180_v31 = vrot.slane %v10179_v16, 1 }
 0x1ec   : > { %10168 = vst [vmem:[#allocation13_spill] sm:$0xff] %v6180_v3  ;;  %v6184_v26 = vpop.permute.xlu0 %868 }
 0x1ed   : > { %10169 = vst [vmem:[#allocation17_spill] sm:$0xff] %v6182_v1  ;;  %v1087_v58 = vsel %vm740_vm1, %v10180_v31, %v1086_v47  ;;  %v10187_v47 = vrot.slane %v10186_v34, 2  ;;  %v1301_v31 = vmul.f32 %v5746_v56, %v5472_v25 }
 0x1ee   : > { %10170 = vst [vmem:[#allocation14_spill] sm:$0xff] %v6184_v26 }
 0x1ef   : > { %v1278_v16 = vsel %vm1153_vm2, %v10187_v47, %v1277_v5  ;;  %v1314_v5 = vrot.slane %v1301_v31, 2  ;;  %v10194_v47 = vld [vmem:[#allocation25_spill] sm:$0xff] }
 0x1f0   : > { %v10195_v56 = vrot.slane %v10194_v47, 2 }
 0x1f1   : > { %1057 = vrot.lane.b32.xlu1 %v1050_v54, %s5315_s16  ;;  %1018 = vrot.lane.b32.xlu2 %v10173_v20, %s5315_s16  ;;  %v10182_v54 = vld [vmem:[#allocation20_spill] sm:$0xff] }
 0x1f2   : > { %1020 = vrot.lane.b32.xlu0 %v1013_v45, %s5315_s16  ;;  %v1123_v45 = vrot.slane %v1110_v15, 1 }
 0x1f3   : > { %v6198_v24 = vpop.permute.xlu1 %1051  ;;  %v6200_v21 = vpop.permute.xlu2 %1281 }
 0x1f4   : > { %10176 = vst [vmem:[#allocation15_spill] sm:$0xff] %v6198_v24  ;;  %v6202_v4 = vpop.permute.xlu0 %903 }
 0x1f5   : > { %10177 = vst [vmem:[#allocation19_spill] sm:$0xff] %v6200_v21 }
 0x1f6   : > { %10178 = vst [vmem:[#allocation16_spill] sm:$0xff] %v6202_v4 }
 0x1f9   : > { %1092 = vrot.lane.b32.xlu1 %v10181_v23, %s5315_s16  ;;  %1094 = vrot.lane.b32.xlu2 %v1087_v58, %s5315_s16  ;;  %v10189_v58 = vld [vmem:[#allocation23_spill] sm:$0xff] }
 0x1fa   : > { %1055 = vrot.lane.b32.xlu0 %v10182_v54, %s5315_s16  ;;  %v10190_v23 = vrot.slane %v10189_v58, 1  ;;  %v10196_v58 = vld [vmem:[#allocation27_spill] sm:$0xff] }
 0x1fb   : > { %v6216_v20 = vpop.permute.xlu1 %1127  ;;  %v6218_v10 = vpop.permute.xlu2 %1316 }
 0x1fc   : > { %10183 = vst [vmem:[#allocation18_spill] sm:$0xff] %v6216_v20  ;;  %v6220_v30 = vpop.permute.xlu0 %979  ;;  %v1124_v54 = vsel %vm740_vm1, %v10190_v23, %v1123_v45  ;;  %v1338_v45 = vmul.f32 %v5774_v19, %v5472_v25  ;;  %v10197_v23 = vld [vmem:[#allocation26_spill] sm:$0xff]  ;;  %v10203_v19 = vld [vmem:[#allocation29_spill] sm:$0xff] }
 0x1fd   : > { %10184 = vst [vmem:[#allocation21_spill] sm:$0xff] %v6218_v10 }
 0x1fe   : > { %10185 = vst [vmem:[#allocation20_spill] sm:$0xff] %v6220_v30 }
 0x201   : > { %1285 = vrot.lane.b32.xlu1 %v1278_v16, %s5316_s17  ;;  %1129 = vrot.lane.b32.xlu2 %v10188_v27, %s5315_s16  ;;  %v1315_v16 = vsel %vm1153_vm2, %v10195_v56, %v1314_v5  ;;  %v1375_v27 = vmul.f32 %v5777_v55, %v5472_v25  ;;  %v1351_v56 = vrot.slane %v1338_v45, 2  ;;  %v10201_v55 = vld [vmem:[#allocation28_spill] sm:$0xff] }
 0x202   : > { %1131 = vrot.lane.b32.xlu0 %v1124_v54, %s5315_s16 }
 0x203   : > { %v6234_v61 = vpop.permute.xlu1 %1279  ;;  %v6236_v15 = vpop.permute.xlu2 %1392  ;;  %v1388_v5 = vrot.slane %v1375_v27, 2 }
 0x204   : > { %10191 = vst [vmem:[#allocation22_spill] sm:$0xff] %v6234_v61  ;;  %v6238_v34 = vpop.permute.xlu0 %1014 }
 0x205   : > { %10192 = vst [vmem:[#allocation24_spill] sm:$0xff] %v6236_v15  ;;  %v10202_v15 = vrot.slane %v10201_v55, 2  ;;  %v6274_v55 = vpop.f32.mrf.mxu2 }
 0x206   : > { %10193 = vst [vmem:[#allocation23_spill] sm:$0xff] %v6238_v34 }
 0x207   : > { %10207 = vst [vmem:[#allocation59_spill] sm:$0xff] %v6274_v55 }
 0x209   : > { %1320 = vrot.lane.b32.xlu1 %v10196_v58, %s5316_s17  ;;  %1322 = vrot.lane.b32.xlu2 %v1315_v16, %s5316_s17  ;;  %v1389_v58 = vsel %vm1153_vm2, %v10202_v15, %v1388_v5  ;;  %v1412_v16 = vmul.f32 %v5829_v0, %v5472_v25  ;;  %v10209_v5 = vld [vmem:[#allocation30_spill] sm:$0xff] }
 0x20a   : > { %1283 = vrot.lane.b32.xlu0 %v10197_v23, %s5316_s17  ;;  %v10204_v23 = vrot.slane %v10203_v19, 2  ;;  %v10212_v19 = vld [vmem:[#allocation31_spill] sm:$0xff] }
 0x20b   : > { %v6252_v54 = vpop.permute.xlu1 %1355  ;;  %v6254_v31 = vpop.permute.xlu2 %1427  ;;  %v1425_v0 = vrot.slane %v1412_v16, 2 }
 0x20c   : > { %10198 = vst [vmem:[#allocation25_spill] sm:$0xff] %v6252_v54  ;;  %v6256_v47 = vpop.permute.xlu0 %1090 }
 0x20d   : > { %10199 = vst [vmem:[#allocation27_spill] sm:$0xff] %v6254_v31  ;;  %v1352_v31 = vsel %vm1153_vm2, %v10204_v23, %v1351_v56  ;;  %v10211_v56 = vld [vmem:[#allocation32_spill] sm:$0xff] }
 0x20e   : > { %10200 = vst [vmem:[#allocation26_spill] sm:$0xff] %v6256_v47 }
 0x211   : > { %1396 = vrot.lane.b32.xlu1 %v1389_v58, %s5316_s17  ;;  %1357 = vrot.lane.b32.xlu2 %v5880_v48, %s5316_s17  ;;  %v10210_v58 = vrot.slane %v10209_v5, 2  ;;  %v1486_v48 = vmul.f32 %v5837_v51, %v5472_v25  ;;  %v6296_v51 = vpop.f32.mrf.mxu2 }
 0x212   : > { %1359 = vrot.lane.b32.xlu0 %v1352_v31, %s5316_s17  ;;  %v1449_v31 = vmul.f32 %v5779_v11, %v5472_v25  ;;  %10216 = vst [vmem:[#allocation61_spill] sm:$0xff] %v6296_v51  ;;  %v1523_v11 = vmul.f32 %v5844_v49, %v5472_v25 }
 0x213   : > { %v6270_v27 = vpop.permute.xlu1 %1390  ;;  %v6272_v45 = vpop.permute.xlu2 %1503  ;;  %v1426_v54 = vsel %vm1153_vm2, %v10210_v58, %v1425_v0  ;;  %v1499_v0 = vrot.slane %v1486_v48, 2 }
 0x214   : > { %10205 = vst [vmem:[#allocation28_spill] sm:$0xff] %v6270_v27  ;;  %v6276_v15 = vpop.permute.xlu0 %1125  ;;  %v1462_v58 = vrot.slane %v1449_v31, 2  ;;  %v1536_v49 = vrot.slane %v1523_v11, 2  ;;  %v6378_v27 = vstv %s5014_s14  ;;  %s5027_s14 = sld [smem:[#allocation2 + $0x7a]] }
 0x215   : > { %10206 = vst [vmem:[#allocation29_spill] sm:$0xff] %v6272_v45 }
 0x216   : > { %10208 = vst [vmem:[#allocation60_spill] sm:$0xff] %v6276_v15 }
 0x219   : > { %1431 = vrot.lane.b32.xlu1 %v10211_v56, %s5315_s16  ;;  %1433 = vrot.lane.b32.xlu2 %v1426_v54, %s5315_s16  ;;  %v10217_v56 = vrot.slane %v5890_v57, 2 }
 0x21a   : > { %1394 = vrot.lane.b32.xlu0 %v10212_v19, %s5316_s17  ;;  %v10218_v19 = vrot.slane %v5906_v53, 2 }
 0x21b   : > { %v6290_v23 = vpop.permute.xlu1 %1466  ;;  %v6292_v16 = vpop.permute.xlu2 %1538  ;;  %v1500_v54 = vsel %vm1153_vm2, %v10217_v56, %v1499_v0  ;;  %v6326_v56 = vstv %s5010_s8  ;;  %s5021_s8 = sld [smem:[#allocation2 + $0x31]] }
 0x21c   : > { %10213 = vst [vmem:[#allocation30_spill] sm:$0xff] %v6290_v23  ;;  %v6294_v5 = vpop.permute.xlu0 %1318  ;;  %v1463_v23 = vsel %vm1153_vm2, %v10218_v19, %v1462_v58  ;;  %v6316_v0 = vpop.f32.mrf.mxu2  ;;  %v10224_v58 = vld [vmem:[#allocation34_spill] sm:$0xff] }
 0x21d   : > { %10214 = vst [vmem:[#allocation32_spill] sm:$0xff] %v6292_v16  ;;  %v6355_v16 = vstv %s5013_s11  ;;  %v1754_v10 = vmul.f32 %v6378_v27, %v6316_v0  ;;  %s5024_s11 = sld [smem:[#allocation2 + $0xe]] }
 0x21e   : > { %10215 = vst [vmem:[#allocation31_spill] sm:$0xff] %v6294_v5 }
 0x21f   : > { %10222 = vst [vmem:[#allocation65_spill] sm:$0xff] %v6316_v0 }
 0x221   : > { %1507 = vrot.lane.b32.xlu1 %v1500_v54, %s5315_s16  ;;  %1468 = vrot.lane.b32.xlu2 %v5936_v29, %s5315_s16  ;;  %v10223_v29 = vrot.slane %v5920_v37, 2  ;;  %v6328_v54 = vstv %s5009_s9  ;;  %s5022_s9 = sld [smem:[#allocation2 + $0x55]] }
 0x222   : > { %1470 = vrot.lane.b32.xlu0 %v1463_v23, %s5315_s16  ;;  %v10225_v23 = vld [vmem:[#allocation33_spill] sm:$0xff] }
 0x223   : > { %v6310_v48 = vpop.permute.xlu1 %1501  ;;  %v6312_v57 = vpop.permute.xlu2 %588  ;;  %v1537_v53 = vsel %vm1153_vm2, %v10223_v29, %v1536_v49  ;;  %v1648_v49 = vmul.f32 %v6326_v56, %v6274_v55  ;;  %v1622_v29 = vmul.f32 %v6328_v54, %v6274_v55 }
 0x224   : > { %10219 = vst [vmem:[#allocation62_spill] sm:$0xff] %v6310_v48  ;;  %v6314_v31 = vpop.permute.xlu0 %1353  ;;  %v6334_v48 = vstv %s5008_s10  ;;  %s5023_s10 = sld [smem:[#allocation2 + $0x79]] }
 0x225   : > { %10220 = vst [vmem:[#allocation63_spill] sm:$0xff] %v6312_v57  ;;  %v1597_v61 = vmul.f32 %v6334_v48, %v6296_v51 }
 0x226   : > { %10221 = vst [vmem:[#allocation64_spill] sm:$0xff] %v6314_v31 }
 0x229   : > { %1542 = vrot.lane.b32.xlu1 %v10224_v58, %s5315_s16  ;;  %1544 = vrot.lane.b32.xlu2 %v1537_v53, %s5315_s16  ;;  %v1596_v53 = vmul.f32 %v6334_v48, %v6274_v55  ;;  %v6344_v58 = vpop.f32.mrf.mxu2 }
 0x22a   : > { %1505 = vrot.lane.b32.xlu0 %v10225_v23, %s5315_s16  ;;  %10229 = vst [vmem:[#allocation67_spill] sm:$0xff] %v6344_v58  ;;  %v1651_v38 = vmul.f32 %v6326_v56, %v6344_v58 }
 0x22b   : > { %v6330_v19 = vpop.permute.xlu1 %536  ;;  %v6332_v11 = vpop.permute.xlu2 %666 }
 0x22c   : > { %10226 = vst [vmem:[#allocation34_spill] sm:$0xff] %v6330_v19  ;;  %v6336_v37 = vpop.permute.xlu0 %1429  ;;  %v6359_v19 = vstv %s5011_s13  ;;  %s5026_s13 = sld [smem:[#allocation2 + $0x56]] }
 0x22d   : > { %10227 = vst [vmem:[#allocation33_spill] sm:$0xff] %v6332_v11  ;;  %v6357_v11 = vstv %s5012_s12  ;;  %s5025_s12 = sld [smem:[#allocation2 + $0x32]] }
 0x22e   : > { %10228 = vst [vmem:[#allocation66_spill] sm:$0xff] %v6336_v37 }
 0x231   : > { %1656 = vrot.lane.b32.xlu2 %v1648_v49, %s5316_s17  ;;  %1630 = vrot.lane.b32.xlu1 %v1622_v29, %s5316_s17  ;;  %v6361_v31 = vpop.f32.mrf.mxu2  ;;  %v1726_v49 = vmul.f32 %v6355_v16, %v6274_v55  ;;  %v1700_v29 = vmul.f32 %v6357_v11, %v6274_v55 }
 0x232   : > { %1604 = vrot.lane.b32.xlu0 %v1596_v53, %s5316_s17  ;;  %10233 = vst [vmem:[#allocation71_spill] sm:$0xff] %v6361_v31  ;;  %v1674_v53 = vmul.f32 %v6359_v19, %v6274_v55 }
 0x233   : > { %v6349_v23 = vpop.permute.xlu1 %562  ;;  %v6351_v37 = vpop.permute.xlu2 %872 }
 0x234   : > { %10230 = vst [vmem:[#allocation68_spill] sm:$0xff] %v6349_v23  ;;  %v6353_v57 = vpop.permute.xlu0 %1464  ;;  %v1623_v23 = vmul.f32 %v6328_v54, %v6296_v51 }
 0x235   : > { %10231 = vst [vmem:[#allocation69_spill] sm:$0xff] %v6351_v37 }
 0x236   : > { %10232 = vst [vmem:[#allocation70_spill] sm:$0xff] %v6353_v57 }
 0x239   : > { %1734 = vrot.lane.b32.xlu2 %v1726_v49, %s5315_s16  ;;  %1708 = vrot.lane.b32.xlu1 %v1700_v29, %s5315_s16  ;;  %v420_v45 = vpop.f32.mrf.mxu2  ;;  %v1752_v49 = vmul.f32 %v6378_v27, %v6274_v55 }
 0x23a   : > { %1682 = vrot.lane.b32.xlu0 %v1674_v53, %s5316_s17 }
 0x23b   : > { %v6372_v37 = vpop.permute.xlu1 %640  ;;  %v6374_v57 = vpop.permute.xlu2 %907 }
 0x23c   : > { %10234 = vst [vmem:[#allocation72_spill] sm:$0xff] %v6372_v37  ;;  %v6376_v5 = vpop.permute.xlu0 %1540  ;;  %v1649_v37 = vmul.f32 %v6326_v56, %v6296_v51 }
 0x23d   : > { %10235 = vst [vmem:[#allocation73_spill] sm:$0xff] %v6374_v57  ;;  %v1675_v57 = vmul.f32 %v6359_v19, %v6296_v51 }
 0x23e   : > { %10236 = vst [vmem:[#allocation74_spill] sm:$0xff] %v6376_v5  ;;  %v1701_v5 = vmul.f32 %v6357_v11, %v6296_v51 }
 0x241   : > { %1632 = vrot.lane.b32.xlu2 %v1623_v23, %s5316_s17  ;;  %1606 = vrot.lane.b32.xlu1 %v1597_v61, %s5316_s17 }
 0x242   : > { %1760 = vrot.lane.b32.xlu0 %v1752_v49, %s5315_s16 }
 0x243   : > { %v6389_v29 = vpop.permute.xlu1 %718  ;;  %v6391_v53 = vpop.permute.xlu2 %983 }
 0x244   : > { %10237 = vst [vmem:[#allocation75_spill] sm:$0xff] %v6389_v29  ;;  %v6393_v45 = vpop.permute.xlu0 %614  ;;  %v1753_v29 = vmul.f32 %v6378_v27, %v6296_v51 }
 0x245   : > { %10238 = vst [vmem:[#allocation76_spill] sm:$0xff] %v6391_v53  ;;  %v1598_v53 = vmul.f32 %v6334_v48, %v6316_v0 }
 0x246   : > { %10239 = vst [vmem:[#allocation77_spill] sm:$0xff] %v6393_v45  ;;  %v1727_v45 = vmul.f32 %v6355_v16, %v6296_v51 }
 0x249   : > { %1710 = vrot.lane.b32.xlu2 %v1701_v5, %s5315_s16  ;;  %1684 = vrot.lane.b32.xlu1 %v1675_v57, %s5316_s17 }
 0x24a   : > { %1658 = vrot.lane.b32.xlu0 %v1649_v37, %s5316_s17 }
 0x24b   : > { %v6404_v61 = vpop.permute.xlu1 %870  ;;  %v6406_v23 = vpop.permute.xlu2 %1018 }
 0x24c   : > { %10240 = vst [vmem:[#allocation78_spill] sm:$0xff] %v6404_v61  ;;  %v6408_v49 = vpop.permute.xlu0 %692  ;;  %v1676_v61 = vmul.f32 %v6359_v19, %v6316_v0 }
 0x24d   : > { %10241 = vst [vmem:[#allocation79_spill] sm:$0xff] %v6406_v23  ;;  %v1650_v23 = vmul.f32 %v6326_v56, %v6316_v0  ;;  %v5207_v56 = vld [vmem:[%s10015_s2] sm:$0xff] }
 0x24e   : > { %10242 = vst [vmem:[#allocation80_spill] sm:$0xff] %v6408_v49  ;;  %v1624_v49 = vmul.f32 %v6328_v54, %v6316_v0 }
 0x251   : > { %1762 = vrot.lane.b32.xlu1 %v1753_v29, %s5315_s16  ;;  %1608 = vrot.lane.b32.xlu2 %v1598_v53, %s5316_s17  ;;  %v319_v29 = vpop.f32.mrf.mxu0 }
 0x252   : > { %1736 = vrot.lane.b32.xlu0 %v1727_v45, %s5315_s16 }
 0x253   : > { %v6419_v5 = vpop.permute.xlu1 %946  ;;  %v6421_v57 = vpop.permute.xlu2 %1094 }
 0x254   : > { %10243 = vst [vmem:[#allocation81_spill] sm:$0xff] %v6419_v5  ;;  %v6423_v37 = vpop.permute.xlu0 %909  ;;  %v1728_v5 = vmul.f32 %v6355_v16, %v6316_v0 }
 0x255   : > { %10244 = vst [vmem:[#allocation82_spill] sm:$0xff] %v6421_v57 }
 0x256   : > { %10245 = vst [vmem:[#allocation83_spill] sm:$0xff] %v6423_v37  ;;  %v333_v37 = vpack.c.bf16 %v319_v29, %v319_v29 }
 0x259   : > { %1660 = vrot.lane.b32.xlu1 %v1650_v23, %s5316_s17  ;;  %1686 = vrot.lane.b32.xlu2 %v1676_v61, %s5316_s17  ;;  %v321_v21 = vpop.f32.mrf.mxu0  ;;  %v1702_v23 = vmul.f32 %v6357_v11, %v6316_v0 }
 0x25a   : > { %1634 = vrot.lane.b32.xlu0 %v1624_v49, %s5316_s17  ;;  %v334_v61 = vpack.c.bf16 %v321_v21, %v321_v21  ;;  %v424_v49 = vunpack.c.l.b16 %v333_v37  ;;  %v1625_v21 = vmul.f32 %v6328_v54, %v6344_v58 }
 0x25b   : > { %v6434_v53 = vpop.permute.xlu1 %981  ;;  %v6436_v45 = vpop.permute.xlu2 %1129 }
 0x25c   : > { %10246 = vst [vmem:[#allocation84_spill] sm:$0xff] %v6434_v53  ;;  %v6438_v57 = vpop.permute.xlu0 %944 }
 0x25d   : > { %10247 = vst [vmem:[#allocation85_spill] sm:$0xff] %v6436_v45  ;;  %v425_v45 = vunpack.c.l.b16 %v334_v61 }
 0x25e   : > { %10248 = vst [vmem:[#allocation86_spill] sm:$0xff] %v6438_v57 }
 0x25f   : > { %v426_v20 = vpack.c.b16 %v425_v45, %v424_v49  ;;  %v1777_v49 = vstv %s5015_s26  ;;  %s5034_s26 = sld [smem:[#allocation2 + $0x58]] }
 0x261   : > { %1738 = vrot.lane.b32.xlu1 %v1728_v5, %s5315_s16  ;;  %1764 = vrot.lane.b32.xlu2 %v1754_v10, %s5315_s16  ;;  %v1599_v10 = vmul.f32 %v6334_v48, %v6344_v58  ;;  %v1677_v48 = vmul.f32 %v6359_v19, %v6344_v58  ;;  %v1755_v19 = vmul.f32 %v6378_v27, %v6344_v58 }
 0x262   : > { %1712 = vrot.lane.b32.xlu0 %v1702_v23, %s5315_s16  ;;  %435 = vmatpush.bf16.msrb.mxu3 %v426_v20  ;;  %v1703_v20 = vmul.f32 %v6357_v11, %v6344_v58  ;;  %v1778_v11 = vmul.f32 %v1777_v49, %v6274_v55 }
 0x263   : > { %v6449_v29 = vpop.permute.xlu1 %1057  ;;  %v6451_v57 = vpop.permute.xlu2 %1322 }
 0x264   : > { %10249 = vst [vmem:[#allocation87_spill] sm:$0xff] %v6449_v29  ;;  %v6453_v53 = vpop.permute.xlu0 %1020  ;;  %v2030_v29 = vstv %s5023_s10  ;;  %s5045_s10 = sld [smem:[#allocation2 + $0x37]] }
 0x265   : > { %10250 = vst [vmem:[#allocation88_spill] sm:$0xff] %v6451_v57  ;;  %4963 = vmatmul.msk.bf16.vlgmr.msrb.gmra.mxu3 %vm287_vm0, %v5207_v56 }
 0x266   : > { %10251 = vst [vmem:[#allocation89_spill] sm:$0xff] %v6453_v53 }
 0x269   : > { %1662 = vrot.lane.b32.xlu2 %v1651_v38, %s5316_s17  ;;  %1636 = vrot.lane.b32.xlu1 %v1625_v21, %s5316_s17  ;;  %v1729_v38 = vmul.f32 %v6355_v16, %v6344_v58  ;;  %v1919_v16 = vstv %s5020_s30  ;;  %v1779_v21 = vmul.f32 %v1777_v49, %v6296_v51  ;;  %s5036_s30 = sld [smem:[#allocation2 + $0x11]] }
 0x26a   : > { %1610 = vrot.lane.b32.xlu0 %v1599_v10, %s5316_s17  ;;  %v1920_v10 = vmul.f32 %v1919_v16, %v6274_v55  ;;  %v1921_v56 = vmul.f32 %v1919_v16, %v6296_v51 }
 0x26b   : > { %v6464_v5 = vpop.permute.xlu1 %1092  ;;  %v6466_v37 = vpop.permute.xlu2 %1357 }
 0x26c   : > { %10252 = vst [vmem:[#allocation90_spill] sm:$0xff] %v6464_v5  ;;  %v6472_v54 = vpop.permute.xlu0 %1055 }
 0x26d   : > { %10253 = vst [vmem:[#allocation91_spill] sm:$0xff] %v6466_v37  ;;  %v1931_v37 = vrot.slane %v1921_v56, 1 }
 0x26e   : > { %10254 = vst [vmem:[#allocation92_spill] sm:$0xff] %v6472_v54  ;;  %v1993_v54 = vstv %s5022_s9  ;;  %s5044_s9 = sld [smem:[#allocation2 + $0x13]] }
 0x26f   : > { %v2479_v15 = vstv %s5036_s30  ;;  %s6902_s30 = sld [smem:[#allocation2 + $0x4b]] }
 0x271   : > { %1740 = vrot.lane.b32.xlu2 %v1729_v38, %s5315_s16  ;;  %1714 = vrot.lane.b32.xlu1 %v1703_v20, %s5315_s16 }
 0x272   : > { %1688 = vrot.lane.b32.xlu0 %v1677_v48, %s5316_s17  ;;  %v5208_v48 = vld [vmem:[%s10015_s2 + $0x8] sm:$0xff] }
 0x273   : > { %v6483_v45 = vpop.permute.xlu1 %1285  ;;  %v6485_v23 = vpop.permute.xlu2 %1433 }
 0x274   : > { %10255 = vst [vmem:[#allocation93_spill] sm:$0xff] %v6483_v45  ;;  %v6487_v61 = vpop.permute.xlu0 %1131  ;;  %v1956_v45 = vstv %s5021_s8  ;;  %s5039_s8 = sld [smem:[#allocation2 + $0x7d]] }
 0x275   : > { %10256 = vst [vmem:[#allocation94_spill] sm:$0xff] %v6485_v23  ;;  %4964 = vmatmul.msk.bf16.gmra.mxu3 %vm287_vm0, %v5208_v48  ;;  %v1930_v23 = vrot.slane %v1920_v10, 1  ;;  %v1922_v48 = vmul.f32 %v1919_v16, %v6316_v0 }
 0x276   : > { %10257 = vst [vmem:[#allocation95_spill] sm:$0xff] %v6487_v61  ;;  %v1958_v61 = vmul.f32 %v1956_v45, %v6296_v51 }
 0x277   : > { %v1933_v57 = vrot.slane %v1922_v48, 1 }
 0x279   : > { %1788 = vrot.lane.b32.xlu2 %v1779_v21, %s5315_s16  ;;  %1786 = vrot.lane.b32.xlu1 %v1778_v11, %s5315_s16  ;;  %v1781_v21 = vmul.f32 %v1777_v49, %v6344_v58  ;;  %v1932_v11 = vsel %vm740_vm1, %v1930_v23, %v1931_v37 }
 0x27a   : > { %1766 = vrot.lane.b32.xlu0 %v1755_v19, %s5315_s16  ;;  %v1780_v19 = vmul.f32 %v1777_v49, %v6316_v0  ;;  %v2590_v46 = vstv %s5039_s8  ;;  %s6952_s8 = sld [smem:[#allocation2 + $0x6]] }
 0x27b   : > { %v6498_v38 = vpop.permute.xlu1 %1320  ;;  %v6500_v20 = vpop.permute.xlu2 %1468 }
 0x27c   : > { %10258 = vst [vmem:[#allocation96_spill] sm:$0xff] %v6498_v38  ;;  %v6506_v27 = vpop.permute.xlu0 %1283  ;;  %v1923_v38 = vmul.f32 %v1919_v16, %v6344_v58 }
 0x27d   : > { %10259 = vst [vmem:[#allocation97_spill] sm:$0xff] %v6500_v20  ;;  %v1924_v20 = vmul.f32 %v1919_v16, %v6361_v31  ;;  %v1959_v16 = vmul.f32 %v1956_v45, %v6316_v0 }
 0x27e   : > { %10260 = vst [vmem:[#allocation98_spill] sm:$0xff] %v6506_v27  ;;  %v1935_v23 = vrot.slane %v1923_v38, 1  ;;  %v1957_v38 = vmul.f32 %v1956_v45, %v6274_v55 }
 0x27f   : > { %v1937_v49 = vrot.slane %v1924_v20, 1 }
 0x280   : > { %v7047_v63 = vstv %s6952_s8  ;;  %s7485_s8 = sld [smem:[#allocation2 + $0x9]] }
 0x281   : > { %1939 = vrot.lane.b32.xlu2 %v1932_v11, %s5316_s17  ;;  %1792 = vrot.lane.b32.xlu1 %v1781_v21, %s5315_s16  ;;  %v1936_v11 = vsel %vm740_vm1, %v1933_v57, %v1935_v23  ;;  %v1938_v21 = vsel %vm740_vm1, %v1935_v23, %v1937_v49  ;;  %v1968_v49 = vrot.slane %v1958_v61, 1  ;;  %v1961_v61 = vmul.f32 %v1956_v45, %v6361_v31 }
 0x282   : > { %1790 = vrot.lane.b32.xlu0 %v1780_v19, %s5315_s16  ;;  %v1960_v19 = vmul.f32 %v1956_v45, %v6344_v58  ;;  %v1997_v45 = vmul.f32 %v1993_v54, %v6344_v58 }
 0x283   : > { %v6517_v10 = vpop.permute.xlu1 %1396  ;;  %v6519_v56 = vpop.permute.xlu2 %1544 }
 0x284   : > { %10261 = vst [vmem:[#allocation99_spill] sm:$0xff] %v6517_v10  ;;  %v6521_v27 = vpop.permute.xlu0 %1359  ;;  %v1970_v10 = vrot.slane %v1959_v16, 1 }
 0x285   : > { %10262 = vst [vmem:[#allocation100_spill] sm:$0xff] %v6519_v56  ;;  %v1934_v56 = vsel %vm740_vm1, %v1931_v37, %v1933_v57  ;;  %v1967_v57 = vrot.slane %v1957_v38, 1  ;;  %v1994_v37 = vmul.f32 %v1993_v54, %v6274_v55 }
 0x286   : > { %10263 = vst [vmem:[#allocation101_spill] sm:$0xff] %v6521_v27  ;;  %v10266_v27 = vld [vmem:[#allocation11_spill] sm:$0xff] }
 0x287   : > { %4965 = vmatmul.msk.bf16.gmra.mxu3 %vm287_vm0, %v10266_v27  ;;  %v2004_v38 = vrot.slane %v1994_v37, 1  ;;  %v1974_v27 = vrot.slane %v1961_v61, 1 }
 0x289   : > { %1943 = vrot.lane.b32.xlu1 %v1936_v11, %s5316_s17  ;;  %1945 = vrot.lane.b32.xlu2 %v1938_v21, %s5316_s17  ;;  %v1972_v11 = vrot.slane %v1960_v19, 1  ;;  %v1995_v21 = vmul.f32 %v1993_v54, %v6296_v51 }
 0x28a   : > { %1941 = vrot.lane.b32.xlu0 %v1934_v56, %s5316_s17  ;;  %v1971_v56 = vsel %vm740_vm1, %v1968_v49, %v1970_v10 }
 0x28b   : > { %v6533_v20 = vpop.permute.xlu1 %1431  ;;  %v6535_v48 = vpop.permute.xlu2 %1656  ;;  %v2005_v5 = vrot.slane %v1995_v21, 1  ;;  %v1975_v37 = vsel %vm740_vm1, %v1972_v11, %v1974_v27  ;;  %v2034_v27 = vmul.f32 %v2030_v29, %v6344_v58 }
 0x28c   : > { %10264 = vst [vmem:[#allocation102_spill] sm:$0xff] %v6533_v20  ;;  %v6539_v23 = vpop.permute.xlu0 %1394  ;;  %v1973_v20 = vsel %vm740_vm1, %v1970_v10, %v1972_v11  ;;  %v2035_v11 = vmul.f32 %v2030_v29, %v6361_v31 }
 0x28d   : > { %10265 = vst [vmem:[#allocation103_spill] sm:$0xff] %v6535_v48  ;;  %v1996_v48 = vmul.f32 %v1993_v54, %v6316_v0 }
 0x28e   : > { %10267 = vst [vmem:[#allocation104_spill] sm:$0xff] %v6539_v23  ;;  %v1969_v23 = vsel %vm740_vm1, %v1967_v57, %v1968_v49  ;;  %v2031_v49 = vmul.f32 %v2030_v29, %v6274_v55  ;;  %v2032_v57 = vmul.f32 %v2030_v29, %v6296_v51 }
 0x28f   : > { %v2007_v10 = vrot.slane %v1996_v48, 1 }
 0x291   : > { %1978 = vrot.lane.b32.xlu1 %v1971_v56, %s5316_s17  ;;  %1980 = vrot.lane.b32.xlu2 %v1973_v20, %s5316_s17  ;;  %v2006_v56 = vsel %vm740_vm1, %v2004_v38, %v2005_v5  ;;  %v2008_v20 = vsel %vm740_vm1, %v2005_v5, %v2007_v10  ;;  %v2009_v5 = vrot.slane %v1997_v45, 1  ;;  %v2033_v45 = vmul.f32 %v2030_v29, %v6316_v0 }
 0x292   : > { %1976 = vrot.lane.b32.xlu0 %v1969_v23, %s5316_s17  ;;  %v1998_v23 = vmul.f32 %v1993_v54, %v6361_v31  ;;  %v2042_v54 = vrot.slane %v2032_v57, 1 }
 0x293   : > { %v6551_v16 = vpop.permute.xlu1 %1507  ;;  %v6553_v19 = vpop.permute.xlu2 %1734 }
 0x294   : > { %10268 = vst [vmem:[#allocation105_spill] sm:$0xff] %v6551_v16  ;;  %v6555_v53 = vpop.permute.xlu0 %1470  ;;  %v2011_v38 = vrot.slane %v1998_v23, 1 }
 0x295   : > { %10269 = vst [vmem:[#allocation106_spill] sm:$0xff] %v6553_v19  ;;  %v2041_v19 = vrot.slane %v2031_v49, 1 }
 0x296   : > { %10270 = vst [vmem:[#allocation107_spill] sm:$0xff] %v6555_v53  ;;  %v2012_v53 = vsel %vm740_vm1, %v2009_v5, %v2011_v38  ;;  %v2067_v38 = vstv %s5024_s11  ;;  %s5046_s11 = sld [smem:[#allocation2 + $0x5b]] }
 0x299   : > { %2013 = vrot.lane.b32.xlu1 %v2006_v56, %s5316_s17  ;;  %2015 = vrot.lane.b32.xlu2 %v2008_v20, %s5316_s17  ;;  %v2043_v56 = vsel %vm740_vm1, %v2041_v19, %v2042_v54  ;;  %v2010_v20 = vsel %vm740_vm1, %v2007_v10, %v2009_v5  ;;  %v2046_v19 = vrot.slane %v2034_v27, 1  ;;  %v2070_v10 = vmul.f32 %v2067_v38, %v6316_v0 }
 0x29a   : > { %1982 = vrot.lane.b32.xlu0 %v1975_v37, %s5316_s17  ;;  %v2048_v37 = vrot.slane %v2035_v11, 1  ;;  %v2068_v27 = vmul.f32 %v2067_v38, %v6274_v55 }
 0x29b   : > { %v6567_v48 = vpop.permute.xlu1 %1542  ;;  %v6569_v21 = vpop.permute.xlu2 %1632 }
 0x29c   : > { %10271 = vst [vmem:[#allocation108_spill] sm:$0xff] %v6567_v48  ;;  %v6571_v61 = vpop.permute.xlu0 %1505  ;;  %v2049_v29 = vsel %vm740_vm1, %v2046_v19, %v2048_v37  ;;  %v2078_v37 = vrot.slane %v2068_v27, 1  ;;  %v2141_v48 = vstv %s5026_s13  ;;  %s4970_s13 = sld [smem:[#allocation2 + $0x48]] }
 0x29d   : > { %10272 = vst [vmem:[#allocation109_spill] sm:$0xff] %v6569_v21 }
 0x29e   : > { %10273 = vst [vmem:[#allocation110_spill] sm:$0xff] %v6571_v61  ;;  %v2044_v61 = vrot.slane %v2033_v45, 1 }
 0x2a0   : > { %v2047_v5 = vsel %vm740_vm1, %v2044_v61, %v2046_v19 }
 0x2a1   : > { %2019 = vrot.lane.b32.xlu1 %v2012_v53, %s5316_s17  ;;  %2050 = vrot.lane.b32.xlu2 %v2043_v56, %s5316_s17  ;;  %v2069_v53 = vmul.f32 %v2067_v38, %v6296_v51  ;;  %v2071_v56 = vmul.f32 %v2067_v38, %v6344_v58 }
 0x2a2   : > { %2017 = vrot.lane.b32.xlu0 %v2010_v20, %s5316_s17  ;;  %v2045_v20 = vsel %vm740_vm1, %v2042_v54, %v2044_v61 }
 0x2a3   : > { %v6582_v49 = vpop.permute.xlu1 %1630  ;;  %v6584_v23 = vpop.permute.xlu2 %1710  ;;  %v2083_v19 = vrot.slane %v2071_v56, 1 }
 0x2a4   : > { %10274 = vst [vmem:[#allocation111_spill] sm:$0xff] %v6582_v49  ;;  %v6586_v57 = vpop.permute.xlu0 %1604 }
 0x2a5   : > { %10275 = vst [vmem:[#allocation112_spill] sm:$0xff] %v6584_v23  ;;  %v2079_v23 = vrot.slane %v2069_v53, 1 }
 0x2a6   : > { %10276 = vst [vmem:[#allocation113_spill] sm:$0xff] %v6586_v57  ;;  %v2081_v57 = vrot.slane %v2070_v10, 1  ;;  %v2072_v10 = vmul.f32 %v2067_v38, %v6361_v31 }
 0x2a7   : > { %v2080_v53 = vsel %vm740_vm1, %v2078_v37, %v2079_v23 }
 0x2a8   : > { %v2082_v61 = vsel %vm740_vm1, %v2079_v23, %v2081_v57  ;;  %v2084_v54 = vsel %vm740_vm1, %v2081_v57, %v2083_v19  ;;  %v2085_v16 = vrot.slane %v2072_v10, 1  ;;  %v2143_v23 = vmul.f32 %v2141_v48, %v6296_v51 }
 0x2a9   : > { %2054 = vrot.lane.b32.xlu1 %v2047_v5, %s5316_s17  ;;  %2056 = vrot.lane.b32.xlu2 %v2049_v29, %s5316_s17  ;;  %v2104_v5 = vstv %s5025_s12  ;;  %s4969_s12 = sld [smem:[#allocation2 + $0x24]] }
 0x2aa   : > { %2052 = vrot.lane.b32.xlu0 %v2045_v20, %s5316_s17  ;;  %v2105_v29 = vmul.f32 %v2104_v5, %v6274_v55  ;;  %v2106_v20 = vmul.f32 %v2104_v5, %v6296_v51 }
 0x2ab   : > { %v6598_v11 = vpop.permute.xlu1 %1708  ;;  %v6600_v45 = vpop.permute.xlu2 %1608 }
 0x2ac   : > { %10277 = vst [vmem:[#allocation114_spill] sm:$0xff] %v6598_v11  ;;  %v6602_v49 = vpop.permute.xlu0 %1682  ;;  %v2107_v11 = vmul.f32 %v2104_v5, %v6316_v0 }
 0x2ad   : > { %10278 = vst [vmem:[#allocation115_spill] sm:$0xff] %v6600_v45  ;;  %v2116_v45 = vrot.slane %v2106_v20, 1 }
 0x2ae   : > { %10279 = vst [vmem:[#allocation116_spill] sm:$0xff] %v6602_v49  ;;  %v2115_v49 = vrot.slane %v2105_v29, 1  ;;  %v2118_v21 = vrot.slane %v2107_v11, 1  ;;  %v2086_v29 = vsel %vm740_vm1, %v2083_v19, %v2085_v16  ;;  %v2145_v16 = vmul.f32 %v2141_v48, %v6344_v58 }
 0x2af   : > { %v2146_v19 = vmul.f32 %v2141_v48, %v6361_v31 }
 0x2b0   : > { %v2117_v37 = vsel %vm740_vm1, %v2115_v49, %v2116_v45  ;;  %v2119_v38 = vsel %vm740_vm1, %v2116_v45, %v2118_v21 }
 0x2b1   : > { %2089 = vrot.lane.b32.xlu1 %v2082_v61, %s5315_s16  ;;  %2091 = vrot.lane.b32.xlu2 %v2084_v54, %s5315_s16  ;;  %v2142_v61 = vmul.f32 %v2141_v48, %v6274_v55  ;;  %v2108_v54 = vmul.f32 %v2104_v5, %v6344_v58 }
 0x2b2   : > { %2087 = vrot.lane.b32.xlu0 %v2080_v53, %s5315_s16  ;;  %v2109_v53 = vmul.f32 %v2104_v5, %v6361_v31 }
 0x2b3   : > { %v6614_v56 = vpop.permute.xlu1 %1606  ;;  %v6616_v27 = vpop.permute.xlu2 %1686  ;;  %v2120_v49 = vrot.slane %v2108_v54, 1  ;;  %v2144_v54 = vmul.f32 %v2141_v48, %v6316_v0 }
 0x2b4   : > { %10280 = vst [vmem:[#allocation117_spill] sm:$0xff] %v6614_v56  ;;  %v6618_v57 = vpop.permute.xlu0 %1760  ;;  %v2122_v45 = vrot.slane %v2109_v53, 1  ;;  %v2368_v56 = vstv %s5033_s23  ;;  %s5047_s23 = sld [smem:[#allocation2 + $0x7f]] }
 0x2b5   : > { %10281 = vst [vmem:[#allocation118_spill] sm:$0xff] %v6616_v27  ;;  %v2153_v27 = vrot.slane %v2143_v23, 1 }
 0x2b6   : > { %10282 = vst [vmem:[#allocation119_spill] sm:$0xff] %v6618_v57  ;;  %v2152_v57 = vrot.slane %v2142_v61, 1  ;;  %v2123_v5 = vsel %vm740_vm1, %v2120_v49, %v2122_v45  ;;  %v2178_v45 = vstv %s5027_s14  ;;  %s480_s14 = sld [smem:[#allocation2]] }
 0x2b7   : > { %v2181_v48 = vmul.f32 %v2178_v45, %v6316_v0 }
 0x2b9   : > { %2124 = vrot.lane.b32.xlu1 %v2117_v37, %s5315_s16  ;;  %2126 = vrot.lane.b32.xlu2 %v2119_v38, %s5315_s16  ;;  %v2154_v37 = vsel %vm740_vm1, %v2152_v57, %v2153_v27  ;;  %v2121_v38 = vsel %vm740_vm1, %v2118_v21, %v2120_v49  ;;  %v2157_v57 = vrot.slane %v2145_v16, 1  ;;  %v2179_v16 = vmul.f32 %v2178_v45, %v6274_v55 }
 0x2ba   : > { %2093 = vrot.lane.b32.xlu0 %v2086_v29, %s5315_s16  ;;  %v2159_v29 = vrot.slane %v2146_v19, 1 }
 0x2bb   : > { %v6630_v11 = vpop.permute.xlu1 %1684  ;;  %v6632_v20 = vpop.permute.xlu2 %1764 }
 0x2bc   : > { %10283 = vst [vmem:[#allocation120_spill] sm:$0xff] %v6630_v11  ;;  %v6634_v10 = vpop.permute.xlu0 %1658  ;;  %v2160_v49 = vsel %vm740_vm1, %v2157_v57, %v2159_v29  ;;  %v2192_v29 = vrot.slane %v2181_v48, 1 }
 0x2bd   : > { %10284 = vst [vmem:[#allocation121_spill] sm:$0xff] %v6632_v20  ;;  %v2155_v20 = vrot.slane %v2144_v54, 1 }
 0x2be   : > { %10285 = vst [vmem:[#allocation122_spill] sm:$0xff] %v6634_v10  ;;  %v2189_v10 = vrot.slane %v2179_v16, 1 }
 0x2bf   : > { %v2158_v21 = vsel %vm740_vm1, %v2155_v20, %v2157_v57 }
 0x2c1   : > { %2130 = vrot.lane.b32.xlu1 %v2123_v5, %s5315_s16  ;;  %2161 = vrot.lane.b32.xlu2 %v2154_v37, %s5315_s16  ;;  %v2180_v5 = vmul.f32 %v2178_v45, %v6296_v51  ;;  %v2182_v37 = vmul.f32 %v2178_v45, %v6344_v58 }
 0x2c2   : > { %2128 = vrot.lane.b32.xlu0 %v2121_v38, %s5315_s16  ;;  %v2156_v38 = vsel %vm740_vm1, %v2153_v27, %v2155_v20 }
 0x2c3   : > { %v6645_v61 = vpop.permute.xlu1 %1762  ;;  %v6647_v23 = vpop.permute.xlu2 %1662  ;;  %v2190_v57 = vrot.slane %v2180_v5, 1  ;;  %v2183_v5 = vmul.f32 %v2178_v45, %v6361_v31 }
 0x2c4   : > { %10286 = vst [vmem:[#allocation123_spill] sm:$0xff] %v6645_v61  ;;  %v6649_v53 = vpop.permute.xlu0 %1736  ;;  %v2331_v61 = vstv %s5032_s15  ;;  %s4980_s15 = sld [smem:[#allocation2 + $0x3]] }
 0x2c5   : > { %10287 = vst [vmem:[#allocation124_spill] sm:$0xff] %v6647_v23  ;;  %v2332_v27 = vmul.f32 %v2331_v61, %v6274_v55  ;;  %v2333_v20 = vmul.f32 %v2331_v61, %v6296_v51  ;;  %v2336_v45 = vmul.f32 %v2331_v61, %v6361_v31 }
 0x2c6   : > { %10288 = vst [vmem:[#allocation125_spill] sm:$0xff] %v6649_v53  ;;  %v2194_v53 = vrot.slane %v2182_v37, 1 }
 0x2c7   : > { %v2342_v16 = vrot.slane %v2332_v27, 2 }
 0x2c9   : > { %2165 = vrot.lane.b32.xlu1 %v2158_v21, %s5315_s16  ;;  %2167 = vrot.lane.b32.xlu2 %v2160_v49, %s5315_s16  ;;  %v2334_v21 = vmul.f32 %v2331_v61, %v6316_v0  ;;  %v2193_v49 = vsel %vm740_vm1, %v2190_v57, %v2192_v29 }
 0x2ca   : > { %2163 = vrot.lane.b32.xlu0 %v2156_v38, %s5315_s16  ;;  %v2195_v38 = vsel %vm740_vm1, %v2192_v29, %v2194_v53  ;;  %v2196_v29 = vrot.slane %v2183_v5, 1 }
 0x2cb   : > { %v6661_v19 = vpop.permute.xlu1 %1660  ;;  %v6663_v54 = vpop.permute.xlu2 %1740 }
 0x2cc   : > { %10289 = vst [vmem:[#allocation126_spill] sm:$0xff] %v6661_v19  ;;  %v6665_v23 = vpop.permute.xlu0 %1634  ;;  %v2345_v19 = vrot.slane %v2334_v21, 2  ;;  %v2197_v27 = vsel %vm740_vm1, %v2194_v53, %v2196_v29 }
 0x2cd   : > { %10290 = vst [vmem:[#allocation127_spill] sm:$0xff] %v6663_v54  ;;  %v2191_v54 = vsel %vm740_vm1, %v2189_v10, %v2190_v57  ;;  %v2335_v57 = vmul.f32 %v2331_v61, %v6344_v58  ;;  %v2349_v61 = vrot.slane %v2336_v45, 2 }
 0x2ce   : > { %10291 = vst [vmem:[#allocation128_spill] sm:$0xff] %v6665_v23  ;;  %v2343_v23 = vrot.slane %v2333_v20, 2 }
 0x2cf   : > { %v2347_v5 = vrot.slane %v2335_v57, 2  ;;  %v2371_v57 = vmul.f32 %v2368_v56, %v6316_v0 }
 0x2d0   : > { %v2346_v10 = vsel %vm1153_vm2, %v2343_v23, %v2345_v19 }
 0x2d1   : > { %2200 = vrot.lane.b32.xlu1 %v2193_v49, %s5315_s16  ;;  %2202 = vrot.lane.b32.xlu2 %v2195_v38, %s5315_s16  ;;  %v2344_v49 = vsel %vm1153_vm2, %v2342_v16, %v2343_v23  ;;  %v2370_v38 = vmul.f32 %v2368_v56, %v6296_v51  ;;  %v2350_v53 = vsel %vm1153_vm2, %v2347_v5, %v2349_v61 }
 0x2d2   : > { %2198 = vrot.lane.b32.xlu0 %v2191_v54, %s5315_s16  ;;  %v2369_v54 = vmul.f32 %v2368_v56, %v6274_v55 }
 0x2d3   : > { %v6677_v48 = vpop.permute.xlu1 %1738  ;;  %v6679_v37 = vpop.permute.xlu2 %1788 }
 0x2d4   : > { %10292 = vst [vmem:[#allocation129_spill] sm:$0xff] %v6677_v48  ;;  %v6681_v11 = vpop.permute.xlu0 %1712  ;;  %v2379_v16 = vrot.slane %v2369_v54, 2 }
 0x2d5   : > { %10293 = vst [vmem:[#allocation130_spill] sm:$0xff] %v6679_v37  ;;  %v2380_v37 = vrot.slane %v2370_v38, 2 }
 0x2d6   : > { %10294 = vst [vmem:[#allocation131_spill] sm:$0xff] %v6681_v11  ;;  %v5136_v11 = vld [vmem:[%s5422_s25 + $0x18] sm:$0xff]  ;;  %s5035_s25 = sld [smem:[#allocation2 + $0x7c]] }
 0x2d7   : > { %4948 = vmatmul.msk.bf16.gmra.mxu0 %vm287_vm0, %v5136_v11  ;;  %v2381_v29 = vsel %vm1153_vm2, %v2379_v16, %v2380_v37  ;;  %v2405_v16 = vstv %s5034_s26  ;;  %s4971_s26 = sld [smem:[#allocation2 + $0x6c]] }
 0x2d9   : > { %2351 = vrot.lane.b32.xlu1 %v2344_v49, %s5316_s17  ;;  %2353 = vrot.lane.b32.xlu2 %v2346_v10, %s5316_s17  ;;  %v2372_v49 = vmul.f32 %v2368_v56, %v6344_v58  ;;  %v2373_v10 = vmul.f32 %v2368_v56, %v6361_v31  ;;  %v2408_v56 = vmul.f32 %v2405_v16, %v6316_v0 }
 0x2da   : > { %2204 = vrot.lane.b32.xlu0 %v2197_v27, %s5315_s16  ;;  %v2348_v27 = vsel %vm1153_vm2, %v2345_v19, %v2347_v5 }
 0x2db   : > { %v6693_v20 = vpop.permute.xlu2 %1939  ;;  %v6695_v23 = vpop.permute.xlu1 %1636  ;;  %v2384_v38 = vrot.slane %v2372_v49, 2  ;;  %v2386_v61 = vrot.slane %v2373_v10, 2  ;;  %v2406_v49 = vmul.f32 %v2405_v16, %v6274_v55 }
 0x2dc   : > { %10295 = vst [vmem:[#allocation132_spill] sm:$0xff] %v6693_v20  ;;  %v6697_v21 = vpop.permute.xlu0 %1610  ;;  %v2382_v20 = vrot.slane %v2371_v57, 2 }
 0x2dd   : > { %10296 = vst [vmem:[#allocation133_spill] sm:$0xff] %v6695_v23  ;;  %v2387_v5 = vsel %vm1153_vm2, %v2384_v38, %v2386_v61  ;;  %v2419_v61 = vrot.slane %v2408_v56, 2  ;;  %v2442_v23 = vstv %s5035_s25  ;;  %v2410_v56 = vmul.f32 %v2405_v16, %v6361_v31  ;;  %s4983_s25 = sld [smem:[#allocation2 + $0x6f]] }
 0x2de   : > { %10297 = vst [vmem:[#allocation134_spill] sm:$0xff] %v6697_v21  ;;  %v2385_v19 = vsel %vm1153_vm2, %v2382_v20, %v2384_v38 }
 0x2e1   : > { %2357 = vrot.lane.b32.xlu1 %v2350_v53, %s5316_s17  ;;  %2388 = vrot.lane.b32.xlu2 %v2381_v29, %s5316_s17  ;;  %v2407_v53 = vmul.f32 %v2405_v16, %v6296_v51  ;;  %v2409_v29 = vmul.f32 %v2405_v16, %v6344_v58  ;;  %v2446_v16 = vmul.f32 %v2442_v23, %v6344_v58 }
 0x2e2   : > { %2355 = vrot.lane.b32.xlu0 %v2348_v27, %s5316_s17  ;;  %v2383_v27 = vsel %vm1153_vm2, %v2380_v37, %v2382_v20  ;;  %v2443_v37 = vmul.f32 %v2442_v23, %v6274_v55  ;;  %v2444_v20 = vmul.f32 %v2442_v23, %v6296_v51 }
 0x2e3   : > { %v6710_v45 = vpop.permute.xlu1 %1714  ;;  %v6712_v11 = vpop.permute.xlu2 %1945  ;;  %v2417_v38 = vrot.slane %v2407_v53, 2 }
 0x2e4   : > { %10298 = vst [vmem:[#allocation135_spill] sm:$0xff] %v6710_v45  ;;  %v6714_v54 = vpop.permute.xlu0 %1688  ;;  %v2416_v45 = vrot.slane %v2406_v49, 2 }
 0x2e5   : > { %10299 = vst [vmem:[#allocation136_spill] sm:$0xff] %v6712_v11 }
 0x2e6   : > { %10300 = vst [vmem:[#allocation137_spill] sm:$0xff] %v6714_v54  ;;  %v2421_v54 = vrot.slane %v2409_v29, 2  ;;  %v2418_v53 = vsel %vm1153_vm2, %v2416_v45, %v2417_v38 }
 0x2e9   : > { %2392 = vrot.lane.b32.xlu1 %v2385_v19, %s5316_s17  ;;  %2394 = vrot.lane.b32.xlu2 %v2387_v5, %s5316_s17  ;;  %v6732_v19 = vpop.f32.mrf.mxu3  ;;  %v2445_v5 = vmul.f32 %v2442_v23, %v6316_v0 }
 0x2ea   : > { %2390 = vrot.lane.b32.xlu0 %v2383_v27, %s5316_s17  ;;  %v2420_v27 = vsel %vm1153_vm2, %v2417_v38, %v2419_v61  ;;  %v2447_v38 = vmul.f32 %v2442_v23, %v6361_v31 }
 0x2eb   : > { %v6726_v10 = vpop.permute.xlu1 %1786  ;;  %v6728_v57 = vpop.permute.xlu2 %1980  ;;  %v2456_v48 = vrot.slane %v2445_v5, 2 }
 0x2ec   : > { %10301 = vst [vmem:[#allocation138_spill] sm:$0xff] %v6726_v10  ;;  %v6730_v11 = vpop.permute.xlu0 %1766  ;;  %v2454_v10 = vrot.slane %v2444_v20, 2  ;;  %v2460_v23 = vrot.slane %v2447_v38, 2 }
 0x2ed   : > { %10302 = vst [vmem:[#allocation139_spill] sm:$0xff] %v6728_v57  ;;  %v2422_v57 = vsel %vm1153_vm2, %v2419_v61, %v2421_v54  ;;  %v2423_v61 = vrot.slane %v2410_v56, 2  ;;  %v2458_v56 = vrot.slane %v2446_v16, 2  ;;  %v2482_v16 = vmul.f32 %v2479_v15, %v6316_v0 }
 0x2ee   : > { %10303 = vst [vmem:[#allocation140_spill] sm:$0xff] %v6730_v11  ;;  %v2453_v11 = vrot.slane %v2443_v37, 2  ;;  %v2481_v37 = vmul.f32 %v2479_v15, %v6296_v51 }
 0x2ef   : > { %v2424_v20 = vsel %vm1153_vm2, %v2421_v54, %v2423_v61  ;;  %v2483_v61 = vmul.f32 %v2479_v15, %v6344_v58 }
 0x2f0   : > { %v2455_v45 = vsel %vm1153_vm2, %v2453_v11, %v2454_v10 }
 0x2f1   : > { %2427 = vrot.lane.b32.xlu1 %v2420_v27, %s5316_s17  ;;  %2429 = vrot.lane.b32.xlu2 %v2422_v57, %s5316_s17  ;;  %v6750_v27 = vpop.f32.mrf.mxu3  ;;  %v2457_v57 = vsel %vm1153_vm2, %v2454_v10, %v2456_v48 }
 0x2f2   : > { %2425 = vrot.lane.b32.xlu0 %v2418_v53, %s5316_s17  ;;  %v2480_v53 = vmul.f32 %v2479_v15, %v6274_v55 }
 0x2f3   : > { %v6744_v29 = vpop.permute.xlu1 %1792  ;;  %v6746_v49 = vpop.permute.xlu2 %2015 }
 0x2f4   : > { %10304 = vst [vmem:[#allocation141_spill] sm:$0xff] %v6744_v29  ;;  %v6748_v21 = vpop.permute.xlu0 %1790 }
 0x2f5   : > { %10305 = vst [vmem:[#allocation142_spill] sm:$0xff] %v6746_v49  ;;  %v2490_v49 = vrot.slane %v2480_v53, 2 }
 0x2f6   : > { %10306 = vst [vmem:[#allocation143_spill] sm:$0xff] %v6748_v21  ;;  %v2491_v21 = vrot.slane %v2481_v37, 2 }
 0x2f8   : > { %v2492_v54 = vsel %vm1153_vm2, %v2490_v49, %v2491_v21  ;;  %v2495_v49 = vrot.slane %v2483_v61, 2 }
 0x2f9   : > { %2462 = vrot.lane.b32.xlu1 %v2455_v45, %s5316_s17  ;;  %2464 = vrot.lane.b32.xlu2 %v2457_v57, %s5316_s17  ;;  %v6768_v29 = vpop.f32.mrf.mxu3  ;;  %v2461_v45 = vsel %vm1153_vm2, %v2458_v56, %v2460_v23  ;;  %v2484_v57 = vmul.f32 %v2479_v15, %v6361_v31 }
 0x2fa   : > { %2431 = vrot.lane.b32.xlu0 %v2424_v20, %s5316_s17  ;;  %v2459_v20 = vsel %vm1153_vm2, %v2456_v48, %v2458_v56 }
 0x2fb   : > { %v6762_v5 = vpop.permute.xlu1 %1943  ;;  %v6764_v11 = vpop.permute.xlu2 %2050  ;;  %v2497_v23 = vrot.slane %v2484_v57, 2 }
 0x2fc   : > { %10307 = vst [vmem:[#allocation144_spill] sm:$0xff] %v6762_v5  ;;  %v6766_v10 = vpop.permute.xlu0 %1941 }
 0x2fd   : > { %10308 = vst [vmem:[#allocation145_spill] sm:$0xff] %v6764_v11  ;;  %v2516_v11 = vstv %s5037_s6  ;;  %s6905_s6 = sld [smem:[#allocation2 + $0x27]] }
 0x2fe   : > { %10309 = vst [vmem:[#allocation146_spill] sm:$0xff] %v6766_v10  ;;  %v2493_v10 = vrot.slane %v2482_v16, 2  ;;  %v2518_v48 = vmul.f32 %v2516_v11, %v6296_v51  ;;  %v2519_v56 = vmul.f32 %v2516_v11, %v6316_v0  ;;  %v2517_v57 = vmul.f32 %v2516_v11, %v6274_v55 }
 0x300   : > { %v2496_v15 = vsel %vm1153_vm2, %v2493_v10, %v2495_v49  ;;  %v2494_v61 = vsel %vm1153_vm2, %v2491_v21, %v2493_v10 }
 0x301   : > { %2468 = vrot.lane.b32.xlu1 %v2461_v45, %s5316_s17  ;;  %2499 = vrot.lane.b32.xlu2 %v2492_v54, %s5315_s16  ;;  %v6785_v45 = vpop.f32.mrf.mxu3  ;;  %v2498_v54 = vsel %vm1153_vm2, %v2495_v49, %v2497_v23  ;;  %v2527_v23 = vrot.slane %v2517_v57, 2 }
 0x302   : > { %2466 = vrot.lane.b32.xlu0 %v2459_v20, %s5316_s17  ;;  %v2520_v20 = vmul.f32 %v2516_v11, %v6344_v58 }
 0x303   : > { %v6779_v38 = vpop.permute.xlu1 %1978  ;;  %v6781_v53 = vpop.permute.xlu2 %2056 }
 0x304   : > { %10310 = vst [vmem:[#allocation147_spill] sm:$0xff] %v6779_v38  ;;  %v6783_v37 = vpop.permute.xlu0 %1976  ;;  %v2530_v38 = vrot.slane %v2519_v56, 2  ;;  %v2532_v49 = vrot.slane %v2520_v20, 2  ;;  %v2521_v56 = vmul.f32 %v2516_v11, %v6361_v31 }
 0x305   : > { %10311 = vst [vmem:[#allocation148_spill] sm:$0xff] %v6781_v53 }
 0x306   : > { %10312 = vst [vmem:[#allocation149_spill] sm:$0xff] %v6783_v37  ;;  %v2528_v37 = vrot.slane %v2518_v48, 2  ;;  %v2533_v10 = vsel %vm1153_vm2, %v2530_v38, %v2532_v49  ;;  %v2534_v14 = vrot.slane %v2521_v56, 2 }
 0x308   : > { %v2531_v21 = vsel %vm1153_vm2, %v2528_v37, %v2530_v38  ;;  %v2529_v48 = vsel %vm1153_vm2, %v2527_v23, %v2528_v37  ;;  %v2591_v37 = vmul.f32 %v2590_v46, %v6274_v55  ;;  %v2592_v23 = vmul.f32 %v2590_v46, %v6296_v51 }
 0x309   : > { %2503 = vrot.lane.b32.xlu1 %v2496_v15, %s5315_s16  ;;  %2505 = vrot.lane.b32.xlu2 %v2498_v54, %s5315_s16  ;;  %v2553_v15 = vstv %s5038_s7  ;;  %s6924_s7 = sld [smem:[#allocation2 + $0x14]] }
 0x30a   : > { %2501 = vrot.lane.b32.xlu0 %v2494_v61, %s5315_s16  ;;  %v6803_v1 = vpop.f32.mrf.mxu3  ;;  %v2554_v54 = vmul.f32 %v2553_v15, %v6274_v55  ;;  %v2555_v61 = vmul.f32 %v2553_v15, %v6296_v51  ;;  %v6978_v51 = vstv %s6905_s6  ;;  %s7884_s6 = sld [smem:[#allocation2 + $0x83]] }
 0x30b   : > { %v6797_v16 = vpop.permute.xlu1 %2013  ;;  %v6799_v53 = vpop.permute.xlu2 %2091  ;;  %10316 = vst [vmem:[#allocation153_spill] sm:$0xff] %v6803_v1 }
 0x30c   : > { %10313 = vst [vmem:[#allocation150_spill] sm:$0xff] %v6797_v16  ;;  %v6801_v5 = vpop.permute.xlu0 %1982  ;;  %v2565_v16 = vrot.slane %v2555_v61, 2 }
 0x30d   : > { %10314 = vst [vmem:[#allocation151_spill] sm:$0xff] %v6799_v53  ;;  %v2556_v53 = vmul.f32 %v2553_v15, %v6316_v0 }
 0x30e   : > { %10315 = vst [vmem:[#allocation152_spill] sm:$0xff] %v6801_v5  ;;  %v2564_v5 = vrot.slane %v2554_v54, 2  ;;  %v2535_v54 = vsel %vm1153_vm2, %v2532_v49, %v2534_v14  ;;  %v2594_v14 = vmul.f32 %v2590_v46, %v6344_v58  ;;  %v2595_v49 = vmul.f32 %v2590_v46, %v6361_v31 }
 0x30f   : > { %v2567_v33 = vrot.slane %v2556_v53, 2  ;;  %v2771_v1 = vstv %s6924_s7  ;;  %s7449_s7 = sld [smem:[#allocation2 + $0x5e]] }
 0x310   : > { %v2566_v11 = vsel %vm1153_vm2, %v2564_v5, %v2565_v16  ;;  %v2772_v26 = vmul.f32 %v2771_v1, %v6732_v19  ;;  %v2774_v17 = vmul.f32 %v2771_v1, %v6768_v29 }
 0x311   : > { %2538 = vrot.lane.b32.xlu1 %v2531_v21, %s5315_s16  ;;  %2540 = vrot.lane.b32.xlu2 %v2533_v10, %s5315_s16  ;;  %v2568_v10 = vsel %vm1153_vm2, %v2565_v16, %v2567_v33 }
 0x312   : > { %2536 = vrot.lane.b32.xlu0 %v2529_v48, %s5315_s16  ;;  %v449_v21 = vpop.f32.mrf.mxu3  ;;  %v2557_v48 = vmul.f32 %v2553_v15, %v6344_v58 }
 0x313   : > { %v6815_v20 = vpop.permute.xlu1 %2019  ;;  %v6817_v57 = vpop.permute.xlu2 %2126  ;;  %v2601_v21 = vrot.slane %v2591_v37, 2 }
 0x314   : > { %10317 = vst [vmem:[#allocation154_spill] sm:$0xff] %v6815_v20  ;;  %v6819_v38 = vpop.permute.xlu0 %2017  ;;  %v2569_v5 = vrot.slane %v2557_v48, 2  ;;  %v2606_v48 = vrot.slane %v2594_v14, 2 }
 0x315   : > { %10318 = vst [vmem:[#allocation155_spill] sm:$0xff] %v6817_v57  ;;  %v2558_v57 = vmul.f32 %v2553_v15, %v6361_v31 }
 0x316   : > { %10319 = vst [vmem:[#allocation156_spill] sm:$0xff] %v6819_v38  ;;  %v2602_v38 = vrot.slane %v2592_v23, 2 }
 0x317   : > { %v2571_v16 = vrot.slane %v2558_v57, 2 }
 0x319   : > { %2573 = vrot.lane.b32.xlu1 %v2566_v11, %s5315_s16  ;;  %2575 = vrot.lane.b32.xlu2 %v2568_v10, %s5315_s16  ;;  %v2572_v15 = vsel %vm1153_vm2, %v2569_v5, %v2571_v16  ;;  %v2603_v11 = vsel %vm1153_vm2, %v2601_v21, %v2602_v38  ;;  %v2570_v10 = vsel %vm1153_vm2, %v2567_v33, %v2569_v5  ;;  %v2608_v16 = vrot.slane %v2595_v49, 2 }
 0x31a   : > { %2542 = vrot.lane.b32.xlu0 %v2535_v54, %s5315_s16  ;;  %v2593_v54 = vmul.f32 %v2590_v46, %v6316_v0  ;;  %v2667_v49 = vstv %s5044_s9  ;;  %s6968_s9 = sld [smem:[#allocation2 + $0x2a]]  ;;  %v6975_v0 = vstv %s6902_s30 }
 0x31b   : > { %v6831_v53 = vpop.permute.xlu1 %2054  ;;  %v6833_v61 = vpop.permute.xlu2 %2161  ;;  %v2609_v33 = vsel %vm1153_vm2, %v2606_v48, %v2608_v16  ;;  %v6986_v55 = vmul.f32 %v6975_v0, %v5516_v43  ;;  %v789_v6 = vmul.f32 %v6975_v0, %v5455_v18  ;;  %s7737_s30 = sld [smem:[#allocation2 + $0x5f]] }
 0x31c   : > { %10320 = vst [vmem:[#allocation157_spill] sm:$0xff] %v6831_v53  ;;  %v6835_v56 = vpop.permute.xlu0 %2052  ;;  %v2604_v21 = vrot.slane %v2593_v54, 2  ;;  %v2669_v54 = vmul.f32 %v2667_v49, %v6750_v27 }
 0x31d   : > { %10321 = vst [vmem:[#allocation158_spill] sm:$0xff] %v6833_v61  ;;  %v799_v42 = vrot.slane %v789_v6, 1 }
 0x31e   : > { %10322 = vst [vmem:[#allocation159_spill] sm:$0xff] %v6835_v56  ;;  %v2605_v46 = vsel %vm1153_vm2, %v2602_v38, %v2604_v21 }
 0x320   : > { %v7066_v9 = vstv %s6968_s9  ;;  %s7492_s9 = sld [smem:[#allocation2 + $0x51]] }
 0x321   : > { %2579 = vrot.lane.b32.xlu1 %v2572_v15, %s5315_s16  ;;  %2610 = vrot.lane.b32.xlu2 %v2603_v11, %s5315_s16  ;;  %v2607_v15 = vsel %vm1153_vm2, %v2604_v21, %v2606_v48  ;;  %v2668_v48 = vmul.f32 %v2667_v49, %v6732_v19 }
 0x322   : > { %2577 = vrot.lane.b32.xlu0 %v2570_v10, %s5315_s16  ;;  %v2670_v10 = vmul.f32 %v2667_v49, %v6768_v29 }
 0x323   : > { %v6846_v57 = vpop.permute.xlu1 %2089  ;;  %v6848_v37 = vpop.permute.xlu2 %2167 }
 0x324   : > { %10323 = vst [vmem:[#allocation160_spill] sm:$0xff] %v6846_v57  ;;  %v6850_v23 = vpop.permute.xlu0 %2087 }
 0x325   : > { %10324 = vst [vmem:[#allocation161_spill] sm:$0xff] %v6848_v37 }
 0x326   : > { %10325 = vst [vmem:[#allocation162_spill] sm:$0xff] %v6850_v23 }
 0x329   : > { %2614 = vrot.lane.b32.xlu1 %v2607_v15, %s5315_s16  ;;  %2616 = vrot.lane.b32.xlu2 %v2609_v33, %s5315_s16  ;;  %v2693_v15 = vstv %s5045_s10  ;;  %s6980_s10 = sld [smem:[#allocation2 + $0x72]] }
 0x32a   : > { %2612 = vrot.lane.b32.xlu0 %v2605_v46, %s5315_s16  ;;  %v2694_v33 = vmul.f32 %v2693_v15, %v6732_v19  ;;  %v2695_v46 = vmul.f32 %v2693_v15, %v6750_v27 }
 0x32b   : > { %v6858_v5 = vpop.permute.xlu1 %2124  ;;  %v6860_v11 = vpop.permute.xlu2 %2202 }
 0x32c   : > { %10326 = vst [vmem:[#allocation163_spill] sm:$0xff] %v6858_v5  ;;  %v6862_v14 = vpop.permute.xlu0 %2093 }
 0x32d   : > { %10327 = vst [vmem:[#allocation164_spill] sm:$0xff] %v6860_v11  ;;  %v2671_v11 = vmul.f32 %v2667_v49, %v6785_v45  ;;  %v2696_v49 = vmul.f32 %v2693_v15, %v6768_v29 }
 0x32e   : > { %10328 = vst [vmem:[#allocation165_spill] sm:$0xff] %v6862_v14 }
 0x32f   : > { %v7073_v28 = vstv %s6980_s10  ;;  %s7508_s10 = sld [smem:[#allocation2 + $0x82]] }
 0x331   : > { %2678 = vrot.lane.b32.xlu1 %v2669_v54, %s5316_s17  ;;  %2680 = vrot.lane.b32.xlu2 %v2670_v10, %s5316_s17 }
 0x332   : > { %2676 = vrot.lane.b32.xlu0 %v2668_v48, %s5316_s17 }
 0x333   : > { %v6870_v38 = vpop.permute.xlu1 %2130  ;;  %v6872_v16 = vpop.permute.xlu2 %2353 }
 0x334   : > { %10329 = vst [vmem:[#allocation166_spill] sm:$0xff] %v6870_v38  ;;  %v6874_v21 = vpop.permute.xlu0 %2128  ;;  %v6944_v38 = vstv %s4983_s25  ;;  %s7408_s25 = sld [smem:[#allocation2 + $0x3a]] }
 0x335   : > { %10330 = vst [vmem:[#allocation167_spill] sm:$0xff] %v6872_v16  ;;  %v2719_v16 = vstv %s5046_s11  ;;  %v6966_v53 = vmul.f32 %v6944_v38, %v5516_v43  ;;  %v818_v58 = vmul.f32 %v6944_v38, %v5455_v18  ;;  %s7013_s11 = sld [smem:[#allocation2 + $0x4e]] }
 0x336   : > { %10331 = vst [vmem:[#allocation168_spill] sm:$0xff] %v6874_v21  ;;  %v2720_v37 = vmul.f32 %v2719_v16, %v6732_v19  ;;  %v2697_v21 = vmul.f32 %v2693_v15, %v6785_v45  ;;  %v2723_v15 = vmul.f32 %v2719_v16, %v6785_v45 }
 0x337   : > { %v10353_v40 = vrot.slane %v6966_v53, 1 }
 0x339   : > { %2702 = vrot.lane.b32.xlu1 %v2694_v33, %s5316_s17  ;;  %2704 = vrot.lane.b32.xlu2 %v2695_v46, %s5316_s17 }
 0x33a   : > { %2682 = vrot.lane.b32.xlu0 %v2671_v11, %s5316_s17 }
 0x33b   : > { %v6882_v10 = vpop.permute.xlu1 %2165  ;;  %v6884_v54 = vpop.permute.xlu2 %2388 }
 0x33c   : > { %10332 = vst [vmem:[#allocation169_spill] sm:$0xff] %v6882_v10  ;;  %v6886_v48 = vpop.permute.xlu0 %2163  ;;  %v2745_v10 = vstv %s5047_s23  ;;  %s7681_s23 = sld [smem:[#allocation2 + $0x3b]] }
 0x33d   : > { %10333 = vst [vmem:[#allocation170_spill] sm:$0xff] %v6884_v54  ;;  %v2722_v54 = vmul.f32 %v2719_v16, %v6768_v29  ;;  %v2748_v56 = vmul.f32 %v2745_v10, %v6768_v29  ;;  %v2747_v23 = vmul.f32 %v2745_v10, %v6750_v27  ;;  %v2746_v20 = vmul.f32 %v2745_v10, %v6732_v19 }
 0x33e   : > { %10334 = vst [vmem:[#allocation171_spill] sm:$0xff] %v6886_v48  ;;  %v6920_v48 = vstv %s4980_s15  ;;  %s7277_s15 = sld [smem:[#allocation2 + $0x16]] }
 0x33f   : > { %v730_v5 = vmul.f32 %v6920_v48, %v5455_v18 }
 0x341   : > { %2728 = vrot.lane.b32.xlu2 %v2720_v37, %s5316_s17  ;;  %2708 = vrot.lane.b32.xlu1 %v2697_v21, %s5316_s17  ;;  %v2721_v37 = vmul.f32 %v2719_v16, %v6750_v27  ;;  %v6910_v21 = vstv %s4969_s12  ;;  %v741_v24 = vrot.slane %v730_v5, 1  ;;  %s7029_s12 = sld [smem:[#allocation2 + $0x38]] }
 0x342   : > { %2706 = vrot.lane.b32.xlu0 %v2696_v49, %s5316_s17  ;;  %v6912_v49 = vstv %s4970_s13  ;;  %s7196_s13 = sld [smem:[#allocation2 + $0x5c]] }
 0x343   : > { %v6894_v11 = vpop.permute.xlu1 %2200  ;;  %v6896_v33 = vpop.permute.xlu2 %2394  ;;  %v7040_v35 = vmul.f32 %v6912_v49, %v5516_v43 }
 0x344   : > { %10335 = vst [vmem:[#allocation172_spill] sm:$0xff] %v6894_v11  ;;  %v6898_v46 = vpop.permute.xlu0 %2198  ;;  %v6918_v11 = vstv %s480_s14  ;;  %s7268_s14 = sld [smem:[#allocation2 + $0x80]] }
 0x345   : > { %10336 = vst [vmem:[#allocation173_spill] sm:$0xff] %v6896_v33  ;;  %v6948_v14 = vmul.f32 %v6918_v11, %v5455_v18 }
 0x346   : > { %10337 = vst [vmem:[#allocation174_spill] sm:$0xff] %v6898_v46 }
 0x349   : > { %2734 = vrot.lane.b32.xlu2 %v2723_v15, %s5316_s17  ;;  %2732 = vrot.lane.b32.xlu1 %v2722_v54, %s5316_s17  ;;  %v6926_v54 = vstv %s4971_s26  ;;  %v6930_v15 = vmul.f32 %v6920_v48, %v5516_v43  ;;  %s7700_s26 = sld [smem:[#allocation2 + $0x54]] }
 0x34a   : > { %2730 = vrot.lane.b32.xlu0 %v2721_v37, %s5316_s17  ;;  %v6934_v37 = vmul.f32 %v6910_v21, %v5455_v18  ;;  %v6958_v57 = vmul.f32 %v6926_v54, %v5455_v18 }
 0x34b   : > { %v6914_v33 = vpop.permute.xlu1 %2351  ;;  %v6916_v46 = vpop.permute.xlu2 %2429  ;;  %v742_v31 = vrot.slane %v6930_v15, 1  ;;  %v6990_v15 = vmul.f32 %v6978_v51, %v5516_v43 }
 0x34c   : > { %10338 = vst [vmem:[#allocation175_spill] sm:$0xff] %v6914_v33  ;;  %v6922_v16 = vpop.permute.xlu0 %2204  ;;  %v10342_v33 = vld [vmem:[#allocation12_spill] sm:$0xff] }
 0x34d   : > { %10339 = vst [vmem:[#allocation176_spill] sm:$0xff] %v6916_v46  ;;  %v6938_v46 = vmul.f32 %v6912_v49, %v5455_v18  ;;  %v6962_v61 = vmul.f32 %v6918_v11, %v10342_v33  ;;  %v6994_v47 = vmul.f32 %v6978_v51, %v10342_v33  ;;  %v6998_v34 = vmul.f32 %v6920_v48, %v10342_v33 }
 0x34e   : > { %10340 = vst [vmem:[#allocation177_spill] sm:$0xff] %v6922_v16  ;;  %v6942_v16 = vmul.f32 %v6926_v54, %v10342_v33  ;;  %v7011_v30 = vmul.f32 %v6910_v21, %v10342_v33  ;;  %v7032_v5 = vsel %vm740_vm1, %v741_v24, %v742_v31  ;;  %v2749_v24 = vmul.f32 %v2745_v10, %v6785_v45 }
 0x34f   : > { %10341 = vst [vmem:[#allocation178_spill] sm:$0xff] %v6938_v46  ;;  %v7063_v4 = vmul.f32 %v7047_v63, %v10342_v33  ;;  %v7110_v62 = vmul.f32 %v6975_v0, %v10342_v33  ;;  %v7131_v8 = vmul.f32 %v7066_v9, %v10342_v33  ;;  %v2775_v46 = vmul.f32 %v2771_v1, %v6785_v45 }
 0x350   : > { %10343 = vst [vmem:[#allocation12_spill] sm:$0xff] %v6942_v16  ;;  %v1232_v16 = vmul.f32 %v7073_v28, %v5516_v43 }
 0x351   : > { %10344 = vst [vmem:[#allocation179_spill] sm:$0xff] %v6962_v61  ;;  %2758 = vrot.lane.b32.xlu2 %v2748_v56, %s5316_s17  ;;  %2756 = vrot.lane.b32.xlu1 %v2747_v23, %s5316_s17  ;;  %v7003_v56 = vmul.f32 %v6910_v21, %v5516_v43  ;;  %v7007_v23 = vmul.f32 %v6912_v49, %v10342_v33 }
 0x352   : > { %2754 = vrot.lane.b32.xlu0 %v2746_v20, %s5316_s17  ;;  %10347 = vst [vmem:[#allocation182_spill] sm:$0xff] %v7011_v30  ;;  %v7021_v20 = vmul.f32 %v6926_v54, %v5516_v43  ;;  %v760_v30 = vmul.f32 %v6978_v51, %v5455_v18  ;;  %v1242_v60 = vrot.slane %v1232_v16, 2 }
 0x353   : > { %10345 = vst [vmem:[#allocation180_spill] sm:$0xff] %v7003_v56  ;;  %v7015_v52 = vpop.permute.xlu1 %2357  ;;  %v7017_v39 = vpop.permute.xlu2 %2464  ;;  %v10366_v56 = vrot.slane %v6966_v53, 1 }
 0x354   : > { %10346 = vst [vmem:[#allocation181_spill] sm:$0xff] %v7007_v23  ;;  %v7026_v3 = vpop.permute.xlu0 %2355 }
 0x355   : > { %10348 = vst [vmem:[#allocation183_spill] sm:$0xff] %v7015_v52  ;;  %v828_v52 = vrot.slane %v818_v58, 1  ;;  %v2773_v58 = vmul.f32 %v2771_v1, %v6750_v27 }
 0x356   : > { %10349 = vst [vmem:[#allocation184_spill] sm:$0xff] %v7017_v39  ;;  %v7036_v39 = vmul.f32 %v6918_v11, %v5516_v43 }
 0x357   : > { %10350 = vst [vmem:[#allocation185_spill] sm:$0xff] %v7021_v20  ;;  %v7056_v61 = vsel %vm740_vm1, %v828_v52, %v10353_v40  ;;  %v10355_v40 = vrot.slane %v6986_v55, 1  ;;  %v10357_v52 = vrot.slane %v6994_v47, 1 }
 0x358   : > { %10351 = vst [vmem:[#allocation186_spill] sm:$0xff] %v7026_v3  ;;  %v771_v3 = vrot.slane %v6990_v15, 1  ;;  %v1144_v15 = vmul.f32 %v7047_v63, %v5516_v43 }
 0x359   : > { %10352 = vst [vmem:[#allocation187_spill] sm:$0xff] %v7032_v5  ;;  %v7070_v5 = vmul.f32 %v6944_v38, %v10342_v33  ;;  %2782 = vrot.lane.b32.xlu2 %v2773_v58, %s5315_s16  ;;  %2780 = vrot.lane.b32.xlu1 %v2772_v26, %s5315_s16  ;;  %v7080_v6 = vsel %vm740_vm1, %v799_v42, %v10355_v40  ;;  %v10359_v26 = vrot.slane %v6998_v34, 1  ;;  %v770_v42 = vrot.slane %v760_v30, 1 }
 0x35a   : > { %10354 = vst [vmem:[#allocation188_spill] sm:$0xff] %v7056_v61  ;;  %v7085_v10 = vsel %vm740_vm1, %v771_v3, %v10357_v52  ;;  %v1174_v61 = vmul.f32 %v7066_v9, %v5516_v43  ;;  %2760 = vrot.lane.b32.xlu0 %v2749_v24, %s5316_s17  ;;  %v7099_v40 = vmul.f32 %v7073_v28, %v10342_v33  ;;  %v7102_v52 = vstv %s7013_s11  ;;  %s7518_s11 = sld [smem:[#allocation2 + $0x75]] }
 0x35b   : > { %10356 = vst [vmem:[#allocation189_spill] sm:$0xff] %v7080_v6  ;;  %v7095_v58 = vsel %vm740_vm1, %v742_v31, %v10359_v26  ;;  %v7104_v6 = vpop.permute.xlu1 %2392  ;;  %v7114_v24 = vmul.f32 %v7102_v52, %v5516_v43  ;;  %v7118_v30 = vmul.f32 %v7102_v52, %v10342_v33  ;;  %v2797_v26 = vstv %s7029_s12  ;;  %s7522_s12 = sld [smem:[#allocation2 + $0x2d]] }
 0x35c   : > { %10358 = vst [vmem:[#allocation190_spill] sm:$0xff] %v7085_v10  ;;  %v7106_v10 = vpop.permute.xlu2 %2499  ;;  %v7120_v31 = vpop.permute.xlu0 %2390  ;;  %v1155_v41 = vrot.slane %v1144_v15, 2  ;;  %v1184_v59 = vrot.slane %v1174_v61, 2  ;;  %v1143_v43 = vmul.f32 %v7047_v63, %v5455_v18  ;;  %v1231_v15 = vmul.f32 %v7073_v28, %v5455_v18 }
 0x35d   : > { %10360 = vst [vmem:[#allocation191_spill] sm:$0xff] %v7095_v58  ;;  %v324_v58 = vpop.f32.mrf.mxu0  ;;  %v1213_v61 = vrot.slane %v7114_v24, 2  ;;  %v10069_v16 = vrot.slane %v7118_v30, 2  ;;  %v10364_v33 = vrot.slane %v7063_v4, 2  ;;  %v10365_v12 = vrot.slane %v7070_v5, 1 }
 0x35e   : > { %10361 = vst [vmem:[#allocation192_spill] sm:$0xff] %v7104_v6  ;;  %v2798_v6 = vmul.f32 %v2797_v26, %v6732_v19  ;;  %v1154_v1 = vrot.slane %v1143_v43, 2  ;;  %v10070_v24 = vrot.slane %v7131_v8, 2  ;;  %v10367_v53 = vrot.slane %v7099_v40, 2 }
 0x35f   : > { %10362 = vst [vmem:[#allocation193_spill] sm:$0xff] %v7106_v10  ;;  %v1173_v10 = vmul.f32 %v7066_v9, %v5455_v18  ;;  %v7145_v20 = vsel %vm1153_vm2, %v1155_v41, %v10364_v33  ;;  %v7155_v23 = vsel %vm740_vm1, %v10366_v56, %v10365_v12  ;;  %v1202_v33 = vmul.f32 %v7102_v52, %v5455_v18 }
 0x360   : > { %10363 = vst [vmem:[#allocation194_spill] sm:$0xff] %v7120_v31  ;;  %v7148_v31 = vsel %vm740_vm1, %v770_v42, %v771_v3  ;;  %v335_v3 = vpack.c.bf16 %v324_v58, %v324_v58  ;;  %v7169_v12 = vsel %vm1153_vm2, %v1242_v60, %v10367_v53  ;;  %v1241_v56 = vrot.slane %v1231_v15, 2 }
 0x361   : > { %v1183_v36 = vrot.slane %v1173_v10, 2  ;;  %2806 = vrot.lane.b32.xlu2 %v2798_v6, %s5315_s16  ;;  %2786 = vrot.lane.b32.xlu1 %v2775_v46, %s5315_s16  ;;  %v733_v46 = vmul.f32 %v6920_v48, %v5518_v44  ;;  %v7178_v18 = vsel %vm1153_vm2, %v1154_v1, %v1155_v41  ;;  %v7190_v43 = vsel %vm1153_vm2, %v1213_v61, %v10069_v16 }
 0x362   : > { %2784 = vrot.lane.b32.xlu0 %v2774_v17, %s5315_s16  ;;  %v10370_v17 = vrot.slane %v7110_v62, 1  ;;  %v734_v15 = vmul.f32 %v6920_v48, %v5472_v25  ;;  %v7199_v1 = vsel %vm1153_vm2, %v1241_v56, %v1242_v60  ;;  %v7210_v48 = vsel %vm1153_vm2, %v1184_v59, %v10070_v24 }
 0x363   : > { %v7164_v10 = vsel %vm1153_vm2, %v1183_v36, %v1184_v59  ;;  %v7173_v6 = vpop.permute.xlu1 %2427  ;;  %v10371_v36 = vrot.slane %v6986_v55, 1  ;;  %v7203_v55 = vmul.f32 %v6912_v49, %v5518_v44  ;;  %v1212_v16 = vrot.slane %v1202_v33, 2 }
 0x364   : > { %10368 = vst [vmem:[#allocation195_spill] sm:$0xff] %v7173_v6  ;;  %v7175_v42 = vpop.permute.xlu2 %2505  ;;  %v7194_v53 = vpop.permute.xlu0 %2425  ;;  %v746_v60 = vrot.slane %v733_v46, 1  ;;  %v2801_v56 = vmul.f32 %v2797_v26, %v6785_v45  ;;  %v2800_v49 = vmul.f32 %v2797_v26, %v6768_v29  ;;  %v748_v59 = vrot.slane %v734_v15, 1 }
 0x365   : > { %10369 = vst [vmem:[#allocation196_spill] sm:$0xff] %v7175_v42  ;;  %v7185_v58 = vsel %vm740_vm1, %v10371_v36, %v10370_v17  ;;  %v326_v41 = vpop.f32.mrf.mxu0  ;;  %v763_v17 = vmul.f32 %v6978_v51, %v5518_v44  ;;  %v792_v42 = vmul.f32 %v6975_v0, %v5518_v44  ;;  %v2799_v33 = vmul.f32 %v2797_v26, %v6750_v27 }
 0x366   : > { %10372 = vst [vmem:[#allocation197_spill] sm:$0xff] %v7194_v53  ;;  %v336_v36 = vpack.c.bf16 %v326_v41, %v326_v41  ;;  %v453_v53 = vunpack.c.l.b16 %v335_v3  ;;  %v7222_v41 = vmul.f32 %v6910_v21, %v5518_v44  ;;  %v7226_v24 = vsel %vm1153_vm2, %v1212_v16, %v1213_v61 }
 0x367   : > { %10373 = vst [vmem:[#allocation198_spill] sm:$0xff] %v7203_v55  ;;  %v7218_v55 = vmul.f32 %v6918_v11, %v5518_v44  ;;  %v775_v3 = vrot.slane %v763_v17, 1  ;;  %v793_v46 = vmul.f32 %v6975_v0, %v5472_v25  ;;  %v804_v11 = vrot.slane %v792_v42, 1 }
 0x368   : > { %v454_v6 = vunpack.c.l.b16 %v336_v36  ;;  %v764_v36 = vmul.f32 %v6978_v51, %v5472_v25  ;;  %v821_v21 = vmul.f32 %v6944_v38, %v5518_v44  ;;  %v1176_v26 = vmul.f32 %v7066_v9, %v5518_v44 }
 0x369   : > { %2812 = vrot.lane.b32.xlu2 %v2801_v56, %s5315_s16  ;;  %2810 = vrot.lane.b32.xlu1 %v2800_v49, %s5315_s16  ;;  %v7241_v0 = vmul.f32 %v6926_v54, %v5518_v44  ;;  %v10375_v51 = vrot.slane %v6998_v34, 1  ;;  %v1177_v42 = vmul.f32 %v7066_v9, %v5472_v25  ;;  %v7252_v15 = vmul.f32 %v7102_v52, %v5518_v44 }
 0x36a   : > { %2808 = vrot.lane.b32.xlu0 %v2799_v33, %s5315_s16  ;;  %v455_v61 = vpack.c.b16 %v454_v6, %v453_v53  ;;  %v7259_v6 = vsel %vm740_vm1, %v746_v60, %v748_v59  ;;  %v1146_v34 = vmul.f32 %v7047_v63, %v5518_v44  ;;  %v1147_v54 = vmul.f32 %v7047_v63, %v5472_v25 }
 0x36b   : > { %10374 = vst [vmem:[#allocation199_spill] sm:$0xff] %v7241_v0  ;;  %v7246_v16 = vsel %vm740_vm1, %v10375_v51, %v746_v60  ;;  %v7254_v17 = vpop.permute.xlu1 %2462  ;;  %v2823_v9 = vstv %s7196_s13  ;;  %v10380_v49 = vrot.slane %v6994_v47, 1  ;;  %v806_v51 = vrot.slane %v793_v46, 1  ;;  %s7615_s13 = sld [smem:[#allocation2 + $0xc]] }
 0x36c   : > { %10376 = vst [vmem:[#allocation200_spill] sm:$0xff] %v7254_v17  ;;  %v7256_v56 = vpop.permute.xlu2 %2540  ;;  %v7265_v53 = vpop.permute.xlu0 %2431  ;;  %464 = vmatpush.bf16.msrb.mxu1 %v455_v61  ;;  %v777_v60 = vrot.slane %v764_v36, 1  ;;  %v822_v59 = vmul.f32 %v6944_v38, %v5472_v25  ;;  %v10381_v63 = vrot.slane %v7110_v62, 1  ;;  %v1188_v17 = vrot.slane %v1176_v26, 2  ;;  %v5209_v38 = vld [vmem:[%s10015_s2] sm:$0xff] }
 0x36d   : > { %10377 = vst [vmem:[#allocation201_spill] sm:$0xff] %v7256_v56  ;;  %v7273_v33 = vsel %vm740_vm1, %v10380_v49, %v775_v3  ;;  %v833_v56 = vrot.slane %v821_v21, 1  ;;  %v1234_v47 = vmul.f32 %v7073_v28, %v5518_v44  ;;  %v1190_v61 = vrot.slane %v1177_v42, 2  ;;  %v10382_v42 = vld [vmem:[#allocation35_spill] sm:$0xff] }
 0x36e   : > { %10378 = vst [vmem:[#allocation202_spill] sm:$0xff] %v7259_v6  ;;  %v1217_v49 = vrot.slane %v7252_v15, 2  ;;  %v2826_v46 = vmul.f32 %v2823_v9, %v6768_v29  ;;  %v2825_v36 = vmul.f32 %v2823_v9, %v6750_v27  ;;  %v1159_v62 = vrot.slane %v1146_v34, 2 }
 0x36f   : > { %10379 = vst [vmem:[#allocation203_spill] sm:$0xff] %v7265_v53  ;;  %v7282_v53 = vsel %vm740_vm1, %v10381_v63, %v804_v11  ;;  %4966 = vmatmul.msk.bf16.vlgmr.msrb.gmra.mxu1 %vm287_vm0, %v5209_v38  ;;  %v1161_v21 = vrot.slane %v1147_v54, 2  ;;  %v1235_v26 = vmul.f32 %v7073_v28, %v5472_v25  ;;  %v2824_v44 = vmul.f32 %v2823_v9, %v6732_v19 }
 0x370   : > { %v568_v15 = vadd.f32 %v10382_v42, %v6934_v37  ;;  %v7299_v63 = vsel %vm740_vm1, %v804_v11, %v806_v51  ;;  %v7302_v6 = vsel %vm740_vm1, %v775_v3, %v777_v60  ;;  %v835_v0 = vrot.slane %v822_v59, 1  ;;  %v10392_v42 = vld [vmem:[#allocation41_spill] sm:$0xff] }
 0x371   : > { %2836 = vrot.lane.b32.xlu2 %v2826_v46, %s5315_s16  ;;  %2834 = vrot.lane.b32.xlu1 %v2825_v36, %s5315_s16  ;;  %v542_v28 = vadd.f32 %v6018_v50, %v6948_v14  ;;  %v10383_v34 = vrot.slane %v7070_v5, 1  ;;  %v1246_v37 = vrot.slane %v1234_v47, 2  ;;  %v1206_v11 = vmul.f32 %v7102_v52, %v5472_v25 }
 0x372   : > { %2832 = vrot.lane.b32.xlu0 %v2824_v44, %s5315_s16  ;;  %v543_v3 = vadd.f32 %v6127_v22, %v7036_v39  ;;  %v7319_v51 = vsel %vm1153_vm2, %v1188_v17, %v1190_v61  ;;  %v10384_v50 = vrot.slane %v7118_v30, 2  ;;  %v10385_v5 = vrot.slane %v7131_v8, 2  ;;  %v10391_v44 = vld [vmem:[#allocation180_spill] sm:$0xff] }
 0x373   : > { %v7311_v54 = vsel %vm740_vm1, %v10383_v34, %v833_v56  ;;  %v7331_v25 = vpop.permute.xlu1 %2468  ;;  %v7336_v59 = vsel %vm1153_vm2, %v1159_v62, %v1161_v21  ;;  %v10388_v22 = vrot.slane %v7063_v4, 2  ;;  %v1248_v30 = vrot.slane %v1235_v26, 2 }
 0x374   : > { %v7324_v14 = vsel %vm1153_vm2, %v10384_v50, %v1217_v49  ;;  %v7329_v60 = vsel %vm1153_vm2, %v10385_v5, %v1188_v17  ;;  %10386 = vst [vmem:[#allocation35_spill] sm:$0xff] %v7331_v25  ;;  %v7333_v52 = vpop.permute.xlu2 %2575  ;;  %v7343_v47 = vpop.permute.xlu0 %2466  ;;  %v2849_v61 = vstv %s7268_s14  ;;  %v620_v8 = vadd.f32 %v6046_v2, %v6958_v57  ;;  %v10393_v57 = vld [vmem:[#allocation44_spill] sm:$0xff]  ;;  %v10398_v5 = vld [vmem:[#allocation38_spill] sm:$0xff]  ;;  %s7632_s14 = sld [smem:[#allocation2 + $0x17]] }
 0x375   : > { %10387 = vst [vmem:[#allocation204_spill] sm:$0xff] %v7333_v52  ;;  %v7341_v39 = vsel %vm1153_vm2, %v10388_v22, %v1159_v62  ;;  %v595_v17 = vadd.f32 %v6148_v32, %v7040_v35  ;;  %v7351_v46 = vsel %vm740_vm1, %v833_v56, %v835_v0  ;;  %v2991_v36 = vstv %s7277_s15  ;;  %v10394_v0 = vld [vmem:[#allocation185_spill] sm:$0xff]  ;;  %v10421_v25 = vld [vmem:[#allocation50_spill] sm:$0xff]  ;;  %s7662_s15 = sld [smem:[#allocation2 + $0x30]] }
 0x376   : > { %10389 = vst [vmem:[#allocation205_spill] sm:$0xff] %v7343_v47  ;;  %v672_v38 = vadd.f32 %v6002_v7, %v568_v15  ;;  %v646_v4 = vadd.f32 %v6014_v13, %v542_v28  ;;  %v1219_v62 = vrot.slane %v1206_v11, 2  ;;  %v10390_v21 = vrot.slane %v7099_v40, 2  ;;  %v10395_v56 = vld [vmem:[#allocation49_spill] sm:$0xff]  ;;  %v10396_v28 = vld [vmem:[#allocation178_spill] sm:$0xff]  ;;  %v10397_v11 = vld [vmem:[#allocation36_spill] sm:$0xff] }
 0x377   : > { %v569_v2 = vadd.f32 %v10392_v42, %v10391_v44  ;;  %v647_v34 = vadd.f32 %v10393_v57, %v543_v3  ;;  %v2851_v35 = vmul.f32 %v2849_v61, %v6750_v27  ;;  %v2850_v32 = vmul.f32 %v2849_v61, %v6732_v19  ;;  %v10399_v3 = vld [vmem:[#allocation52_spill] sm:$0xff]  ;;  %v10400_v44 = vld [vmem:[#allocation181_spill] sm:$0xff]  ;;  %v10401_v42 = vld [vmem:[#allocation43_spill] sm:$0xff] }
 0x378   : > { %v7359_v26 = vsel %vm1153_vm2, %v10390_v21, %v1246_v37  ;;  %v621_v7 = vadd.f32 %v10395_v56, %v10394_v0  ;;  %v2827_v13 = vmul.f32 %v2823_v9, %v6785_v45  ;;  %v2992_v15 = vmul.f32 %v2991_v36, %v6732_v19  ;;  %v10402_v9 = vld [vmem:[#allocation58_spill] sm:$0xff] }
 0x379   : > { %v7371_v40 = vmul.f32 %v2991_v36, %v6750_v27  ;;  %v594_v50 = vadd.f32 %v10397_v11, %v10396_v28  ;;  %v724_v22 = vadd.f32 %v10398_v5, %v620_v8  ;;  %v699_v21 = vadd.f32 %v10399_v3, %v595_v17  ;;  %2860 = vrot.lane.b32.xlu2 %v2851_v35, %s5315_s16  ;;  %v10403_v8 = vld [vmem:[#allocation12_spill] sm:$0xff]  ;;  %v10404_v28 = vld [vmem:[#allocation37_spill] sm:$0xff]  ;;  %v10405_v11 = vld [vmem:[#allocation42_spill] sm:$0xff] }
 0x37a   : > { %2858 = vrot.lane.b32.xlu1 %v2850_v32, %s5315_s16  ;;  %v596_v57 = vadd.f32 %v10401_v42, %v10400_v44  ;;  %v673_v0 = vadd.f32 %v10402_v9, %v569_v2  ;;  %v7383_v56 = vsel %vm1153_vm2, %v1246_v37, %v1248_v30  ;;  %v7386_v47 = vsel %vm1153_vm2, %v1217_v49, %v1219_v62  ;;  %v10406_v5 = vld [vmem:[#allocation187_spill] sm:$0xff] }
 0x37b   : > { %2838 = vrot.lane.b32.xlu0 %v2827_v13, %s5315_s16  ;;  %v622_v17 = vadd.f32 %v10404_v28, %v10403_v8  ;;  %v698_v35 = vadd.f32 %v10405_v11, %v594_v50  ;;  %v754_v32 = vadd.f32 %v10406_v5, %v646_v4  ;;  %v10407_v3 = vld [vmem:[#allocation191_spill] sm:$0xff]  ;;  %v7394_v44 = vpop.permute.xlu1 %2503  ;;  %v783_v49 = vadd.f32 %v7148_v31, %v672_v38  ;;  %v10413_v8 = vld [vmem:[#allocation40_spill] sm:$0xff]  ;;  %v10415_v11 = vld [vmem:[#allocation14_spill] sm:$0xff] }
 0x37c   : > { %v755_v52 = vadd.f32 %v10407_v3, %v647_v34  ;;  %10408 = vst [vmem:[#allocation180_spill] sm:$0xff] %v7394_v44  ;;  %v7396_v2 = vpop.permute.xlu2 %2610  ;;  %v10410_v37 = vld [vmem:[#allocation47_spill] sm:$0xff]  ;;  %v7400_v62 = vpop.permute.xlu0 %2501  ;;  %v3002_v13 = vrot.slane %v2992_v15, 1  ;;  %v3003_v42 = vrot.slane %v7371_v40, 1  ;;  %v10414_v28 = vld [vmem:[#allocation188_spill] sm:$0xff]  ;;  %v813_v5 = vadd.f32 %v7185_v58, %v699_v21  ;;  %v10418_v31 = vld [vmem:[#allocation45_spill] sm:$0xff] }
 0x37d   : > { %10409 = vst [vmem:[#allocation41_spill] sm:$0xff] %v7396_v2  ;;  %v725_v30 = vadd.f32 %v10410_v37, %v621_v7  ;;  %v10412_v9 = vld [vmem:[#allocation179_spill] sm:$0xff]  ;;  %v841_v4 = vadd.f32 %v10414_v28, %v724_v22  ;;  %v10417_v37 = vld [vmem:[#allocation182_spill] sm:$0xff]  ;;  %v10420_v2 = vld [vmem:[#allocation16_spill] sm:$0xff]  ;;  %v878_v44 = vadd.f32 %v10421_v25, %v754_v32  ;;  %v2853_v22 = vmul.f32 %v2849_v61, %v6785_v45 }
 0x37e   : > { %10411 = vst [vmem:[#allocation44_spill] sm:$0xff] %v7400_v62  ;;  %v544_v50 = vadd.f32 %v10413_v8, %v10412_v9  ;;  %v879_v34 = vadd.f32 %v10415_v11, %v755_v52  ;;  %v10416_v3 = vld [vmem:[#allocation39_spill] sm:$0xff]  ;;  %v570_v38 = vadd.f32 %v10418_v31, %v10417_v37  ;;  %v10419_v62 = vld [vmem:[#allocation190_spill] sm:$0xff]  ;;  %v915_v40 = vadd.f32 %v10420_v2, %v783_v49  ;;  %v10422_v9 = vld [vmem:[#allocation189_spill] sm:$0xff] }
 0x37f   : > { %v700_v7 = vadd.f32 %v10416_v3, %v596_v57  ;;  %v784_v15 = vadd.f32 %v10419_v62, %v673_v0  ;;  %v812_v8 = vadd.f32 %v10422_v9, %v698_v35  ;;  %v2995_v52 = vmul.f32 %v2991_v36, %v6785_v45  ;;  %v5210_v58 = vld [vmem:[%s10015_s2 + $0x8] sm:$0xff]  ;;  %v10423_v2 = vld [vmem:[#allocation153_spill] sm:$0xff]  ;;  %v10426_v11 = vld [vmem:[#allocation46_spill] sm:$0xff] }
 0x380   : > { %4967 = vmatmul.msk.bf16.gmra.mxu1 %vm287_vm0, %v5210_v58  ;;  %v842_v21 = vadd.f32 %v7155_v23, %v725_v30  ;;  %v3004_v57 = vsel %vm740_vm1, %v3002_v13, %v3003_v42  ;;  %v2852_v0 = vmul.f32 %v2849_v61, %v6768_v29  ;;  %v2996_v25 = vmul.f32 %v2991_v36, %v10423_v2  ;;  %v10424_v32 = vld [vmem:[#allocation13_spill] sm:$0xff]  ;;  %v10427_v37 = vld [vmem:[#allocation56_spill] sm:$0xff]  ;;  %v10428_v30 = vld [vmem:[#allocation54_spill] sm:$0xff] }
 0x381   : > { %v1027_v35 = vadd.f32 %v10424_v32, %v879_v34  ;;  %v10425_v49 = vld [vmem:[#allocation53_spill] sm:$0xff]  ;;  %3011 = vrot.lane.b32.xlu2 %v3004_v57, %s5316_s17  ;;  %v2994_v28 = vmul.f32 %v2991_v36, %v6768_v29  ;;  %v674_v3 = vadd.f32 %v10426_v11, %v570_v38  ;;  %v952_v23 = vadd.f32 %v10427_v37, %v812_v8  ;;  %v10429_v31 = vld [vmem:[#allocation15_spill] sm:$0xff]  ;;  %v10430_v9 = vld [vmem:[#allocation20_spill] sm:$0xff] }
 0x382   : > { %v953_v62 = vadd.f32 %v10425_v49, %v813_v5  ;;  %2864 = vrot.lane.b32.xlu1 %v2853_v22, %s5315_s16  ;;  %v916_v13 = vadd.f32 %v10428_v30, %v784_v15  ;;  %v1063_v61 = vadd.f32 %v10429_v31, %v915_v40  ;;  %v990_v34 = vadd.f32 %v10430_v9, %v842_v21  ;;  %v10431_v5 = vld [vmem:[#allocation23_spill] sm:$0xff]  ;;  %v10432_v57 = vld [vmem:[#allocation26_spill] sm:$0xff]  ;;  %v10435_v49 = vld [vmem:[#allocation48_spill] sm:$0xff] }
 0x383   : > { %2862 = vrot.lane.b32.xlu0 %v2852_v0, %s5315_s16  ;;  %v1026_v58 = vadd.f32 %v10431_v5, %v878_v44  ;;  %v7440_v22 = vpop.permute.xlu1 %2538  ;;  %v3007_v38 = vrot.slane %v2995_v52, 1  ;;  %v648_v8 = vadd.f32 %v10435_v49, %v544_v50  ;;  %v10436_v11 = vld [vmem:[#allocation51_spill] sm:$0xff]  ;;  %v3009_v0 = vrot.slane %v2996_v25, 1  ;;  %v10439_v21 = vld [vmem:[#allocation17_spill] sm:$0xff]  ;;  %v10440_v52 = vld [vmem:[#allocation60_spill] sm:$0xff] }
 0x384   : > { %v1101_v32 = vadd.f32 %v10432_v57, %v953_v62  ;;  %10433 = vst [vmem:[#allocation185_spill] sm:$0xff] %v7440_v22  ;;  %v7442_v36 = vpop.permute.xlu2 %2616  ;;  %v726_v15 = vadd.f32 %v10436_v11, %v622_v17  ;;  %v10437_v37 = vld [vmem:[#allocation55_spill] sm:$0xff]  ;;  %v7447_v30 = vpop.permute.xlu0 %2536  ;;  %v1100_v44 = vadd.f32 %v10439_v21, %v952_v23  ;;  %v1168_v62 = vadd.f32 %v7145_v20, %v1027_v35  ;;  %v10441_v50 = vld [vmem:[#allocation57_spill] sm:$0xff] }
 0x385   : > { %10434 = vst [vmem:[#allocation49_spill] sm:$0xff] %v7442_v36  ;;  %v989_v40 = vadd.f32 %v10437_v37, %v841_v4  ;;  %v3005_v31 = vrot.slane %v2994_v28, 1  ;;  %v3028_v9 = vstv %s7408_s25  ;;  %v1196_v5 = vadd.f32 %v7164_v10, %v1063_v61  ;;  %v10442_v4 = vld [vmem:[#allocation18_spill] sm:$0xff]  ;;  %s7719_s25 = sld [smem:[#allocation2 + $0x78]] }
 0x386   : > { %10438 = vst [vmem:[#allocation178_spill] sm:$0xff] %v7447_v30  ;;  %v1064_v49 = vadd.f32 %v10441_v50, %v916_v13  ;;  %v7458_v17 = vadd.f32 %v7282_v53, %v700_v7  ;;  %v1138_v11 = vadd.f32 %v10442_v4, %v990_v34  ;;  %v1167_v25 = vadd.f32 %v7178_v18, %v1026_v58  ;;  %v10443_v13 = vld [vmem:[#allocation19_spill] sm:$0xff] }
 0x387   : > { %v1137_v57 = vadd.f32 %v10440_v52, %v989_v40  ;;  %v1226_v37 = vadd.f32 %v7190_v43, %v1101_v32  ;;  %v3008_v23 = vsel %vm740_vm1, %v3005_v31, %v3007_v38  ;;  %v3010_v20 = vsel %vm740_vm1, %v3007_v38, %v3009_v0  ;;  %v10444_v43 = vld [vmem:[#allocation21_spill] sm:$0xff]  ;;  %v10445_v38 = vld [vmem:[#allocation22_spill] sm:$0xff]  ;;  %v10450_v52 = vld [vmem:[#allocation68_spill] sm:$0xff] }
 0x388   : > { %v3030_v35 = vmul.f32 %v3028_v9, %v6750_v27  ;;  %v3031_v10 = vmul.f32 %v3028_v9, %v6768_v29  ;;  %v7468_v28 = vmul.f32 %v3028_v9, %v6785_v45  ;;  %v1292_v53 = vadd.f32 %v10443_v13, %v1168_v62  ;;  %v10446_v0 = vld [vmem:[#allocation25_spill] sm:$0xff]  ;;  %v10457_v13 = vld [vmem:[#allocation11_spill] sm:$0xff] }
 0x389   : > { %v3006_v7 = vsel %vm740_vm1, %v3003_v42, %v3005_v31  ;;  %3017 = vrot.lane.b32.xlu2 %v3010_v20, %s5316_s17  ;;  %v3029_v18 = vmul.f32 %v3028_v9, %v6732_v19  ;;  %v7476_v61 = vadd.f32 %v10444_v43, %v1196_v5  ;;  %v1254_v34 = vadd.f32 %v7199_v1, %v1137_v57  ;;  %v10454_v20 = vld [vmem:[#allocation28_spill] sm:$0xff] }
 0x38a   : > { %3015 = vrot.lane.b32.xlu1 %v3008_v23, %s5316_s17  ;;  %v7480_v58 = vadd.f32 %v7273_v33, %v674_v3  ;;  %v7483_v32 = vadd.f32 %v7246_v16, %v648_v8  ;;  %v1255_v42 = vadd.f32 %v7169_v12, %v1138_v11  ;;  %v1291_v40 = vadd.f32 %v10445_v38, %v1167_v25  ;;  %v10452_v11 = vld [vmem:[#allocation27_spill] sm:$0xff]  ;;  %v10459_v38 = vld [vmem:[#allocation33_spill] sm:$0xff] }
 0x38b   : > { %3013 = vrot.lane.b32.xlu0 %v3006_v7, %s5316_s17  ;;  %v1366_v21 = vadd.f32 %v10446_v0, %v1226_v37  ;;  %v1197_v62 = vadd.f32 %v7210_v48, %v1064_v49  ;;  %v7494_v1 = vpop.permute.xlu1 %2573  ;;  %v3040_v3 = vrot.slane %v3030_v35, 1  ;;  %v3042_v8 = vrot.slane %v3031_v10, 1  ;;  %v10451_v49 = vld [vmem:[#allocation24_spill] sm:$0xff]  ;;  %v10453_v37 = vld [vmem:[#allocation29_spill] sm:$0xff]  ;;  %v10458_v7 = vld [vmem:[#allocation34_spill] sm:$0xff] }
 0x38c   : > { %10447 = vst [vmem:[#allocation36_spill] sm:$0xff] %v7494_v1  ;;  %v7496_v33 = vpop.permute.xlu2 %2680  ;;  %v7498_v16 = vpop.permute.xlu0 %2542  ;;  %v10071_v31 = vrot.slane %v7468_v28, 1  ;;  %v3065_v5 = vstv %s7449_s7  ;;  %v1225_v12 = vadd.f32 %v7226_v24, %v1100_v44  ;;  %v571_v57 = vadd.f32 %v10450_v52, %v7222_v41  ;;  %v10455_v24 = vld [vmem:[#allocation31_spill] sm:$0xff]  ;;  %v10456_v44 = vld [vmem:[#allocation64_spill] sm:$0xff]  ;;  %s7957_s7 = sld [smem:[#allocation2 + $0xf]] }
 0x38d   : > { %10448 = vst [vmem:[#allocation38_spill] sm:$0xff] %v7496_v33  ;;  %v7506_v48 = vadd.f32 %v7311_v54, %v726_v15  ;;  %v3039_v50 = vrot.slane %v3029_v18, 1  ;;  %v1403_v4 = vadd.f32 %v10451_v49, %v1255_v42  ;;  %v7512_v25 = vadd.f32 %v10452_v11, %v1291_v40  ;;  %v10462_v52 = vld [vmem:[#allocation63_spill] sm:$0xff]  ;;  %v10463_v11 = vld [vmem:[#allocation72_spill] sm:$0xff] }
 0x38e   : > { %10449 = vst [vmem:[#allocation52_spill] sm:$0xff] %v7498_v16  ;;  %v7515_v23 = vadd.f32 %v10453_v37, %v1366_v21  ;;  %v1402_v35 = vadd.f32 %v10454_v20, %v1254_v34  ;;  %v1329_v41 = vadd.f32 %v10455_v24, %v1197_v62  ;;  %v1365_v54 = vadd.f32 %v10456_v44, %v1225_v12  ;;  %v10461_v12 = vld [vmem:[#allocation198_spill] sm:$0xff]  ;;  %v10464_v37 = vld [vmem:[#allocation199_spill] sm:$0xff]  ;;  %v10465_v20 = vld [vmem:[#allocation77_spill] sm:$0xff] }
 0x38f   : > { %v3066_v15 = vmul.f32 %v3065_v5, %v6732_v19  ;;  %v3067_v10 = vmul.f32 %v3065_v5, %v6750_v27  ;;  %v545_v18 = vadd.f32 %v10458_v7, %v7218_v55  ;;  %v3043_v43 = vsel %vm740_vm1, %v3040_v3, %v3042_v8  ;;  %v10460_v55 = vld [vmem:[#allocation32_spill] sm:$0xff]  ;;  %v10481_v16 = vld [vmem:[#allocation74_spill] sm:$0xff] }
 0x390   : > { %4968 = vmatmul.msk.bf16.gmra.mxu1 %vm287_vm0, %v10457_v13  ;;  %v3045_v34 = vsel %vm740_vm1, %v3042_v8, %v10071_v31  ;;  %v7535_v42 = vmul.f32 %v3065_v5, %v6768_v29  ;;  %v675_v40 = vadd.f32 %v10459_v38, %v571_v57  ;;  %v3041_v0 = vsel %vm740_vm1, %v3039_v50, %v3040_v3  ;;  %v10468_v13 = vld [vmem:[#allocation30_spill] sm:$0xff]  ;;  %v10474_v31 = vld [vmem:[#allocation75_spill] sm:$0xff] }
 0x391   : > { %3052 = vrot.lane.b32.xlu2 %v3045_v34, %s5316_s17  ;;  %v3033_v21 = vmul.f32 %v3028_v9, %v10423_v2  ;;  %v1550_v62 = vadd.f32 %v10460_v55, %v1402_v35  ;;  %v597_v49 = vadd.f32 %v10462_v52, %v10461_v12  ;;  %v649_v8 = vadd.f32 %v10463_v11, %v545_v18  ;;  %v10469_v18 = vld [vmem:[#allocation62_spill] sm:$0xff]  ;;  %v10472_v12 = vld [vmem:[#allocation80_spill] sm:$0xff] }
 0x392   : > { %3050 = vrot.lane.b32.xlu1 %v3043_v43, %s5316_s17  ;;  %v623_v24 = vadd.f32 %v10465_v20, %v10464_v37  ;;  %v7550_v57 = vstv %s7492_s9  ;;  %v7553_v3 = vstv %s7485_s8  ;;  %v3076_v35 = vrot.slane %v3066_v15, 1  ;;  %v10470_v34 = vld [vmem:[#allocation66_spill] sm:$0xff]  ;;  %s7971_s8 = sld [smem:[#allocation2 + $0x19]] }
 0x393   : > { %3048 = vrot.lane.b32.xlu0 %v3041_v0, %s5316_s17  ;;  %v7555_v50 = vpop.permute.xlu1 %2579  ;;  %v3077_v44 = vrot.slane %v3067_v10, 1  ;;  %v1477_v7 = vadd.f32 %v10468_v13, %v1329_v41  ;;  %v7561_v43 = vadd.f32 %v10469_v18, %v1365_v54  ;;  %v7564_v38 = vadd.f32 %v10470_v34, %v1292_v53  ;;  %v10473_v20 = vld [vmem:[#allocation202_spill] sm:$0xff]  ;;  %v10475_v13 = vld [vmem:[#allocation59_spill] sm:$0xff]  ;;  %v10476_v18 = vld [vmem:[#allocation61_spill] sm:$0xff]  ;;  %s8027_s9 = sld [smem:[#allocation2 + $0x33]] }
 0x394   : > { %10466 = vst [vmem:[#allocation181_spill] sm:$0xff] %v7555_v50  ;;  %v7557_v9 = vpop.permute.xlu2 %2704  ;;  %v7566_v0 = vpop.permute.xlu0 %2577  ;;  %v3079_v55 = vrot.slane %v7535_v42, 1  ;;  %v701_v52 = vadd.f32 %v10472_v12, %v597_v49  ;;  %v786_v11 = vadd.f32 %v7302_v6, %v675_v40  ;;  %v3046_v37 = vrot.slane %v3033_v21, 1 }
 0x395   : > { %10467 = vst [vmem:[#allocation43_spill] sm:$0xff] %v7557_v9  ;;  %v3102_v15 = vstv %s7508_s10  ;;  %v757_v10 = vadd.f32 %v10473_v20, %v649_v8  ;;  %v727_v41 = vadd.f32 %v10474_v31, %v623_v24  ;;  %v1556_v54 = vmul.f32 %v7553_v3, %v10475_v13  ;;  %v10477_v8 = vld [vmem:[#allocation78_spill] sm:$0xff]  ;;  %v10480_v9 = vld [vmem:[#allocation73_spill] sm:$0xff]  ;;  %s8035_s10 = sld [smem:[#allocation2 + $0x57]] }
 0x396   : > { %10471 = vst [vmem:[#allocation58_spill] sm:$0xff] %v7566_v0  ;;  %v1577_v53 = vmul.f32 %v7550_v57, %v10476_v18  ;;  %v7579_v34 = vstv %s7522_s12  ;;  %v7582_v0 = vstv %s7518_s11  ;;  %v3078_v42 = vsel %vm740_vm1, %v3076_v35, %v3077_v44  ;;  %s8041_s11 = sld [smem:[#allocation2 + $0x7b]] }
 0x397   : > { %v3069_v6 = vmul.f32 %v3065_v5, %v6785_v45  ;;  %v3080_v40 = vsel %vm740_vm1, %v3077_v44, %v3079_v55  ;;  %v3070_v21 = vmul.f32 %v3065_v5, %v10423_v2  ;;  %v3103_v31 = vmul.f32 %v3102_v15, %v6732_v19  ;;  %v10479_v5 = vld [vmem:[#allocation70_spill] sm:$0xff]  ;;  %s8060_s12 = sld [smem:[#allocation2 + $0x3d]] }
 0x398   : > { %v7590_v49 = vmul.f32 %v3102_v15, %v6750_v27  ;;  %v880_v24 = vadd.f32 %v10477_v8, %v7483_v32  ;;  %v815_v12 = vadd.f32 %v7299_v63, %v701_v52  ;;  %v10478_v35 = vrot.slane %v7468_v28, 1  ;;  %v10482_v32 = vld [vmem:[#allocation81_spill] sm:$0xff]  ;;  %v10483_v52 = vld [vmem:[#allocation83_spill] sm:$0xff] }
 0x399   : > { %3087 = vrot.lane.b32.xlu2 %v3080_v40, %s5316_s17  ;;  %v1476_v44 = vadd.f32 %v10479_v5, %v7476_v61  ;;  %v917_v50 = vadd.f32 %v10480_v9, %v7480_v58  ;;  %v7605_v33 = vadd.f32 %v10481_v16, %v1403_v4  ;;  %v1586_v63 = vmul.f32 %v7582_v0, %v10475_v13 }
 0x39a   : > { %3085 = vrot.lane.b32.xlu1 %v3078_v42, %s5316_s17  ;;  %v3047_v20 = vsel %vm740_vm1, %v10478_v35, %v3046_v37  ;;  %v955_v28 = vadd.f32 %v10482_v32, %v815_v12  ;;  %v918_v37 = vadd.f32 %v10483_v52, %v786_v11  ;;  %v844_v42 = vadd.f32 %v7351_v46, %v727_v41  ;;  %v10487_v35 = vld [vmem:[#allocation79_spill] sm:$0xff]  ;;  %v10490_v32 = vld [vmem:[#allocation84_spill] sm:$0xff] }
 0x39b   : > { %3054 = vrot.lane.b32.xlu0 %v3047_v20, %s5316_s17  ;;  %v1567_v61 = vmul.f32 %v7579_v34, %v10476_v18  ;;  %v7617_v58 = vpop.permute.xlu1 %2614  ;;  %v3081_v9 = vrot.slane %v3069_v6, 1  ;;  %v3083_v40 = vrot.slane %v3070_v21, 1  ;;  %v3113_v8 = vrot.slane %v3103_v31, 1  ;;  %v10488_v20 = vld [vmem:[#allocation69_spill] sm:$0xff]  ;;  %v10491_v6 = vld [vmem:[#allocation87_spill] sm:$0xff] }
 0x39c   : > { %10484 = vst [vmem:[#allocation12_spill] sm:$0xff] %v7617_v58  ;;  %v7619_v16 = vpop.permute.xlu2 %2728  ;;  %v7621_v4 = vpop.permute.xlu0 %2612  ;;  %v3114_v12 = vrot.slane %v7590_v49, 1  ;;  %v1028_v11 = vadd.f32 %v10487_v35, %v880_v24  ;;  %v881_v46 = vadd.f32 %v10488_v20, %v757_v10  ;;  %v7627_v41 = vadd.f32 %v1556_v54, %v7512_v25  ;;  %v10492_v24 = vld [vmem:[#allocation82_spill] sm:$0xff]  ;;  %v10493_v35 = vld [vmem:[#allocation76_spill] sm:$0xff] }
 0x39d   : > { %10485 = vst [vmem:[#allocation37_spill] sm:$0xff] %v7619_v16  ;;  %v7630_v5 = vadd.f32 %v1577_v53, %v7515_v23  ;;  %v991_v52 = vadd.f32 %v10490_v32, %v7506_v48  ;;  %v1066_v21 = vadd.f32 %v10491_v6, %v918_v37  ;;  %v1576_v31 = vmul.f32 %v7550_v57, %v10475_v13  ;;  %v10494_v53 = vld [vmem:[#allocation86_spill] sm:$0xff]  ;;  %v10522_v16 = vld [vmem:[#allocation104_spill] sm:$0xff] }
 0x39e   : > { %10486 = vst [vmem:[#allocation42_spill] sm:$0xff] %v7621_v4  ;;  %v7639_v49 = vadd.f32 %v1586_v63, %v1550_v62  ;;  %v1103_v10 = vadd.f32 %v10492_v24, %v955_v28  ;;  %v992_v25 = vadd.f32 %v10493_v35, %v844_v42  ;;  %v7643_v54 = vadd.f32 %v1567_v61, %v1477_v7  ;;  %v10495_v62 = vld [vmem:[#allocation89_spill] sm:$0xff]  ;;  %v10502_v35 = vld [vmem:[#allocation95_spill] sm:$0xff] }
 0x39f   : > { %10489 = vst [vmem:[#allocation187_spill] sm:$0xff] %v7630_v5  ;;  %v3106_v23 = vmul.f32 %v3102_v15, %v6785_v45  ;;  %v954_v20 = vadd.f32 %v10494_v53, %v7458_v17  ;;  %v3084_v48 = vsel %vm740_vm1, %v3081_v9, %v3083_v40  ;;  %v3115_v37 = vsel %vm740_vm1, %v3113_v8, %v3114_v12  ;;  %v10496_v42 = vld [vmem:[#allocation85_spill] sm:$0xff] }
 0x3a0   : > { %v3107_v32 = vmul.f32 %v3102_v15, %v10423_v2  ;;  %v1029_v63 = vadd.f32 %v10495_v62, %v881_v46  ;;  %v3082_v28 = vsel %vm740_vm1, %v3079_v55, %v3081_v9  ;;  %v3105_v7 = vmul.f32 %v3102_v15, %v6768_v29  ;;  %v10497_v46 = vld [vmem:[#allocation90_spill] sm:$0xff]  ;;  %v10498_v9 = vld [vmem:[#allocation92_spill] sm:$0xff] }
 0x3a1   : > { %3122 = vrot.lane.b32.xlu2 %v3115_v37, %s5316_s17  ;;  %v1139_v61 = vadd.f32 %v10496_v42, %v991_v52  ;;  %v1199_v17 = vadd.f32 %v7319_v51, %v1066_v21  ;;  %v1169_v40 = vadd.f32 %v7341_v39, %v1028_v11  ;;  %v7660_v8 = vadd.f32 %v1576_v31, %v7561_v43 }
 0x3a2   : > { %3091 = vrot.lane.b32.xlu1 %v3084_v48, %s5316_s17  ;;  %v1102_v55 = vadd.f32 %v10497_v46, %v954_v20  ;;  %v1065_v6 = vadd.f32 %v10498_v9, %v917_v50  ;;  %v7668_v24 = vstv %s7615_s13  ;;  %v3118_v51 = vrot.slane %v3106_v23, 1  ;;  %v10503_v23 = vld [vmem:[#allocation88_spill] sm:$0xff]  ;;  %s8205_s13 = sld [smem:[#allocation2 + $0x61]] }
 0x3a3   : > { %3089 = vrot.lane.b32.xlu0 %v3082_v28, %s5316_s17  ;;  %v7670_v15 = vpop.permute.xlu1 %2678  ;;  %v1228_v39 = vadd.f32 %v7386_v47, %v1103_v10  ;;  %v1566_v43 = vmul.f32 %v7579_v34, %v10475_v13  ;;  %v1557_v11 = vmul.f32 %v7553_v3, %v10476_v18  ;;  %v3120_v31 = vrot.slane %v3107_v32, 1  ;;  %v10504_v28 = vld [vmem:[#allocation93_spill] sm:$0xff] }
 0x3a4   : > { %10499 = vst [vmem:[#allocation191_spill] sm:$0xff] %v7670_v15  ;;  %v7672_v52 = vpop.permute.xlu2 %2734  ;;  %v7679_v21 = vpop.permute.xlu0 %2676  ;;  %v1170_v50 = vadd.f32 %v7336_v59, %v1029_v63  ;;  %v1140_v53 = vadd.f32 %v10502_v35, %v992_v25  ;;  %v3116_v20 = vrot.slane %v3105_v7, 1  ;;  %v3139_v48 = vstv %s7632_s14  ;;  %s8276_s14 = sld [smem:[#allocation2 + $0x85]] }
 0x3a5   : > { %10500 = vst [vmem:[#allocation47_spill] sm:$0xff] %v7672_v52  ;;  %v7687_v37 = vadd.f32 %v10503_v23, %v1199_v17  ;;  %v7689_v47 = vadd.f32 %v1566_v43, %v1476_v44  ;;  %v1804_v10 = vmul.f32 %v7668_v24, %v10475_v13  ;;  %v7695_v62 = vmul.f32 %v7668_v24, %v10476_v18 }
 0x3a6   : > { %10501 = vst [vmem:[#allocation179_spill] sm:$0xff] %v7679_v21  ;;  %v1227_v32 = vadd.f32 %v7324_v14, %v1102_v55  ;;  %v1294_v59 = vadd.f32 %v10504_v28, %v1170_v50  ;;  %v1198_v25 = vadd.f32 %v7329_v60, %v1065_v6  ;;  %v3119_v63 = vsel %vm740_vm1, %v3116_v20, %v3118_v51  ;;  %v10505_v55 = vld [vmem:[#allocation96_spill] sm:$0xff]  ;;  %v10523_v21 = vld [vmem:[#allocation103_spill] sm:$0xff] }
 0x3a7   : > { %v3121_v44 = vsel %vm740_vm1, %v3118_v51, %v3120_v31  ;;  %v3141_v7 = vmul.f32 %v3139_v48, %v6750_v27  ;;  %v3142_v42 = vmul.f32 %v3139_v48, %v6768_v29  ;;  %v7707_v17 = vmul.f32 %v3139_v48, %v6785_v45 }
 0x3a8   : > { %v1257_v14 = vadd.f32 %v7383_v56, %v1140_v53  ;;  %v3117_v46 = vsel %vm740_vm1, %v3114_v12, %v3116_v20  ;;  %v3140_v60 = vmul.f32 %v3139_v48, %v6732_v19  ;;  %v1330_v9 = vadd.f32 %v10505_v55, %v1198_v25  ;;  %v10506_v56 = vld [vmem:[#allocation91_spill] sm:$0xff]  ;;  %v10513_v55 = vld [vmem:[#allocation94_spill] sm:$0xff] }
 0x3a9   : > { %3128 = vrot.lane.b32.xlu2 %v3121_v44, %s5316_s17  ;;  %v1814_v6 = vrot.slane %v1804_v10, 1  ;;  %v10072_v51 = vrot.slane %v7695_v62, 1  ;;  %v7717_v43 = vstv %s7662_s15  ;;  %v7723_v31 = vadd.f32 %v10506_v56, %v1227_v32  ;;  %v10507_v12 = vld [vmem:[#allocation99_spill] sm:$0xff]  ;;  %s8345_s15 = sld [smem:[#allocation2 + $0x1a]] }
 0x3aa   : > { %3126 = vrot.lane.b32.xlu1 %v3119_v63, %s5316_s17  ;;  %v1405_v50 = vadd.f32 %v10507_v12, %v1257_v14  ;;  %v1256_v35 = vadd.f32 %v7359_v26, %v1139_v61  ;;  %v1587_v53 = vmul.f32 %v7582_v0, %v10476_v18  ;;  %v3151_v28 = vrot.slane %v3141_v7, 1  ;;  %v10512_v61 = vld [vmem:[#allocation65_spill] sm:$0xff] }
 0x3ab   : > { %3124 = vrot.lane.b32.xlu0 %v3117_v46, %s5316_s17  ;;  %v7729_v20 = vpop.permute.xlu1 %2702  ;;  %v3153_v25 = vrot.slane %v3142_v42, 1  ;;  %v3155_v63 = vrot.slane %v7707_v17, 1  ;;  %v3176_v32 = vstv %s7681_s23  ;;  %v7740_v44 = vadd.f32 %v1557_v11, %v7564_v38  ;;  %v10514_v7 = vld [vmem:[#allocation97_spill] sm:$0xff]  ;;  %v10515_v17 = vld [vmem:[#allocation98_spill] sm:$0xff]  ;;  %s8443_s23 = sld [smem:[#allocation2 + $0x3e]] }
 0x3ac   : > { %10508 = vst [vmem:[#allocation40_spill] sm:$0xff] %v7729_v20  ;;  %v7731_v23 = vpop.permute.xlu2 %2758  ;;  %v7733_v10 = vpop.permute.xlu0 %2682  ;;  %v7743_v26 = vadd.f32 %v1587_v53, %v7605_v33  ;;  %v7747_v14 = vmul.f32 %v7717_v43, %v10512_v61  ;;  %v3150_v46 = vrot.slane %v3140_v60, 1  ;;  %v7750_v56 = vadd.f32 %v10513_v55, %v1294_v59  ;;  %v10516_v33 = vld [vmem:[#allocation101_spill] sm:$0xff]  ;;  %v10517_v55 = vld [vmem:[#allocation100_spill] sm:$0xff] }
 0x3ad   : > { %10509 = vst [vmem:[#allocation188_spill] sm:$0xff] %v7731_v23  ;;  %v7753_v42 = vadd.f32 %v10514_v7, %v1330_v9  ;;  %v1293_v12 = vadd.f32 %v10515_v17, %v1169_v40  ;;  %v7759_v38 = vsel %vm740_vm1, %v1814_v6, %v10072_v51  ;;  %v1368_v11 = vadd.f32 %v10516_v33, %v1228_v39  ;;  %v10518_v6 = vld [vmem:[#allocation102_spill] sm:$0xff] }
 0x3ae   : > { %10510 = vst [vmem:[#allocation14_spill] sm:$0xff] %v7733_v10  ;;  %v7763_v53 = vstv %s7700_s26  ;;  %v3177_v60 = vmul.f32 %v3176_v32, %v6732_v19  ;;  %v3178_v59 = vmul.f32 %v3176_v32, %v6750_v27  ;;  %v7768_v52 = vadd.f32 %v10517_v55, %v1405_v50  ;;  %s8495_s26 = sld [smem:[#allocation2 + $0x62]] }
 0x3af   : > { %10511 = vst [vmem:[#allocation39_spill] sm:$0xff] %v7743_v26  ;;  %v3154_v9 = vsel %vm740_vm1, %v3151_v28, %v3153_v25  ;;  %v3156_v40 = vsel %vm740_vm1, %v3153_v25, %v3155_v63  ;;  %v7773_v7 = vmul.f32 %v3176_v32, %v6768_v29  ;;  %v1441_v17 = vadd.f32 %v10518_v6, %v1293_v12 }
 0x3b0   : > { %v3152_v33 = vsel %vm740_vm1, %v3150_v46, %v3151_v28  ;;  %v3144_v50 = vmul.f32 %v3139_v48, %v10423_v2  ;;  %v1558_v55 = vmul.f32 %v7553_v3, %v10512_v61  ;;  %v7785_v25 = vmul.f32 %v7763_v53, %v10476_v18  ;;  %v10519_v48 = vld [vmem:[#allocation67_spill] sm:$0xff] }
 0x3b1   : > { %3163 = vrot.lane.b32.xlu2 %v3156_v40, %s5315_s16  ;;  %v7789_v12 = vmul.f32 %v7763_v53, %v10512_v61  ;;  %v7792_v6 = vstv %s7719_s25  ;;  %v7797_v28 = vmul.f32 %v7582_v0, %v10512_v61  ;;  %v7801_v46 = vmul.f32 %v7668_v24, %v10519_v48  ;;  %s8522_s25 = sld [smem:[#allocation2 + $0x12]] }
 0x3b2   : > { %3161 = vrot.lane.b32.xlu1 %v3154_v9, %s5315_s16  ;;  %v3187_v51 = vrot.slane %v3177_v60, 1  ;;  %v3188_v39 = vrot.slane %v3178_v59, 1  ;;  %v1404_v10 = vadd.f32 %v10522_v16, %v1256_v35  ;;  %v7810_v20 = vadd.f32 %v10523_v21, %v7660_v8 }
 0x3b3   : > { %3159 = vrot.lane.b32.xlu0 %v3152_v33, %s5315_s16  ;;  %v7805_v40 = vpop.permute.xlu1 %2708  ;;  %v3190_v4 = vrot.slane %v7773_v7, 1  ;;  %v3213_v15 = vstv %s7737_s30  ;;  %v7816_v23 = vadd.f32 %v1558_v55, %v1441_v17  ;;  %v3157_v59 = vrot.slane %v3144_v50, 1  ;;  %v10527_v17 = vld [vmem:[#allocation105_spill] sm:$0xff]  ;;  %s8533_s30 = sld [smem:[#allocation2 + $0x36]] }
 0x3b4   : > { %v7803_v9 = vpop.permute.xlu2 %2782  ;;  %10521 = vst [vmem:[#allocation45_spill] sm:$0xff] %v7805_v40  ;;  %v7812_v33 = vpop.permute.xlu0 %2706  ;;  %v10525_v40 = vld [vmem:[#allocation71_spill] sm:$0xff]  ;;  %v7826_v16 = vmul.f32 %v7550_v57, %v10512_v61  ;;  %v7830_v8 = vmul.f32 %v7579_v34, %v10512_v61  ;;  %v7834_v21 = vmul.f32 %v7579_v34, %v10519_v48  ;;  %v7838_v35 = vmul.f32 %v7717_v43, %v10519_v48 }
 0x3b5   : > { %10520 = vst [vmem:[#allocation182_spill] sm:$0xff] %v7803_v9  ;;  %v7820_v9 = vmul.f32 %v7550_v57, %v10519_v48  ;;  %v1808_v60 = vmul.f32 %v7668_v24, %v10525_v40  ;;  %v7842_v7 = vmul.f32 %v7553_v3, %v10519_v48  ;;  %v3189_v57 = vsel %vm740_vm1, %v3187_v51, %v3188_v39  ;;  %v10532_v3 = vld [vmem:[#allocation107_spill] sm:$0xff] }
 0x3b6   : > { %10524 = vst [vmem:[#allocation190_spill] sm:$0xff] %v7812_v33  ;;  %v3214_v50 = vmul.f32 %v3213_v15, %v6732_v19  ;;  %v3191_v55 = vsel %vm740_vm1, %v3188_v39, %v3190_v4  ;;  %v3180_v33 = vmul.f32 %v3176_v32, %v6785_v45  ;;  %v3181_v34 = vmul.f32 %v3176_v32, %v10423_v2 }
 0x3b7   : > { %10526 = vst [vmem:[#allocation16_spill] sm:$0xff] %v7834_v21  ;;  %v7851_v58 = vmul.f32 %v3213_v15, %v6750_v27  ;;  %v1821_v1 = vrot.slane %v1808_v60, 1  ;;  %v3158_v51 = vsel %vm740_vm1, %v3155_v63, %v3157_v59  ;;  %v1516_v39 = vadd.f32 %v10527_v17, %v1368_v11 }
 0x3b8   : > { %v7861_v36 = vmul.f32 %v7582_v0, %v10519_v48  ;;  %v1806_v60 = vmul.f32 %v7668_v24, %v10512_v61  ;;  %v7871_v63 = vmul.f32 %v7792_v6, %v10476_v18  ;;  %v1834_v11 = vmul.f32 %v7717_v43, %v10476_v18 }
 0x3b9   : > { %3198 = vrot.lane.b32.xlu2 %v3191_v55, %s5315_s16  ;;  %v1833_v0 = vmul.f32 %v7717_v43, %v10475_v13  ;;  %v3192_v55 = vrot.slane %v3180_v33, 1  ;;  %v3224_v32 = vrot.slane %v3214_v50, 1  ;;  %v3225_v30 = vrot.slane %v7851_v58, 1  ;;  %v10539_v50 = vld [vmem:[#allocation108_spill] sm:$0xff] }
 0x3ba   : > { %3196 = vrot.lane.b32.xlu1 %v3189_v57, %s5315_s16  ;;  %10528 = vst [vmem:[#allocation50_spill] sm:$0xff] %v7861_v36  ;;  %v1891_v57 = vmul.f32 %v7792_v6, %v10475_v13  ;;  %v7888_v22 = vadd.f32 %v10532_v3, %v7687_v37  ;;  %v10534_v21 = vrot.slane %v7801_v46, 1  ;;  %v1862_v58 = vmul.f32 %v7763_v53, %v10475_v13  ;;  %v10540_v37 = vld [vmem:[#allocation109_spill] sm:$0xff] }
 0x3bb   : > { %3165 = vrot.lane.b32.xlu0 %v3158_v51, %s5315_s16  ;;  %v7879_v17 = vpop.permute.xlu1 %2732  ;;  %v3194_v51 = vrot.slane %v3181_v34, 1  ;;  %v1552_v34 = vadd.f32 %v10539_v50, %v1404_v10  ;;  %v7907_v3 = vadd.f32 %v10540_v37, %v7643_v54  ;;  %v3226_v10 = vsel %vm740_vm1, %v3224_v32, %v3225_v30  ;;  %v10544_v37 = vld [vmem:[#allocation111_spill] sm:$0xff] }
 0x3bc   : > { %v7877_v59 = vpop.permute.xlu2 %2806  ;;  %10530 = vst [vmem:[#allocation153_spill] sm:$0xff] %v7879_v17  ;;  %v7881_v24 = vpop.permute.xlu0 %2730  ;;  %v7893_v5 = vsel %vm740_vm1, %v10534_v21, %v1821_v1  ;;  %v10536_v17 = vrot.slane %v7789_v12, 1  ;;  %v10543_v1 = vrot.slane %v7747_v14, 1  ;;  %v3217_v54 = vmul.f32 %v3213_v15, %v6785_v45 }
 0x3bd   : > { %10529 = vst [vmem:[#allocation189_spill] sm:$0xff] %v7877_v59  ;;  %v10542_v59 = vrot.slane %v7838_v35, 1  ;;  %v3195_v26 = vsel %vm740_vm1, %v3192_v55, %v3194_v51  ;;  %v3218_v50 = vmul.f32 %v3213_v15, %v10423_v2  ;;  %v1872_v36 = vrot.slane %v1862_v58, 1 }
 0x3be   : > { %10531 = vst [vmem:[#allocation13_spill] sm:$0xff] %v7881_v24  ;;  %v10537_v24 = vrot.slane %v7785_v25, 1  ;;  %v7930_v32 = vadd.f32 %v7797_v28, %v1552_v34  ;;  %v10548_v28 = vmov %v10543_v1  ;;  %v7969_v14 = vstv %s7884_s6  ;;  %s8540_s6 = sld [smem:[#allocation2 + $0x5a]] }
 0x3bf   : > { %10533 = vst [vmem:[#allocation53_spill] sm:$0xff] %v7888_v22  ;;  %v7914_v21 = vsel %vm740_vm1, %v10543_v1, %v10542_v59  ;;  %v1901_v22 = vrot.slane %v1891_v57, 1  ;;  %v3216_v57 = vmul.f32 %v3213_v15, %v6768_v29  ;;  %v10546_v59 = vrot.slane %v7695_v62, 1 }
 0x3c0   : > { %10535 = vst [vmem:[#allocation46_spill] sm:$0xff] %v7893_v5  ;;  %v7900_v33 = vsel %vm740_vm1, %v10537_v24, %v10536_v17  ;;  %v1817_v5 = vrot.slane %v1806_v60, 1  ;;  %v1902_v17 = vrot.slane %v7871_v63, 1  ;;  %v1844_v24 = vrot.slane %v1834_v11, 1  ;;  %v10545_v11 = vld [vmem:[#allocation110_spill] sm:$0xff]  ;;  %v10567_v63 = vld [vmem:[#allocation112_spill] sm:$0xff] }
 0x3c1   : > { %10538 = vst [vmem:[#allocation56_spill] sm:$0xff] %v7900_v33  ;;  %v1843_v33 = vrot.slane %v1833_v0, 1  ;;  %v3193_v60 = vsel %vm740_vm1, %v3190_v4, %v3192_v55  ;;  %3233 = vrot.lane.b32.xlu2 %v3226_v10, %s5315_s16  ;;  %v1515_v0 = vadd.f32 %v10545_v11, %v7723_v31  ;;  %v10547_v4 = vld [vmem:[#allocation113_spill] sm:$0xff]  ;;  %v3231_v1 = vrot.slane %v3218_v50, 1  ;;  %v10552_v10 = vld [vmem:[#allocation106_spill] sm:$0xff] }
 0x3c2   : > { %10541 = vst [vmem:[#allocation54_spill] sm:$0xff] %v7907_v3  ;;  %v1642_v3 = vadd.f32 %v10544_v37, %v7689_v47  ;;  %3202 = vrot.lane.b32.xlu1 %v3195_v26, %s5315_s16  ;;  %v7935_v47 = vsel %vm740_vm1, %v10546_v59, %v1817_v5  ;;  %v7939_v26 = vmul.f32 %v7792_v6, %v10519_v48  ;;  %v10553_v37 = vrot.slane %v7785_v25, 1 }
 0x3c3   : > { %3200 = vrot.lane.b32.xlu0 %v3193_v60, %s5315_s16  ;;  %v1616_v15 = vadd.f32 %v10547_v4, %v7627_v41  ;;  %v7947_v31 = vsel %vm740_vm1, %v1901_v22, %v1902_v17  ;;  %v7952_v62 = vsel %vm740_vm1, %v1844_v24, %v10548_v28  ;;  %v7955_v55 = vsel %vm740_vm1, %v1843_v33, %v1844_v24  ;;  %v7961_v58 = vpop.permute.xlu1 %2756  ;;  %v10555_v28 = vld [vmem:[#allocation114_spill] sm:$0xff] }
 0x3c4   : > { %v7959_v51 = vpop.permute.xlu2 %2812  ;;  %10550 = vst [vmem:[#allocation20_spill] sm:$0xff] %v7961_v58  ;;  %v7964_v41 = vadd.f32 %v7820_v9, %v1516_v39  ;;  %v7966_v34 = vpop.permute.xlu0 %2754  ;;  %v3229_v22 = vrot.slane %v3217_v54, 1  ;;  %v7974_v33 = vadd.f32 %v10552_v10, %v1642_v3  ;;  %v1895_v24 = vmul.f32 %v7792_v6, %v10525_v40 }
 0x3c5   : > { %10549 = vst [vmem:[#allocation15_spill] sm:$0xff] %v7959_v51  ;;  %v7981_v60 = vsel %vm740_vm1, %v1872_v36, %v10553_v37  ;;  %v3227_v9 = vrot.slane %v3216_v57, 1  ;;  %v10554_v39 = vrot.slane %v7801_v46, 1  ;;  %v10073_v50 = vrot.slane %v7939_v26, 1 }
 0x3c6   : > { %10551 = vst [vmem:[#allocation23_spill] sm:$0xff] %v7966_v34  ;;  %v1837_v3 = vmul.f32 %v7717_v43, %v10525_v40  ;;  %v7993_v11 = vmul.f32 %v7792_v6, %v10512_v61  ;;  %v7996_v25 = vadd.f32 %v7826_v16, %v1515_v0  ;;  %v1865_v36 = vmul.f32 %v7763_v53, %v10519_v48 }
 0x3c7   : > { %v7986_v54 = vsel %vm740_vm1, %v1817_v5, %v10554_v39  ;;  %v1866_v46 = vmul.f32 %v7763_v53, %v10525_v40  ;;  %v3252_v5 = vmul.f32 %v7969_v14, %v6750_v27  ;;  %v3230_v57 = vsel %vm740_vm1, %v3227_v9, %v3229_v22 }
 0x3c8   : > { %v3232_v43 = vsel %vm740_vm1, %v3229_v22, %v3231_v1  ;;  %v3253_v6 = vmul.f32 %v7969_v14, %v6768_v29  ;;  %v8010_v16 = vmul.f32 %v7969_v14, %v6785_v45  ;;  %v8014_v0 = vadd.f32 %v7842_v7, %v7750_v56  ;;  %v10556_v1 = vld [vmem:[#allocation115_spill] sm:$0xff] }
 0x3c9   : > { %v1908_v53 = vrot.slane %v1895_v24, 1  ;;  %v3228_v59 = vsel %vm740_vm1, %v3225_v30, %v3227_v9  ;;  %3239 = vrot.lane.b32.xlu2 %v3232_v43, %s5315_s16  ;;  %v3251_v4 = vmul.f32 %v7969_v14, %v6732_v19  ;;  %v1720_v22 = vadd.f32 %v10555_v28, %v1616_v15  ;;  %v10557_v30 = vld [vmem:[#allocation117_spill] sm:$0xff] }
 0x3ca   : > { %3237 = vrot.lane.b32.xlu1 %v3230_v57, %s5315_s16  ;;  %v8024_v10 = vadd.f32 %v10556_v1, %v7816_v23  ;;  %v1850_v37 = vrot.slane %v1837_v3, 1  ;;  %v1904_v56 = vrot.slane %v7993_v11, 1  ;;  %v1617_v7 = vadd.f32 %v10557_v30, %v7740_v44  ;;  %v10561_v44 = vld [vmem:[#allocation116_spill] sm:$0xff] }
 0x3cb   : > { %3235 = vrot.lane.b32.xlu0 %v3228_v59, %s5315_s16  ;;  %v1877_v24 = vrot.slane %v1865_v36, 1  ;;  %v1879_v9 = vrot.slane %v1866_v46, 1  ;;  %v8033_v39 = vstv %s7957_s7  ;;  %v8039_v23 = vpop.permute.xlu1 %2780  ;;  %v3262_v11 = vrot.slane %v3252_v5, 1  ;;  %v10563_v5 = vld [vmem:[#allocation118_spill] sm:$0xff]  ;;  %s8557_s7 = sld [smem:[#allocation2 + $0x86]] }
 0x3cc   : > { %v8037_v15 = vpop.permute.xlu2 %2836  ;;  %10559 = vst [vmem:[#allocation48_spill] sm:$0xff] %v8039_v23  ;;  %v8043_v3 = vpop.permute.xlu0 %2760  ;;  %v3264_v57 = vrot.slane %v3253_v6, 1  ;;  %v3266_v43 = vrot.slane %v8010_v16, 1  ;;  %v3403_v59 = vstv %s7971_s8  ;;  %v8049_v36 = vadd.f32 %v10561_v44, %v7639_v49  ;;  %s8595_s8 = sld [smem:[#allocation2 + $0x7e]] }
 0x3cd   : > { %10558 = vst [vmem:[#allocation26_spill] sm:$0xff] %v8037_v15  ;;  %v8053_v46 = vadd.f32 %v7830_v8, %v7753_v42  ;;  %v8058_v28 = vsel %vm740_vm1, %v10073_v50, %v1908_v53  ;;  %v3261_v1 = vrot.slane %v3251_v4, 1  ;;  %v8064_v6 = vadd.f32 %v10563_v5, %v7930_v32  ;;  %v10566_v53 = vld [vmem:[#allocation119_spill] sm:$0xff] }
 0x3ce   : > { %10560 = vst [vmem:[#allocation51_spill] sm:$0xff] %v8043_v3  ;;  %v10564_v16 = vrot.slane %v7838_v35, 1  ;;  %v8074_v42 = vsel %vm740_vm1, %v1902_v17, %v1904_v56  ;;  %v2217_v8 = vmul.f32 %v8033_v39, %v10476_v18  ;;  %v8080_v4 = vadd.f32 %v10566_v53, %v7810_v20 }
 0x3cf   : > { %10562 = vst [vmem:[#allocation55_spill] sm:$0xff] %v8058_v28  ;;  %v3404_v32 = vmul.f32 %v3403_v59, %v6732_v19  ;;  %v3405_v35 = vmul.f32 %v3403_v59, %v6750_v27  ;;  %v8088_v30 = vadd.f32 %v10567_v63, %v1617_v7  ;;  %v8091_v17 = vsel %vm740_vm1, %v1877_v24, %v1879_v9 }
 0x3d0   : > { %v8069_v49 = vsel %vm740_vm1, %v10564_v16, %v1850_v37  ;;  %10565 = vst [vmem:[#allocation17_spill] sm:$0xff] %v8074_v42  ;;  %v8085_v37 = vmul.f32 %v3403_v59, %v6768_v29  ;;  %v3265_v44 = vsel %vm740_vm1, %v3262_v11, %v3264_v57  ;;  %v3267_v5 = vsel %vm740_vm1, %v3264_v57, %v3266_v43 }
 0x3d1   : > { %v10568_v20 = vrot.slane %v7789_v12, 1  ;;  %v3263_v53 = vsel %vm740_vm1, %v3261_v1, %v3262_v11  ;;  %3274 = vrot.lane.b32.xlu2 %v3267_v5, %s5315_s16  ;;  %v3255_v7 = vmul.f32 %v7969_v14, %v10423_v2  ;;  %v8107_v9 = vmul.f32 %v8033_v39, %v10512_v61  ;;  %v10576_v5 = vld [vmem:[#allocation39_spill] sm:$0xff] }
 0x3d2   : > { %3272 = vrot.lane.b32.xlu1 %v3265_v44, %s5315_s16  ;;  %v2227_v57 = vrot.slane %v2217_v8, 2  ;;  %v2244_v63 = vstv %s8027_s9  ;;  %v2216_v12 = vmul.f32 %v8033_v39, %v10475_v13  ;;  %v3414_v44 = vrot.slane %v3404_v32, 2  ;;  %v10572_v8 = vld [vmem:[#allocation50_spill] sm:$0xff]  ;;  %s8606_s9 = sld [smem:[#allocation2 + $0x15]] }
 0x3d3   : > { %v8098_v16 = vsel %vm740_vm1, %v10568_v20, %v1877_v24  ;;  %3270 = vrot.lane.b32.xlu0 %v3263_v53, %s5315_s16  ;;  %v8114_v24 = vstv %s8035_s10  ;;  %v8118_v1 = vpop.permute.xlu1 %2786  ;;  %v3415_v14 = vrot.slane %v3405_v35, 2  ;;  %v8122_v20 = vadd.f32 %v7759_v38, %v1720_v22  ;;  %s8627_s10 = sld [smem:[#allocation2 + $0x81]] }
 0x3d4   : > { %10569 = vst [vmem:[#allocation60_spill] sm:$0xff] %v8098_v16  ;;  %v8116_v11 = vpop.permute.xlu2 %2860  ;;  %v8126_v50 = vadd.f32 %v10572_v8, %v7768_v52  ;;  %v10573_v34 = vrot.slane %v7939_v26, 1  ;;  %v8134_v3 = vstv %s8041_s11  ;;  %v8136_v15 = vpop.permute.xlu0 %2784  ;;  %v2245_v32 = vmul.f32 %v2244_v63, %v10475_v13  ;;  %v10582_v16 = vld [vmem:[#allocation16_spill] sm:$0xff]  ;;  %s8668_s11 = sld [smem:[#allocation2 + $0x39]] }
 0x3d5   : > { %10570 = vst [vmem:[#allocation57_spill] sm:$0xff] %v8116_v11  ;;  %v8140_v35 = vmul.f32 %v2244_v63, %v10476_v18  ;;  %v3268_v38 = vrot.slane %v3255_v7, 1  ;;  %v3440_v22 = vstv %s8060_s12  ;;  %v2226_v8 = vrot.slane %v2216_v12, 2  ;;  %s8688_s12 = sld [smem:[#allocation2 + $0x18]] }
 0x3d6   : > { %10571 = vst [vmem:[#allocation18_spill] sm:$0xff] %v8118_v1  ;;  %v8131_v53 = vsel %vm740_vm1, %v1904_v56, %v10573_v34  ;;  %v10577_v1 = vld [vmem:[#allocation120_spill] sm:$0xff]  ;;  %v8150_v34 = vmul.f32 %v8114_v24, %v10512_v61  ;;  %v8154_v56 = vmul.f32 %v8134_v3, %v10476_v18  ;;  %v3416_v7 = vsel %vm1153_vm2, %v3414_v44, %v3415_v14 }
 0x3d7   : > { %10574 = vst [vmem:[#allocation19_spill] sm:$0xff] %v8131_v53  ;;  %v8145_v52 = vadd.f32 %v10577_v1, %v10576_v5  ;;  %v10578_v1 = vrot.slane %v8085_v37, 2  ;;  %v3407_v12 = vmul.f32 %v3403_v59, %v6785_v45  ;;  %v3408_v26 = vmul.f32 %v3403_v59, %v10423_v2  ;;  %v10581_v53 = vld [vmem:[#allocation53_spill] sm:$0xff] }
 0x3d8   : > { %10575 = vst [vmem:[#allocation21_spill] sm:$0xff] %v8136_v15  ;;  %v8158_v15 = vmul.f32 %v8134_v3, %v10512_v61  ;;  %v3441_v23 = vmul.f32 %v3440_v22, %v6732_v19  ;;  %v8168_v11 = vmul.f32 %v3440_v22, %v6750_v27  ;;  %v2255_v58 = vrot.slane %v2245_v32, 2 }
 0x3d9   : > { %v3418_v5 = vsel %vm1153_vm2, %v3415_v14, %v10578_v1  ;;  %v2256_v51 = vrot.slane %v8140_v35, 2  ;;  %v8172_v42 = vmul.f32 %v2244_v63, %v10512_v61  ;;  %v3269_v44 = vsel %vm740_vm1, %v3266_v43, %v3268_v38  ;;  %v10579_v14 = vld [vmem:[#allocation187_spill] sm:$0xff]  ;;  %v10580_v1 = vld [vmem:[#allocation122_spill] sm:$0xff] }
 0x3da   : > { %3423 = vrot.lane.b32.xlu1 %v3416_v7, %s5316_s17  ;;  %3425 = vrot.lane.b32.xlu2 %v3418_v5, %s5316_s17  ;;  %v1669_v59 = vadd.f32 %v10580_v1, %v10579_v14  ;;  %v8181_v28 = vadd.f32 %v10582_v16, %v10581_v53  ;;  %v10583_v32 = vrot.slane %v8107_v9, 2  ;;  %v2275_v61 = vmul.f32 %v8114_v24, %v10476_v18 }
 0x3db   : > { %3276 = vrot.lane.b32.xlu0 %v3269_v44, %s5315_s16  ;;  %v8192_v43 = vsel %vm1153_vm2, %v2226_v8, %v2227_v57  ;;  %v2314_v38 = vrot.slane %v8154_v56, 2  ;;  %v2274_v16 = vmul.f32 %v8114_v24, %v10475_v13  ;;  %v8200_v5 = vpop.permute.xlu1 %2810  ;;  %v3419_v1 = vrot.slane %v3407_v12, 2  ;;  %v10590_v12 = vld [vmem:[#allocation54_spill] sm:$0xff] }
 0x3dc   : > { %v8186_v35 = vsel %vm1153_vm2, %v2227_v57, %v10583_v32  ;;  %10584 = vst [vmem:[#allocation22_spill] sm:$0xff] %v8192_v43  ;;  %v8198_v53 = vpop.permute.xlu2 %3011  ;;  %v8202_v14 = vpop.permute.xlu0 %2808  ;;  %v3421_v18 = vrot.slane %v3408_v26, 2  ;;  %v3451_v32 = vrot.slane %v3441_v23, 2  ;;  %v3452_v44 = vrot.slane %v8168_v11, 2 }
 0x3dd   : > { %10585 = vst [vmem:[#allocation25_spill] sm:$0xff] %v8198_v53  ;;  %v8208_v57 = vsel %vm1153_vm2, %v2255_v58, %v2256_v51  ;;  %v2287_v8 = vrot.slane %v8150_v34, 2  ;;  %v2303_v7 = vmul.f32 %v8134_v3, %v10475_v13  ;;  %v8218_v26 = vmul.f32 %v2244_v63, %v10519_v48  ;;  %v10592_v34 = vld [vmem:[#allocation124_spill] sm:$0xff] }
 0x3de   : > { %10586 = vst [vmem:[#allocation68_spill] sm:$0xff] %v8200_v5  ;;  %v10589_v5 = vld [vmem:[#allocation123_spill] sm:$0xff]  ;;  %v2249_v23 = vmul.f32 %v2244_v63, %v10525_v40  ;;  %v2285_v11 = vrot.slane %v2275_v61, 2  ;;  %v10593_v56 = vrot.slane %v8158_v15, 2  ;;  %v3453_v43 = vsel %vm1153_vm2, %v3451_v32, %v3452_v44 }
 0x3df   : > { %10587 = vst [vmem:[#allocation24_spill] sm:$0xff] %v8202_v14  ;;  %v8215_v53 = vadd.f32 %v10589_v5, %v1669_v59  ;;  %v10591_v14 = vld [vmem:[#allocation125_spill] sm:$0xff]  ;;  %v2284_v59 = vrot.slane %v2274_v16, 2  ;;  %v3422_v5 = vsel %vm1153_vm2, %v3419_v1, %v3421_v18  ;;  %v3444_v63 = vmul.f32 %v3440_v22, %v6785_v45 }
 0x3e0   : > { %10588 = vst [vmem:[#allocation27_spill] sm:$0xff] %v8208_v57  ;;  %v8223_v58 = vadd.f32 %v10591_v14, %v10590_v12  ;;  %v8227_v57 = vadd.f32 %v10592_v34, %v7964_v41  ;;  %v8232_v13 = vsel %vm1153_vm2, %v2314_v38, %v10593_v56  ;;  %v3445_v61 = vmul.f32 %v3440_v22, %v10423_v2 }
 0x3e1   : > { %10594 = vst [vmem:[#allocation29_spill] sm:$0xff] %v8232_v13  ;;  %v8240_v14 = vmul.f32 %v8114_v24, %v10519_v48  ;;  %v2313_v41 = vrot.slane %v2303_v7, 2  ;;  %v10595_v12 = vrot.slane %v8085_v37, 2  ;;  %v3443_v16 = vmul.f32 %v3440_v22, %v6768_v29 }
 0x3e2   : > { %3429 = vrot.lane.b32.xlu1 %v3422_v5, %s5316_s17  ;;  %3460 = vrot.lane.b32.xlu2 %v3453_v43, %s5316_s17  ;;  %v2260_v18 = vrot.slane %v8218_v26, 2  ;;  %v2262_v32 = vrot.slane %v2249_v23, 2  ;;  %v2219_v34 = vmul.f32 %v8033_v39, %v10519_v48  ;;  %v2220_v7 = vmul.f32 %v8033_v39, %v10525_v40 }
 0x3e3   : > { %v3420_v56 = vsel %vm1153_vm2, %v10595_v12, %v3419_v1  ;;  %v10596_v37 = vrot.slane %v8172_v42, 2  ;;  %v8260_v43 = vsel %vm1153_vm2, %v2285_v11, %v2287_v8  ;;  %v2278_v22 = vmul.f32 %v8114_v24, %v10525_v40  ;;  %v8266_v23 = vpop.permute.xlu1 %2834 }
 0x3e4   : > { %3427 = vrot.lane.b32.xlu0 %v3420_v56, %s5316_s17  ;;  %10597 = vst [vmem:[#allocation28_spill] sm:$0xff] %v8260_v43  ;;  %v2306_v26 = vmul.f32 %v8134_v3, %v10519_v48  ;;  %v8268_v5 = vpop.permute.xlu2 %3017  ;;  %v8271_v39 = vsel %vm1153_vm2, %v2284_v59, %v2285_v11  ;;  %v8273_v12 = vpop.permute.xlu0 %2832  ;;  %v3458_v56 = vrot.slane %v3445_v61, 2  ;;  %v2289_v13 = vrot.slane %v8240_v14, 2 }
 0x3e5   : > { %v8257_v1 = vsel %vm1153_vm2, %v2256_v51, %v10596_v37  ;;  %10598 = vst [vmem:[#allocation31_spill] sm:$0xff] %v8266_v23  ;;  %v3456_v51 = vrot.slane %v3444_v63, 2  ;;  %v3477_v37 = vstv %s8205_s13  ;;  %v8280_v24 = vsel %vm1153_vm2, %v2313_v41, %v2314_v38  ;;  %s8736_s13 = sld [smem:[#allocation2 + $0x1c]] }
 0x3e6   : > { %10599 = vst [vmem:[#allocation64_spill] sm:$0xff] %v8268_v5  ;;  %v2307_v48 = vmul.f32 %v8134_v3, %v10525_v40  ;;  %v3454_v23 = vrot.slane %v3443_v16, 2  ;;  %v10602_v5 = vld [vmem:[#allocation126_spill] sm:$0xff]  ;;  %v8287_v59 = vsel %vm1153_vm2, %v2260_v18, %v2262_v32  ;;  %v2231_v63 = vrot.slane %v2219_v34, 2 }
 0x3e7   : > { %10600 = vst [vmem:[#allocation11_spill] sm:$0xff] %v8271_v39  ;;  %v1670_v11 = vadd.f32 %v10602_v5, %v7996_v25  ;;  %v2233_v61 = vrot.slane %v2220_v7, 2  ;;  %v2291_v43 = vrot.slane %v2278_v22, 2  ;;  %v2318_v14 = vrot.slane %v2306_v26, 2  ;;  %v10604_v16 = vld [vmem:[#allocation134_spill] sm:$0xff]  ;;  %v10605_v22 = vld [vmem:[#allocation129_spill] sm:$0xff] }
 0x3e8   : > { %10601 = vst [vmem:[#allocation34_spill] sm:$0xff] %v8273_v12  ;;  %v10603_v12 = vld [vmem:[#allocation128_spill] sm:$0xff]  ;;  %v3479_v38 = vmul.f32 %v3477_v37, %v6750_v27  ;;  %v3457_v41 = vsel %vm1153_vm2, %v3454_v23, %v3456_v51  ;;  %v3459_v40 = vsel %vm1153_vm2, %v3456_v51, %v3458_v56  ;;  %v3480_v3 = vmul.f32 %v3477_v37, %v6768_v29  ;;  %v10608_v56 = vld [vmem:[#allocation131_spill] sm:$0xff] }
 0x3e9   : > { %v1644_v39 = vadd.f32 %v10603_v12, %v8053_v46  ;;  %v8296_v25 = vmul.f32 %v3477_v37, %v6785_v45  ;;  %v1619_v32 = vadd.f32 %v10604_v16, %v8014_v0  ;;  %v2320_v34 = vrot.slane %v2307_v48, 2 }
 0x3ea   : > { %3464 = vrot.lane.b32.xlu1 %v3457_v41, %s5316_s17  ;;  %v3455_v46 = vsel %vm1153_vm2, %v3452_v44, %v3454_v23  ;;  %3466 = vrot.lane.b32.xlu2 %v3459_v40, %s5316_s17  ;;  %v3478_v7 = vmul.f32 %v3477_v37, %v6732_v19  ;;  %v8306_v5 = vsel %vm1153_vm2, %v2287_v8, %v2289_v13  ;;  %v10606_v0 = vrot.slane %v8107_v9, 2  ;;  %v10607_v44 = vld [vmem:[#allocation121_spill] sm:$0xff]  ;;  %v10609_v41 = vld [vmem:[#allocation135_spill] sm:$0xff] }
 0x3eb   : > { %v1748_v26 = vadd.f32 %v10605_v22, %v1644_v39  ;;  %v8309_v12 = vsel %vm1153_vm2, %v2231_v63, %v2233_v61  ;;  %v1774_v23 = vadd.f32 %v10607_v44, %v1670_v11  ;;  %v1722_v48 = vadd.f32 %v10608_v56, %v8024_v10 }
 0x3ec   : > { %v8314_v51 = vsel %vm1153_vm2, %v10606_v0, %v2231_v63  ;;  %3462 = vrot.lane.b32.xlu0 %v3455_v46, %s5316_s17  ;;  %v1723_v39 = vadd.f32 %v10609_v41, %v1619_v32  ;;  %v10610_v8 = vrot.slane %v8172_v42, 2  ;;  %v8326_v61 = vpop.permute.xlu1 %2858  ;;  %v8328_v9 = vpop.permute.xlu2 %3052  ;;  %v3489_v16 = vrot.slane %v3479_v38, 2  ;;  %v10615_v38 = vld [vmem:[#allocation130_spill] sm:$0xff] }
 0x3ed   : > { %10611 = vst [vmem:[#allocation33_spill] sm:$0xff] %v8326_v61  ;;  %v8330_v63 = vpop.permute.xlu0 %2838  ;;  %v3491_v46 = vrot.slane %v3480_v3, 2  ;;  %v3493_v11 = vrot.slane %v8296_v25, 2  ;;  %v3514_v22 = vstv %s8276_s14  ;;  %v8335_v10 = vsel %vm1153_vm2, %v2289_v13, %v2291_v43  ;;  %v8347_v44 = vpop.f32.mrf.mxu1  ;;  %v10616_v25 = vld [vmem:[#allocation133_spill] sm:$0xff]  ;;  %v10653_v61 = vld [vmem:[#allocation159_spill] sm:$0xff]  ;;  %s8751_s14 = sld [smem:[#allocation2 + $0x3c]] }
 0x3ee   : > { %v8324_v40 = vsel %vm1153_vm2, %v10610_v8, %v2260_v18  ;;  %10612 = vst [vmem:[#allocation32_spill] sm:$0xff] %v8328_v9  ;;  %v8338_v32 = vsel %vm1153_vm2, %v2318_v14, %v2320_v34  ;;  %v10614_v42 = vrot.slane %v8158_v15, 2  ;;  %v3488_v0 = vrot.slane %v3478_v7, 2  ;;  %v10617_v34 = vld [vmem:[#allocation56_spill] sm:$0xff] }
 0x3ef   : > { %10613 = vst [vmem:[#allocation198_spill] sm:$0xff] %v8330_v63  ;;  %v1799_v3 = vadd.f32 %v10615_v38, %v8145_v52  ;;  %v1645_v13 = vadd.f32 %v10616_v25, %v8181_v28  ;;  %v1858_v43 = vadd.f32 %v7914_v21, %v1748_v26  ;;  %v1886_v56 = vadd.f32 %v10617_v34, %v8215_v53  ;;  %v10618_v8 = vld [vmem:[#allocation132_spill] sm:$0xff]  ;;  %v10620_v53 = vld [vmem:[#allocation137_spill] sm:$0xff]  ;;  %v10621_v25 = vld [vmem:[#allocation127_spill] sm:$0xff] }
 0x3f0   : > { %v8343_v18 = vsel %vm1153_vm2, %v10614_v42, %v2318_v14  ;;  %v1829_v15 = vadd.f32 %v7986_v54, %v1722_v48  ;;  %v3515_v14 = vmul.f32 %v3514_v22, %v6732_v19  ;;  %v3516_v7 = vmul.f32 %v3514_v22, %v6750_v27  ;;  %v10619_v42 = vld [vmem:[#allocation46_spill] sm:$0xff] }
 0x3f1   : > { %v8360_v41 = vmul.f32 %v3514_v22, %v6768_v29  ;;  %v8364_v52 = vadd.f32 %v10618_v8, %v8122_v20  ;;  %v1830_v28 = vadd.f32 %v10619_v42, %v1723_v39  ;;  %v3492_v21 = vsel %vm1153_vm2, %v3489_v16, %v3491_v46  ;;  %v10622_v34 = vld [vmem:[#allocation138_spill] sm:$0xff]  ;;  %v10623_v8 = vld [vmem:[#allocation140_spill] sm:$0xff] }
 0x3f2   : > { %v3494_v26 = vsel %vm1153_vm2, %v3491_v46, %v3493_v11  ;;  %v1697_v54 = vadd.f32 %v10620_v53, %v8126_v50  ;;  %3499 = vrot.lane.b32.xlu1 %v3492_v21, %s5316_s17  ;;  %v3490_v48 = vsel %vm1153_vm2, %v3488_v0, %v3489_v16  ;;  %v3482_v38 = vmul.f32 %v3477_v37, %v10423_v2  ;;  %v10624_v50 = vld [vmem:[#allocation141_spill] sm:$0xff] }
 0x3f3   : > { %3501 = vrot.lane.b32.xlu2 %v3494_v26, %s5316_s17  ;;  %v1749_v20 = vadd.f32 %v10621_v25, %v1645_v13  ;;  %v1798_v39 = vadd.f32 %v10622_v34, %v8049_v36  ;;  %v1775_v42 = vadd.f32 %v10623_v8, %v8227_v57  ;;  %v1828_v46 = vadd.f32 %v7935_v47, %v8088_v30  ;;  %v10626_v36 = vld [vmem:[#allocation136_spill] sm:$0xff] }
 0x3f4   : > { %3497 = vrot.lane.b32.xlu0 %v3490_v48, %s5316_s17  ;;  %v1801_v16 = vadd.f32 %v10624_v50, %v1697_v54  ;;  %v8384_v0 = vpop.permute.xlu1 %2864  ;;  %v8386_v21 = vpop.permute.xlu2 %3087  ;;  %v3525_v37 = vrot.slane %v3515_v14, 2  ;;  %v3526_v13 = vrot.slane %v3516_v7, 2  ;;  %v1954_v53 = vadd.f32 %v10626_v36, %v1830_v28  ;;  %v10627_v48 = vld [vmem:[#allocation139_spill] sm:$0xff]  ;;  %v10629_v28 = vld [vmem:[#allocation142_spill] sm:$0xff] }
 0x3f5   : > { %10625 = vst [vmem:[#allocation63_spill] sm:$0xff] %v8386_v21  ;;  %v1857_v57 = vadd.f32 %v7952_v62, %v8223_v58  ;;  %v1856_v47 = vadd.f32 %v7955_v55, %v7974_v33  ;;  %v1885_v30 = vadd.f32 %v7981_v60, %v8080_v4  ;;  %v8396_v54 = vpop.permute.xlu0 %2862  ;;  %v1990_v25 = vadd.f32 %v10627_v48, %v1858_v43  ;;  %v10628_v14 = vld [vmem:[#allocation143_spill] sm:$0xff]  ;;  %v8402_v50 = vpop.f32.mrf.mxu1  ;;  %v10631_v58 = vld [vmem:[#allocation60_spill] sm:$0xff] }
 0x3f6   : > { %v1800_v7 = vadd.f32 %v10628_v14, %v8064_v6  ;;  %v3495_v34 = vrot.slane %v3482_v38, 2  ;;  %v3551_v8 = vstv %s8345_s15  ;;  %v2026_v36 = vadd.f32 %v10629_v28, %v1886_v56  ;;  %v10630_v60 = vld [vmem:[#allocation55_spill] sm:$0xff]  ;;  %s8802_s15 = sld [smem:[#allocation2 + $0x40]] }
 0x3f7   : > { %v1914_v62 = vadd.f32 %v7947_v31, %v1798_v39  ;;  %v1859_v55 = vadd.f32 %v8069_v49, %v1749_v20  ;;  %v1888_v33 = vadd.f32 %v8091_v17, %v1775_v42  ;;  %v1917_v4 = vadd.f32 %v10630_v60, %v1801_v16  ;;  %v10633_v17 = vld [vmem:[#allocation144_spill] sm:$0xff]  ;;  %v10634_v39 = vld [vmem:[#allocation19_spill] sm:$0xff]  ;;  %v10635_v16 = vld [vmem:[#allocation146_spill] sm:$0xff] }
 0x3f8   : > { %v1887_v26 = vadd.f32 %v10631_v58, %v1774_v23  ;;  %v3527_v43 = vsel %vm1153_vm2, %v3525_v37, %v3526_v13  ;;  %v10632_v6 = vrot.slane %v8360_v41, 2  ;;  %v3518_v48 = vmul.f32 %v3514_v22, %v6785_v45  ;;  %v10638_v60 = vld [vmem:[#allocation17_spill] sm:$0xff] }
 0x3f9   : > { %v3519_v56 = vmul.f32 %v3514_v22, %v10423_v2  ;;  %v3552_v31 = vmul.f32 %v3551_v8, %v6732_v19  ;;  %v8418_v49 = vmul.f32 %v3551_v8, %v6750_v27  ;;  %v1953_v20 = vadd.f32 %v10633_v17, %v1829_v15  ;;  %v10637_v22 = vld [vmem:[#allocation147_spill] sm:$0xff]  ;;  %v10640_v17 = vld [vmem:[#allocation148_spill] sm:$0xff] }
 0x3fa   : > { %v3529_v38 = vsel %vm1153_vm2, %v3526_v13, %v10632_v6  ;;  %v1916_v42 = vadd.f32 %v10634_v39, %v1800_v7  ;;  %3534 = vrot.lane.b32.xlu1 %v3527_v43, %s5316_s17  ;;  %v3496_v23 = vsel %vm1153_vm2, %v3493_v11, %v3495_v34  ;;  %v1952_v37 = vadd.f32 %v10635_v16, %v1828_v46  ;;  %v10636_v13 = vld [vmem:[#allocation145_spill] sm:$0xff]  ;;  %v10641_v43 = vld [vmem:[#allocation150_spill] sm:$0xff]  ;;  %v10642_v11 = vld [vmem:[#allocation151_spill] sm:$0xff] }
 0x3fb   : > { %3536 = vrot.lane.b32.xlu2 %v3529_v38, %s5316_s17  ;;  %v2062_v14 = vadd.f32 %v10636_v13, %v1914_v62  ;;  %v1989_v28 = vadd.f32 %v10637_v22, %v1857_v57  ;;  %v1915_v58 = vadd.f32 %v10638_v60, %v1799_v3  ;;  %v10639_v6 = vld [vmem:[#allocation149_spill] sm:$0xff]  ;;  %v8432_v7 = vadd.f32 %v10640_v17, %v1917_v4  ;;  %v10646_v13 = vld [vmem:[#allocation154_spill] sm:$0xff] }
 0x3fc   : > { %3503 = vrot.lane.b32.xlu0 %v3496_v23, %s5316_s17  ;;  %v1988_v15 = vadd.f32 %v10639_v6, %v1856_v47  ;;  %v2025_v39 = vadd.f32 %v10641_v43, %v1885_v30  ;;  %v2101_v34 = vadd.f32 %v10642_v11, %v1953_v20  ;;  %v8436_v38 = vpop.permute.xlu1 %3015  ;;  %v8438_v46 = vpop.permute.xlu2 %3122  ;;  %v3530_v57 = vrot.slane %v3518_v48, 2  ;;  %v10645_v47 = vld [vmem:[#allocation152_spill] sm:$0xff]  ;;  %v10648_v20 = vld [vmem:[#allocation155_spill] sm:$0xff]  ;;  %v10649_v43 = vld [vmem:[#allocation157_spill] sm:$0xff] }
 0x3fd   : > { %10643 = vst [vmem:[#allocation72_spill] sm:$0xff] %v8436_v38  ;;  %v8440_v62 = vpop.permute.xlu0 %3013  ;;  %v3532_v16 = vrot.slane %v3519_v56, 2  ;;  %v3562_v3 = vrot.slane %v3552_v31, 2  ;;  %v3563_v23 = vrot.slane %v8418_v49, 2  ;;  %v1991_v4 = vadd.f32 %v10645_v47, %v1859_v55  ;;  %v10647_v30 = vld [vmem:[#allocation156_spill] sm:$0xff]  ;;  %v8449_v17 = vpop.f32.mrf.mxu1  ;;  %v10652_v49 = vld [vmem:[#allocation162_spill] sm:$0xff] }
 0x3fe   : > { %10644 = vst [vmem:[#allocation199_spill] sm:$0xff] %v8438_v46  ;;  %v2028_v22 = vadd.f32 %v10646_v13, %v1888_v33  ;;  %v2027_v60 = vadd.f32 %v10647_v30, %v1887_v26  ;;  %v2137_v6 = vadd.f32 %v10648_v20, %v1989_v28  ;;  %v2064_v11 = vadd.f32 %v10649_v43, %v1916_v42  ;;  %v10650_v46 = vld [vmem:[#allocation158_spill] sm:$0xff]  ;;  %v10651_v56 = vld [vmem:[#allocation160_spill] sm:$0xff]  ;;  %v10654_v55 = vld [vmem:[#allocation163_spill] sm:$0xff] }
 0x3ff   : > { %v2173_v48 = vadd.f32 %v10650_v46, %v2025_v39  ;;  %v2100_v31 = vadd.f32 %v10651_v56, %v1952_v37  ;;  %v2099_v63 = vadd.f32 %v10652_v49, %v8364_v52  ;;  %v2063_v21 = vadd.f32 %v10653_v61, %v1915_v58  ;;  %v10655_v33 = vld [vmem:[#allocation165_spill] sm:$0xff]  ;;  %v10656_v26 = vld [vmem:[#allocation166_spill] sm:$0xff]  ;;  %v10657_v37 = vld [vmem:[#allocation168_spill] sm:$0xff] }
 0x400   : > { %v2136_v47 = vadd.f32 %v10654_v55, %v1988_v15  ;;  %v2102_v13 = vadd.f32 %v10655_v33, %v1954_v53  ;;  %v2139_v30 = vadd.f32 %v10656_v26, %v1991_v4  ;;  %v3533_v28 = vsel %vm1153_vm2, %v3530_v57, %v3532_v16  ;;  %v10659_v58 = vld [vmem:[#allocation161_spill] sm:$0xff]  ;;  %v10660_v16 = vld [vmem:[#allocation164_spill] sm:$0xff]  ;;  %v10661_v43 = vld [vmem:[#allocation22_spill] sm:$0xff] }
 0x401   : > { %v3564_v20 = vsel %vm1153_vm2, %v3562_v3, %v3563_v23  ;;  %v3555_v42 = vmul.f32 %v3551_v8, %v6785_v45  ;;  %v3556_v39 = vmul.f32 %v3551_v8, %v10423_v2  ;;  %v2138_v46 = vadd.f32 %v10657_v37, %v1990_v25  ;;  %v10662_v25 = vld [vmem:[#allocation169_spill] sm:$0xff]  ;;  %v10667_v37 = vld [vmem:[#allocation170_spill] sm:$0xff] }
 0x402   : > { %3540 = vrot.lane.b32.xlu1 %v3533_v28, %s5316_s17  ;;  %v10658_v61 = vrot.slane %v8360_v41, 2  ;;  %v3554_v53 = vmul.f32 %v3551_v8, %v6768_v29  ;;  %v2176_v15 = vadd.f32 %v10659_v58, %v2028_v22  ;;  %v2212_v3 = vadd.f32 %v10660_v16, %v2064_v11  ;;  %v10663_v41 = vld [vmem:[#allocation171_spill] sm:$0xff] }
 0x403   : > { %3571 = vrot.lane.b32.xlu2 %v3564_v20, %s5315_s16  ;;  %v2240_v4 = vadd.f32 %v8186_v35, %v2100_v31  ;;  %v2239_v56 = vadd.f32 %v10661_v43, %v2099_v63  ;;  %v2175_v49 = vadd.f32 %v10662_v25, %v2027_v60  ;;  %v2174_v55 = vadd.f32 %v10663_v41, %v2026_v36  ;;  %v10666_v22 = vld [vmem:[#allocation167_spill] sm:$0xff] }
 0x404   : > { %v3531_v52 = vsel %vm1153_vm2, %v10658_v61, %v3530_v57  ;;  %v10664_v57 = vld [vmem:[#allocation27_spill] sm:$0xff]  ;;  %v2242_v26 = vadd.f32 %v8309_v12, %v2102_v13  ;;  %v8480_v8 = vpop.permute.xlu1 %3050  ;;  %v8482_v28 = vpop.permute.xlu2 %3128  ;;  %v3567_v63 = vrot.slane %v3555_v42, 2  ;;  %v3569_v31 = vrot.slane %v3556_v39, 2  ;;  %v10669_v42 = vld [vmem:[#allocation174_spill] sm:$0xff] }
 0x405   : > { %3538 = vrot.lane.b32.xlu0 %v3531_v52, %s5316_s17  ;;  %v2268_v33 = vadd.f32 %v10664_v57, %v2136_v47  ;;  %10665 = vst [vmem:[#allocation77_spill] sm:$0xff] %v8480_v8  ;;  %v8485_v11 = vadd.f32 %v10666_v22, %v2240_v4  ;;  %v8487_v35 = vpop.permute.xlu0 %3048  ;;  %v8490_v20 = vstv %s8443_s23  ;;  %v2271_v60 = vadd.f32 %v8287_v59, %v2139_v30  ;;  %v8497_v13 = vpop.f32.mrf.mxu1  ;;  %v10668_v52 = vld [vmem:[#allocation172_spill] sm:$0xff]  ;;  %v10673_v43 = vld [vmem:[#allocation175_spill] sm:$0xff]  ;;  %s8810_s23 = sld [smem:[#allocation2 + $0x5d]] }
 0x406   : > { %v2241_v36 = vadd.f32 %v8314_v51, %v2101_v34  ;;  %v2270_v47 = vadd.f32 %v8324_v40, %v2138_v46  ;;  %v3565_v12 = vrot.slane %v3554_v53, 2  ;;  %v2211_v58 = vadd.f32 %v10668_v52, %v2063_v21  ;;  %v10670_v30 = vld [vmem:[#allocation28_spill] sm:$0xff]  ;;  %v10671_v46 = vld [vmem:[#allocation177_spill] sm:$0xff] }
 0x407   : > { %v8500_v61 = vadd.f32 %v10667_v37, %v2268_v33  ;;  %v2210_v39 = vadd.f32 %v10669_v42, %v2062_v14  ;;  %v2269_v16 = vadd.f32 %v8257_v1, %v2137_v6  ;;  %v2299_v59 = vadd.f32 %v8306_v5, %v2175_v49  ;;  %v10672_v5 = vld [vmem:[#allocation173_spill] sm:$0xff]  ;;  %v10676_v22 = vld [vmem:[#allocation176_spill] sm:$0xff] }
 0x408   : > { %v2298_v51 = vadd.f32 %v10670_v30, %v2174_v55  ;;  %v3590_v40 = vmul.f32 %v8490_v20, %v6750_v27  ;;  %v3591_v34 = vmul.f32 %v8490_v20, %v6768_v29  ;;  %v2213_v53 = vadd.f32 %v10671_v46, %v8432_v7  ;;  %v10674_v49 = vld [vmem:[#allocation29_spill] sm:$0xff]  ;;  %v10675_v55 = vld [vmem:[#allocation11_spill] sm:$0xff]  ;;  %v10680_v37 = vld [vmem:[#allocation184_spill] sm:$0xff] }
 0x409   : > { %v3568_v4 = vsel %vm1153_vm2, %v3565_v12, %v3567_v63  ;;  %v3570_v21 = vsel %vm1153_vm2, %v3567_v63, %v3569_v31  ;;  %v8517_v1 = vmul.f32 %v8490_v20, %v6785_v45  ;;  %v8520_v14 = vadd.f32 %v10672_v5, %v2271_v60  ;;  %v10685_v5 = vld [vmem:[#allocation193_spill] sm:$0xff] }
 0x40a   : > { %3575 = vrot.lane.b32.xlu1 %v3568_v4, %s5315_s16  ;;  %v3566_v6 = vsel %vm1153_vm2, %v3563_v23, %v3565_v12  ;;  %v3589_v7 = vmul.f32 %v8490_v20, %v6732_v19  ;;  %v2363_v25 = vadd.f32 %v10673_v43, %v2239_v56  ;;  %v2327_v41 = vadd.f32 %v10674_v49, %v2211_v58  ;;  %v10679_v12 = vld [vmem:[#allocation183_spill] sm:$0xff]  ;;  %v10684_v4 = vld [vmem:[#allocation194_spill] sm:$0xff]  ;;  %v10687_v43 = vld [vmem:[#allocation197_spill] sm:$0xff] }
 0x40b   : > { %3577 = vrot.lane.b32.xlu2 %v3570_v21, %s5315_s16  ;;  %v2297_v57 = vadd.f32 %v10675_v55, %v2173_v48  ;;  %v2326_v33 = vadd.f32 %v8280_v24, %v2210_v39  ;;  %v8537_v23 = vadd.f32 %v10676_v22, %v2299_v59  ;;  %v2300_v63 = vadd.f32 %v8335_v10, %v2176_v15  ;;  %v10681_v10 = vld [vmem:[#allocation186_spill] sm:$0xff]  ;;  %v10690_v55 = vld [vmem:[#allocation201_spill] sm:$0xff] }
 0x40c   : > { %v8542_v31 = vpop.permute.xlu1 %3085  ;;  %v8544_v56 = vpop.permute.xlu2 %3163  ;;  %v3600_v60 = vrot.slane %v3590_v40, 2  ;;  %v3602_v48 = vrot.slane %v3591_v34, 2  ;;  %v2366_v24 = vadd.f32 %v10679_v12, %v2242_v26  ;;  %v8548_v52 = vadd.f32 %v10680_v37, %v2327_v41  ;;  %v10683_v26 = vld [vmem:[#allocation192_spill] sm:$0xff] }
 0x40d   : > { %3573 = vrot.lane.b32.xlu0 %v3566_v6, %s5315_s16  ;;  %10677 = vst [vmem:[#allocation30_spill] sm:$0xff] %v8542_v31  ;;  %v2329_v58 = vadd.f32 %v8338_v32, %v2213_v53  ;;  %v8551_v42 = vpop.permute.xlu0 %3054  ;;  %v10074_v39 = vrot.slane %v8517_v1, 2  ;;  %v2365_v15 = vadd.f32 %v10681_v10, %v2241_v36  ;;  %v2328_v59 = vadd.f32 %v8343_v18, %v2212_v3  ;;  %v8559_v40 = vpop.f32.mrf.mxu1  ;;  %v10686_v53 = vld [vmem:[#allocation195_spill] sm:$0xff]  ;;  %v10688_v36 = vld [vmem:[#allocation196_spill] sm:$0xff] }
 0x40e   : > { %10678 = vst [vmem:[#allocation62_spill] sm:$0xff] %v8544_v56  ;;  %v3599_v30 = vrot.slane %v3589_v7, 2  ;;  %v3625_v46 = vstv %s8495_s26  ;;  %v2402_v34 = vadd.f32 %v10683_v26, %v2270_v47  ;;  %v2401_v21 = vadd.f32 %v10684_v4, %v2269_v16  ;;  %v10689_v3 = vld [vmem:[#allocation200_spill] sm:$0xff]  ;;  %s8859_s26 = sld [smem:[#allocation2 + $0x64]] }
 0x40f   : > { %10682 = vst [vmem:[#allocation66_spill] sm:$0xff] %v8559_v40  ;;  %v2511_v32 = vadd.f32 %v10685_v5, %v2363_v25  ;;  %v2438_v6 = vadd.f32 %v10686_v53, %v2298_v51  ;;  %v2437_v49 = vadd.f32 %v10687_v43, %v2297_v57  ;;  %v8567_v18 = vadd.f32 %v10688_v36, %v2366_v24  ;;  %v10692_v24 = vld [vmem:[#allocation180_spill] sm:$0xff]  ;;  %v10699_v53 = vld [vmem:[#allocation205_spill] sm:$0xff] }
 0x410   : > { %v2474_v7 = vadd.f32 %v10689_v3, %v2326_v33  ;;  %v3603_v41 = vsel %vm1153_vm2, %v3600_v60, %v3602_v48  ;;  %v3605_v47 = vsel %vm1153_vm2, %v3602_v48, %v10074_v39  ;;  %v3626_v16 = vmul.f32 %v3625_v46, %v6732_v19  ;;  %v10691_v48 = vld [vmem:[#allocation203_spill] sm:$0xff]  ;;  %v10703_v39 = vld [vmem:[#allocation185_spill] sm:$0xff] }
 0x411   : > { %v3627_v25 = vmul.f32 %v3625_v46, %v6750_v27  ;;  %v8577_v51 = vmul.f32 %v3625_v46, %v6768_v29  ;;  %v8580_v57 = vadd.f32 %v10690_v55, %v2402_v34  ;;  %v3601_v33 = vsel %vm1153_vm2, %v3599_v30, %v3600_v60  ;;  %v10693_v34 = vld [vmem:[#allocation35_spill] sm:$0xff]  ;;  %v10694_v30 = vld [vmem:[#allocation204_spill] sm:$0xff] }
 0x412   : > { %3610 = vrot.lane.b32.xlu1 %v3603_v41, %s5315_s16  ;;  %v3593_v22 = vmul.f32 %v8490_v20, %v10423_v2  ;;  %v8588_v12 = vadd.f32 %v10691_v48, %v2300_v63  ;;  %v2513_v37 = vadd.f32 %v10692_v24, %v2365_v15  ;;  %v2627_v10 = vstv %s8522_s25  ;;  %s8886_s25 = sld [smem:[#allocation2 + $0x60]] }
 0x413   : > { %3612 = vrot.lane.b32.xlu2 %v3605_v47, %s5315_s16  ;;  %v8593_v26 = vstv %s8533_s30  ;;  %v2477_v60 = vadd.f32 %v10693_v34, %v2329_v58  ;;  %v8600_v4 = vadd.f32 %v10694_v30, %v2438_v6  ;;  %v2630_v20 = vmul.f32 %v2627_v10, %v6768_v29  ;;  %v10700_v6 = vld [vmem:[#allocation41_spill] sm:$0xff]  ;;  %v10702_v34 = vld [vmem:[#allocation44_spill] sm:$0xff]  ;;  %s8938_s30 = sld [smem:[#allocation2 + $0x84]] }
 0x414   : > { %v8604_v5 = vstv %s8540_s6  ;;  %v8608_v63 = vpop.permute.xlu1 %3091  ;;  %v8610_v15 = vpop.permute.xlu2 %3198  ;;  %v2476_v43 = vadd.f32 %v10699_v53, %v2328_v59  ;;  %v3636_v3 = vrot.slane %v3626_v16, 2  ;;  %v3637_v41 = vrot.slane %v3627_v25, 2  ;;  %v10704_v25 = vld [vmem:[#allocation49_spill] sm:$0xff]  ;;  %s8992_s6 = sld [smem:[#allocation2 + $0x88]] }
 0x415   : > { %3608 = vrot.lane.b32.xlu0 %v3601_v33, %s5315_s16  ;;  %10695 = vst [vmem:[#allocation80_spill] sm:$0xff] %v8600_v4  ;;  %v8613_v36 = vpop.permute.xlu0 %3089  ;;  %v3639_v58 = vrot.slane %v8577_v51, 2  ;;  %v8617_v47 = vadd.f32 %v10700_v6, %v2474_v7  ;;  %v2639_v55 = vmul.f32 %v8593_v26, %v6750_v27  ;;  %v3606_v33 = vrot.slane %v3593_v22, 2  ;;  %v478_v24 = vpop.f32.mrf.mxu1 }
 0x416   : > { %10696 = vst [vmem:[#allocation202_spill] sm:$0xff] %v8604_v5  ;;  %v3662_v48 = vstv %s8557_s7  ;;  %v2512_v30 = vadd.f32 %v10702_v34, %v8485_v11  ;;  %v2549_v59 = vadd.f32 %v10703_v39, %v2401_v21  ;;  %v2634_v53 = vadd.f32 %v2630_v20, %v2513_v37  ;;  %v10705_v37 = vld [vmem:[#allocation178_spill] sm:$0xff]  ;;  %s9045_s7 = sld [smem:[#allocation2 + $0x1d]] }
 0x417   : > { %10697 = vst [vmem:[#allocation75_spill] sm:$0xff] %v8608_v63  ;;  %v2648_v16 = vmul.f32 %v8604_v5, %v6732_v19  ;;  %v8630_v7 = vadd.f32 %v10704_v25, %v2477_v60  ;;  %v2628_v51 = vmul.f32 %v2627_v10, %v6732_v19  ;;  %v3629_v22 = vmul.f32 %v3625_v46, %v6785_v45 }
 0x418   : > { %10698 = vst [vmem:[#allocation59_spill] sm:$0xff] %v8610_v15  ;;  %v3630_v6 = vmul.f32 %v3625_v46, %v10423_v2  ;;  %v3638_v24 = vsel %vm1153_vm2, %v3636_v3, %v3637_v41  ;;  %v3640_v11 = vsel %vm1153_vm2, %v3637_v41, %v3639_v58  ;;  %v3663_v39 = vmul.f32 %v3662_v48, %v6732_v19  ;;  %v10707_v41 = vld [vmem:[#allocation36_spill] sm:$0xff] }
 0x419   : > { %10701 = vst [vmem:[#allocation61_spill] sm:$0xff] %v8617_v47  ;;  %v8639_v21 = vmul.f32 %v3662_v48, %v6750_v27  ;;  %v2548_v60 = vadd.f32 %v10705_v37, %v8500_v61  ;;  %v2629_v20 = vmul.f32 %v2627_v10, %v6750_v27  ;;  %v10706_v46 = vrot.slane %v8517_v1, 2  ;;  %v10708_v61 = vld [vmem:[#allocation12_spill] sm:$0xff] }
 0x41a   : > { %3645 = vrot.lane.b32.xlu1 %v3638_v24, %s5315_s16  ;;  %v2585_v34 = vadd.f32 %v10707_v41, %v2437_v49  ;;  %v2643_v25 = vadd.f32 %v2639_v55, %v2549_v59  ;;  %v8650_v40 = vadd.f32 %v2628_v51, %v2511_v32  ;;  %v2651_v63 = vmul.f32 %v8604_v5, %v6785_v45 }
 0x41b   : > { %v3607_v3 = vsel %vm1153_vm2, %v10706_v46, %v3606_v33  ;;  %3647 = vrot.lane.b32.xlu2 %v3640_v11, %s5315_s16  ;;  %v2624_v37 = vadd.f32 %v10708_v61, %v2476_v43  ;;  %v2638_v24 = vmul.f32 %v8593_v26, %v6732_v19  ;;  %v8659_v1 = vstv %s8595_s8  ;;  %v10711_v46 = vld [vmem:[#allocation38_spill] sm:$0xff]  ;;  %s9095_s8 = sld [smem:[#allocation2 + $0x41]] }
 0x41c   : > { %10709 = vst [vmem:[#allocation78_spill] sm:$0xff] %v8659_v1  ;;  %v8662_v33 = vstv %s8606_s9  ;;  %v8664_v11 = vpop.permute.xlu1 %3126  ;;  %v8666_v49 = vpop.permute.xlu2 %3233  ;;  %v3641_v55 = vrot.slane %v3629_v22, 2  ;;  %v3643_v59 = vrot.slane %v3630_v6, 2  ;;  %v3673_v51 = vrot.slane %v3663_v39, 2  ;;  %s5086_s9 = sld [smem:[#allocation2 + $0x65]] }
 0x41d   : > { %3614 = vrot.lane.b32.xlu0 %v3607_v3, %s5315_s16  ;;  %10710 = vst [vmem:[#allocation70_spill] sm:$0xff] %v8666_v49  ;;  %v8670_v32 = vpop.permute.xlu0 %3124  ;;  %v3674_v43 = vrot.slane %v8639_v21, 2  ;;  %v8674_v3 = vadd.f32 %v10711_v46, %v2634_v53  ;;  %v2633_v41 = vadd.f32 %v2629_v20, %v2512_v30  ;;  %v8676_v61 = vadd.f32 %v2638_v24, %v2548_v60  ;;  %v10712_v49 = vld [vmem:[#allocation52_spill] sm:$0xff] }
 0x41e   : > { %v2660_v31 = vmul.f32 %v8659_v1, %v6768_v29  ;;  %v2551_v47 = vadd.f32 %v10712_v49, %v8520_v14  ;;  %v8682_v15 = vadd.f32 %v2648_v16, %v2585_v34  ;;  %v2631_v22 = vmul.f32 %v2627_v10, %v6785_v45  ;;  %v10715_v49 = vld [vmem:[#allocation43_spill] sm:$0xff] }
 0x41f   : > { %v8686_v6 = vstv %s8627_s10  ;;  %v8692_v30 = vmul.f32 %v8662_v33, %v6750_v27  ;;  %v8696_v53 = vmul.f32 %v8662_v33, %v6768_v29  ;;  %v3644_v16 = vsel %vm1153_vm2, %v3641_v55, %v3643_v59  ;;  %s5087_s10 = sld [smem:[#allocation2 + $0x89]] }
 0x420   : > { %10713 = vst [vmem:[#allocation73_spill] sm:$0xff] %v8682_v15  ;;  %v2664_v39 = vadd.f32 %v2660_v31, %v2624_v37  ;;  %v8700_v14 = vmul.f32 %v8686_v6, %v6785_v45  ;;  %v3675_v10 = vsel %vm1153_vm2, %v3673_v51, %v3674_v43  ;;  %v3666_v21 = vmul.f32 %v3662_v48, %v6785_v45  ;;  %v10714_v37 = vld [vmem:[#allocation181_spill] sm:$0xff]  ;;  %v10717_v51 = vld [vmem:[#allocation188_spill] sm:$0xff] }
 0x421   : > { %v3667_v31 = vmul.f32 %v3662_v48, %v10423_v2  ;;  %v8708_v60 = vmul.f32 %v8686_v6, %v6768_v29  ;;  %v3642_v20 = vsel %vm1153_vm2, %v3639_v58, %v3641_v55  ;;  %v3665_v34 = vmul.f32 %v3662_v48, %v6768_v29  ;;  %v10722_v58 = vld [vmem:[#allocation182_spill] sm:$0xff] }
 0x422   : > { %3651 = vrot.lane.b32.xlu1 %v3644_v16, %s5315_s16  ;;  %v2588_v24 = vadd.f32 %v10714_v37, %v8588_v12  ;;  %v8717_v59 = vadd.f32 %v10715_v49, %v2643_v25  ;;  %v2768_v46 = vadd.f32 %v10717_v51, %v2664_v39  ;;  %v8721_v8 = vadd.f32 %v2631_v22, %v8567_v18  ;;  %v10718_v16 = vld [vmem:[#allocation191_spill] sm:$0xff] }
 0x423   : > { %3682 = vrot.lane.b32.xlu2 %v3675_v10, %s5315_s16  ;;  %v2689_v15 = vadd.f32 %v10718_v16, %v2633_v41  ;;  %v8731_v25 = vstv %s8668_s11  ;;  %v3678_v22 = vrot.slane %v3666_v21, 2  ;;  %v10720_v41 = vld [vmem:[#allocation58_spill] sm:$0xff]  ;;  %v2641_v49 = vmul.f32 %v8593_v26, %v6785_v45  ;;  %s5092_s11 = sld [smem:[#allocation2 + $0x1f]] }
 0x424   : > { %10716 = vst [vmem:[#allocation74_spill] sm:$0xff] %v8717_v59  ;;  %v3162_v12 = vpop.permute.xlu1 %3161  ;;  %v8728_v10 = vpop.permute.xlu2 %3239  ;;  %v2872_v39 = vadd.f32 %v8396_v54, %v2768_v46  ;;  %v2587_v37 = vadd.f32 %v10720_v41, %v8537_v23  ;;  %v10076_v51 = vrot.slane %v8708_v60, 1  ;;  %v3676_v16 = vrot.slane %v3665_v34, 2 }
 0x425   : > { %3649 = vrot.lane.b32.xlu0 %v3642_v20, %s5315_s16  ;;  %10719 = vst [vmem:[#allocation81_spill] sm:$0xff] %v8728_v10  ;;  %v8734_v18 = vpop.permute.xlu0 %3159  ;;  %v3680_v20 = vrot.slane %v3667_v31, 2  ;;  %v8743_v48 = vadd.f32 %v2651_v63, %v2588_v24  ;;  %v2793_v55 = vadd.f32 %v10722_v58, %v2689_v15  ;;  %v2640_v54 = vmul.f32 %v8593_v26, %v6768_v29 }
 0x426   : > { %v8749_v21 = vstv %s8688_s12  ;;  %v2645_v31 = vadd.f32 %v2641_v49, %v2551_v47  ;;  %v10723_v23 = vrot.slane %v8696_v53, 1  ;;  %v10724_v46 = vrot.slane %v8692_v30, 1  ;;  %s5093_s12 = sld [smem:[#allocation2 + $0x43]] }
 0x427   : > { %10721 = vst [vmem:[#allocation83_spill] sm:$0xff] %v8743_v48  ;;  %v8760_v63 = vmul.f32 %v8731_v25, %v6750_v27  ;;  %v10726_v15 = vrot.slane %v8700_v14, 1  ;;  %v2905_v34 = vmul.f32 %v8731_v25, %v6732_v19  ;;  %v3679_v24 = vsel %vm1153_vm2, %v3676_v16, %v3678_v22 }
 0x428   : > { %v2890_v41 = vsel %vm740_vm1, %v10724_v46, %v10723_v23  ;;  %v3681_v58 = vsel %vm1153_vm2, %v3678_v22, %v3680_v20  ;;  %v3677_v49 = vsel %vm1153_vm2, %v3674_v43, %v3676_v16  ;;  %v8776_v23 = vmul.f32 %v8749_v21, %v6750_v27  ;;  %v10728_v16 = vld [vmem:[#allocation42_spill] sm:$0xff] }
 0x429   : > { %10725 = vst [vmem:[#allocation79_spill] sm:$0xff] %v8760_v63  ;;  %v2979_v26 = vsel %vm740_vm1, %v10076_v51, %v10726_v15  ;;  %v8780_v46 = vmul.f32 %v8749_v21, %v6768_v29  ;;  %v2659_v22 = vmul.f32 %v8659_v1, %v6750_v27  ;;  %v2900_v20 = vadd.f32 %v2890_v41, %v2793_v55 }
 0x42a   : > { %v2988_v47 = vadd.f32 %v2979_v26, %v2872_v39  ;;  %3686 = vrot.lane.b32.xlu1 %v3679_v24, %s5315_s16  ;;  %v8783_v39 = vadd.f32 %v2640_v54, %v8580_v57  ;;  %v2623_v15 = vadd.f32 %v10728_v16, %v8548_v52  ;;  %v10729_v26 = vld [vmem:[#allocation40_spill] sm:$0xff]  ;;  %v2915_v41 = vrot.slane %v2905_v34, 1  ;;  %v10732_v57 = vld [vmem:[#allocation189_spill] sm:$0xff] }
 0x42b   : > { %3688 = vrot.lane.b32.xlu2 %v3681_v58, %s5315_s16  ;;  %10727 = vst [vmem:[#allocation69_spill] sm:$0xff] %v8780_v46  ;;  %v2714_v24 = vadd.f32 %v10729_v26, %v8676_v61  ;;  %v2650_v58 = vmul.f32 %v8604_v5, %v6768_v29  ;;  %v3024_v55 = vadd.f32 %v8440_v62, %v2900_v20 }
 0x42c   : > { %v3136_v43 = vadd.f32 %v8664_v11, %v2988_v47  ;;  %v3197_v54 = vpop.permute.xlu1 %3196  ;;  %v3275_v51 = vpop.permute.xlu2 %3274  ;;  %v2876_v52 = vmul.f32 %v8662_v33, %v6732_v19  ;;  %v8817_v20 = vmul.f32 %v8662_v33, %v6785_v45  ;;  %v8823_v16 = vmul.f32 %v8731_v25, %v6785_v45 }
 0x42d   : > { %3684 = vrot.lane.b32.xlu0 %v3677_v49, %s5315_s16  ;;  %v8797_v11 = vpop.permute.xlu0 %3165  ;;  %v3739_v49 = vstv %s8736_s13  ;;  %v2818_v10 = vadd.f32 %v10732_v57, %v2714_v24  ;;  %v2654_v62 = vadd.f32 %v2650_v58, %v2587_v37  ;;  %v3172_v34 = vadd.f32 %v3162_v12, %v3024_v55  ;;  %s5076_s13 = sld [smem:[#allocation2 + $0x1b]] }
 0x42e   : > { %10730 = vst [vmem:[#allocation84_spill] sm:$0xff] %v8797_v11  ;;  %v8799_v47 = vadd.f32 %v3275_v51, %v3136_v43  ;;  %v3742_v61 = vmul.f32 %v3739_v49, %v8449_v17  ;;  %v8813_v51 = vstv %s8751_s14  ;;  %v2880_v43 = vmul.f32 %v8662_v33, %v10423_v2  ;;  %s5094_s14 = sld [smem:[#allocation2 + $0x67]] }
 0x42f   : > { %v3741_v26 = vmul.f32 %v3739_v49, %v8402_v50  ;;  %v2661_v37 = vmul.f32 %v8659_v1, %v6785_v45  ;;  %v10733_v12 = vrot.slane %v8760_v63, 1  ;;  %v2909_v58 = vmul.f32 %v8731_v25, %v10423_v2 }
 0x430   : > { %10731 = vst [vmem:[#allocation87_spill] sm:$0xff] %v8799_v47  ;;  %v3740_v57 = vmul.f32 %v3739_v49, %v8347_v44  ;;  %v2886_v55 = vrot.slane %v2876_v52, 1  ;;  %v10734_v33 = vrot.slane %v8780_v46, 2  ;;  %v10735_v47 = vrot.slane %v8776_v23, 2  ;;  %v10737_v46 = vld [vmem:[#allocation45_spill] sm:$0xff] }
 0x431   : > { %v2917_v24 = vsel %vm740_vm1, %v2915_v41, %v10733_v12  ;;  %v3317_v9 = vmul.f32 %v8813_v51, %v6732_v19  ;;  %v8845_v41 = vmul.f32 %v8813_v51, %v6750_v27  ;;  %v10736_v12 = vld [vmem:[#allocation179_spill] sm:$0xff]  ;;  %v2717_v4 = vadd.f32 %v10737_v46, %v2645_v31 }
 0x432   : > { %3750 = vrot.lane.b32.xlu1 %v3741_v26, %s5316_s17  ;;  %v3302_v48 = vsel %vm1153_vm2, %v10735_v47, %v10734_v33  ;;  %v2688_v52 = vadd.f32 %v10736_v12, %v8650_v40  ;;  %v2663_v26 = vadd.f32 %v2659_v22, %v2623_v15  ;;  %v2928_v63 = vadd.f32 %v2917_v24, %v2818_v10 }
 0x433   : > { %3752 = vrot.lane.b32.xlu2 %v3742_v61, %s5316_s17  ;;  %v3312_v61 = vadd.f32 %v3302_v48, %v3172_v34  ;;  %v10083_v47 = vrot.slane %v8817_v20, 1  ;;  %v2893_v33 = vrot.slane %v2880_v43, 1  ;;  %v10082_v56 = vrot.slane %v8823_v16, 1  ;;  %v10740_v34 = vld [vmem:[#allocation15_spill] sm:$0xff] }
 0x434   : > { %v3203_v59 = vpop.permute.xlu1 %3202  ;;  %v3426_v11 = vpop.permute.xlu2 %3425  ;;  %v3060_v1 = vadd.f32 %v8487_v35, %v2928_v63  ;;  %v2922_v5 = vrot.slane %v2909_v58, 1  ;;  %v3765_v10 = vstv %s8802_s15  ;;  %v8862_v48 = vadd.f32 %v2661_v37, %v8630_v7  ;;  %v10739_v35 = vld [vmem:[#allocation14_spill] sm:$0xff]  ;;  %s5077_s15 = sld [smem:[#allocation2 + $0x3f]] }
 0x435   : > { %3748 = vrot.lane.b32.xlu0 %v3740_v57, %s5316_s17  ;;  %v8854_v38 = vpop.permute.xlu0 %3200  ;;  %v8856_v40 = vadd.f32 %v3426_v11, %v3312_v61  ;;  %v10738_v31 = vrot.slane %v8692_v30, 1  ;;  %v3327_v22 = vrot.slane %v3317_v9, 2  ;;  %v10081_v15 = vrot.slane %v8845_v41, 2 }
 0x436   : > { %v8870_v63 = vadd.f32 %v10739_v35, %v8721_v8  ;;  %v2821_v11 = vadd.f32 %v10740_v34, %v2717_v4  ;;  %v8874_v43 = vstv %s8810_s23  ;;  %v3208_v24 = vadd.f32 %v3197_v54, %v3060_v1  ;;  %s5078_s23 = sld [smem:[#allocation2 + $0x63]] }
 0x437   : > { %v2888_v46 = vsel %vm740_vm1, %v2886_v55, %v10738_v31  ;;  %v8878_v7 = vmul.f32 %v8686_v6, %v6750_v27  ;;  %v8882_v30 = vmul.f32 %v8874_v43, %v6785_v45  ;;  %v3766_v9 = vmul.f32 %v3765_v10, %v8347_v44  ;;  %v10741_v55 = vld [vmem:[#allocation20_spill] sm:$0xff] }
 0x438   : > { %v3767_v37 = vmul.f32 %v3765_v10, %v8402_v50  ;;  %v8891_v8 = vsel %vm740_vm1, %v10083_v47, %v2893_v33  ;;  %v8895_v4 = vmul.f32 %v8731_v25, %v6768_v29  ;;  %v2923_v1 = vsel %vm740_vm1, %v10082_v56, %v2922_v5  ;;  %v10742_v33 = vld [vmem:[#allocation153_spill] sm:$0xff] }
 0x439   : > { %v3743_v54 = vmul.f32 %v3739_v49, %v8497_v13  ;;  %v3329_v58 = vsel %vm1153_vm2, %v3327_v22, %v10081_v15  ;;  %v8908_v57 = vmul.f32 %v8813_v51, %v6785_v45  ;;  %v3321_v25 = vmul.f32 %v8813_v51, %v10423_v2 }
 0x43a   : > { %3774 = vrot.lane.b32.xlu1 %v3766_v9, %s5316_s17  ;;  %v2767_v5 = vadd.f32 %v10741_v55, %v2663_v26  ;;  %v8915_v49 = vmul.f32 %v8874_v43, %v6768_v29  ;;  %v2931_v12 = vadd.f32 %v2923_v1, %v2821_v11  ;;  %v3340_v61 = vadd.f32 %v3329_v58, %v3208_v24  ;;  %v10744_v1 = vld [vmem:[#allocation190_spill] sm:$0xff]  ;;  %v10745_v58 = vld [vmem:[#allocation48_spill] sm:$0xff] }
 0x43b   : > { %3776 = vrot.lane.b32.xlu2 %v3767_v37, %s5316_s17  ;;  %v2742_v31 = vadd.f32 %v10742_v33, %v2654_v62  ;;  %v8921_v22 = vmul.f32 %v8874_v43, %v6750_v27  ;;  %v10085_v35 = vrot.slane %v8878_v7, 1  ;;  %v10084_v34 = vrot.slane %v8882_v30, 1  ;;  %v10743_v37 = vld [vmem:[#allocation57_spill] sm:$0xff] }
 0x43c   : > { %v3238_v9 = vpop.permute.xlu1 %3237  ;;  %v3461_v26 = vpop.permute.xlu2 %3460  ;;  %v2871_v55 = vadd.f32 %v10743_v37, %v2767_v5  ;;  %v3063_v15 = vadd.f32 %v8551_v42, %v2931_v12  ;;  %v3791_v62 = vstv %s8859_s26  ;;  %v2792_v33 = vadd.f32 %v10745_v58, %v2688_v52  ;;  %v10746_v5 = vld [vmem:[#allocation26_spill] sm:$0xff]  ;;  %s5095_s26 = sld [smem:[#allocation2 + $0x8b]] }
 0x43d   : > { %3754 = vrot.lane.b32.xlu0 %v3743_v54, %s5316_s17  ;;  %v8927_v11 = vpop.permute.xlu0 %3235  ;;  %v8929_v24 = vadd.f32 %v3461_v26, %v3340_v61  ;;  %v8934_v54 = vadd.f32 %v10744_v1, %v8783_v39  ;;  %v10086_v56 = vrot.slane %v8908_v57, 2  ;;  %v3334_v47 = vrot.slane %v3321_v25, 2 }
 0x43e   : > { %v2846_v37 = vadd.f32 %v10746_v5, %v2742_v31  ;;  %v2947_v42 = vrot.slane %v8915_v49, 1  ;;  %v2967_v12 = vmul.f32 %v8686_v6, %v10423_v2  ;;  %v3211_v61 = vadd.f32 %v3203_v59, %v3063_v15 }
 0x43f   : > { %v10747_v26 = vrot.slane %v8708_v60, 1  ;;  %v3792_v52 = vmul.f32 %v3791_v62, %v8347_v44  ;;  %v3769_v25 = vmul.f32 %v3765_v10, %v8497_v13  ;;  %v8952_v1 = vstv %s8886_s25  ;;  %s5096_s25 = sld [smem:[#allocation2 + $0x20]] }
 0x440   : > { %v2950_v31 = vsel %vm740_vm1, %v2947_v42, %v10084_v34  ;;  %v3768_v59 = vmul.f32 %v3765_v10, %v8449_v17  ;;  %v3288_v60 = vmul.f32 %v8749_v21, %v6732_v19  ;;  %v2899_v15 = vadd.f32 %v2888_v46, %v2792_v33  ;;  %v10748_v33 = vld [vmem:[#allocation51_spill] sm:$0xff] }
 0x441   : > { %v2977_v39 = vsel %vm740_vm1, %v10085_v35, %v10747_v26  ;;  %v3335_v5 = vsel %vm1153_vm2, %v10086_v56, %v3334_v47  ;;  %v8969_v26 = vmul.f32 %v8952_v1, %v6785_v45  ;;  %v2959_v34 = vadd.f32 %v2950_v31, %v2846_v37 }
 0x442   : > { %v2987_v58 = vadd.f32 %v2977_v39, %v2871_v55  ;;  %3780 = vrot.lane.b32.xlu1 %v3769_v25, %s5316_s17  ;;  %v3343_v10 = vadd.f32 %v3335_v5, %v3211_v61  ;;  %v8975_v46 = vmul.f32 %v8952_v1, %v6768_v29  ;;  %v2769_v39 = vadd.f32 %v10748_v33, %v8862_v48 }
 0x443   : > { %3800 = vrot.lane.b32.xlu2 %v3792_v52, %s5316_s17  ;;  %v10749_v52 = vld [vmem:[#allocation25_spill] sm:$0xff]  ;;  %v10750_v25 = vrot.slane %v8817_v20, 1  ;;  %v10751_v35 = vrot.slane %v8696_v53, 1  ;;  %v3099_v61 = vadd.f32 %v8613_v36, %v2959_v34  ;;  %v3298_v48 = vrot.slane %v3288_v60, 2  ;;  %v10752_v20 = vld [vmem:[#allocation18_spill] sm:$0xff] }
 0x444   : > { %v3135_v55 = vadd.f32 %v8670_v32, %v2987_v58  ;;  %v3023_v47 = vadd.f32 %v10749_v52, %v2899_v15  ;;  %v2980_v32 = vrot.slane %v2967_v12, 1  ;;  %v3273_v31 = vpop.permute.xlu1 %3272  ;;  %v3467_v58 = vpop.permute.xlu2 %3466  ;;  %v2795_v15 = vadd.f32 %v10752_v20, %v8870_v63  ;;  %v10753_v36 = vld [vmem:[#allocation21_spill] sm:$0xff] }
 0x445   : > { %3778 = vrot.lane.b32.xlu0 %v3768_v59, %s5316_s17  ;;  %v2892_v37 = vsel %vm740_vm1, %v10751_v35, %v10750_v25  ;;  %v8988_v5 = vpop.permute.xlu0 %3270  ;;  %v8990_v56 = vadd.f32 %v3467_v58, %v3343_v10  ;;  %v2873_v53 = vadd.f32 %v8384_v0, %v2769_v39  ;;  %v10087_v35 = vrot.slane %v8969_v26, 2 }
 0x446   : > { %v8986_v59 = vadd.f32 %v3273_v31, %v3135_v55  ;;  %v8999_v12 = vstv %s8938_s30  ;;  %v2794_v34 = vadd.f32 %v10753_v36, %v8674_v3  ;;  %v3171_v55 = vadd.f32 %v8734_v18, %v3023_v47  ;;  %s5079_s30 = sld [smem:[#allocation2 + $0x87]] }
 0x447   : > { %v3247_v33 = vadd.f32 %v3238_v9, %v3099_v61  ;;  %v10088_v10 = vrot.slane %v8975_v46, 2  ;;  %v3795_v60 = vmul.f32 %v3791_v62, %v8497_v13  ;;  %v3794_v52 = vmul.f32 %v3791_v62, %v8449_v17  ;;  %v10756_v61 = vld [vmem:[#allocation68_spill] sm:$0xff] }
 0x448   : > { %v3291_v63 = vmul.f32 %v8749_v21, %v6785_v45  ;;  %v3292_v0 = vmul.f32 %v8749_v21, %v10423_v2  ;;  %v10754_v39 = vrot.slane %v8700_v14, 1  ;;  %v3793_v3 = vmul.f32 %v3791_v62, %v8402_v50 }
 0x449   : > { %v10755_v18 = vrot.slane %v8776_v23, 2  ;;  %v9020_v47 = vmul.f32 %v8999_v12, %v6750_v27  ;;  %v2918_v31 = vrot.slane %v8895_v4, 1  ;;  %v3362_v14 = vsel %vm1153_vm2, %v10088_v10, %v10087_v35 }
 0x44a   : > { %v2981_v25 = vsel %vm740_vm1, %v10754_v39, %v2980_v32  ;;  %3804 = vrot.lane.b32.xlu1 %v3794_v52, %s5316_s17  ;;  %v9032_v21 = vmul.f32 %v8999_v12, %v6768_v29  ;;  %v2902_v23 = vadd.f32 %v8891_v8, %v2795_v15  ;;  %v2901_v62 = vadd.f32 %v2892_v37, %v2794_v34  ;;  %v10757_v39 = vld [vmem:[#allocation64_spill] sm:$0xff] }
 0x44b   : > { %v3300_v9 = vsel %vm1153_vm2, %v3298_v48, %v10755_v18  ;;  %v2989_v58 = vadd.f32 %v2981_v25, %v2873_v53  ;;  %3806 = vrot.lane.b32.xlu2 %v3795_v60, %s5316_s17  ;;  %v3371_v32 = vadd.f32 %v3362_v14, %v3247_v33  ;;  %v2820_v48 = vadd.f32 %v10756_v61, %v8934_v54  ;;  %v10758_v15 = vld [vmem:[#allocation72_spill] sm:$0xff]  ;;  %v10759_v33 = vld [vmem:[#allocation202_spill] sm:$0xff] }
 0x44c   : > { %v3311_v4 = vadd.f32 %v3300_v9, %v3171_v55  ;;  %v3424_v53 = vpop.permute.xlu1 %3423  ;;  %v3303_v60 = vrot.slane %v3291_v63, 2  ;;  %v3305_v52 = vrot.slane %v3292_v0, 2  ;;  %v3026_v25 = vadd.f32 %v10757_v39, %v2902_v23  ;;  %v10760_v0 = vld [vmem:[#allocation78_spill] sm:$0xff] }
 0x44d   : > { %3802 = vrot.lane.b32.xlu0 %v3793_v3, %s5316_s17  ;;  %v3137_v20 = vadd.f32 %v8482_v28, %v2989_v58  ;;  %v3502_v36 = vpop.permute.xlu2 %3501  ;;  %v3277_v35 = vpop.permute.xlu0 %3276  ;;  %v3817_v37 = vstv %s8992_s6  ;;  %v3025_v34 = vadd.f32 %v10758_v15, %v2901_v62  ;;  %v3386_v28 = vrot.slane %v9020_v47, 2  ;;  %v10761_v58 = vld [vmem:[#allocation84_spill] sm:$0xff]  ;;  %v10762_v23 = vld [vmem:[#allocation74_spill] sm:$0xff]  ;;  %s5097_s6 = sld [smem:[#allocation2 + $0x44]] }
 0x44e   : > { %v9040_v18 = vadd.f32 %v3424_v53, %v3311_v4  ;;  %v9042_v8 = vadd.f32 %v3502_v36, %v3371_v32  ;;  %v10089_v54 = vrot.slane %v9032_v21, 2  ;;  %v2649_v63 = vmul.f32 %v10759_v33, %v6750_v27  ;;  %v10763_v4 = vld [vmem:[#allocation24_spill] sm:$0xff]  ;;  %v10767_v33 = vld [vmem:[#allocation79_spill] sm:$0xff] }
 0x44f   : > { %v9048_v55 = vadd.f32 %v3277_v35, %v3137_v20  ;;  %v2658_v3 = vmul.f32 %v10760_v0, %v6732_v19  ;;  %v2934_v9 = vmul.f32 %v8874_v43, %v6732_v19  ;;  %v3174_v14 = vadd.f32 %v10761_v58, %v3026_v25  ;;  %v10764_v35 = vld [vmem:[#allocation62_spill] sm:$0xff]  ;;  %v10765_v53 = vld [vmem:[#allocation80_spill] sm:$0xff] }
 0x450   : > { %v2819_v62 = vadd.f32 %v10763_v4, %v10762_v23  ;;  %v3173_v32 = vadd.f32 %v10764_v35, %v3025_v34  ;;  %v3820_v61 = vmul.f32 %v3817_v37, %v8449_v17  ;;  %v3819_v20 = vmul.f32 %v3817_v37, %v8402_v50 }
 0x451   : > { %v2653_v36 = vadd.f32 %v2649_v63, %v10765_v53  ;;  %v10766_v39 = vrot.slane %v8823_v16, 1  ;;  %v10768_v0 = vrot.slane %v10767_v33, 1  ;;  %v3818_v25 = vmul.f32 %v3817_v37, %v8347_v44  ;;  %v10769_v63 = vld [vmem:[#allocation69_spill] sm:$0xff] }
 0x452   : > { %v2945_v23 = vrot.slane %v8921_v22, 1  ;;  %3828 = vrot.lane.b32.xlu1 %v3819_v20, %s5316_s17  ;;  %v3306_v34 = vsel %vm1153_vm2, %v3303_v60, %v3305_v52  ;;  %v3389_v16 = vsel %vm1153_vm2, %v3386_v28, %v10089_v54  ;;  %v3319_v35 = vmul.f32 %v8813_v51, %v6768_v29  ;;  %v10771_v52 = vld [vmem:[#allocation13_spill] sm:$0xff]  ;;  %v10775_v51 = vld [vmem:[#allocation83_spill] sm:$0xff] }
 0x453   : > { %v2921_v15 = vsel %vm740_vm1, %v2918_v31, %v10766_v39  ;;  %v2919_v10 = vsel %vm740_vm1, %v10768_v0, %v2918_v31  ;;  %3830 = vrot.lane.b32.xlu2 %v3820_v61, %s5316_s17  ;;  %v3314_v31 = vadd.f32 %v3306_v34, %v3174_v14  ;;  %v3399_v4 = vadd.f32 %v3389_v16, %v8986_v59  ;;  %v10772_v0 = vld [vmem:[#allocation32_spill] sm:$0xff]  ;;  %v10773_v59 = vld [vmem:[#allocation73_spill] sm:$0xff] }
 0x454   : > { %v2930_v58 = vadd.f32 %v2921_v15, %v2820_v48  ;;  %v10770_v48 = vrot.slane %v10769_v63, 2  ;;  %v2741_v61 = vadd.f32 %v10771_v52, %v2653_v36  ;;  %v2929_v20 = vadd.f32 %v2919_v10, %v2819_v62  ;;  %v3430_v39 = vpop.permute.xlu1 %3429  ;;  %v10774_v16 = vld [vmem:[#allocation37_spill] sm:$0xff]  ;;  %v10776_v36 = vld [vmem:[#allocation47_spill] sm:$0xff] }
 0x455   : > { %3826 = vrot.lane.b32.xlu0 %v3818_v25, %s5316_s17  ;;  %v2944_v53 = vrot.slane %v2934_v9, 1  ;;  %v3537_v33 = vpop.permute.xlu2 %3536  ;;  %v9090_v25 = vadd.f32 %v3430_v39, %v3314_v31  ;;  %v2740_v29 = vadd.f32 %v10774_v16, %v10773_v59  ;;  %v2743_v10 = vadd.f32 %v10776_v36, %v10775_v51  ;;  %v10777_v9 = vld [vmem:[#allocation77_spill] sm:$0xff]  ;;  %v10778_v63 = vld [vmem:[#allocation31_spill] sm:$0xff] }
 0x456   : > { %v3304_v22 = vsel %vm1153_vm2, %v10770_v48, %v3303_v60  ;;  %v3062_v54 = vadd.f32 %v10772_v0, %v2930_v58  ;;  %v3428_v14 = vpop.permute.xlu0 %3427  ;;  %v9092_v34 = vadd.f32 %v3537_v33, %v3399_v4  ;;  %v3843_v60 = vstv %s9045_s7  ;;  %v10779_v4 = vld [vmem:[#allocation34_spill] sm:$0xff]  ;;  %v10780_v39 = vld [vmem:[#allocation59_spill] sm:$0xff]  ;;  %v10781_v16 = vld [vmem:[#allocation61_spill] sm:$0xff]  ;;  %s5098_s7 = sld [smem:[#allocation2 + $0x68]] }
 0x457   : > { %v3313_v15 = vadd.f32 %v3304_v22, %v3173_v32  ;;  %v3061_v62 = vadd.f32 %v10777_v9, %v2929_v20  ;;  %v2845_v58 = vadd.f32 %v10778_v63, %v2741_v61  ;;  %v2963_v31 = vmul.f32 %v8686_v6, %v6732_v19 }
 0x458   : > { %v3210_v48 = vadd.f32 %v8854_v38, %v3062_v54  ;;  %v3330_v22 = vrot.slane %v3319_v35, 2  ;;  %v2844_v52 = vadd.f32 %v10779_v4, %v2740_v29  ;;  %v3845_v0 = vmul.f32 %v3843_v60, %v8402_v50  ;;  %v10786_v4 = vld [vmem:[#allocation30_spill] sm:$0xff] }
 0x459   : > { %v9102_v32 = vadd.f32 %v3428_v14, %v3313_v15  ;;  %v3209_v33 = vadd.f32 %v10780_v39, %v3061_v62  ;;  %v3844_v59 = vmul.f32 %v3843_v60, %v8347_v44  ;;  %v2662_v20 = vadd.f32 %v2658_v3, %v10781_v16  ;;  %v10787_v16 = vld [vmem:[#allocation33_spill] sm:$0xff] }
 0x45a   : > { %v2948_v61 = vsel %vm740_vm1, %v2945_v23, %v2947_v42  ;;  %v2946_v15 = vsel %vm740_vm1, %v2944_v53, %v2945_v23  ;;  %v3821_v6 = vmul.f32 %v3817_v37, %v8497_v13  ;;  %v2938_v38 = vmul.f32 %v8874_v43, %v10423_v2  ;;  %v10784_v53 = vld [vmem:[#allocation23_spill] sm:$0xff] }
 0x45b   : > { %3854 = vrot.lane.b32.xlu2 %v3845_v0, %s5315_s16  ;;  %3852 = vrot.lane.b32.xlu1 %v3844_v59, %s5315_s16  ;;  %v10782_v54 = vrot.slane %v8908_v57, 2  ;;  %v3347_v49 = vmul.f32 %v8952_v1, %v6750_v27  ;;  %v2958_v42 = vadd.f32 %v2948_v61, %v2845_v58  ;;  %v10783_v37 = vrot.slane %v8845_v41, 2  ;;  %v10785_v27 = vld [vmem:[#allocation63_spill] sm:$0xff] }
 0x45c   : > { %v3346_v23 = vmul.f32 %v8952_v1, %v6732_v19  ;;  %v2766_v14 = vadd.f32 %v10784_v53, %v2662_v20  ;;  %v2973_v57 = vrot.slane %v2963_v31, 1  ;;  %v2957_v29 = vadd.f32 %v2946_v15, %v2844_v52  ;;  %v3465_v51 = vpop.permute.xlu1 %3464  ;;  %v10788_v20 = vld [vmem:[#allocation198_spill] sm:$0xff] }
 0x45d   : > { %v3333_v35 = vsel %vm1153_vm2, %v3330_v22, %v10782_v54  ;;  %3832 = vrot.lane.b32.xlu0 %v3821_v6, %s5316_s17  ;;  %v3331_v43 = vsel %vm1153_vm2, %v10783_v37, %v3330_v22  ;;  %v3572_v9 = vpop.permute.xlu2 %3571  ;;  %v3098_v62 = vadd.f32 %v10785_v27, %v2958_v42  ;;  %v3869_v41 = vstv %s9095_s8  ;;  %v10789_v15 = vld [vmem:[#allocation70_spill] sm:$0xff]  ;;  %s5099_s8 = sld [smem:[#allocation2 + $0x8c]] }
 0x45e   : > { %v3342_v3 = vadd.f32 %v3333_v35, %v3210_v48  ;;  %v3341_v36 = vadd.f32 %v3331_v43, %v3209_v33  ;;  %v3463_v58 = vpop.permute.xlu0 %3462  ;;  %v9136_v48 = vadd.f32 %v3572_v9, %v9040_v18  ;;  %v3097_v22 = vadd.f32 %v10786_v4, %v2957_v29  ;;  %v10793_v29 = vld [vmem:[#allocation199_spill] sm:$0xff] }
 0x45f   : > { %v2951_v39 = vrot.slane %v2938_v38, 1  ;;  %v3357_v59 = vrot.slane %v3347_v49, 2  ;;  %v2870_v31 = vadd.f32 %v10787_v16, %v2766_v14  ;;  %v3246_v52 = vadd.f32 %v8927_v11, %v3098_v62 }
 0x460   : > { %v3474_v63 = vadd.f32 %v3465_v51, %v3342_v3  ;;  %v9140_v0 = vadd.f32 %v3463_v58, %v3341_v36  ;;  %v3356_v33 = vrot.slane %v3346_v23, 2  ;;  %v2847_v61 = vadd.f32 %v10788_v20, %v2743_v10 }
 0x461   : > { %v3245_v6 = vadd.f32 %v10789_v15, %v3097_v22  ;;  %v3870_v54 = vmul.f32 %v3869_v41, %v8347_v44  ;;  %v3847_v18 = vmul.f32 %v3843_v60, %v8497_v13  ;;  %v10790_v35 = vrot.slane %v8878_v7, 1  ;;  %v10795_v22 = vld [vmem:[#allocation81_spill] sm:$0xff] }
 0x462   : > { %v3846_v42 = vmul.f32 %v3843_v60, %v8449_v17  ;;  %v10791_v49 = vrot.slane %v8882_v30, 1  ;;  %v10792_v11 = vrot.slane %v8975_v46, 2  ;;  %v3375_v37 = vmul.f32 %v8999_v12, %v6732_v19  ;;  %v10794_v19 = vld [vmem:[#allocation75_spill] sm:$0xff] }
 0x463   : > { %v2975_v38 = vsel %vm740_vm1, %v2973_v57, %v10790_v35  ;;  %3878 = vrot.lane.b32.xlu2 %v3870_v54, %s5315_s16  ;;  %3858 = vrot.lane.b32.xlu1 %v3847_v18, %s5315_s16  ;;  %v3358_v60 = vsel %vm1153_vm2, %v3356_v33, %v3357_v59  ;;  %v3350_v30 = vmul.f32 %v8952_v1, %v10423_v2  ;;  %v10796_v20 = vrot.slane %v8969_v26, 2 }
 0x464   : > { %v2952_v3 = vsel %vm740_vm1, %v10791_v49, %v2951_v39  ;;  %v3360_v10 = vsel %vm1153_vm2, %v3357_v59, %v10792_v11  ;;  %v2986_v7 = vadd.f32 %v2975_v38, %v2870_v31  ;;  %v3500_v53 = vpop.permute.xlu1 %3499  ;;  %v3369_v14 = vadd.f32 %v3358_v60, %v3245_v6 }
 0x465   : > { %3856 = vrot.lane.b32.xlu0 %v3846_v42, %s5315_s16  ;;  %v3370_v43 = vadd.f32 %v3360_v10, %v3246_v52  ;;  %v2960_v23 = vadd.f32 %v2952_v3, %v2847_v61  ;;  %v3578_v57 = vpop.permute.xlu2 %3577  ;;  %v3385_v58 = vrot.slane %v3375_v37, 2  ;;  %v3363_v1 = vrot.slane %v3350_v30, 2  ;;  %v10798_v10 = vld [vmem:[#allocation87_spill] sm:$0xff] }
 0x466   : > { %v3134_v46 = vadd.f32 %v10793_v29, %v2986_v7  ;;  %v3498_v36 = vpop.permute.xlu0 %3497  ;;  %v9168_v9 = vadd.f32 %v3578_v57, %v9090_v25  ;;  %v3873_v59 = vmul.f32 %v3869_v41, %v8497_v13  ;;  %v3872_v16 = vmul.f32 %v3869_v41, %v8449_v17 }
 0x467   : > { %v3510_v51 = vadd.f32 %v3500_v53, %v3370_v43  ;;  %v3100_v27 = vadd.f32 %v10794_v19, %v2960_v23  ;;  %v9171_v62 = vadd.f32 %v3498_v36, %v3369_v14  ;;  %v3871_v31 = vmul.f32 %v3869_v41, %v8402_v50 }
 0x468   : > { %v3282_v4 = vadd.f32 %v8988_v5, %v3134_v46  ;;  %v3387_v25 = vsel %vm1153_vm2, %v3385_v58, %v3386_v28  ;;  %v3378_v5 = vmul.f32 %v8999_v12, %v6785_v45  ;;  %v3379_v52 = vmul.f32 %v8999_v12, %v10423_v2 }
 0x469   : > { %v3248_v39 = vadd.f32 %v10795_v22, %v3100_v27  ;;  %v3364_v41 = vsel %vm1153_vm2, %v10796_v20, %v3363_v1  ;;  %v3895_v28 = vstv %s5086_s9  ;;  %v10797_v49 = vrot.slane %v9032_v21, 2  ;;  %s5104_s9 = sld [smem:[#allocation2 + $0x22]] }
 0x46a   : > { %v3398_v33 = vadd.f32 %v3387_v25, %v3282_v4  ;;  %v3390_v35 = vrot.slane %v3378_v5, 2  ;;  %v3392_v2 = vrot.slane %v3379_v52, 2  ;;  %v3898_v12 = vmul.f32 %v3895_v28, %v8449_v17  ;;  %v10799_v25 = vld [vmem:[#allocation66_spill] sm:$0xff] }
 0x46b   : > { %3884 = vrot.lane.b32.xlu2 %v3873_v59, %s5315_s16  ;;  %3882 = vrot.lane.b32.xlu1 %v3872_v16, %s5315_s16  ;;  %v3372_v15 = vadd.f32 %v3364_v41, %v3248_v39  ;;  %v3897_v26 = vmul.f32 %v3895_v28, %v8402_v50  ;;  %v3896_v38 = vmul.f32 %v3895_v28, %v8347_v44  ;;  %v3921_v23 = vstv %s5087_s10  ;;  %s5088_s10 = sld [smem:[#allocation2 + $0x1e]] }
 0x46c   : > { %v3535_v61 = vpop.permute.xlu1 %3534  ;;  %v3391_v3 = vsel %vm1153_vm2, %v10797_v49, %v3390_v35  ;;  %v4063_v14 = vstv %s5092_s11  ;;  %v3923_v57 = vmul.f32 %v3921_v23, %v8402_v50  ;;  %v3899_v21 = vmul.f32 %v3895_v28, %v8497_v13  ;;  %s5105_s11 = sld [smem:[#allocation2 + $0x46]] }
 0x46d   : > { %3880 = vrot.lane.b32.xlu0 %v3871_v31, %s5315_s16  ;;  %v3613_v6 = vpop.permute.xlu2 %3612  ;;  %v3546_v54 = vadd.f32 %v3535_v61, %v3398_v33  ;;  %v3400_v37 = vadd.f32 %v3391_v3, %v10798_v10  ;;  %v4064_v29 = vmul.f32 %v4063_v14, %v8347_v44  ;;  %v4065_v46 = vmul.f32 %v4063_v14, %v8402_v50 }
 0x46e   : > { %v3504_v47 = vpop.permute.xlu0 %3503  ;;  %v9191_v18 = vadd.f32 %v3613_v6, %v3474_v63  ;;  %v3393_v63 = vsel %vm1153_vm2, %v3390_v35, %v3392_v2  ;;  %v3925_v39 = vmul.f32 %v3921_v23, %v8497_v13  ;;  %v4067_v59 = vmul.f32 %v4063_v14, %v8497_v13 }
 0x46f   : > { %v9193_v45 = vadd.f32 %v3504_v47, %v3372_v15  ;;  %v3401_v42 = vadd.f32 %v3393_v63, %v9048_v55  ;;  %v3922_v55 = vmul.f32 %v3921_v23, %v8347_v44  ;;  %v4074_v4 = vrot.slane %v4064_v29, 1 }
 0x470   : > { %v4075_v1 = vrot.slane %v4065_v46, 1  ;;  %v3924_v31 = vmul.f32 %v3921_v23, %v8449_v17  ;;  %v4066_v5 = vmul.f32 %v4063_v14, %v8449_v17  ;;  %v4079_v33 = vrot.slane %v4067_v59, 1 }
 0x471   : > { %v4100_v6 = vstv %s5093_s12  ;;  %v9240_v28 = vstv %s5076_s13  ;;  %v4137_v23 = vstv %s5094_s14  ;;  %s5089_s12 = sld [smem:[#allocation2 + $0x42]] }
 0x472   : > { %v4076_v16 = vsel %vm740_vm1, %v4074_v4, %v4075_v1  ;;  %v4077_v47 = vrot.slane %v4066_v5, 1  ;;  %v4102_v35 = vmul.f32 %v4100_v6, %v8402_v50  ;;  %v4103_v2 = vmul.f32 %v4100_v6, %v8449_v17  ;;  %s5106_s13 = sld [smem:[#allocation2 + $0x6a]] }
 0x473   : > { %3908 = vrot.lane.b32.xlu2 %v3898_v12, %s5315_s16  ;;  %3906 = vrot.lane.b32.xlu1 %v3897_v26, %s5315_s16  ;;  %v3702_v26 = vmul.f32 %v9240_v28, %v8449_v17  ;;  %v4101_v63 = vmul.f32 %v4100_v6, %v8347_v44  ;;  %v4139_v29 = vmul.f32 %v4137_v23, %v8402_v50  ;;  %s5090_s14 = sld [smem:[#allocation2 + $0x66]] }
 0x474   : > { %v3541_v11 = vpop.permute.xlu1 %3540  ;;  %v4080_v12 = vsel %vm740_vm1, %v4077_v47, %v4079_v33  ;;  %v4114_v10 = vrot.slane %v4103_v2, 1 }
 0x475   : > { %3904 = vrot.lane.b32.xlu0 %v3896_v38, %s5315_s16  ;;  %v3648_v7 = vpop.permute.xlu2 %3647  ;;  %v3549_v43 = vadd.f32 %v3541_v11, %v3401_v42  ;;  %v4104_v38 = vmul.f32 %v4100_v6, %v8497_v13  ;;  %v4112_v11 = vrot.slane %v4102_v35, 1  ;;  %v4149_v59 = vrot.slane %v4139_v29, 1 }
 0x476   : > { %v9207_v30 = vadd.f32 %v3648_v7, %v3510_v51 }
 0x477   : > { %v3539_v60 = vpop.permute.xlu0 %3538  ;;  %v4115_v46 = vsel %vm740_vm1, %v4112_v11, %v4114_v10 }
 0x478   : > { %v9209_v53 = vadd.f32 %v3539_v60, %v3400_v37  ;;  %v4116_v60 = vrot.slane %v4104_v38, 1 }
 0x47b   : > { %3932 = vrot.lane.b32.xlu2 %v3923_v57, %s5315_s16  ;;  %3930 = vrot.lane.b32.xlu1 %v3922_v55, %s5315_s16  ;;  %v4111_v57 = vrot.slane %v4101_v63, 1  ;;  %v9260_v55 = vstv %s5077_s15  ;;  %s5107_s15 = sld [smem:[#allocation2 + $0x8e]] }
 0x47c   : > { %v3576_v51 = vpop.permute.xlu1 %3575 }
 0x47d   : > { %3910 = vrot.lane.b32.xlu0 %v3899_v21, %s5315_s16  ;;  %v3683_v36 = vpop.permute.xlu2 %3682  ;;  %v3585_v19 = vadd.f32 %v3576_v51, %v9102_v32  ;;  %v4068_v32 = vmul.f32 %v4063_v14, %v10799_v25  ;;  %v4138_v21 = vmul.f32 %v4137_v23, %v8347_v44  ;;  %v3711_v51 = vmul.f32 %v9260_v55, %v8402_v50 }
 0x47e   : > { %v9220_v58 = vadd.f32 %v3683_v36, %v3546_v54  ;;  %v4140_v36 = vmul.f32 %v4137_v23, %v8449_v17 }
 0x47f   : > { %v3574_v27 = vpop.permute.xlu0 %3573  ;;  %v4081_v15 = vrot.slane %v4068_v32, 1  ;;  %v3706_v42 = vadd.f32 %v3702_v26, %v3585_v19  ;;  %v4105_v19 = vmul.f32 %v4100_v6, %v10799_v25  ;;  %v4142_v6 = vmul.f32 %v4137_v23, %v10799_v25 }
 0x480   : > { %v9223_v22 = vadd.f32 %v3574_v27, %v8856_v40  ;;  %v4151_v5 = vrot.slane %v4140_v36, 1 }
 0x483   : > { %4083 = vrot.lane.b32.xlu2 %v4076_v16, %s5316_s17  ;;  %3936 = vrot.lane.b32.xlu1 %v3925_v39, %s5315_s16  ;;  %v4148_v39 = vrot.slane %v4138_v21, 1  ;;  %v3700_v21 = vmul.f32 %v9240_v28, %v8347_v44 }
 0x484   : > { %v3611_v40 = vpop.permute.xlu1 %3610 }
 0x485   : > { %3934 = vrot.lane.b32.xlu0 %v3924_v31, %s5315_s16  ;;  %v3689_v52 = vpop.permute.xlu2 %3688  ;;  %v3621_v20 = vadd.f32 %v3611_v40, %v9140_v0  ;;  %v4082_v0 = vsel %vm740_vm1, %v4079_v33, %v4081_v15  ;;  %v9280_v33 = vstv %s5078_s23  ;;  %v4150_v15 = vsel %vm740_vm1, %v4148_v39, %v4149_v59  ;;  %s5091_s23 = sld [smem:[#allocation2 + $0x8a]] }
 0x486   : > { %v9235_v61 = vadd.f32 %v3689_v52, %v3549_v43  ;;  %v4118_v52 = vrot.slane %v4105_v19, 1 }
 0x487   : > { %v3609_v41 = vpop.permute.xlu0 %3608  ;;  %v3715_v27 = vadd.f32 %v3711_v51, %v3621_v20  ;;  %v4141_v20 = vmul.f32 %v4137_v23, %v8497_v13  ;;  %v3701_v23 = vmul.f32 %v9240_v28, %v8402_v50  ;;  %v3704_v51 = vadd.f32 %v3700_v21, %v9136_v48 }
 0x488   : > { %v9238_v54 = vadd.f32 %v3609_v41, %v8929_v24  ;;  %v4078_v24 = vsel %vm740_vm1, %v4075_v1, %v4077_v47  ;;  %v4174_v41 = vstv %s5095_s26  ;;  %v4152_v47 = vsel %vm740_vm1, %v4149_v59, %v4151_v5  ;;  %s5108_s26 = sld [smem:[#allocation2 + $0x23]] }
 0x489   : > { %v4175_v35 = vmul.f32 %v4174_v41, %v8347_v44  ;;  %v4119_v2 = vsel %vm740_vm1, %v4116_v60, %v4118_v52  ;;  %v4153_v38 = vrot.slane %v4141_v20, 1  ;;  %v4177_v29 = vmul.f32 %v4174_v41, %v8449_v17 }
 0x48a   : > { %v4211_v59 = vstv %s5096_s25  ;;  %v3710_v52 = vmul.f32 %v9260_v55, %v8347_v44  ;;  %v3712_v21 = vmul.f32 %v9260_v55, %v8449_v17  ;;  %s9605_s25 = sld [smem:[#allocation2 + $0x47]] }
 0x48b   : > { %4087 = vrot.lane.b32.xlu1 %v4080_v12, %s5316_s17  ;;  %4089 = vrot.lane.b32.xlu2 %v4082_v0, %s5316_s17  ;;  %v4213_v48 = vmul.f32 %v4211_v59, %v8402_v50 }
 0x48c   : > { %v3646_v49 = vpop.permute.xlu1 %3645 }
 0x48d   : > { %4085 = vrot.lane.b32.xlu0 %v4078_v24, %s5316_s17  ;;  %v3753_v3 = vpop.permute.xlu2 %3752  ;;  %v3657_v37 = vadd.f32 %v3646_v49, %v9171_v62  ;;  %v4117_v62 = vsel %vm740_vm1, %v4114_v10, %v4116_v60  ;;  %v4155_v24 = vrot.slane %v4142_v6, 1  ;;  %v4178_v60 = vmul.f32 %v4174_v41, %v8497_v13 }
 0x48e   : > { %v9255_v43 = vadd.f32 %v3753_v3, %v3706_v42  ;;  %v4185_v3 = vrot.slane %v4175_v35, 1  ;;  %v4215_v6 = vmul.f32 %v4211_v59, %v8497_v13  ;;  %v4212_v35 = vmul.f32 %v4211_v59, %v8347_v44 }
 0x48f   : > { %v3615_v7 = vpop.permute.xlu0 %3614  ;;  %v4190_v19 = vrot.slane %v4178_v60, 1  ;;  %v4248_v60 = vstv %s5097_s6  ;;  %s5100_s6 = sld [smem:[#allocation2 + $0x21]] }
 0x490   : > { %v9258_v14 = vadd.f32 %v3615_v7, %v8990_v56  ;;  %v4113_v56 = vsel %vm740_vm1, %v4111_v57, %v4112_v11  ;;  %v4156_v7 = vsel %vm740_vm1, %v4153_v38, %v4155_v24  ;;  %v4179_v57 = vmul.f32 %v4174_v41, %v10799_v25 }
 0x492   : > { %v4192_v39 = vrot.slane %v4179_v57, 1  ;;  %v4251_v57 = vmul.f32 %v4248_v60, %v8449_v17 }
 0x493   : > { %4122 = vrot.lane.b32.xlu1 %v4115_v46, %s5316_s17  ;;  %4124 = vrot.lane.b32.xlu2 %v4117_v62, %s5316_s17  ;;  %v3705_v46 = vadd.f32 %v3701_v23, %v9223_v22  ;;  %v9323_v22 = vstv %s5079_s30  ;;  %v4249_v23 = vmul.f32 %v4248_v60, %v8347_v44  ;;  %s5111_s30 = sld [smem:[#allocation2 + $0x8f]] }
 0x494   : > { %v3652_v4 = vpop.permute.xlu1 %3651  ;;  %v3732_v20 = vmul.f32 %v9323_v22, %v8449_v17 }
 0x495   : > { %4120 = vrot.lane.b32.xlu0 %v4113_v56, %s5316_s17  ;;  %v3777_v1 = vpop.permute.xlu2 %3776  ;;  %v3660_v16 = vadd.f32 %v3652_v4, %v9193_v45  ;;  %v3720_v45 = vmul.f32 %v9280_v33, %v8347_v44 }
 0x496   : > { %v9275_v32 = vadd.f32 %v3777_v1, %v3715_v27 }
 0x497   : > { %v3650_v31 = vpop.permute.xlu0 %3649  ;;  %v3724_v12 = vadd.f32 %v3720_v45, %v3657_v37  ;;  %v3703_v45 = vmul.f32 %v9240_v28, %v8497_v13 }
 0x498   : > { %v9278_v40 = vadd.f32 %v3650_v31, %v9042_v8  ;;  %v4176_v8 = vmul.f32 %v4174_v41, %v8402_v50 }
 0x49a   : > { %v4186_v11 = vrot.slane %v4176_v8, 1  ;;  %v3714_v8 = vadd.f32 %v3710_v52, %v9238_v54  ;;  %v4250_v54 = vmul.f32 %v4248_v60, %v8402_v50  ;;  %v4262_v52 = vrot.slane %v4251_v57, 1 }
 0x49b   : > { %4157 = vrot.lane.b32.xlu1 %v4150_v15, %s5316_s17  ;;  %4159 = vrot.lane.b32.xlu2 %v4152_v47, %s5316_s17  ;;  %v4193_v15 = vsel %vm740_vm1, %v4190_v19, %v4192_v39 }
 0x49c   : > { %v3687_v0 = vpop.permute.xlu1 %3686  ;;  %v4187_v37 = vsel %vm740_vm1, %v4185_v3, %v4186_v11 }
 0x49d   : > { %4126 = vrot.lane.b32.xlu0 %v4119_v2, %s5316_s17  ;;  %v3801_v26 = vpop.permute.xlu2 %3800  ;;  %v3696_v63 = vadd.f32 %v3687_v0, %v9209_v53  ;;  %v3723_v53 = vmul.f32 %v9280_v33, %v8497_v13 }
 0x49e   : > { %v9295_v49 = vadd.f32 %v3801_v26, %v3724_v12  ;;  %v3707_v26 = vadd.f32 %v3703_v45, %v9168_v9 }
 0x49f   : > { %v3685_v42 = vpop.permute.xlu0 %3684  ;;  %v3727_v62 = vadd.f32 %v3723_v53, %v3660_v16  ;;  %v4214_v16 = vmul.f32 %v4211_v59, %v8449_v17  ;;  %v3736_v2 = vadd.f32 %v3732_v20, %v3696_v63  ;;  %v3713_v53 = vmul.f32 %v9260_v55, %v8497_v13 }
 0x4a0   : > { %v9298_v10 = vadd.f32 %v3685_v42, %v9092_v34  ;;  %v4154_v34 = vsel %vm740_vm1, %v4151_v5, %v4153_v38  ;;  %v4188_v5 = vrot.slane %v4177_v29, 1  ;;  %v4223_v38 = vrot.slane %v4213_v48, 1 }
 0x4a1   : > { %v4225_v24 = vrot.slane %v4214_v16, 1  ;;  %v4216_v29 = vmul.f32 %v4211_v59, %v10799_v25  ;;  %v4285_v16 = vstv %s5098_s7  ;;  %s5101_s7 = sld [smem:[#allocation2 + $0x45]] }
 0x4a2   : > { %v4191_v41 = vsel %vm740_vm1, %v4188_v5, %v4190_v19  ;;  %v4189_v47 = vsel %vm740_vm1, %v4186_v11, %v4188_v5  ;;  %v4260_v19 = vrot.slane %v4250_v54, 1  ;;  %v4287_v20 = vmul.f32 %v4285_v16, %v8402_v50 }
 0x4a3   : > { %4163 = vrot.lane.b32.xlu1 %v4156_v7, %s5316_s17  ;;  %4194 = vrot.lane.b32.xlu2 %v4187_v37, %s5316_s17  ;;  %v4227_v7 = vrot.slane %v4215_v6, 1  ;;  %v4222_v37 = vrot.slane %v4212_v35, 1  ;;  %v4226_v63 = vsel %vm740_vm1, %v4223_v38, %v4225_v24  ;;  %v4229_v55 = vrot.slane %v4216_v29, 1 }
 0x4a4   : > { %v3751_v36 = vpop.permute.xlu1 %3750  ;;  %v3730_v54 = vmul.f32 %v9323_v22, %v8347_v44 }
 0x4a5   : > { %4161 = vrot.lane.b32.xlu0 %v4154_v34, %s5316_s17  ;;  %v3807_v56 = vpop.permute.xlu2 %3806  ;;  %v3761_v4 = vadd.f32 %v3751_v36, %v3705_v46  ;;  %v4228_v9 = vsel %vm740_vm1, %v4225_v24, %v4227_v7  ;;  %v4224_v34 = vsel %vm740_vm1, %v4222_v37, %v4223_v38  ;;  %v3717_v46 = vadd.f32 %v3713_v53, %v9258_v14 }
 0x4a6   : > { %v9317_v1 = vadd.f32 %v3807_v56, %v3727_v62  ;;  %v3716_v36 = vadd.f32 %v3712_v21, %v9191_v18  ;;  %v4259_v56 = vrot.slane %v4249_v23, 1  ;;  %v4253_v14 = vmul.f32 %v4248_v60, %v10799_v25 }
 0x4a7   : > { %v3749_v27 = vpop.permute.xlu0 %3748  ;;  %v3722_v18 = vmul.f32 %v9280_v33, %v8449_v17  ;;  %v4230_v6 = vsel %vm740_vm1, %v4227_v7, %v4229_v55  ;;  %v4297_v7 = vrot.slane %v4287_v20, 1  ;;  %v4290_v23 = vmul.f32 %v4285_v16, %v10799_v25 }
 0x4a8   : > { %v9319_v31 = vadd.f32 %v3749_v27, %v3704_v51  ;;  %v4261_v59 = vsel %vm740_vm1, %v4259_v56, %v4260_v19 }
 0x4a9   : > { %v3726_v45 = vadd.f32 %v3722_v18, %v9278_v40 }
 0x4ab   : > { %4198 = vrot.lane.b32.xlu1 %v4191_v41, %s5316_s17  ;;  %4200 = vrot.lane.b32.xlu2 %v4193_v15, %s5316_s17  ;;  %v4252_v41 = vmul.f32 %v4248_v60, %v8497_v13  ;;  %v4263_v15 = vsel %vm740_vm1, %v4260_v19, %v4262_v52 }
 0x4ac   : > { %v3775_v12 = vpop.permute.xlu1 %3774 }
 0x4ad   : > { %4196 = vrot.lane.b32.xlu0 %v4189_v47, %s5316_s17  ;;  %v3831_v0 = vpop.permute.xlu2 %3830  ;;  %v3786_v42 = vadd.f32 %v3775_v12, %v3714_v8  ;;  %v3721_v47 = vmul.f32 %v9280_v33, %v8402_v50  ;;  %v4264_v12 = vrot.slane %v4252_v41, 1  ;;  %v4289_v33 = vmul.f32 %v4285_v16, %v8497_v13 }
 0x4ae   : > { %v9341_v3 = vadd.f32 %v3831_v0, %v3736_v2  ;;  %v4266_v0 = vrot.slane %v4253_v14, 1 }
 0x4af   : > { %v3755_v11 = vpop.permute.xlu0 %3754  ;;  %v3725_v2 = vadd.f32 %v3721_v47, %v9207_v30  ;;  %v3731_v30 = vmul.f32 %v9323_v22, %v8402_v50  ;;  %v4301_v21 = vrot.slane %v4289_v33, 1 }
 0x4b0   : > { %v9343_v28 = vadd.f32 %v3755_v11, %v3707_v26  ;;  %v4267_v37 = vsel %vm740_vm1, %v4264_v12, %v4266_v0 }
 0x4b3   : > { %4233 = vrot.lane.b32.xlu1 %v4226_v63, %s5315_s16  ;;  %4235 = vrot.lane.b32.xlu2 %v4228_v9, %s5315_s16  ;;  %v4288_v63 = vmul.f32 %v4285_v16, %v8449_v17  ;;  %v3735_v9 = vadd.f32 %v3731_v30, %v9298_v10 }
 0x4b4   : > { %v3781_v51 = vpop.permute.xlu1 %3780 }
 0x4b5   : > { %4231 = vrot.lane.b32.xlu0 %v4224_v34, %s5315_s16  ;;  %v3855_v62 = vpop.permute.xlu2 %3854  ;;  %v3789_v39 = vadd.f32 %v3781_v51, %v3717_v46  ;;  %v3734_v34 = vadd.f32 %v3730_v54, %v9220_v58  ;;  %v4303_v51 = vrot.slane %v4290_v23, 1  ;;  %v4299_v19 = vrot.slane %v4288_v63, 1 }
 0x4b6   : > { %v9361_v27 = vadd.f32 %v3855_v62, %v3761_v4  ;;  %v4286_v4 = vmul.f32 %v4285_v16, %v8347_v44  ;;  %v3733_v16 = vmul.f32 %v9323_v22, %v8497_v13 }
 0x4b7   : > { %v3779_v5 = vpop.permute.xlu0 %3778  ;;  %v4304_v58 = vsel %vm740_vm1, %v4301_v21, %v4303_v51  ;;  %v4300_v55 = vsel %vm740_vm1, %v4297_v7, %v4299_v19 }
 0x4b8   : > { %v9363_v48 = vadd.f32 %v3779_v5, %v3716_v36  ;;  %v4296_v11 = vrot.slane %v4286_v4, 1  ;;  %v4322_v36 = vstv %s5099_s8  ;;  %s5103_s8 = sld [smem:[#allocation2 + $0x8d]] }
 0x4b9   : > { %v4324_v5 = vmul.f32 %v4322_v36, %v8402_v50  ;;  %v4325_v10 = vmul.f32 %v4322_v36, %v8449_v17 }
 0x4ba   : > { %v4298_v40 = vsel %vm740_vm1, %v4296_v11, %v4297_v7 }
 0x4bb   : > { %4268 = vrot.lane.b32.xlu1 %v4261_v59, %s5315_s16  ;;  %4270 = vrot.lane.b32.xlu2 %v4263_v15, %s5315_s16  ;;  %v4323_v59 = vmul.f32 %v4322_v36, %v8347_v44  ;;  %v3737_v15 = vadd.f32 %v3733_v16, %v9235_v61  ;;  %v4334_v18 = vrot.slane %v4324_v5, 1  ;;  %v4336_v4 = vrot.slane %v4325_v10, 1 }
 0x4bc   : > { %v3805_v8 = vpop.permute.xlu1 %3804 }
 0x4bd   : > { %4237 = vrot.lane.b32.xlu0 %v4230_v6, %s5315_s16  ;;  %v3879_v35 = vpop.permute.xlu2 %3878  ;;  %v3814_v38 = vadd.f32 %v3805_v8, %v3726_v45  ;;  %v4333_v22 = vrot.slane %v4323_v59, 1  ;;  %v4337_v61 = vsel %vm740_vm1, %v4334_v18, %v4336_v4 }
 0x4be   : > { %v9381_v26 = vadd.f32 %v3879_v35, %v3786_v42  ;;  %v4265_v42 = vsel %vm740_vm1, %v4262_v52, %v4264_v12  ;;  %v4302_v52 = vsel %vm740_vm1, %v4299_v19, %v4301_v21  ;;  %v4475_v35 = vstv %s5104_s9  ;;  %s4770_s9 = sld [smem:[#allocation5]] }
 0x4bf   : > { %v3803_v24 = vpop.permute.xlu0 %3802  ;;  %v4476_v12 = vmul.f32 %v4475_v35, %v8347_v44  ;;  %v4477_v0 = vmul.f32 %v4475_v35, %v8402_v50  ;;  %v4335_v11 = vsel %vm740_vm1, %v4333_v22, %v4334_v18  ;;  %v4480_v19 = vmul.f32 %v4475_v35, %v10799_v25 }
 0x4c0   : > { %v9383_v60 = vadd.f32 %v3803_v24, %v3725_v2  ;;  %v9422_v2 = vstv %s5088_s10  ;;  %v4327_v24 = vmul.f32 %v4322_v36, %v10799_v25  ;;  %s242_s10 = sand.u32 1, %s5303_s19  }
 0x4c1   : > { %v3948_v7 = vmul.f32 %v9422_v2, %v8347_v44  ;;  %v9437_v33 = vmul.f32 %v9422_v2, %v8402_v50  ;;  %v4486_v30 = vrot.slane %v4476_v12, 2  ;;  %v4487_v23 = vrot.slane %v4477_v0, 2 }
 0x4c3   : > { %4274 = vrot.lane.b32.xlu1 %v4267_v37, %s5315_s16  ;;  %4305 = vrot.lane.b32.xlu2 %v4298_v40, %s5315_s16  ;;  %v3959_v21 = vrot.slane %v9437_v33, 1  ;;  %v4488_v51 = vsel %vm1153_vm2, %v4486_v30, %v4487_v23 }
 0x4c4   : > { %v3829_v57 = vpop.permute.xlu1 %3828 }
 0x4c5   : > { %4272 = vrot.lane.b32.xlu0 %v4265_v42, %s5315_s16  ;;  %v3885_v53 = vpop.permute.xlu2 %3884  ;;  %v3839_v46 = vadd.f32 %v3829_v57, %v3735_v9  ;;  %v4340_v9 = vrot.slane %v4327_v24, 1 }
 0x4c6   : > { %v9400_v29 = vadd.f32 %v3885_v53, %v3789_v39  ;;  %v4326_v39 = vmul.f32 %v4322_v36, %v8497_v13  ;;  %v4479_v36 = vmul.f32 %v4475_v35, %v8497_v13 }
 0x4c7   : > { %v3827_v62 = vpop.permute.xlu0 %3826 }
 0x4c8   : > { %v9402_v56 = vadd.f32 %v3827_v62, %v3734_v34  ;;  %v4338_v45 = vrot.slane %v4326_v39, 1  ;;  %v3958_v34 = vrot.slane %v3948_v7, 1  ;;  %v4512_v62 = vstv %s5105_s11  ;;  %s4922_s11 = sshll.u32 %s242_s10, 7 }
 0x4c9   : > { %v4513_v5 = vmul.f32 %v4512_v62, %v8347_v44  ;;  %v4514_v10 = vmul.f32 %v4512_v62, %v8402_v50  ;;  %v4491_v59 = vrot.slane %v4479_v36, 2  ;;  %v4515_v12 = vmul.f32 %v4512_v62, %v8449_v17 }
 0x4ca   : > { %v9502_v36 = vstv %s5090_s14  ;;  %s5117_s14 = sld [smem:[#allocation5 + $0x2]] }
 0x4cb   : > { %4309 = vrot.lane.b32.xlu1 %v4302_v52, %s5315_s16  ;;  %4311 = vrot.lane.b32.xlu2 %v4304_v58, %s5315_s16  ;;  %v9461_v52 = vmul.f32 %v9422_v2, %v8497_v13  ;;  %v3952_v58 = vmul.f32 %v9422_v2, %v10799_v25 }
 0x4cd   : > { %4307 = vrot.lane.b32.xlu0 %v4300_v55, %s5315_s16  ;;  %v3909_v41 = vpop.permute.xlu2 %3908  ;;  %v3853_v14 = vpop.permute.xlu1 %3852  ;;  %v3965_v22 = vrot.slane %v3952_v58, 1 }
 0x4ce   : > { %v9417_v20 = vadd.f32 %v3909_v41, %v3814_v38  ;;  %v3864_v6 = vadd.f32 %v3853_v14, %v9319_v31  ;;  %v4339_v38 = vsel %vm740_vm1, %v4336_v4, %v4338_v45  ;;  %v4478_v31 = vmul.f32 %v4475_v35, %v8449_v17 }
 0x4cf   : > { %v3833_v47 = vpop.permute.xlu0 %3832  ;;  %v4493_v41 = vrot.slane %v4480_v19, 2  ;;  %v4523_v4 = vrot.slane %v4513_v5, 2  ;;  %v3963_v35 = vrot.slane %v9461_v52, 1 }
 0x4d0   : > { %v9420_v8 = vadd.f32 %v3833_v47, %v3737_v15  ;;  %v4489_v53 = vrot.slane %v4478_v31, 2  ;;  %v4524_v47 = vrot.slane %v4514_v10, 2 }
 0x4d1   : > { %v3966_v24 = vsel %vm740_vm1, %v3963_v35, %v3965_v22 }
 0x4d2   : > { %v4525_v0 = vsel %vm1153_vm2, %v4523_v4, %v4524_v47 }
 0x4d3   : > { %4344 = vrot.lane.b32.xlu1 %v4337_v61, %s5315_s16  ;;  %4346 = vrot.lane.b32.xlu2 %v4339_v38, %s5315_s16  ;;  %v4516_v61 = vmul.f32 %v4512_v62, %v8497_v13  ;;  %v9478_v38 = vstv %s5089_s12  ;;  %s9848_s12 = scalar_lea.vmem [#allocation7], %s4922_s11  ;;  %s5261_s11 = scalar_lea.hbm %s10018_s5, 256 }
 0x4d4   : > { %v9488_v31 = vmul.f32 %v9478_v38, %v8497_v13  ;;  %v9493_v30 = vmul.f32 %v9478_v38, %v8449_v17 }
 0x4d5   : > { %4342 = vrot.lane.b32.xlu0 %v4335_v11, %s5315_s16  ;;  %v3933_v37 = vpop.permute.xlu2 %3932  ;;  %v3859_v40 = vpop.permute.xlu1 %3858 }
 0x4d6   : > { %v9440_v42 = vadd.f32 %v3933_v37, %v3839_v46  ;;  %v3867_v54 = vadd.f32 %v3859_v40, %v9343_v28  ;;  %v4341_v46 = vsel %vm740_vm1, %v4338_v45, %v4340_v9  ;;  %v4490_v28 = vsel %vm1153_vm2, %v4487_v23, %v4489_v53 }
 0x4d7   : > { %v3857_v63 = vpop.permute.xlu0 %3856  ;;  %v4526_v40 = vrot.slane %v4515_v12, 2  ;;  %v4549_v23 = vstv %s5106_s13  ;;  %v3990_v19 = vrot.slane %v9493_v30, 1  ;;  %s5112_s13 = sld [smem:[#allocation5 + $0x1]] }
 0x4d8   : > { %v9444_v57 = vadd.f32 %v3857_v63, %v9255_v43  ;;  %v3960_v43 = vsel %vm740_vm1, %v3958_v34, %v3959_v21  ;;  %v3974_v11 = vadd.f32 %v3966_v24, %v3867_v54  ;;  %v4528_v34 = vrot.slane %v4516_v61, 2 }
 0x4d9   : > { %v3971_v39 = vadd.f32 %v3960_v43, %v3864_v6  ;;  %v4494_v6 = vsel %vm1153_vm2, %v4491_v59, %v4493_v41  ;;  %v3992_v54 = vrot.slane %v9488_v31, 1  ;;  %v4527_v10 = vsel %vm1153_vm2, %v4524_v47, %v4526_v40 }
 0x4da   : > { %v4529_v5 = vsel %vm1153_vm2, %v4526_v40, %v4528_v34  ;;  %v4586_v47 = vstv %s5107_s15  ;;  %v9534_v61 = vstv %s5091_s23  ;;  %s5122_s15 = sld [smem:[#allocation5 + $0x3]]  ;;  %s5140_s23 = sshll.u32 %s5370_s22, 7 }
 0x4db   : > { %4495 = vrot.lane.b32.xlu1 %v4488_v51, %s5316_s17  ;;  %4497 = vrot.lane.b32.xlu2 %v4490_v28, %s5316_s17  ;;  %v4552_v28 = vmul.f32 %v4549_v23, %v8449_v17  ;;  %v3993_v58 = vsel %vm740_vm1, %v3990_v19, %v3992_v54  ;;  %v9550_v40 = vmul.f32 %v9534_v61, %v8402_v50  ;;  %s4827_s22 = sshll.u32 %s9848_s12, 4  ;;  %s4828_s22 = int_to_ptr.vmem [resolvable:$true] %s4827_s22 }
 0x4dd   : > { %4348 = vrot.lane.b32.xlu0 %v4341_v46, %s5315_s16  ;;  %v4084_v55 = vpop.permute.xlu2 %4083  ;;  %v3883_v16 = vpop.permute.xlu1 %3882  ;;  %v4551_v46 = vmul.f32 %v4549_v23, %v8402_v50  ;;  %v4563_v4 = vrot.slane %v4552_v28, 2 }
 0x4de   : > { %v9466_v14 = vadd.f32 %v4084_v55, %v3971_v39  ;;  %v3892_v15 = vadd.f32 %v3883_v16, %v9363_v48  ;;  %v4517_v48 = vmul.f32 %v4512_v62, %v10799_v25  ;;  %v9523_v39 = vmul.f32 %v9502_v36, %v8402_v50 }
 0x4df   : > { %v3881_v18 = vpop.permute.xlu0 %3880  ;;  %v9527_v55 = vmul.f32 %v9502_v36, %v8449_v17 }
 0x4e0   : > { %v9470_v45 = vadd.f32 %v3881_v18, %v9275_v32  ;;  %v4492_v32 = vsel %vm1153_vm2, %v4489_v53, %v4491_v59  ;;  %v4530_v62 = vrot.slane %v4517_v48, 2  ;;  %v4002_v16 = vadd.f32 %v3993_v58, %v3892_v15 }
 0x4e1   : > { %v4561_v18 = vrot.slane %v4551_v46, 2  ;;  %v4017_v15 = vrot.slane %v9523_v39, 1  ;;  %v4019_v24 = vrot.slane %v9527_v55, 1  ;;  %v4554_v46 = vmul.f32 %v4549_v23, %v10799_v25 }
 0x4e2   : > { %v4531_v43 = vsel %vm1153_vm2, %v4528_v34, %v4530_v62  ;;  %v4734_v55 = vstv %s5111_s30 }
 0x4e3   : > { %4501 = vrot.lane.b32.xlu1 %v4494_v6, %s5316_s17  ;;  %4532 = vrot.lane.b32.xlu2 %v4525_v0, %s5316_s17  ;;  %v4020_v62 = vsel %vm740_vm1, %v4017_v15, %v4019_v24 }
 0x4e5   : > { %4499 = vrot.lane.b32.xlu0 %v4492_v32, %s5316_s17  ;;  %v3907_v7 = vpop.permute.xlu1 %3906  ;;  %v4090_v37 = vpop.permute.xlu2 %4089 }
 0x4e6   : > { %v3917_v63 = vadd.f32 %v3907_v7, %v9383_v60  ;;  %v9496_v53 = vadd.f32 %v4090_v37, %v3974_v11  ;;  %v4550_v60 = vmul.f32 %v4549_v23, %v8347_v44  ;;  %v4587_v11 = vmul.f32 %v4586_v47, %v8347_v44 }
 0x4e7   : > { %v3905_v9 = vpop.permute.xlu0 %3904  ;;  %v9544_v7 = vmul.f32 %v4586_v47, %v8449_v17  ;;  %v4035_v37 = vmul.f32 %v9534_v61, %v8347_v44 }
 0x4e8   : > { %v9499_v51 = vadd.f32 %v3905_v9, %v9295_v49  ;;  %v9512_v49 = vmul.f32 %v4549_v23, %v8497_v13  ;;  %v4560_v32 = vrot.slane %v4550_v60, 2  ;;  %v4030_v28 = vadd.f32 %v4020_v62, %v3917_v63 }
 0x4e9   : > { %v4597_v60 = vrot.slane %v4587_v11, 2  ;;  %v4600_v58 = vrot.slane %v9544_v7, 2  ;;  %v4623_v23 = vstv %s5108_s26  ;;  %v4590_v7 = vmul.f32 %v4586_v47, %v8497_v13 }
 0x4ea   : > { %v4565_v0 = vrot.slane %v9512_v49, 2  ;;  %v4562_v34 = vsel %vm1153_vm2, %v4560_v32, %v4561_v18 }
 0x4eb   : > { %4536 = vrot.lane.b32.xlu1 %v4529_v5, %s5316_s17  ;;  %4538 = vrot.lane.b32.xlu2 %v4531_v43, %s5316_s17 }
 0x4ec   : > { %v4566_v9 = vsel %vm1153_vm2, %v4563_v4, %v4565_v0 }
 0x4ed   : > { %4534 = vrot.lane.b32.xlu0 %v4527_v10, %s5316_s17  ;;  %v3931_v59 = vpop.permute.xlu1 %3930  ;;  %v4125_v41 = vpop.permute.xlu2 %4124  ;;  %v3950_v10 = vmul.f32 %v9422_v2, %v8449_v17 }
 0x4ee   : > { %v3942_v22 = vadd.f32 %v3931_v59, %v9402_v56  ;;  %v9531_v12 = vadd.f32 %v4125_v41, %v4002_v16  ;;  %v4588_v56 = vmul.f32 %v4586_v47, %v8402_v50  ;;  %v4045_v16 = vrot.slane %v4035_v37, 1 }
 0x4ef   : > { %v3911_v6 = vpop.permute.xlu0 %3910  ;;  %v4046_v59 = vrot.slane %v9550_v40, 1  ;;  %v3961_v2 = vrot.slane %v3950_v10, 1  ;;  %v4591_v37 = vmul.f32 %v4586_v47, %v10799_v25  ;;  %v4039_v47 = vmul.f32 %v9534_v61, %v10799_v25 }
 0x4f0   : > { %v9537_v48 = vadd.f32 %v3911_v6, %v9317_v1  ;;  %v4564_v1 = vsel %vm1153_vm2, %v4561_v18, %v4563_v4  ;;  %v4598_v5 = vrot.slane %v4588_v56, 2  ;;  %v4567_v6 = vrot.slane %v4554_v46, 2 }
 0x4f1   : > { %v4047_v56 = vsel %vm740_vm1, %v4045_v16, %v4046_v59  ;;  %v3964_v62 = vsel %vm740_vm1, %v3961_v2, %v3963_v35  ;;  %v4602_v35 = vrot.slane %v4590_v7, 2 }
 0x4f2   : > { %v4599_v32 = vsel %vm1153_vm2, %v4597_v60, %v4598_v5  ;;  %v4601_v11 = vsel %vm1153_vm2, %v4598_v5, %v4600_v58  ;;  %v3973_v46 = vadd.f32 %v3964_v62, %v9444_v57  ;;  %v4058_v60 = vadd.f32 %v4047_v56, %v3942_v22 }
 0x4f3   : > { %4571 = vrot.lane.b32.xlu1 %v4564_v1, %s5316_s17  ;;  %4573 = vrot.lane.b32.xlu2 %v4566_v9, %s5316_s17  ;;  %v4625_v1 = vmul.f32 %v4623_v23, %v8402_v50  ;;  %v9587_v9 = vmul.f32 %v9534_v61, %v8497_v13  ;;  %v4604_v57 = vrot.slane %v4591_v37, 2  ;;  %v4628_v37 = vmul.f32 %v4623_v23, %v10799_v25 }
 0x4f5   : > { %4569 = vrot.lane.b32.xlu0 %v4562_v34, %s5316_s17  ;;  %v3937_v43 = vpop.permute.xlu1 %3936  ;;  %v4160_v49 = vpop.permute.xlu2 %4159  ;;  %v4568_v34 = vsel %vm1153_vm2, %v4565_v0, %v4567_v6  ;;  %v3977_v0 = vmul.f32 %v9478_v38, %v8347_v44  ;;  %v4635_v33 = vrot.slane %v4625_v1, 2  ;;  %v4050_v22 = vrot.slane %v9587_v9, 1 }
 0x4f6   : > { %v3945_v41 = vadd.f32 %v3937_v43, %v9420_v8  ;;  %v9569_v4 = vadd.f32 %v4160_v49, %v4030_v28  ;;  %v4624_v8 = vmul.f32 %v4623_v23, %v8347_v44  ;;  %v3962_v28 = vsel %vm740_vm1, %v3959_v21, %v3961_v2 }
 0x4f7   : > { %v3935_v18 = vpop.permute.xlu0 %3934  ;;  %v3972_v52 = vadd.f32 %v3962_v28, %v9361_v27  ;;  %v3987_v2 = vrot.slane %v3977_v0, 1  ;;  %v4603_v27 = vsel %vm1153_vm2, %v4600_v58, %v4602_v35  ;;  %v4605_v56 = vsel %vm1153_vm2, %v4602_v35, %v4604_v57 }
 0x4f8   : > { %v9572_v63 = vadd.f32 %v3935_v18, %v9341_v3  ;;  %v3978_v3 = vmul.f32 %v9478_v38, %v8402_v50  ;;  %v4634_v43 = vrot.slane %v4624_v8, 2  ;;  %v4627_v8 = vmul.f32 %v4623_v23, %v8497_v13 }
 0x4f9   : > { %v4641_v35 = vrot.slane %v4628_v37, 2 }
 0x4fa   : > { %v3988_v21 = vrot.slane %v3978_v3, 1  ;;  %v4636_v7 = vsel %vm1153_vm2, %v4634_v43, %v4635_v33  ;;  %v4006_v3 = vmul.f32 %v9502_v36, %v8347_v44 }
 0x4fb   : > { %4606 = vrot.lane.b32.xlu1 %v4599_v32, %s5316_s17  ;;  %4608 = vrot.lane.b32.xlu2 %v4601_v11, %s5316_s17  ;;  %v4052_v32 = vrot.slane %v4039_v47, 1  ;;  %v4626_v11 = vmul.f32 %v4623_v23, %v8449_v17  ;;  %v3981_v47 = vmul.f32 %v9478_v38, %v10799_v25 }
 0x4fc   : > { %v3991_v1 = vsel %vm740_vm1, %v3988_v21, %v3990_v19  ;;  %v3989_v23 = vsel %vm740_vm1, %v3987_v2, %v3988_v21  ;;  %v4016_v43 = vrot.slane %v4006_v3, 1 }
 0x4fd   : > { %4575 = vrot.lane.b32.xlu0 %v4568_v34, %s5316_s17  ;;  %v4088_v5 = vpop.permute.xlu1 %4087  ;;  %v4195_v10 = vpop.permute.xlu2 %4194  ;;  %v4053_v58 = vsel %vm740_vm1, %v4050_v22, %v4052_v32  ;;  %v4001_v34 = vadd.f32 %v3991_v1, %v9470_v45  ;;  %v4000_v19 = vadd.f32 %v3989_v23, %v9381_v26  ;;  %v4637_v28 = vrot.slane %v4626_v11, 2 }
 0x4fe   : > { %v4097_v49 = vadd.f32 %v4088_v5, %v3973_v46  ;;  %v9607_v18 = vadd.f32 %v4195_v10, %v4058_v60  ;;  %v4061_v62 = vadd.f32 %v4053_v58, %v3945_v41  ;;  %v4660_v60 = vstv %s9605_s25 }
 0x4ff   : > { %v4086_v16 = vpop.permute.xlu0 %4085  ;;  %v4639_v10 = vrot.slane %v4627_v8, 2  ;;  %v3994_v41 = vrot.slane %v3981_v47, 1  ;;  %v4662_v38 = vmul.f32 %v4660_v60, %v8402_v50  ;;  %v4663_v26 = vmul.f32 %v4660_v60, %v8449_v17 }
 0x500   : > { %v9609_v6 = vadd.f32 %v4086_v16, %v3972_v52  ;;  %v4638_v16 = vsel %vm1153_vm2, %v4635_v33, %v4637_v28  ;;  %v4661_v32 = vmul.f32 %v4660_v60, %v8347_v44  ;;  %v4664_v2 = vmul.f32 %v4660_v60, %v8497_v13 }
 0x501   : > { %v4640_v57 = vsel %vm1153_vm2, %v4637_v28, %v4639_v10  ;;  %v4642_v21 = vsel %vm1153_vm2, %v4639_v10, %v4641_v35  ;;  %v4018_v33 = vsel %vm740_vm1, %v4016_v43, %v4017_v15  ;;  %v4010_v11 = vmul.f32 %v9502_v36, %v10799_v25 }
 0x502   : > { %v4672_v1 = vrot.slane %v4662_v38, 2  ;;  %v4674_v15 = vrot.slane %v4663_v26, 2  ;;  %v4676_v23 = vrot.slane %v4664_v2, 2  ;;  %v4671_v47 = vrot.slane %v4661_v32, 2 }
 0x503   : > { %4612 = vrot.lane.b32.xlu1 %v4605_v56, %s5316_s17  ;;  %4643 = vrot.lane.b32.xlu2 %v4636_v7, %s5315_s16  ;;  %v4029_v56 = vadd.f32 %v4018_v33, %v9499_v51  ;;  %v3995_v7 = vsel %vm740_vm1, %v3992_v54, %v3994_v41  ;;  %v4037_v43 = vmul.f32 %v9534_v61, %v8449_v17 }
 0x504   : > { %v4003_v37 = vadd.f32 %v3995_v7, %v9400_v29  ;;  %v4675_v54 = vsel %vm1153_vm2, %v4672_v1, %v4674_v15  ;;  %v4677_v29 = vsel %vm1153_vm2, %v4674_v15, %v4676_v23 }
 0x505   : > { %4610 = vrot.lane.b32.xlu0 %v4603_v27, %s5316_s17  ;;  %v4123_v30 = vpop.permute.xlu1 %4122  ;;  %v4201_v46 = vpop.permute.xlu2 %4200  ;;  %s5110_s17 = sld [smem:[#allocation2 + $0x6b]]  ;;  %v4009_v27 = vmul.f32 %v9502_v36, %v8497_v13 }
 0x506   : > { %v4133_v0 = vadd.f32 %v4123_v30, %v4001_v34  ;;  %v9635_v52 = vadd.f32 %v4201_v46, %v4061_v62  ;;  %v4023_v30 = vrot.slane %v4010_v11, 1 }
 0x507   : > { %v4121_v5 = vpop.permute.xlu0 %4120  ;;  %v4021_v51 = vrot.slane %v4009_v27, 1  ;;  %v4048_v27 = vrot.slane %v4037_v43, 1  ;;  %v9723_v43 = vstv %s5100_s6  ;;  %s4815_s6 = scalar_lea.sflag [#allocation3], %s242_s10 }
 0x508   : > { %v9637_v45 = vadd.f32 %v4121_v5, %v4000_v19  ;;  %v4665_v5 = vmul.f32 %v4660_v60, %v10799_v25 }
 0x509   : > { %v4024_v28 = vsel %vm740_vm1, %v4021_v51, %v4023_v30  ;;  %v4022_v35 = vsel %vm740_vm1, %v4019_v24, %v4021_v51 }
 0x50a   : > { %v4032_v10 = vadd.f32 %v4024_v28, %v9537_v48  ;;  %v4678_v48 = vrot.slane %v4665_v5, 2 }
 0x50b   : > { %4647 = vrot.lane.b32.xlu1 %v4640_v57, %s5315_s16  ;;  %4649 = vrot.lane.b32.xlu2 %v4642_v21, %s5315_s16  ;;  %v4697_v36 = vstv %s5110_s17  ;;  %s4826_s17 = scalar_lea.hbm %s10018_s5, %s5140_s23 }
 0x50c   : > { %v4698_v31 = vmul.f32 %v4697_v36, %v8347_v44  ;;  %v4699_v19 = vmul.f32 %v4697_v36, %v8402_v50  ;;  %v4700_v46 = vmul.f32 %v4697_v36, %v8449_v17  ;;  %v4701_v24 = vmul.f32 %v4697_v36, %v8497_v13  ;;  %s4829_s30 = sshll.u32 %s4826_s17, 4  ;;  %s4830_s30 = int_to_ptr.hbm [resolvable:$true] %s4829_s30 }
 0x50d   : > { %4645 = vrot.lane.b32.xlu0 %v4638_v16, %s5315_s16  ;;  %v4158_v8 = vpop.permute.xlu1 %4157  ;;  %v4236_v39 = vpop.permute.xlu2 %4235  ;;  %v4031_v16 = vadd.f32 %v4022_v35, %v9417_v20  ;;  %v4702_v61 = vmul.f32 %v4697_v36, %v10799_v25  ;;  %v4679_v7 = vsel %vm1153_vm2, %v4676_v23, %v4678_v48 }
 0x50e   : > { %v4169_v58 = vadd.f32 %v4158_v8, %v4029_v56  ;;  %v9661_v34 = vadd.f32 %v4236_v39, %v4097_v49  ;;  %v4673_v49 = vsel %vm1153_vm2, %v4671_v47, %v4672_v1  ;;  %v4708_v26 = vrot.slane %v4698_v31, 2 }
 0x50f   : > { %v4127_v3 = vpop.permute.xlu0 %4126  ;;  %v4709_v60 = vrot.slane %v4699_v19, 2  ;;  %v4711_v2 = vrot.slane %v4700_v46, 2  ;;  %v4735_v56 = vmul.f32 %v4734_v55, %v8347_v44  ;;  %v4051_v8 = vsel %vm740_vm1, %v4048_v27, %v4050_v22 }
 0x510   : > { %v9663_v62 = vadd.f32 %v4127_v3, %v4003_v37  ;;  %v4060_v37 = vadd.f32 %v4051_v8, %v9572_v63  ;;  %v4049_v39 = vsel %vm740_vm1, %v4046_v59, %v4048_v27  ;;  %v4713_v36 = vrot.slane %v4701_v24, 2 }
 0x511   : > { %v4710_v11 = vsel %vm1153_vm2, %v4708_v26, %v4709_v60  ;;  %v4712_v20 = vsel %vm1153_vm2, %v4709_v60, %v4711_v2  ;;  %v4059_v15 = vadd.f32 %v4049_v39, %v9440_v42  ;;  %v4715_v23 = vrot.slane %v4702_v61, 2 }
 0x512   : > { %v4745_v9 = vrot.slane %v4735_v56, 2  ;;  %v4738_v59 = vmul.f32 %v4734_v55, %v8497_v13  ;;  %v4739_v42 = vmul.f32 %v4734_v55, %v10799_v25  ;;  %v9736_v26 = vmul.f32 %v9723_v43, %v8449_v17 }
 0x513   : > { %4682 = vrot.lane.b32.xlu1 %v4675_v54, %s5315_s16  ;;  %4684 = vrot.lane.b32.xlu2 %v4677_v29, %s5315_s16  ;;  %v4716_v63 = vsel %vm1153_vm2, %v4713_v36, %v4715_v23  ;;  %v4714_v54 = vsel %vm1153_vm2, %v4711_v2, %v4713_v36  ;;  %v9746_v24 = vstv %s5101_s7  ;;  %s5255_s7 = sshra.s32 %s4830_s30, 4  ;;  %s5256_s7 = int_to_ptr.hbm [resolvable:$true] %s5255_s7 }
 0x514   : > { %v4750_v5 = vrot.slane %v4738_v59, 2  ;;  %v4373_v27 = vrot.slane %v9736_v26, 2  ;;  %v4393_v36 = vmul.f32 %v9746_v24, %v10799_v25  ;;  %p5262_p3 = scmp.lt.s32.totalorder %s5256_s7, %s10018_s5 }
 0x515   : > { %4680 = vrot.lane.b32.xlu0 %v4673_v49, %s5315_s16  ;;  %v4164_v41 = vpop.permute.xlu1 %4163  ;;  %v4271_v38 = vpop.permute.xlu2 %4270 }
 0x516   : > { %v4172_v57 = vadd.f32 %v4164_v41, %v4032_v10  ;;  %v9683_v32 = vadd.f32 %v4271_v38, %v4133_v0  ;;  %v4736_v0 = vmul.f32 %v4734_v55, %v8402_v50  ;;  %v4752_v10 = vrot.slane %v4739_v42, 2 }
 0x517   : > { %v4162_v21 = vpop.permute.xlu0 %4161 }
 0x518   : > { %v9685_v33 = vadd.f32 %v4162_v21, %v4031_v16  ;;  %v4746_v22 = vrot.slane %v4736_v0, 2  ;;  %v4753_v16 = vsel %vm1153_vm2, %v4750_v5, %v4752_v10 }
 0x51a   : > { %v4747_v40 = vsel %vm1153_vm2, %v4745_v9, %v4746_v22 }
 0x51b   : > { %4717 = vrot.lane.b32.xlu1 %v4710_v11, %s5315_s16  ;;  %4719 = vrot.lane.b32.xlu2 %v4712_v20, %s5315_s16  ;;  %v4389_v11 = vmul.f32 %v9746_v24, %v8347_v44 }
 0x51d   : > { %4686 = vrot.lane.b32.xlu0 %v4679_v7, %s5315_s16  ;;  %v4199_v1 = vpop.permute.xlu1 %4198  ;;  %v4306_v3 = vpop.permute.xlu2 %4305  ;;  %v4399_v39 = vrot.slane %v4389_v11, 2 }
 0x51e   : > { %v4208_v47 = vadd.f32 %v4199_v1, %v4060_v37  ;;  %v9705_v30 = vadd.f32 %v4306_v3, %v4169_v58  ;;  %v4737_v58 = vmul.f32 %v4734_v55, %v8449_v17  ;;  %v9768_v3 = vmul.f32 %v9746_v24, %v8497_v13 }
 0x51f   : > { %v4197_v51 = vpop.permute.xlu0 %4196 }
 0x520   : > { %v9707_v31 = vadd.f32 %v4197_v51, %v4059_v15  ;;  %v4748_v35 = vrot.slane %v4737_v58, 2 }
 0x522   : > { %v4751_v41 = vsel %vm1153_vm2, %v4748_v35, %v4750_v5  ;;  %v4749_v38 = vsel %vm1153_vm2, %v4746_v22, %v4748_v35 }
 0x523   : > { %4723 = vrot.lane.b32.xlu1 %v4716_v63, %s5315_s16  ;;  %4754 = vrot.lane.b32.xlu2 %v4747_v40, %s5315_s16  ;;  %v4404_v63 = vrot.slane %v9768_v3, 2  ;;  %v4406_v40 = vrot.slane %v4393_v36, 2 }
 0x525   : > { %4721 = vrot.lane.b32.xlu0 %v4714_v54, %s5315_s16  ;;  %v4234_v29 = vpop.permute.xlu1 %4233  ;;  %v4312_v19 = vpop.permute.xlu2 %4311  ;;  %v4407_v42 = vsel %vm1153_vm2, %v4404_v63, %v4406_v40 }
 0x526   : > { %v4244_v46 = vadd.f32 %v4234_v29, %v9609_v6  ;;  %v9721_v28 = vadd.f32 %v4312_v19, %v4172_v57  ;;  %v9732_v6 = vmul.f32 %v9723_v43, %v8402_v50 }
 0x527   : > { %v9719_v49 = vpop.permute.xlu0 %4231 }
 0x528   : > { %v4371_v55 = vrot.slane %v9732_v6, 2 }
 0x52a   : > { %v4374_v61 = vsel %vm1153_vm2, %v4371_v55, %v4373_v27 }
 0x52b   : > { %4758 = vrot.lane.b32.xlu1 %v4751_v41, %s5315_s16  ;;  %4760 = vrot.lane.b32.xlu2 %v4753_v16, %s5315_s16  ;;  %v4384_v20 = vadd.f32 %v4374_v61, %v4244_v46  ;;  %v9797_v41 = vstv %s5103_s8 }
 0x52c   : > { %v9807_v6 = vmul.f32 %v9797_v41, %v8402_v50 }
 0x52d   : > { %4756 = vrot.lane.b32.xlu0 %v4749_v38, %s5315_s16  ;;  %v4269_v57 = vpop.permute.xlu1 %4268  ;;  %v4347_v21 = vpop.permute.xlu2 %4346  ;;  %s5102_s16 = sld [smem:[#allocation2 + $0x69]] }
 0x52e   : > { %v4280_v60 = vadd.f32 %v4269_v57, %v9637_v45  ;;  %v9742_v48 = vadd.f32 %v4347_v21, %v4208_v47  ;;  %v9755_v45 = vmul.f32 %v9746_v24, %v8402_v50 }
 0x52f   : > { %v9740_v2 = vpop.permute.xlu0 %4237 }
 0x530   : > { %v4400_v1 = vrot.slane %v9755_v45, 2 }
 0x532   : > { %v4401_v15 = vsel %vm1153_vm2, %v4399_v39, %v4400_v1 }
 0x533   : > { %v9778_v59 = vstv %s5102_s16  ;;  %s5257_s16 = scalar_lea.hbm %s5256_s7, 128 }
 0x534   : > { %v9785_v54 = vmul.f32 %v9778_v59, %v8497_v13  ;;  %v9789_v19 = vmul.f32 %v9778_v59, %v8449_v17  ;;  %p5258_p0 = scmp.ne.s32.totalorder %s5256_s7, %s5257_s16  ;;  %p5263_p4 = scmp.lt.s32.totalorder %s5261_s11, %s5257_s16 }
 0x535   : > { %v4275_v56 = vpop.permute.xlu1 %4274  ;;  %v4498_v0 = vpop.permute.xlu2 %4497 }
 0x536   : > { %v4283_v7 = vadd.f32 %v4275_v56, %v9663_v62  ;;  %v9760_v37 = vadd.f32 %v4498_v0, %v4384_v20  ;;  %v4412_v62 = vadd.f32 %v4401_v15, %v4280_v60  ;;  %v4433_v35 = vrot.slane %v9785_v54, 2  ;;  %p5259_p1 = pnand %p5258_p0, %p5387_p5  ;;  %p5264_p7 = por %p5263_p4, %p5262_p3 }
 0x537   : > { %v9758_v8 = vpop.permute.xlu0 %4272  ;;  %v4431_v16 = vrot.slane %v9789_v19, 2  ;;  %v4458_v20 = vrot.slane %v9807_v6, 2  ;;  %v4360_v0 = vmul.f32 %v9723_v43, %v8347_v44 }
 0x538   : > { %v4415_v58 = vadd.f32 %v4407_v42, %v4283_v7  ;;  %v4363_v42 = vmul.f32 %v9723_v43, %v8497_v13  ;;  %p5260_p2 = pneg %p5259_p1 }
 0x539   : > { %v4434_v38 = vsel %vm1153_vm2, %v4431_v16, %v4433_v35  ;;  %v4370_v15 = vrot.slane %v4360_v0, 2 }
 0x53a   : > { %p5265_p8 = pnand %p5264_p7, %p5260_p2 }
 0x53b   : > { %v4372_v40 = vsel %vm1153_vm2, %v4370_v15, %v4371_v55  ;;  %v4246_v55 = vadd.f32 %v9740_v2, %v9496_v53 }
 0x53d   : > { %v4310_v23 = vpop.permute.xlu1 %4309  ;;  %v4533_v47 = vpop.permute.xlu2 %4532 }
 0x53e   : > { %v4319_v51 = vadd.f32 %v4310_v23, %v9685_v33  ;;  %v9775_v22 = vadd.f32 %v4533_v47, %v4412_v62  ;;  %v4243_v23 = vadd.f32 %v9719_v49, %v9466_v14  ;;  %v9840_v49 = vstv %s4770_s9 }
 0x53f   : > { %v9773_v9 = vpop.permute.xlu0 %4307 }
 0x540   : > { %v4443_v57 = vadd.f32 %v4434_v38, %v4319_v51  ;;  %v4318_v3 = vadd.f32 %v9773_v9, %v9569_v4 }
 0x545   : > { %v4345_v33 = vpop.permute.xlu1 %4344  ;;  %v4539_v29 = vpop.permute.xlu2 %4538 }
 0x546   : > { %v4355_v46 = vadd.f32 %v4345_v33, %v9707_v31  ;;  %v9794_v10 = vadd.f32 %v4539_v29, %v4415_v58  ;;  %v9811_v31 = vmul.f32 %v9797_v41, %v8449_v17  ;;  %v4364_v58 = vmul.f32 %v9723_v43, %v10799_v25 }
 0x547   : > { %v9792_v5 = vpop.permute.xlu0 %4342  ;;  %v4383_v33 = vadd.f32 %v4372_v40, %v4243_v23 }
 0x548   : > { %v4460_v56 = vrot.slane %v9811_v31, 2  ;;  %v4377_v38 = vrot.slane %v4364_v58, 2  ;;  %v4354_v19 = vadd.f32 %v9792_v5, %v9607_v18  ;;  %v4451_v18 = vmul.f32 %v9797_v41, %v10799_v25 }
 0x54a   : > { %v4461_v7 = vsel %vm1153_vm2, %v4458_v20, %v4460_v56  ;;  %v4464_v6 = vrot.slane %v4451_v18, 2 }
 0x54b   : > { %v4471_v39 = vadd.f32 %v4461_v7, %v4355_v46  ;;  %v4375_v46 = vrot.slane %v4363_v42, 2 }
 0x54d   : > { %v4496_v21 = vpop.permute.xlu1 %4495  ;;  %v4574_v60 = vpop.permute.xlu2 %4573  ;;  %v4378_v7 = vsel %vm1153_vm2, %v4375_v46, %v4377_v38 }
 0x54e   : > { %v9815_v11 = vadd.f32 %v4574_v60, %v4443_v57  ;;  %v4507_v29 = vadd.f32 %v4496_v21, %v4383_v33  ;;  %v4386_v21 = vadd.f32 %v4378_v7, %v4246_v55  ;;  %v4447_v55 = vmul.f32 %v9797_v41, %v8347_v44 }
 0x54f   : > { %v9813_v61 = vpop.permute.xlu0 %4348  ;;  %v9885_v7 = vstv %s5117_s14 }
 0x550   : > { %v4457_v4 = vrot.slane %v4447_v55, 2 }
 0x555   : > { %v4502_v36 = vpop.permute.xlu1 %4501  ;;  %v4609_v62 = vpop.permute.xlu2 %4608 }
 0x556   : > { %v9830_v51 = vadd.f32 %v4609_v62, %v4471_v39  ;;  %v4391_v39 = vmul.f32 %v9746_v24, %v8449_v17  ;;  %v4510_v15 = vadd.f32 %v4502_v36, %v4386_v21  ;;  %v4282_v62 = vadd.f32 %v9758_v8, %v9531_v12 }
 0x557   : > { %v9828_v47 = vpop.permute.xlu0 %4499  ;;  %v9864_v17 = vmul.f32 %v9778_v59, %v8402_v50 }
 0x558   : > { %v4402_v42 = vrot.slane %v4391_v39, 2 }
 0x559   : > { %v4429_v12 = vrot.slane %v9864_v17, 2 }
 0x55a   : > { %v4405_v33 = vsel %vm1153_vm2, %v4402_v42, %v4404_v63 }
 0x55b   : > { %v4414_v24 = vadd.f32 %v4405_v33, %v4282_v62  ;;  %v9900_v62 = vmul.f32 %v9797_v41, %v8497_v13  ;;  %v4357_v41 = vadd.f32 %v9813_v61, %v9635_v52 }
 0x55d   : > { %v4537_v14 = vpop.permute.xlu1 %4536  ;;  %v4644_v57 = vpop.permute.xlu2 %4643 }
 0x55e   : > { %v4655_v0 = vadd.f32 %v4644_v57, %v4507_v29  ;;  %v4546_v36 = vadd.f32 %v4537_v14, %v4414_v24  ;;  %v9869_v29 = vstv %s5112_s13  ;;  %v4432_v14 = vsel %vm1153_vm2, %v4429_v12, %v4431_v16 }
 0x55f   : > { %v9844_v60 = vpop.permute.xlu0 %4534 }
 0x560   : > { %v4772_v43 = vadd.f32 %v9840_v49, %v4655_v0  ;;  %v4442_v0 = vadd.f32 %v4432_v14, %v4318_v3  ;;  %v4418_v3 = vmul.f32 %v9778_v59, %v8347_v44 }
 0x562   : > { %4777 = vst.msk [vmem:[%s9848_s12] sm:$0xff] %vm4776_vm3, %v4772_v43 }
 0x565   : > { %v4572_v53 = vpop.permute.xlu1 %4571  ;;  %v4650_v2 = vpop.permute.xlu2 %4649 }
 0x566   : > { %v4658_v40 = vadd.f32 %v4650_v2, %v4510_v15  ;;  %v4582_v43 = vadd.f32 %v4572_v53, %v4442_v0  ;;  %v4376_v2 = vsel %vm1153_vm2, %v4373_v27, %v4375_v46  ;;  %v4459_v53 = vsel %vm1153_vm2, %v4457_v4, %v4458_v20 }
 0x567   : > { %v9856_v23 = vpop.permute.xlu0 %4569  ;;  %v4385_v5 = vadd.f32 %v4376_v2, %v9661_v34  ;;  %v4462_v27 = vrot.slane %v9900_v62, 2  ;;  %v9909_v20 = vstv %s5122_s15  ;;  %v4422_v4 = vmul.f32 %v9778_v59, %v10799_v25 }
 0x568   : > { %v4775_v58 = vadd.f32 %v9840_v49, %v4658_v40  ;;  %v4470_v40 = vadd.f32 %v4459_v53, %v4354_v19 }
 0x569   : > { %v4509_v26 = vadd.f32 %v9828_v47, %v4385_v5  ;;  %v4435_v17 = vrot.slane %v4422_v4, 2 }
 0x56a   : > { %4780 = vst.msk [vmem:[%s9848_s12 + $0x18] sm:$0xff] %vm4776_vm3, %v4775_v58 }
 0x56d   : > { %v4607_v8 = vpop.permute.xlu1 %4606  ;;  %v4685_v38 = vpop.permute.xlu2 %4684 }
 0x56e   : > { %v4694_v57 = vadd.f32 %v4685_v38, %v4546_v36  ;;  %v4618_v58 = vadd.f32 %v4607_v8, %v4470_v40  ;;  %v4403_v38 = vsel %vm1153_vm2, %v4400_v1, %v4402_v42  ;;  %v4428_v1 = vrot.slane %v4418_v3, 2 }
 0x56f   : > { %v9873_v63 = vpop.permute.xlu0 %4575  ;;  %v4413_v61 = vadd.f32 %v4403_v38, %v9683_v32 }
 0x570   : > { %v4785_v50 = vadd.f32 %v9869_v29, %v4694_v57  ;;  %v4465_v57 = vsel %vm1153_vm2, %v4462_v27, %v4464_v6 }
 0x572   : > { %5115 = vst.msk [vmem:[%s9848_s12 + $0x30] sm:$0xff] %vm4776_vm3, %v4785_v50  ;;  %v4473_v50 = vadd.f32 %v4465_v57, %v4357_v41 }
 0x575   : > { %v4613_v9 = vpop.permute.xlu1 %4612  ;;  %v4720_v21 = vpop.permute.xlu2 %4719 }
 0x576   : > { %v4730_v16 = vadd.f32 %v4720_v21, %v4582_v43  ;;  %v4621_v45 = vadd.f32 %v4613_v9, %v4473_v50 }
 0x577   : > { %v9889_v39 = vpop.permute.xlu0 %4610 }
 0x578   : > { %v4795_v15 = vadd.f32 %v9885_v7, %v4730_v16 }
 0x57a   : > { %5119 = vst.msk [vmem:[%s9848_s12 + $0x48] sm:$0xff] %vm4776_vm3, %v4795_v15 }
 0x57d   : > { %v4648_v46 = vpop.permute.xlu1 %4647  ;;  %v4755_v13 = vpop.permute.xlu2 %4754 }
 0x57e   : > { %v4657_v33 = vadd.f32 %v4648_v46, %v4509_v26  ;;  %v4766_v24 = vadd.f32 %v4755_v13, %v4618_v58 }
 0x57f   : > { %v4646_v34 = vpop.permute.xlu0 %4645 }
 0x580   : > { %v4656_v36 = vadd.f32 %v4646_v34, %v9760_v37  ;;  %v4774_v47 = vadd.f32 %v9840_v49, %v4657_v33  ;;  %v4805_v8 = vadd.f32 %v9909_v20, %v4766_v24  ;;  %v4545_v37 = vadd.f32 %v9844_v60, %v4413_v61 }
 0x581   : > { %v4430_v60 = vsel %vm1153_vm2, %v4428_v1, %v4429_v12 }
 0x582   : > { %v4773_v52 = vadd.f32 %v9840_v49, %v4656_v36  ;;  %4779 = vst.msk [vmem:[%s9848_s12 + $0x10] sm:$0xff] %vm4776_vm3, %v4774_v47  ;;  %v4441_v21 = vadd.f32 %v4430_v60, %v9705_v30  ;;  %v4436_v30 = vsel %vm1153_vm2, %v4433_v35, %v4435_v17  ;;  %v4463_v35 = vsel %vm1153_vm2, %v4460_v56, %v4462_v27 }
 0x583   : > { %5123 = vst.msk [vmem:[%s9848_s12 + $0x60] sm:$0xff] %vm4776_vm3, %v4805_v8 }
 0x584   : > { %4778 = vst.msk [vmem:[%s9848_s12 + $0x8] sm:$0xff] %vm4776_vm3, %v4773_v52 }
 0x585   : > { %v4683_v44 = vpop.permute.xlu1 %4682  ;;  %v4761_v42 = vpop.permute.xlu2 %4760 }
 0x586   : > { %v4693_v14 = vadd.f32 %v4683_v44, %v4545_v37  ;;  %v4769_v55 = vadd.f32 %v4761_v42, %v4621_v45 }
 0x587   : > { %v4681_v49 = vpop.permute.xlu0 %4680 }
 0x588   : > { %v4692_v32 = vadd.f32 %v4681_v49, %v9775_v22  ;;  %v4784_v0 = vadd.f32 %v9869_v29, %v4693_v14  ;;  %v4808_v43 = vadd.f32 %v9909_v20, %v4769_v55  ;;  %v4581_v22 = vadd.f32 %v9856_v23, %v4441_v21 }
 0x589   : > { %v4444_v23 = vadd.f32 %v4436_v30, %v9721_v28 }
 0x58a   : > { %v4783_v9 = vadd.f32 %v9869_v29, %v4692_v32  ;;  %5114 = vst.msk [vmem:[%s9848_s12 + $0x28] sm:$0xff] %vm4776_vm3, %v4784_v0 }
 0x58b   : > { %5126 = vst.msk [vmem:[%s9848_s12 + $0x78] sm:$0xff] %vm4776_vm3, %v4808_v43  ;;  %v4584_v2 = vadd.f32 %v9873_v63, %v4444_v23 }
 0x58c   : > { %5113 = vst.msk [vmem:[%s9848_s12 + $0x20] sm:$0xff] %vm4776_vm3, %v4783_v9 }
 0x58d   : > { %v4718_v19 = vpop.permute.xlu1 %4717 }
 0x58e   : > { %v4729_v12 = vadd.f32 %v4718_v19, %v4581_v22 }
 0x58f   : > { %v4687_v16 = vpop.permute.xlu0 %4686 }
 0x590   : > { %v4695_v25 = vadd.f32 %v4687_v16, %v9794_v10  ;;  %v4794_v59 = vadd.f32 %v9885_v7, %v4729_v12 }
 0x592   : > { %v4786_v15 = vadd.f32 %v9869_v29, %v4695_v25  ;;  %5118 = vst.msk [vmem:[%s9848_s12 + $0x40] sm:$0xff] %vm4776_vm3, %v4794_v59  ;;  %v4472_v29 = vadd.f32 %v4463_v35, %v9742_v48 }
 0x594   : > { %5116 = vst.msk [vmem:[%s9848_s12 + $0x38] sm:$0xff] %vm4776_vm3, %v4786_v15 }
 0x595   : > { %v4724_v10 = vpop.permute.xlu1 %4723 }
 0x596   : > { %v4732_v53 = vadd.f32 %v4724_v10, %v4584_v2 }
 0x597   : > { %v4722_v62 = vpop.permute.xlu0 %4721 }
 0x598   : > { %v4731_v54 = vadd.f32 %v4722_v62, %v9815_v11  ;;  %v4797_v18 = vadd.f32 %v9885_v7, %v4732_v53  ;;  %v4620_v11 = vadd.f32 %v9889_v39, %v4472_v29 }
 0x59a   : > { %v4796_v28 = vadd.f32 %v9885_v7, %v4731_v54  ;;  %5121 = vst.msk [vmem:[%s9848_s12 + $0x58] sm:$0xff] %vm4776_vm3, %v4797_v18 }
 0x59c   : > { %5120 = vst.msk [vmem:[%s9848_s12 + $0x50] sm:$0xff] %vm4776_vm3, %v4796_v28 }
 0x59d   : > { %v4759_v31 = vpop.permute.xlu1 %4758 }
 0x59e   : > { %v4768_v56 = vadd.f32 %v4759_v31, %v4620_v11 }
 0x59f   : > { %v4757_v63 = vpop.permute.xlu0 %4756 }
 0x5a0   : > { %v4767_v48 = vadd.f32 %v4757_v63, %v9830_v51  ;;  %v4807_v7 = vadd.f32 %v9909_v20, %v4768_v56 }
 0x5a2   : > { %v4806_v5 = vadd.f32 %v9909_v20, %v4767_v48  ;;  %5125 = vst.msk [vmem:[%s9848_s12 + $0x70] sm:$0xff] %vm4776_vm3, %v4807_v7 }
 0x5a4   : > { %5124 = vst.msk [vmem:[%s9848_s12 + $0x68] sm:$0xff] %vm4776_vm3, %v4806_v5 }
 0x5a5   : > { %5268 = shalt.err (!%p5265_p8)
}
 0x5a6   : > { %s5317_s10 = smov 128   ;;  %s5318_s12 = smov 8  }
 0x5a7   : > { %5151 = dma.vmem_to_hbm [thread:$0]  (%p5387_p5), %s4828_s22, 2048, %s4830_s30, %s4815_s6, %s5317_s10, %s5317_s10, %s5318_s12  }
 0x5a8 PF: > { %p5168_p9 = scmp.ge.s32.totalorder %s5311_s21, 2  ;;  %s4844_s15 = sand.u32 1, %s5299_s18  }
 0x5a9   : > { %s4845_s23 = scalar_lea.sflag [#allocation3], %s4844_s15 }
 0x5aa   : > { %p5161_p10 = pnand %p5168_p9, %p5391_p6 }
 0x5ac   : > { %p5162_p11 = pneg %p5161_p10 }
 0x5ae   : > { %5294 = dma.done.wait (%p5162_p11), %s4845_s23, 2048  }
 0x5af   : > { %5296 = vsyncadd (%p5162_p11), %s4845_s23, 4294965248  ;;  %p17_p12 = scmp.ge.s32.totalorder %s5374_s24, 4   ;;  %s10800_s18 = smov %s5303_s19 }
 0x5b0   : > { %s10801_s19 = smov %s5307_s20  ;;  %s10802_s20 = smov %s5385_s27 }
 0x5b1   : > { %s10803_s21 = smov %s5374_s24  ;;  %19 = sbr.rel (!%p17_p12) target bundleno = 5 (0x5), region = 87 }
 0x5b6   :  { %4851 = vsyncpa [#allocation3], 1 }
 0x5b7   :  { %4853 = vsyncpa [#allocation3 + $0x1], 1 }
 0x5b8   :  { %4854 = vsyncpa [#allocation4], 1 }
 0x5b9   :  { %4856 = vsyncpa [#allocation4 + $0x1], 1 }
 0x5ba   :  { %4857 = vsyncpa [#allocation6], 1 }

</bundles_post_ra>
